<compile_context>
chip_gen: v7x
topology: tpu7x:2x2x1
jax: 0.10.0
libtpu: 0.0.40
codegen_flags: <defaults>
</compile_context>

<pallas_src>
import jax
import jax.numpy as jnp
from jax import lax
from jax.experimental import pallas as pl
from jax.experimental.pallas import tpu as pltpu
import numpy as np

N_RIS = 32
N_R = 1                      # N_r (free global in the original script); pick 1
D = 2 * N_RIS * N_R          # = 64 feature dim of h
N_LAYERS = 15


def _make_ris_kernel(block_b):
    """Kernel specialized (at trace time) for `block_b` batch elements/step."""

    def ris_kernel(mus_ref, h_ref, a_ref, y_ref, w_ref, b_ref, wp_ref, bp_ref,
                   out_ref):
        # mus_ref : SMEM (2*N_LAYERS,)  clamped (mu0, mu1) per layer, flattened
        # h_ref   : VMEM (BB, K, D)
        # a_ref   : VMEM (BB, M, D)
        # y_ref   : VMEM (BB, K, M)
        # w_ref   : VMEM (15, D, D)     (W_i^T - mu2_i * I) stacked
        # b_ref   : VMEM (15, D)
        # wp_ref  : VMEM (D, D)         predict1 weight^T
        # bp_ref  : VMEM (1, D)
        # out_ref : VMEM (BB, K, D)
        K = h_ref.shape[1]

        # --- per-batch iteration-invariant terms, computed once -------------
        #   Z = y @ A          (K, D)  == transpose(A^T y^T)
        #   G = A^T A          (D, D)  (contracted leading dim, no A.T copy)
        hs, Zs, Gs = [], [], []
        for bb in range(block_b):
            A = a_ref[bb]                       # (M, D)
            y = y_ref[bb]                       # (K, M)
            Zs.append(jnp.dot(y, A, preferred_element_type=jnp.float32))
            Gs.append(lax.dot_general(
                A, A, dimension_numbers=(((0,), (0,)), ((), ())),
                preferred_element_type=jnp.float32))
            hs.append(h_ref[bb])                # (K, D)

        # --- 15 layers, layer-outer so W_i / b_i / mus load once per layer --
        for i in range(N_LAYERS):
            w_i = w_ref[i]                      # (D, D), mu2 already folded in
            b_i = b_ref[pl.ds(i, 1)]            # (1, D)
            mu0 = mus_ref[2 * i + 0]
            mu1 = mus_ref[2 * i + 1]
            for bb in range(block_b):
                # Fused:  h (W^T - mu2 I - mu1 G) + (b + mu0 Z)
                w_eff = w_i - mu1 * Gs[bb]                 # (D, D)
                b_eff = b_i + mu0 * Zs[bb]                 # (K, D) via broadcast
                hs[bb] = jnp.maximum(
                    jnp.dot(hs[bb], w_eff,
                            preferred_element_type=jnp.float32) + b_eff,
                    0.0)

        # --- predict1, batched across the block ------------------------------
        wp = wp_ref[...]
        bp = bp_ref[...]
        h_all = jnp.concatenate(hs, axis=0) if block_b > 1 else hs[0]  # (BB*K, D)
        out = jnp.dot(h_all, wp, preferred_element_type=jnp.float32) + bp
        out_ref[...] = out.astype(out_ref.dtype).reshape(block_b, K, D)

    return ris_kernel


def _device_traits():
    """(tensorcores_per_device, vreg-pressure cap on block_b)."""
    try:
        kind = jax.devices()[0].device_kind.lower()
    except Exception:  # pragma: no cover - be conservative
        kind = ""
    megacore = any(t in kind for t in ("v4", "v5p", "v7"))
    num_tc = 2 if megacore else 1
    # ~10 persistent vregs per batch chain (G:8, Z:1, h:1); keep block_b small.
    vreg_cap = 2 if ("v5 lite" in kind or "v5e" in kind) else 4
    return num_tc, vreg_cap


def _pick_block_b(batch, num_tc, vreg_cap):
    divisors = [d for d in range(1, batch + 1)
                if batch % d == 0 and d <= max(1, vreg_cap)]
    if num_tc >= 2:
        # Keep >=2 grid steps so both TensorCores get a batch block.
        multi = [d for d in divisors if batch // d >= 2]
        if multi:
            return max(multi)
    # Single TC: minimize grid steps (each costs ~0.35us of pure overhead).
    return max(divisors)


def simple_net_forward(h, A, y, params, block_b=None):
    B, K, Dh = h.shape
    M = A.shape[1]
    assert Dh == D
    if block_b is None:
        num_tc, vreg_cap = _device_traits()
        block_b = _pick_block_b(B, num_tc, vreg_cap)
    assert B % block_b == 0
    grid_b = B // block_b

    # torch.clamp(Mus, 0, 1) happens before every use; the forward pass never
    # updates Mus, so clamping once up front is equivalent.
    mus = jnp.clip(params["mus"], 0.0, 1.0)                 # (15, 3)
    # Pre-fold mu2 into the (already transposed) weights:  h@(W^T - mu2*I).
    eye = jnp.eye(D, dtype=jnp.float32)
    Wt_eff = params["Wt"] - mus[:, 2][:, None, None] * eye[None]   # (15, D, D)
    # Only mu0/mu1 are needed in-kernel; flatten to 1-D so the SMEM allocation
    # is not padded to a [8,128]-word tile.
    mus01 = mus[:, :2].reshape(-1)                          # (30,)
    # sigma1/sigma2 are clamped too but never used in forward.
    # TODO(synk): sigma1/sigma2 and predict2/3/4 are dead in forward(); omitted.

    b = params["b"]         # (15, D)
    wpt = params["wpt"]     # (D, D)
    bp = params["bp"]       # (1, D)

    kernel = _make_ris_kernel(block_b)

    return pl.pallas_call(
        kernel,
        out_shape=jax.ShapeDtypeStruct((B, K, D), jnp.float32),
        grid=(grid_b,),
        in_specs=[
            pl.BlockSpec(memory_space=pltpu.MemorySpace.SMEM),            # mus
            pl.BlockSpec((block_b, K, D), lambda g: (g, 0, 0)),           # h
            pl.BlockSpec((block_b, M, D), lambda g: (g, 0, 0)),           # A
            pl.BlockSpec((block_b, K, M), lambda g: (g, 0, 0)),           # y
            pl.BlockSpec((N_LAYERS, D, D), lambda g: (0, 0, 0)),          # Wt_eff
            pl.BlockSpec((N_LAYERS, D), lambda g: (0, 0)),                # b
            pl.BlockSpec((D, D), lambda g: (0, 0)),                       # wpt
            pl.BlockSpec((1, D), lambda g: (0, 0)),                       # bp
        ],
        out_specs=pl.BlockSpec((block_b, K, D), lambda g: (g, 0, 0)),
        compiler_params=pltpu.CompilerParams(
            dimension_semantics=("parallel",)),
    )(mus01, h, A, y, Wt_eff, b, wpt, bp)


def reference_forward(h, A, y, params):
    """Pure-JAX reference mirroring the PyTorch forward (unfused form)."""
    hp = jax.lax.Precision.HIGHEST
    mus = jnp.clip(params["mus"], 0.0, 1.0)
    Z = jnp.einsum("bkm,bmd->bkd", y, A, precision=hp)          # (y A)
    G = jnp.einsum("bmd,bme->bde", A, A, precision=hp)          # A^T A
    for i in range(N_LAYERS):
        lin = jnp.einsum("bkd,de->bke", h, params["Wt"][i], precision=hp) + params["b"][i]
        hg = jnp.einsum("bkd,bde->bke", h, G, precision=hp)
        h = jax.nn.relu(lin + mus[i, 0] * Z - mus[i, 1] * hg - mus[i, 2] * h)
    return jnp.einsum("bkd,de->bke", h, params["wpt"], precision=hp) + params["bp"]


def init_params(key):
    """Deterministic init matching the PyTorch module's shapes.

    nn.Linear default init is U(-1/sqrt(fan_in), 1/sqrt(fan_in)); Mus = 0.001.
    Weights are stored pre-transposed (fan_in x fan_out) for h @ W^T.
    """
    bound = 1.0 / np.sqrt(D)
    keys = jax.random.split(key, 4)
    Wt = jax.random.uniform(keys[0], (N_LAYERS, D, D), jnp.float32, -bound, bound)
    b = jax.random.uniform(keys[1], (N_LAYERS, D), jnp.float32, -bound, bound)
    wpt = jax.random.uniform(keys[2], (D, D), jnp.float32, -bound, bound)
    bp = jax.random.uniform(keys[3], (1, D), jnp.float32, -bound, bound)
    mus = jnp.full((N_LAYERS, 3), 0.001, jnp.float32)
    return {"Wt": Wt, "b": b, "wpt": wpt, "bp": bp, "mus": mus}


if __name__ == "__main__":
    B, K, M = 4, 8, 16        # batch, rows of h/y, measurement dim

    key = jax.random.PRNGKey(0)
    k_h, k_a, k_y, k_p = jax.random.split(key, 4)
    h = jax.random.normal(k_h, (B, K, D), jnp.float32)
    A = jax.random.normal(k_a, (B, M, D), jnp.float32) / np.sqrt(M)
    y = jax.random.normal(k_y, (B, K, M), jnp.float32)
    params = init_params(k_p)

    out = jax.block_until_ready(simple_net_forward(h, A, y, params))
    ref = jax.block_until_ready(reference_forward(h, A, y, params))

    assert out.shape == (B, K, D), out.shape
    np.testing.assert_allclose(np.asarray(out), np.asarray(ref), rtol=1e-2, atol=1e-2)
    print("KERNEL_OK")
</pallas_src>

<mosaic_0001>
module attributes {stable_mosaic.version = 11 : i64} {
  func.func @ris_kernel(%arg0: i32, %arg1: memref<30xf32, #tpu.memory_space<smem>>, %arg2: memref<4x8x64xf32, #tpu.memory_space<vmem>>, %arg3: memref<4x16x64xf32, #tpu.memory_space<vmem>>, %arg4: memref<4x8x16xf32, #tpu.memory_space<vmem>>, %arg5: memref<15x64x64xf32, #tpu.memory_space<vmem>>, %arg6: memref<15x64xf32, #tpu.memory_space<vmem>>, %arg7: memref<64x64xf32, #tpu.memory_space<vmem>>, %arg8: memref<1x64xf32, #tpu.memory_space<vmem>>, %arg9: memref<4x8x64xf32, #tpu.memory_space<vmem>>) attributes {dimension_semantics = [#tpu.dimension_semantics<parallel>], iteration_bounds = array<i64: 1>, scalar_prefetch = 0 : i64, scratch_operands = 0 : i64, tpu.core_type = #tpu.core_type<tc>, window_params = [{transform_indices = @transform_0, window_bounds = array<i64: 30>}, {transform_indices = @transform_1, window_bounds = array<i64: 4, 8, 64>}, {transform_indices = @transform_2, window_bounds = array<i64: 4, 16, 64>}, {transform_indices = @transform_3, window_bounds = array<i64: 4, 8, 16>}, {pipeline_mode = #tpu.pipeline_mode<synchronous>, transform_indices = @transform_4, window_bounds = array<i64: 15, 64, 64>}, {pipeline_mode = #tpu.pipeline_mode<synchronous>, transform_indices = @transform_5, window_bounds = array<i64: 15, 64>}, {pipeline_mode = #tpu.pipeline_mode<synchronous>, transform_indices = @transform_6, window_bounds = array<i64: 64, 64>}, {pipeline_mode = #tpu.pipeline_mode<synchronous>, transform_indices = @transform_7, window_bounds = array<i64: 1, 64>}, {transform_indices = @transform_8, window_bounds = array<i64: 4, 8, 64>}]} {
    %c0 = arith.constant 0 : index
    %c0_0 = arith.constant 0 : index
    %c0_1 = arith.constant 0 : index
    %0 = vector.load %arg3[%c0, %c0_0, %c0_1] : memref<4x16x64xf32, #tpu.memory_space<vmem>>, vector<1x16x64xf32>
    %1 = vector.shape_cast %0 : vector<1x16x64xf32> to vector<16x64xf32>
    %c0_2 = arith.constant 0 : index
    %c0_3 = arith.constant 0 : index
    %c0_4 = arith.constant 0 : index
    %2 = vector.load %arg4[%c0_2, %c0_3, %c0_4] : memref<4x8x16xf32, #tpu.memory_space<vmem>>, vector<1x8x16xf32>
    %3 = vector.shape_cast %2 : vector<1x8x16xf32> to vector<8x16xf32>
    %cst = arith.constant dense<0.000000e+00> : vector<8x64xf32>
    %4 = tpu.matmul %3, %1, %cst {dimension_numbers = #tpu.dot_dimension_numbers<[1], [0], [0], [1], [0, 0, 1, 1], [], []>} : vector<8x16xf32>, vector<16x64xf32>, vector<8x64xf32> -> vector<8x64xf32>
    %cst_5 = arith.constant dense<0.000000e+00> : vector<64x64xf32>
    %5 = tpu.matmul %1, %1, %cst_5 {dimension_numbers = #tpu.dot_dimension_numbers<[0], [0], [1], [1], [0, 1, 1, 1], [], []>} : vector<16x64xf32>, vector<16x64xf32>, vector<64x64xf32> -> vector<64x64xf32>
    %c0_6 = arith.constant 0 : index
    %c0_7 = arith.constant 0 : index
    %c0_8 = arith.constant 0 : index
    %6 = vector.load %arg2[%c0_6, %c0_7, %c0_8] : memref<4x8x64xf32, #tpu.memory_space<vmem>>, vector<1x8x64xf32>
    %7 = vector.shape_cast %6 : vector<1x8x64xf32> to vector<8x64xf32>
    %c1 = arith.constant 1 : index
    %c0_9 = arith.constant 0 : index
    %c0_10 = arith.constant 0 : index
    %8 = vector.load %arg3[%c1, %c0_9, %c0_10] : memref<4x16x64xf32, #tpu.memory_space<vmem>>, vector<1x16x64xf32>
    %9 = vector.shape_cast %8 : vector<1x16x64xf32> to vector<16x64xf32>
    %c1_11 = arith.constant 1 : index
    %c0_12 = arith.constant 0 : index
    %c0_13 = arith.constant 0 : index
    %10 = vector.load %arg4[%c1_11, %c0_12, %c0_13] : memref<4x8x16xf32, #tpu.memory_space<vmem>>, vector<1x8x16xf32>
    %11 = vector.shape_cast %10 : vector<1x8x16xf32> to vector<8x16xf32>
    %cst_14 = arith.constant dense<0.000000e+00> : vector<8x64xf32>
    %12 = tpu.matmul %11, %9, %cst_14 {dimension_numbers = #tpu.dot_dimension_numbers<[1], [0], [0], [1], [0, 0, 1, 1], [], []>} : vector<8x16xf32>, vector<16x64xf32>, vector<8x64xf32> -> vector<8x64xf32>
    %cst_15 = arith.constant dense<0.000000e+00> : vector<64x64xf32>
    %13 = tpu.matmul %9, %9, %cst_15 {dimension_numbers = #tpu.dot_dimension_numbers<[0], [0], [1], [1], [0, 1, 1, 1], [], []>} : vector<16x64xf32>, vector<16x64xf32>, vector<64x64xf32> -> vector<64x64xf32>
    %c1_16 = arith.constant 1 : index
    %c0_17 = arith.constant 0 : index
    %c0_18 = arith.constant 0 : index
    %14 = vector.load %arg2[%c1_16, %c0_17, %c0_18] : memref<4x8x64xf32, #tpu.memory_space<vmem>>, vector<1x8x64xf32>
    %15 = vector.shape_cast %14 : vector<1x8x64xf32> to vector<8x64xf32>
    %c2 = arith.constant 2 : index
    %c0_19 = arith.constant 0 : index
    %c0_20 = arith.constant 0 : index
    %16 = vector.load %arg3[%c2, %c0_19, %c0_20] : memref<4x16x64xf32, #tpu.memory_space<vmem>>, vector<1x16x64xf32>
    %17 = vector.shape_cast %16 : vector<1x16x64xf32> to vector<16x64xf32>
    %c2_21 = arith.constant 2 : index
    %c0_22 = arith.constant 0 : index
    %c0_23 = arith.constant 0 : index
    %18 = vector.load %arg4[%c2_21, %c0_22, %c0_23] : memref<4x8x16xf32, #tpu.memory_space<vmem>>, vector<1x8x16xf32>
    %19 = vector.shape_cast %18 : vector<1x8x16xf32> to vector<8x16xf32>
    %cst_24 = arith.constant dense<0.000000e+00> : vector<8x64xf32>
    %20 = tpu.matmul %19, %17, %cst_24 {dimension_numbers = #tpu.dot_dimension_numbers<[1], [0], [0], [1], [0, 0, 1, 1], [], []>} : vector<8x16xf32>, vector<16x64xf32>, vector<8x64xf32> -> vector<8x64xf32>
    %cst_25 = arith.constant dense<0.000000e+00> : vector<64x64xf32>
    %21 = tpu.matmul %17, %17, %cst_25 {dimension_numbers = #tpu.dot_dimension_numbers<[0], [0], [1], [1], [0, 1, 1, 1], [], []>} : vector<16x64xf32>, vector<16x64xf32>, vector<64x64xf32> -> vector<64x64xf32>
    %c2_26 = arith.constant 2 : index
    %c0_27 = arith.constant 0 : index
    %c0_28 = arith.constant 0 : index
    %22 = vector.load %arg2[%c2_26, %c0_27, %c0_28] : memref<4x8x64xf32, #tpu.memory_space<vmem>>, vector<1x8x64xf32>
    %23 = vector.shape_cast %22 : vector<1x8x64xf32> to vector<8x64xf32>
    %c3 = arith.constant 3 : index
    %c0_29 = arith.constant 0 : index
    %c0_30 = arith.constant 0 : index
    %24 = vector.load %arg3[%c3, %c0_29, %c0_30] : memref<4x16x64xf32, #tpu.memory_space<vmem>>, vector<1x16x64xf32>
    %25 = vector.shape_cast %24 : vector<1x16x64xf32> to vector<16x64xf32>
    %c3_31 = arith.constant 3 : index
    %c0_32 = arith.constant 0 : index
    %c0_33 = arith.constant 0 : index
    %26 = vector.load %arg4[%c3_31, %c0_32, %c0_33] : memref<4x8x16xf32, #tpu.memory_space<vmem>>, vector<1x8x16xf32>
    %27 = vector.shape_cast %26 : vector<1x8x16xf32> to vector<8x16xf32>
    %cst_34 = arith.constant dense<0.000000e+00> : vector<8x64xf32>
    %28 = tpu.matmul %27, %25, %cst_34 {dimension_numbers = #tpu.dot_dimension_numbers<[1], [0], [0], [1], [0, 0, 1, 1], [], []>} : vector<8x16xf32>, vector<16x64xf32>, vector<8x64xf32> -> vector<8x64xf32>
    %cst_35 = arith.constant dense<0.000000e+00> : vector<64x64xf32>
    %29 = tpu.matmul %25, %25, %cst_35 {dimension_numbers = #tpu.dot_dimension_numbers<[0], [0], [1], [1], [0, 1, 1, 1], [], []>} : vector<16x64xf32>, vector<16x64xf32>, vector<64x64xf32> -> vector<64x64xf32>
    %c3_36 = arith.constant 3 : index
    %c0_37 = arith.constant 0 : index
    %c0_38 = arith.constant 0 : index
    %30 = vector.load %arg2[%c3_36, %c0_37, %c0_38] : memref<4x8x64xf32, #tpu.memory_space<vmem>>, vector<1x8x64xf32>
    %31 = vector.shape_cast %30 : vector<1x8x64xf32> to vector<8x64xf32>
    %c0_39 = arith.constant 0 : index
    %c0_40 = arith.constant 0 : index
    %c0_41 = arith.constant 0 : index
    %32 = vector.load %arg5[%c0_39, %c0_40, %c0_41] : memref<15x64x64xf32, #tpu.memory_space<vmem>>, vector<1x64x64xf32>
    %33 = vector.shape_cast %32 : vector<1x64x64xf32> to vector<64x64xf32>
    %c0_42 = arith.constant 0 : index
    %c0_43 = arith.constant 0 : index
    %34 = vector.load %arg6[%c0_42, %c0_43] : memref<15x64xf32, #tpu.memory_space<vmem>>, vector<1x64xf32>
    %c0_44 = arith.constant 0 : index
    %35 = memref.load %arg1[%c0_44] : memref<30xf32, #tpu.memory_space<smem>>
    %c1_45 = arith.constant 1 : index
    %36 = memref.load %arg1[%c1_45] : memref<30xf32, #tpu.memory_space<smem>>
    %37 = vector.broadcast %36 : f32 to vector<64x64xf32>
    %38 = arith.mulf %37, %5 : vector<64x64xf32>
    %39 = arith.subf %33, %38 : vector<64x64xf32>
    %40 = vector.broadcast %35 : f32 to vector<8x64xf32>
    %41 = arith.mulf %40, %4 : vector<8x64xf32>
    %42 = vector.broadcast %34 : vector<1x64xf32> to vector<8x64xf32>
    %43 = arith.addf %42, %41 : vector<8x64xf32>
    %cst_46 = arith.constant dense<0.000000e+00> : vector<8x64xf32>
    %44 = tpu.matmul %7, %39, %cst_46 {dimension_numbers = #tpu.dot_dimension_numbers<[1], [0], [0], [1], [0, 0, 1, 1], [], []>} : vector<8x64xf32>, vector<64x64xf32>, vector<8x64xf32> -> vector<8x64xf32>
    %45 = arith.addf %44, %43 : vector<8x64xf32>
    %cst_47 = arith.constant 0.000000e+00 : f32
    %46 = vector.broadcast %cst_47 : f32 to vector<8x64xf32>
    %47 = arith.maximumf %45, %46 : vector<8x64xf32>
    %48 = vector.broadcast %36 : f32 to vector<64x64xf32>
    %49 = arith.mulf %48, %13 : vector<64x64xf32>
    %50 = arith.subf %33, %49 : vector<64x64xf32>
    %51 = vector.broadcast %35 : f32 to vector<8x64xf32>
    %52 = arith.mulf %51, %12 : vector<8x64xf32>
    %53 = vector.broadcast %34 : vector<1x64xf32> to vector<8x64xf32>
    %54 = arith.addf %53, %52 : vector<8x64xf32>
    %cst_48 = arith.constant dense<0.000000e+00> : vector<8x64xf32>
    %55 = tpu.matmul %15, %50, %cst_48 {dimension_numbers = #tpu.dot_dimension_numbers<[1], [0], [0], [1], [0, 0, 1, 1], [], []>} : vector<8x64xf32>, vector<64x64xf32>, vector<8x64xf32> -> vector<8x64xf32>
    %56 = arith.addf %55, %54 : vector<8x64xf32>
    %cst_49 = arith.constant 0.000000e+00 : f32
    %57 = vector.broadcast %cst_49 : f32 to vector<8x64xf32>
    %58 = arith.maximumf %56, %57 : vector<8x64xf32>
    %59 = vector.broadcast %36 : f32 to vector<64x64xf32>
    %60 = arith.mulf %59, %21 : vector<64x64xf32>
    %61 = arith.subf %33, %60 : vector<64x64xf32>
    %62 = vector.broadcast %35 : f32 to vector<8x64xf32>
    %63 = arith.mulf %62, %20 : vector<8x64xf32>
    %64 = vector.broadcast %34 : vector<1x64xf32> to vector<8x64xf32>
    %65 = arith.addf %64, %63 : vector<8x64xf32>
    %cst_50 = arith.constant dense<0.000000e+00> : vector<8x64xf32>
    %66 = tpu.matmul %23, %61, %cst_50 {dimension_numbers = #tpu.dot_dimension_numbers<[1], [0], [0], [1], [0, 0, 1, 1], [], []>} : vector<8x64xf32>, vector<64x64xf32>, vector<8x64xf32> -> vector<8x64xf32>
    %67 = arith.addf %66, %65 : vector<8x64xf32>
    %cst_51 = arith.constant 0.000000e+00 : f32
    %68 = vector.broadcast %cst_51 : f32 to vector<8x64xf32>
    %69 = arith.maximumf %67, %68 : vector<8x64xf32>
    %70 = vector.broadcast %36 : f32 to vector<64x64xf32>
    %71 = arith.mulf %70, %29 : vector<64x64xf32>
    %72 = arith.subf %33, %71 : vector<64x64xf32>
    %73 = vector.broadcast %35 : f32 to vector<8x64xf32>
    %74 = arith.mulf %73, %28 : vector<8x64xf32>
    %75 = vector.broadcast %34 : vector<1x64xf32> to vector<8x64xf32>
    %76 = arith.addf %75, %74 : vector<8x64xf32>
    %cst_52 = arith.constant dense<0.000000e+00> : vector<8x64xf32>
    %77 = tpu.matmul %31, %72, %cst_52 {dimension_numbers = #tpu.dot_dimension_numbers<[1], [0], [0], [1], [0, 0, 1, 1], [], []>} : vector<8x64xf32>, vector<64x64xf32>, vector<8x64xf32> -> vector<8x64xf32>
    %78 = arith.addf %77, %76 : vector<8x64xf32>
    %cst_53 = arith.constant 0.000000e+00 : f32
    %79 = vector.broadcast %cst_53 : f32 to vector<8x64xf32>
    %80 = arith.maximumf %78, %79 : vector<8x64xf32>
    %c1_54 = arith.constant 1 : index
    %c0_55 = arith.constant 0 : index
    %c0_56 = arith.constant 0 : index
    %81 = vector.load %arg5[%c1_54, %c0_55, %c0_56] : memref<15x64x64xf32, #tpu.memory_space<vmem>>, vector<1x64x64xf32>
    %82 = vector.shape_cast %81 : vector<1x64x64xf32> to vector<64x64xf32>
    %c1_57 = arith.constant 1 : index
    %c0_58 = arith.constant 0 : index
    %83 = vector.load %arg6[%c1_57, %c0_58] : memref<15x64xf32, #tpu.memory_space<vmem>>, vector<1x64xf32>
    %c2_59 = arith.constant 2 : index
    %84 = memref.load %arg1[%c2_59] : memref<30xf32, #tpu.memory_space<smem>>
    %c3_60 = arith.constant 3 : index
    %85 = memref.load %arg1[%c3_60] : memref<30xf32, #tpu.memory_space<smem>>
    %86 = vector.broadcast %85 : f32 to vector<64x64xf32>
    %87 = arith.mulf %86, %5 : vector<64x64xf32>
    %88 = arith.subf %82, %87 : vector<64x64xf32>
    %89 = vector.broadcast %84 : f32 to vector<8x64xf32>
    %90 = arith.mulf %89, %4 : vector<8x64xf32>
    %91 = vector.broadcast %83 : vector<1x64xf32> to vector<8x64xf32>
    %92 = arith.addf %91, %90 : vector<8x64xf32>
    %cst_61 = arith.constant dense<0.000000e+00> : vector<8x64xf32>
    %93 = tpu.matmul %47, %88, %cst_61 {dimension_numbers = #tpu.dot_dimension_numbers<[1], [0], [0], [1], [0, 0, 1, 1], [], []>} : vector<8x64xf32>, vector<64x64xf32>, vector<8x64xf32> -> vector<8x64xf32>
    %94 = arith.addf %93, %92 : vector<8x64xf32>
    %cst_62 = arith.constant 0.000000e+00 : f32
    %95 = vector.broadcast %cst_62 : f32 to vector<8x64xf32>
    %96 = arith.maximumf %94, %95 : vector<8x64xf32>
    %97 = vector.broadcast %85 : f32 to vector<64x64xf32>
    %98 = arith.mulf %97, %13 : vector<64x64xf32>
    %99 = arith.subf %82, %98 : vector<64x64xf32>
    %100 = vector.broadcast %84 : f32 to vector<8x64xf32>
    %101 = arith.mulf %100, %12 : vector<8x64xf32>
    %102 = vector.broadcast %83 : vector<1x64xf32> to vector<8x64xf32>
    %103 = arith.addf %102, %101 : vector<8x64xf32>
    %cst_63 = arith.constant dense<0.000000e+00> : vector<8x64xf32>
    %104 = tpu.matmul %58, %99, %cst_63 {dimension_numbers = #tpu.dot_dimension_numbers<[1], [0], [0], [1], [0, 0, 1, 1], [], []>} : vector<8x64xf32>, vector<64x64xf32>, vector<8x64xf32> -> vector<8x64xf32>
    %105 = arith.addf %104, %103 : vector<8x64xf32>
    %cst_64 = arith.constant 0.000000e+00 : f32
    %106 = vector.broadcast %cst_64 : f32 to vector<8x64xf32>
    %107 = arith.maximumf %105, %106 : vector<8x64xf32>
    %108 = vector.broadcast %85 : f32 to vector<64x64xf32>
    %109 = arith.mulf %108, %21 : vector<64x64xf32>
    %110 = arith.subf %82, %109 : vector<64x64xf32>
    %111 = vector.broadcast %84 : f32 to vector<8x64xf32>
    %112 = arith.mulf %111, %20 : vector<8x64xf32>
    %113 = vector.broadcast %83 : vector<1x64xf32> to vector<8x64xf32>
    %114 = arith.addf %113, %112 : vector<8x64xf32>
    %cst_65 = arith.constant dense<0.000000e+00> : vector<8x64xf32>
    %115 = tpu.matmul %69, %110, %cst_65 {dimension_numbers = #tpu.dot_dimension_numbers<[1], [0], [0], [1], [0, 0, 1, 1], [], []>} : vector<8x64xf32>, vector<64x64xf32>, vector<8x64xf32> -> vector<8x64xf32>
    %116 = arith.addf %115, %114 : vector<8x64xf32>
    %cst_66 = arith.constant 0.000000e+00 : f32
    %117 = vector.broadcast %cst_66 : f32 to vector<8x64xf32>
    %118 = arith.maximumf %116, %117 : vector<8x64xf32>
    %119 = vector.broadcast %85 : f32 to vector<64x64xf32>
    %120 = arith.mulf %119, %29 : vector<64x64xf32>
    %121 = arith.subf %82, %120 : vector<64x64xf32>
    %122 = vector.broadcast %84 : f32 to vector<8x64xf32>
    %123 = arith.mulf %122, %28 : vector<8x64xf32>
    %124 = vector.broadcast %83 : vector<1x64xf32> to vector<8x64xf32>
    %125 = arith.addf %124, %123 : vector<8x64xf32>
    %cst_67 = arith.constant dense<0.000000e+00> : vector<8x64xf32>
    %126 = tpu.matmul %80, %121, %cst_67 {dimension_numbers = #tpu.dot_dimension_numbers<[1], [0], [0], [1], [0, 0, 1, 1], [], []>} : vector<8x64xf32>, vector<64x64xf32>, vector<8x64xf32> -> vector<8x64xf32>
    %127 = arith.addf %126, %125 : vector<8x64xf32>
    %cst_68 = arith.constant 0.000000e+00 : f32
    %128 = vector.broadcast %cst_68 : f32 to vector<8x64xf32>
    %129 = arith.maximumf %127, %128 : vector<8x64xf32>
    %c2_69 = arith.constant 2 : index
    %c0_70 = arith.constant 0 : index
    %c0_71 = arith.constant 0 : index
    %130 = vector.load %arg5[%c2_69, %c0_70, %c0_71] : memref<15x64x64xf32, #tpu.memory_space<vmem>>, vector<1x64x64xf32>
    %131 = vector.shape_cast %130 : vector<1x64x64xf32> to vector<64x64xf32>
    %c2_72 = arith.constant 2 : index
    %c0_73 = arith.constant 0 : index
    %132 = vector.load %arg6[%c2_72, %c0_73] : memref<15x64xf32, #tpu.memory_space<vmem>>, vector<1x64xf32>
    %c4 = arith.constant 4 : index
    %133 = memref.load %arg1[%c4] : memref<30xf32, #tpu.memory_space<smem>>
    %c5 = arith.constant 5 : index
    %134 = memref.load %arg1[%c5] : memref<30xf32, #tpu.memory_space<smem>>
    %135 = vector.broadcast %134 : f32 to vector<64x64xf32>
    %136 = arith.mulf %135, %5 : vector<64x64xf32>
    %137 = arith.subf %131, %136 : vector<64x64xf32>
    %138 = vector.broadcast %133 : f32 to vector<8x64xf32>
    %139 = arith.mulf %138, %4 : vector<8x64xf32>
    %140 = vector.broadcast %132 : vector<1x64xf32> to vector<8x64xf32>
    %141 = arith.addf %140, %139 : vector<8x64xf32>
    %cst_74 = arith.constant dense<0.000000e+00> : vector<8x64xf32>
    %142 = tpu.matmul %96, %137, %cst_74 {dimension_numbers = #tpu.dot_dimension_numbers<[1], [0], [0], [1], [0, 0, 1, 1], [], []>} : vector<8x64xf32>, vector<64x64xf32>, vector<8x64xf32> -> vector<8x64xf32>
    %143 = arith.addf %142, %141 : vector<8x64xf32>
    %cst_75 = arith.constant 0.000000e+00 : f32
    %144 = vector.broadcast %cst_75 : f32 to vector<8x64xf32>
    %145 = arith.maximumf %143, %144 : vector<8x64xf32>
    %146 = vector.broadcast %134 : f32 to vector<64x64xf32>
    %147 = arith.mulf %146, %13 : vector<64x64xf32>
    %148 = arith.subf %131, %147 : vector<64x64xf32>
    %149 = vector.broadcast %133 : f32 to vector<8x64xf32>
    %150 = arith.mulf %149, %12 : vector<8x64xf32>
    %151 = vector.broadcast %132 : vector<1x64xf32> to vector<8x64xf32>
    %152 = arith.addf %151, %150 : vector<8x64xf32>
    %cst_76 = arith.constant dense<0.000000e+00> : vector<8x64xf32>
    %153 = tpu.matmul %107, %148, %cst_76 {dimension_numbers = #tpu.dot_dimension_numbers<[1], [0], [0], [1], [0, 0, 1, 1], [], []>} : vector<8x64xf32>, vector<64x64xf32>, vector<8x64xf32> -> vector<8x64xf32>
    %154 = arith.addf %153, %152 : vector<8x64xf32>
    %cst_77 = arith.constant 0.000000e+00 : f32
    %155 = vector.broadcast %cst_77 : f32 to vector<8x64xf32>
    %156 = arith.maximumf %154, %155 : vector<8x64xf32>
    %157 = vector.broadcast %134 : f32 to vector<64x64xf32>
    %158 = arith.mulf %157, %21 : vector<64x64xf32>
    %159 = arith.subf %131, %158 : vector<64x64xf32>
    %160 = vector.broadcast %133 : f32 to vector<8x64xf32>
    %161 = arith.mulf %160, %20 : vector<8x64xf32>
    %162 = vector.broadcast %132 : vector<1x64xf32> to vector<8x64xf32>
    %163 = arith.addf %162, %161 : vector<8x64xf32>
    %cst_78 = arith.constant dense<0.000000e+00> : vector<8x64xf32>
    %164 = tpu.matmul %118, %159, %cst_78 {dimension_numbers = #tpu.dot_dimension_numbers<[1], [0], [0], [1], [0, 0, 1, 1], [], []>} : vector<8x64xf32>, vector<64x64xf32>, vector<8x64xf32> -> vector<8x64xf32>
    %165 = arith.addf %164, %163 : vector<8x64xf32>
    %cst_79 = arith.constant 0.000000e+00 : f32
    %166 = vector.broadcast %cst_79 : f32 to vector<8x64xf32>
    %167 = arith.maximumf %165, %166 : vector<8x64xf32>
    %168 = vector.broadcast %134 : f32 to vector<64x64xf32>
    %169 = arith.mulf %168, %29 : vector<64x64xf32>
    %170 = arith.subf %131, %169 : vector<64x64xf32>
    %171 = vector.broadcast %133 : f32 to vector<8x64xf32>
    %172 = arith.mulf %171, %28 : vector<8x64xf32>
    %173 = vector.broadcast %132 : vector<1x64xf32> to vector<8x64xf32>
    %174 = arith.addf %173, %172 : vector<8x64xf32>
    %cst_80 = arith.constant dense<0.000000e+00> : vector<8x64xf32>
    %175 = tpu.matmul %129, %170, %cst_80 {dimension_numbers = #tpu.dot_dimension_numbers<[1], [0], [0], [1], [0, 0, 1, 1], [], []>} : vector<8x64xf32>, vector<64x64xf32>, vector<8x64xf32> -> vector<8x64xf32>
    %176 = arith.addf %175, %174 : vector<8x64xf32>
    %cst_81 = arith.constant 0.000000e+00 : f32
    %177 = vector.broadcast %cst_81 : f32 to vector<8x64xf32>
    %178 = arith.maximumf %176, %177 : vector<8x64xf32>
    %c3_82 = arith.constant 3 : index
    %c0_83 = arith.constant 0 : index
    %c0_84 = arith.constant 0 : index
    %179 = vector.load %arg5[%c3_82, %c0_83, %c0_84] : memref<15x64x64xf32, #tpu.memory_space<vmem>>, vector<1x64x64xf32>
    %180 = vector.shape_cast %179 : vector<1x64x64xf32> to vector<64x64xf32>
    %c3_85 = arith.constant 3 : index
    %c0_86 = arith.constant 0 : index
    %181 = vector.load %arg6[%c3_85, %c0_86] : memref<15x64xf32, #tpu.memory_space<vmem>>, vector<1x64xf32>
    %c6 = arith.constant 6 : index
    %182 = memref.load %arg1[%c6] : memref<30xf32, #tpu.memory_space<smem>>
    %c7 = arith.constant 7 : index
    %183 = memref.load %arg1[%c7] : memref<30xf32, #tpu.memory_space<smem>>
    %184 = vector.broadcast %183 : f32 to vector<64x64xf32>
    %185 = arith.mulf %184, %5 : vector<64x64xf32>
    %186 = arith.subf %180, %185 : vector<64x64xf32>
    %187 = vector.broadcast %182 : f32 to vector<8x64xf32>
    %188 = arith.mulf %187, %4 : vector<8x64xf32>
    %189 = vector.broadcast %181 : vector<1x64xf32> to vector<8x64xf32>
    %190 = arith.addf %189, %188 : vector<8x64xf32>
    %cst_87 = arith.constant dense<0.000000e+00> : vector<8x64xf32>
    %191 = tpu.matmul %145, %186, %cst_87 {dimension_numbers = #tpu.dot_dimension_numbers<[1], [0], [0], [1], [0, 0, 1, 1], [], []>} : vector<8x64xf32>, vector<64x64xf32>, vector<8x64xf32> -> vector<8x64xf32>
    %192 = arith.addf %191, %190 : vector<8x64xf32>
    %cst_88 = arith.constant 0.000000e+00 : f32
    %193 = vector.broadcast %cst_88 : f32 to vector<8x64xf32>
    %194 = arith.maximumf %192, %193 : vector<8x64xf32>
    %195 = vector.broadcast %183 : f32 to vector<64x64xf32>
    %196 = arith.mulf %195, %13 : vector<64x64xf32>
    %197 = arith.subf %180, %196 : vector<64x64xf32>
    %198 = vector.broadcast %182 : f32 to vector<8x64xf32>
    %199 = arith.mulf %198, %12 : vector<8x64xf32>
    %200 = vector.broadcast %181 : vector<1x64xf32> to vector<8x64xf32>
    %201 = arith.addf %200, %199 : vector<8x64xf32>
    %cst_89 = arith.constant dense<0.000000e+00> : vector<8x64xf32>
    %202 = tpu.matmul %156, %197, %cst_89 {dimension_numbers = #tpu.dot_dimension_numbers<[1], [0], [0], [1], [0, 0, 1, 1], [], []>} : vector<8x64xf32>, vector<64x64xf32>, vector<8x64xf32> -> vector<8x64xf32>
    %203 = arith.addf %202, %201 : vector<8x64xf32>
    %cst_90 = arith.constant 0.000000e+00 : f32
    %204 = vector.broadcast %cst_90 : f32 to vector<8x64xf32>
    %205 = arith.maximumf %203, %204 : vector<8x64xf32>
    %206 = vector.broadcast %183 : f32 to vector<64x64xf32>
    %207 = arith.mulf %206, %21 : vector<64x64xf32>
    %208 = arith.subf %180, %207 : vector<64x64xf32>
    %209 = vector.broadcast %182 : f32 to vector<8x64xf32>
    %210 = arith.mulf %209, %20 : vector<8x64xf32>
    %211 = vector.broadcast %181 : vector<1x64xf32> to vector<8x64xf32>
    %212 = arith.addf %211, %210 : vector<8x64xf32>
    %cst_91 = arith.constant dense<0.000000e+00> : vector<8x64xf32>
    %213 = tpu.matmul %167, %208, %cst_91 {dimension_numbers = #tpu.dot_dimension_numbers<[1], [0], [0], [1], [0, 0, 1, 1], [], []>} : vector<8x64xf32>, vector<64x64xf32>, vector<8x64xf32> -> vector<8x64xf32>
    %214 = arith.addf %213, %212 : vector<8x64xf32>
    %cst_92 = arith.constant 0.000000e+00 : f32
    %215 = vector.broadcast %cst_92 : f32 to vector<8x64xf32>
    %216 = arith.maximumf %214, %215 : vector<8x64xf32>
    %217 = vector.broadcast %183 : f32 to vector<64x64xf32>
    %218 = arith.mulf %217, %29 : vector<64x64xf32>
    %219 = arith.subf %180, %218 : vector<64x64xf32>
    %220 = vector.broadcast %182 : f32 to vector<8x64xf32>
    %221 = arith.mulf %220, %28 : vector<8x64xf32>
    %222 = vector.broadcast %181 : vector<1x64xf32> to vector<8x64xf32>
    %223 = arith.addf %222, %221 : vector<8x64xf32>
    %cst_93 = arith.constant dense<0.000000e+00> : vector<8x64xf32>
    %224 = tpu.matmul %178, %219, %cst_93 {dimension_numbers = #tpu.dot_dimension_numbers<[1], [0], [0], [1], [0, 0, 1, 1], [], []>} : vector<8x64xf32>, vector<64x64xf32>, vector<8x64xf32> -> vector<8x64xf32>
    %225 = arith.addf %224, %223 : vector<8x64xf32>
    %cst_94 = arith.constant 0.000000e+00 : f32
    %226 = vector.broadcast %cst_94 : f32 to vector<8x64xf32>
    %227 = arith.maximumf %225, %226 : vector<8x64xf32>
    %c4_95 = arith.constant 4 : index
    %c0_96 = arith.constant 0 : index
    %c0_97 = arith.constant 0 : index
    %228 = vector.load %arg5[%c4_95, %c0_96, %c0_97] : memref<15x64x64xf32, #tpu.memory_space<vmem>>, vector<1x64x64xf32>
    %229 = vector.shape_cast %228 : vector<1x64x64xf32> to vector<64x64xf32>
    %c4_98 = arith.constant 4 : index
    %c0_99 = arith.constant 0 : index
    %230 = vector.load %arg6[%c4_98, %c0_99] : memref<15x64xf32, #tpu.memory_space<vmem>>, vector<1x64xf32>
    %c8 = arith.constant 8 : index
    %231 = memref.load %arg1[%c8] : memref<30xf32, #tpu.memory_space<smem>>
    %c9 = arith.constant 9 : index
    %232 = memref.load %arg1[%c9] : memref<30xf32, #tpu.memory_space<smem>>
    %233 = vector.broadcast %232 : f32 to vector<64x64xf32>
    %234 = arith.mulf %233, %5 : vector<64x64xf32>
    %235 = arith.subf %229, %234 : vector<64x64xf32>
    %236 = vector.broadcast %231 : f32 to vector<8x64xf32>
    %237 = arith.mulf %236, %4 : vector<8x64xf32>
    %238 = vector.broadcast %230 : vector<1x64xf32> to vector<8x64xf32>
    %239 = arith.addf %238, %237 : vector<8x64xf32>
    %cst_100 = arith.constant dense<0.000000e+00> : vector<8x64xf32>
    %240 = tpu.matmul %194, %235, %cst_100 {dimension_numbers = #tpu.dot_dimension_numbers<[1], [0], [0], [1], [0, 0, 1, 1], [], []>} : vector<8x64xf32>, vector<64x64xf32>, vector<8x64xf32> -> vector<8x64xf32>
    %241 = arith.addf %240, %239 : vector<8x64xf32>
    %cst_101 = arith.constant 0.000000e+00 : f32
    %242 = vector.broadcast %cst_101 : f32 to vector<8x64xf32>
    %243 = arith.maximumf %241, %242 : vector<8x64xf32>
    %244 = vector.broadcast %232 : f32 to vector<64x64xf32>
    %245 = arith.mulf %244, %13 : vector<64x64xf32>
    %246 = arith.subf %229, %245 : vector<64x64xf32>
    %247 = vector.broadcast %231 : f32 to vector<8x64xf32>
    %248 = arith.mulf %247, %12 : vector<8x64xf32>
    %249 = vector.broadcast %230 : vector<1x64xf32> to vector<8x64xf32>
    %250 = arith.addf %249, %248 : vector<8x64xf32>
    %cst_102 = arith.constant dense<0.000000e+00> : vector<8x64xf32>
    %251 = tpu.matmul %205, %246, %cst_102 {dimension_numbers = #tpu.dot_dimension_numbers<[1], [0], [0], [1], [0, 0, 1, 1], [], []>} : vector<8x64xf32>, vector<64x64xf32>, vector<8x64xf32> -> vector<8x64xf32>
    %252 = arith.addf %251, %250 : vector<8x64xf32>
    %cst_103 = arith.constant 0.000000e+00 : f32
    %253 = vector.broadcast %cst_103 : f32 to vector<8x64xf32>
    %254 = arith.maximumf %252, %253 : vector<8x64xf32>
    %255 = vector.broadcast %232 : f32 to vector<64x64xf32>
    %256 = arith.mulf %255, %21 : vector<64x64xf32>
    %257 = arith.subf %229, %256 : vector<64x64xf32>
    %258 = vector.broadcast %231 : f32 to vector<8x64xf32>
    %259 = arith.mulf %258, %20 : vector<8x64xf32>
    %260 = vector.broadcast %230 : vector<1x64xf32> to vector<8x64xf32>
    %261 = arith.addf %260, %259 : vector<8x64xf32>
    %cst_104 = arith.constant dense<0.000000e+00> : vector<8x64xf32>
    %262 = tpu.matmul %216, %257, %cst_104 {dimension_numbers = #tpu.dot_dimension_numbers<[1], [0], [0], [1], [0, 0, 1, 1], [], []>} : vector<8x64xf32>, vector<64x64xf32>, vector<8x64xf32> -> vector<8x64xf32>
    %263 = arith.addf %262, %261 : vector<8x64xf32>
    %cst_105 = arith.constant 0.000000e+00 : f32
    %264 = vector.broadcast %cst_105 : f32 to vector<8x64xf32>
    %265 = arith.maximumf %263, %264 : vector<8x64xf32>
    %266 = vector.broadcast %232 : f32 to vector<64x64xf32>
    %267 = arith.mulf %266, %29 : vector<64x64xf32>
    %268 = arith.subf %229, %267 : vector<64x64xf32>
    %269 = vector.broadcast %231 : f32 to vector<8x64xf32>
    %270 = arith.mulf %269, %28 : vector<8x64xf32>
    %271 = vector.broadcast %230 : vector<1x64xf32> to vector<8x64xf32>
    %272 = arith.addf %271, %270 : vector<8x64xf32>
    %cst_106 = arith.constant dense<0.000000e+00> : vector<8x64xf32>
    %273 = tpu.matmul %227, %268, %cst_106 {dimension_numbers = #tpu.dot_dimension_numbers<[1], [0], [0], [1], [0, 0, 1, 1], [], []>} : vector<8x64xf32>, vector<64x64xf32>, vector<8x64xf32> -> vector<8x64xf32>
    %274 = arith.addf %273, %272 : vector<8x64xf32>
    %cst_107 = arith.constant 0.000000e+00 : f32
    %275 = vector.broadcast %cst_107 : f32 to vector<8x64xf32>
    %276 = arith.maximumf %274, %275 : vector<8x64xf32>
    %c5_108 = arith.constant 5 : index
    %c0_109 = arith.constant 0 : index
    %c0_110 = arith.constant 0 : index
    %277 = vector.load %arg5[%c5_108, %c0_109, %c0_110] : memref<15x64x64xf32, #tpu.memory_space<vmem>>, vector<1x64x64xf32>
    %278 = vector.shape_cast %277 : vector<1x64x64xf32> to vector<64x64xf32>
    %c5_111 = arith.constant 5 : index
    %c0_112 = arith.constant 0 : index
    %279 = vector.load %arg6[%c5_111, %c0_112] : memref<15x64xf32, #tpu.memory_space<vmem>>, vector<1x64xf32>
    %c10 = arith.constant 10 : index
    %280 = memref.load %arg1[%c10] : memref<30xf32, #tpu.memory_space<smem>>
    %c11 = arith.constant 11 : index
    %281 = memref.load %arg1[%c11] : memref<30xf32, #tpu.memory_space<smem>>
    %282 = vector.broadcast %281 : f32 to vector<64x64xf32>
    %283 = arith.mulf %282, %5 : vector<64x64xf32>
    %284 = arith.subf %278, %283 : vector<64x64xf32>
    %285 = vector.broadcast %280 : f32 to vector<8x64xf32>
    %286 = arith.mulf %285, %4 : vector<8x64xf32>
    %287 = vector.broadcast %279 : vector<1x64xf32> to vector<8x64xf32>
    %288 = arith.addf %287, %286 : vector<8x64xf32>
    %cst_113 = arith.constant dense<0.000000e+00> : vector<8x64xf32>
    %289 = tpu.matmul %243, %284, %cst_113 {dimension_numbers = #tpu.dot_dimension_numbers<[1], [0], [0], [1], [0, 0, 1, 1], [], []>} : vector<8x64xf32>, vector<64x64xf32>, vector<8x64xf32> -> vector<8x64xf32>
    %290 = arith.addf %289, %288 : vector<8x64xf32>
    %cst_114 = arith.constant 0.000000e+00 : f32
    %291 = vector.broadcast %cst_114 : f32 to vector<8x64xf32>
    %292 = arith.maximumf %290, %291 : vector<8x64xf32>
    %293 = vector.broadcast %281 : f32 to vector<64x64xf32>
    %294 = arith.mulf %293, %13 : vector<64x64xf32>
    %295 = arith.subf %278, %294 : vector<64x64xf32>
    %296 = vector.broadcast %280 : f32 to vector<8x64xf32>
    %297 = arith.mulf %296, %12 : vector<8x64xf32>
    %298 = vector.broadcast %279 : vector<1x64xf32> to vector<8x64xf32>
    %299 = arith.addf %298, %297 : vector<8x64xf32>
    %cst_115 = arith.constant dense<0.000000e+00> : vector<8x64xf32>
    %300 = tpu.matmul %254, %295, %cst_115 {dimension_numbers = #tpu.dot_dimension_numbers<[1], [0], [0], [1], [0, 0, 1, 1], [], []>} : vector<8x64xf32>, vector<64x64xf32>, vector<8x64xf32> -> vector<8x64xf32>
    %301 = arith.addf %300, %299 : vector<8x64xf32>
    %cst_116 = arith.constant 0.000000e+00 : f32
    %302 = vector.broadcast %cst_116 : f32 to vector<8x64xf32>
    %303 = arith.maximumf %301, %302 : vector<8x64xf32>
    %304 = vector.broadcast %281 : f32 to vector<64x64xf32>
    %305 = arith.mulf %304, %21 : vector<64x64xf32>
    %306 = arith.subf %278, %305 : vector<64x64xf32>
    %307 = vector.broadcast %280 : f32 to vector<8x64xf32>
    %308 = arith.mulf %307, %20 : vector<8x64xf32>
    %309 = vector.broadcast %279 : vector<1x64xf32> to vector<8x64xf32>
    %310 = arith.addf %309, %308 : vector<8x64xf32>
    %cst_117 = arith.constant dense<0.000000e+00> : vector<8x64xf32>
    %311 = tpu.matmul %265, %306, %cst_117 {dimension_numbers = #tpu.dot_dimension_numbers<[1], [0], [0], [1], [0, 0, 1, 1], [], []>} : vector<8x64xf32>, vector<64x64xf32>, vector<8x64xf32> -> vector<8x64xf32>
    %312 = arith.addf %311, %310 : vector<8x64xf32>
    %cst_118 = arith.constant 0.000000e+00 : f32
    %313 = vector.broadcast %cst_118 : f32 to vector<8x64xf32>
    %314 = arith.maximumf %312, %313 : vector<8x64xf32>
    %315 = vector.broadcast %281 : f32 to vector<64x64xf32>
    %316 = arith.mulf %315, %29 : vector<64x64xf32>
    %317 = arith.subf %278, %316 : vector<64x64xf32>
    %318 = vector.broadcast %280 : f32 to vector<8x64xf32>
    %319 = arith.mulf %318, %28 : vector<8x64xf32>
    %320 = vector.broadcast %279 : vector<1x64xf32> to vector<8x64xf32>
    %321 = arith.addf %320, %319 : vector<8x64xf32>
    %cst_119 = arith.constant dense<0.000000e+00> : vector<8x64xf32>
    %322 = tpu.matmul %276, %317, %cst_119 {dimension_numbers = #tpu.dot_dimension_numbers<[1], [0], [0], [1], [0, 0, 1, 1], [], []>} : vector<8x64xf32>, vector<64x64xf32>, vector<8x64xf32> -> vector<8x64xf32>
    %323 = arith.addf %322, %321 : vector<8x64xf32>
    %cst_120 = arith.constant 0.000000e+00 : f32
    %324 = vector.broadcast %cst_120 : f32 to vector<8x64xf32>
    %325 = arith.maximumf %323, %324 : vector<8x64xf32>
    %c6_121 = arith.constant 6 : index
    %c0_122 = arith.constant 0 : index
    %c0_123 = arith.constant 0 : index
    %326 = vector.load %arg5[%c6_121, %c0_122, %c0_123] : memref<15x64x64xf32, #tpu.memory_space<vmem>>, vector<1x64x64xf32>
    %327 = vector.shape_cast %326 : vector<1x64x64xf32> to vector<64x64xf32>
    %c6_124 = arith.constant 6 : index
    %c0_125 = arith.constant 0 : index
    %328 = vector.load %arg6[%c6_124, %c0_125] : memref<15x64xf32, #tpu.memory_space<vmem>>, vector<1x64xf32>
    %c12 = arith.constant 12 : index
    %329 = memref.load %arg1[%c12] : memref<30xf32, #tpu.memory_space<smem>>
    %c13 = arith.constant 13 : index
    %330 = memref.load %arg1[%c13] : memref<30xf32, #tpu.memory_space<smem>>
    %331 = vector.broadcast %330 : f32 to vector<64x64xf32>
    %332 = arith.mulf %331, %5 : vector<64x64xf32>
    %333 = arith.subf %327, %332 : vector<64x64xf32>
    %334 = vector.broadcast %329 : f32 to vector<8x64xf32>
    %335 = arith.mulf %334, %4 : vector<8x64xf32>
    %336 = vector.broadcast %328 : vector<1x64xf32> to vector<8x64xf32>
    %337 = arith.addf %336, %335 : vector<8x64xf32>
    %cst_126 = arith.constant dense<0.000000e+00> : vector<8x64xf32>
    %338 = tpu.matmul %292, %333, %cst_126 {dimension_numbers = #tpu.dot_dimension_numbers<[1], [0], [0], [1], [0, 0, 1, 1], [], []>} : vector<8x64xf32>, vector<64x64xf32>, vector<8x64xf32> -> vector<8x64xf32>
    %339 = arith.addf %338, %337 : vector<8x64xf32>
    %cst_127 = arith.constant 0.000000e+00 : f32
    %340 = vector.broadcast %cst_127 : f32 to vector<8x64xf32>
    %341 = arith.maximumf %339, %340 : vector<8x64xf32>
    %342 = vector.broadcast %330 : f32 to vector<64x64xf32>
    %343 = arith.mulf %342, %13 : vector<64x64xf32>
    %344 = arith.subf %327, %343 : vector<64x64xf32>
    %345 = vector.broadcast %329 : f32 to vector<8x64xf32>
    %346 = arith.mulf %345, %12 : vector<8x64xf32>
    %347 = vector.broadcast %328 : vector<1x64xf32> to vector<8x64xf32>
    %348 = arith.addf %347, %346 : vector<8x64xf32>
    %cst_128 = arith.constant dense<0.000000e+00> : vector<8x64xf32>
    %349 = tpu.matmul %303, %344, %cst_128 {dimension_numbers = #tpu.dot_dimension_numbers<[1], [0], [0], [1], [0, 0, 1, 1], [], []>} : vector<8x64xf32>, vector<64x64xf32>, vector<8x64xf32> -> vector<8x64xf32>
    %350 = arith.addf %349, %348 : vector<8x64xf32>
    %cst_129 = arith.constant 0.000000e+00 : f32
    %351 = vector.broadcast %cst_129 : f32 to vector<8x64xf32>
    %352 = arith.maximumf %350, %351 : vector<8x64xf32>
    %353 = vector.broadcast %330 : f32 to vector<64x64xf32>
    %354 = arith.mulf %353, %21 : vector<64x64xf32>
    %355 = arith.subf %327, %354 : vector<64x64xf32>
    %356 = vector.broadcast %329 : f32 to vector<8x64xf32>
    %357 = arith.mulf %356, %20 : vector<8x64xf32>
    %358 = vector.broadcast %328 : vector<1x64xf32> to vector<8x64xf32>
    %359 = arith.addf %358, %357 : vector<8x64xf32>
    %cst_130 = arith.constant dense<0.000000e+00> : vector<8x64xf32>
    %360 = tpu.matmul %314, %355, %cst_130 {dimension_numbers = #tpu.dot_dimension_numbers<[1], [0], [0], [1], [0, 0, 1, 1], [], []>} : vector<8x64xf32>, vector<64x64xf32>, vector<8x64xf32> -> vector<8x64xf32>
    %361 = arith.addf %360, %359 : vector<8x64xf32>
    %cst_131 = arith.constant 0.000000e+00 : f32
    %362 = vector.broadcast %cst_131 : f32 to vector<8x64xf32>
    %363 = arith.maximumf %361, %362 : vector<8x64xf32>
    %364 = vector.broadcast %330 : f32 to vector<64x64xf32>
    %365 = arith.mulf %364, %29 : vector<64x64xf32>
    %366 = arith.subf %327, %365 : vector<64x64xf32>
    %367 = vector.broadcast %329 : f32 to vector<8x64xf32>
    %368 = arith.mulf %367, %28 : vector<8x64xf32>
    %369 = vector.broadcast %328 : vector<1x64xf32> to vector<8x64xf32>
    %370 = arith.addf %369, %368 : vector<8x64xf32>
    %cst_132 = arith.constant dense<0.000000e+00> : vector<8x64xf32>
    %371 = tpu.matmul %325, %366, %cst_132 {dimension_numbers = #tpu.dot_dimension_numbers<[1], [0], [0], [1], [0, 0, 1, 1], [], []>} : vector<8x64xf32>, vector<64x64xf32>, vector<8x64xf32> -> vector<8x64xf32>
    %372 = arith.addf %371, %370 : vector<8x64xf32>
    %cst_133 = arith.constant 0.000000e+00 : f32
    %373 = vector.broadcast %cst_133 : f32 to vector<8x64xf32>
    %374 = arith.maximumf %372, %373 : vector<8x64xf32>
    %c7_134 = arith.constant 7 : index
    %c0_135 = arith.constant 0 : index
    %c0_136 = arith.constant 0 : index
    %375 = vector.load %arg5[%c7_134, %c0_135, %c0_136] : memref<15x64x64xf32, #tpu.memory_space<vmem>>, vector<1x64x64xf32>
    %376 = vector.shape_cast %375 : vector<1x64x64xf32> to vector<64x64xf32>
    %c7_137 = arith.constant 7 : index
    %c0_138 = arith.constant 0 : index
    %377 = vector.load %arg6[%c7_137, %c0_138] : memref<15x64xf32, #tpu.memory_space<vmem>>, vector<1x64xf32>
    %c14 = arith.constant 14 : index
    %378 = memref.load %arg1[%c14] : memref<30xf32, #tpu.memory_space<smem>>
    %c15 = arith.constant 15 : index
    %379 = memref.load %arg1[%c15] : memref<30xf32, #tpu.memory_space<smem>>
    %380 = vector.broadcast %379 : f32 to vector<64x64xf32>
    %381 = arith.mulf %380, %5 : vector<64x64xf32>
    %382 = arith.subf %376, %381 : vector<64x64xf32>
    %383 = vector.broadcast %378 : f32 to vector<8x64xf32>
    %384 = arith.mulf %383, %4 : vector<8x64xf32>
    %385 = vector.broadcast %377 : vector<1x64xf32> to vector<8x64xf32>
    %386 = arith.addf %385, %384 : vector<8x64xf32>
    %cst_139 = arith.constant dense<0.000000e+00> : vector<8x64xf32>
    %387 = tpu.matmul %341, %382, %cst_139 {dimension_numbers = #tpu.dot_dimension_numbers<[1], [0], [0], [1], [0, 0, 1, 1], [], []>} : vector<8x64xf32>, vector<64x64xf32>, vector<8x64xf32> -> vector<8x64xf32>
    %388 = arith.addf %387, %386 : vector<8x64xf32>
    %cst_140 = arith.constant 0.000000e+00 : f32
    %389 = vector.broadcast %cst_140 : f32 to vector<8x64xf32>
    %390 = arith.maximumf %388, %389 : vector<8x64xf32>
    %391 = vector.broadcast %379 : f32 to vector<64x64xf32>
    %392 = arith.mulf %391, %13 : vector<64x64xf32>
    %393 = arith.subf %376, %392 : vector<64x64xf32>
    %394 = vector.broadcast %378 : f32 to vector<8x64xf32>
    %395 = arith.mulf %394, %12 : vector<8x64xf32>
    %396 = vector.broadcast %377 : vector<1x64xf32> to vector<8x64xf32>
    %397 = arith.addf %396, %395 : vector<8x64xf32>
    %cst_141 = arith.constant dense<0.000000e+00> : vector<8x64xf32>
    %398 = tpu.matmul %352, %393, %cst_141 {dimension_numbers = #tpu.dot_dimension_numbers<[1], [0], [0], [1], [0, 0, 1, 1], [], []>} : vector<8x64xf32>, vector<64x64xf32>, vector<8x64xf32> -> vector<8x64xf32>
    %399 = arith.addf %398, %397 : vector<8x64xf32>
    %cst_142 = arith.constant 0.000000e+00 : f32
    %400 = vector.broadcast %cst_142 : f32 to vector<8x64xf32>
    %401 = arith.maximumf %399, %400 : vector<8x64xf32>
    %402 = vector.broadcast %379 : f32 to vector<64x64xf32>
    %403 = arith.mulf %402, %21 : vector<64x64xf32>
    %404 = arith.subf %376, %403 : vector<64x64xf32>
    %405 = vector.broadcast %378 : f32 to vector<8x64xf32>
    %406 = arith.mulf %405, %20 : vector<8x64xf32>
    %407 = vector.broadcast %377 : vector<1x64xf32> to vector<8x64xf32>
    %408 = arith.addf %407, %406 : vector<8x64xf32>
    %cst_143 = arith.constant dense<0.000000e+00> : vector<8x64xf32>
    %409 = tpu.matmul %363, %404, %cst_143 {dimension_numbers = #tpu.dot_dimension_numbers<[1], [0], [0], [1], [0, 0, 1, 1], [], []>} : vector<8x64xf32>, vector<64x64xf32>, vector<8x64xf32> -> vector<8x64xf32>
    %410 = arith.addf %409, %408 : vector<8x64xf32>
    %cst_144 = arith.constant 0.000000e+00 : f32
    %411 = vector.broadcast %cst_144 : f32 to vector<8x64xf32>
    %412 = arith.maximumf %410, %411 : vector<8x64xf32>
    %413 = vector.broadcast %379 : f32 to vector<64x64xf32>
    %414 = arith.mulf %413, %29 : vector<64x64xf32>
    %415 = arith.subf %376, %414 : vector<64x64xf32>
    %416 = vector.broadcast %378 : f32 to vector<8x64xf32>
    %417 = arith.mulf %416, %28 : vector<8x64xf32>
    %418 = vector.broadcast %377 : vector<1x64xf32> to vector<8x64xf32>
    %419 = arith.addf %418, %417 : vector<8x64xf32>
    %cst_145 = arith.constant dense<0.000000e+00> : vector<8x64xf32>
    %420 = tpu.matmul %374, %415, %cst_145 {dimension_numbers = #tpu.dot_dimension_numbers<[1], [0], [0], [1], [0, 0, 1, 1], [], []>} : vector<8x64xf32>, vector<64x64xf32>, vector<8x64xf32> -> vector<8x64xf32>
    %421 = arith.addf %420, %419 : vector<8x64xf32>
    %cst_146 = arith.constant 0.000000e+00 : f32
    %422 = vector.broadcast %cst_146 : f32 to vector<8x64xf32>
    %423 = arith.maximumf %421, %422 : vector<8x64xf32>
    %c8_147 = arith.constant 8 : index
    %c0_148 = arith.constant 0 : index
    %c0_149 = arith.constant 0 : index
    %424 = vector.load %arg5[%c8_147, %c0_148, %c0_149] : memref<15x64x64xf32, #tpu.memory_space<vmem>>, vector<1x64x64xf32>
    %425 = vector.shape_cast %424 : vector<1x64x64xf32> to vector<64x64xf32>
    %c8_150 = arith.constant 8 : index
    %c0_151 = arith.constant 0 : index
    %426 = vector.load %arg6[%c8_150, %c0_151] : memref<15x64xf32, #tpu.memory_space<vmem>>, vector<1x64xf32>
    %c16 = arith.constant 16 : index
    %427 = memref.load %arg1[%c16] : memref<30xf32, #tpu.memory_space<smem>>
    %c17 = arith.constant 17 : index
    %428 = memref.load %arg1[%c17] : memref<30xf32, #tpu.memory_space<smem>>
    %429 = vector.broadcast %428 : f32 to vector<64x64xf32>
    %430 = arith.mulf %429, %5 : vector<64x64xf32>
    %431 = arith.subf %425, %430 : vector<64x64xf32>
    %432 = vector.broadcast %427 : f32 to vector<8x64xf32>
    %433 = arith.mulf %432, %4 : vector<8x64xf32>
    %434 = vector.broadcast %426 : vector<1x64xf32> to vector<8x64xf32>
    %435 = arith.addf %434, %433 : vector<8x64xf32>
    %cst_152 = arith.constant dense<0.000000e+00> : vector<8x64xf32>
    %436 = tpu.matmul %390, %431, %cst_152 {dimension_numbers = #tpu.dot_dimension_numbers<[1], [0], [0], [1], [0, 0, 1, 1], [], []>} : vector<8x64xf32>, vector<64x64xf32>, vector<8x64xf32> -> vector<8x64xf32>
    %437 = arith.addf %436, %435 : vector<8x64xf32>
    %cst_153 = arith.constant 0.000000e+00 : f32
    %438 = vector.broadcast %cst_153 : f32 to vector<8x64xf32>
    %439 = arith.maximumf %437, %438 : vector<8x64xf32>
    %440 = vector.broadcast %428 : f32 to vector<64x64xf32>
    %441 = arith.mulf %440, %13 : vector<64x64xf32>
    %442 = arith.subf %425, %441 : vector<64x64xf32>
    %443 = vector.broadcast %427 : f32 to vector<8x64xf32>
    %444 = arith.mulf %443, %12 : vector<8x64xf32>
    %445 = vector.broadcast %426 : vector<1x64xf32> to vector<8x64xf32>
    %446 = arith.addf %445, %444 : vector<8x64xf32>
    %cst_154 = arith.constant dense<0.000000e+00> : vector<8x64xf32>
    %447 = tpu.matmul %401, %442, %cst_154 {dimension_numbers = #tpu.dot_dimension_numbers<[1], [0], [0], [1], [0, 0, 1, 1], [], []>} : vector<8x64xf32>, vector<64x64xf32>, vector<8x64xf32> -> vector<8x64xf32>
    %448 = arith.addf %447, %446 : vector<8x64xf32>
    %cst_155 = arith.constant 0.000000e+00 : f32
    %449 = vector.broadcast %cst_155 : f32 to vector<8x64xf32>
    %450 = arith.maximumf %448, %449 : vector<8x64xf32>
    %451 = vector.broadcast %428 : f32 to vector<64x64xf32>
    %452 = arith.mulf %451, %21 : vector<64x64xf32>
    %453 = arith.subf %425, %452 : vector<64x64xf32>
    %454 = vector.broadcast %427 : f32 to vector<8x64xf32>
    %455 = arith.mulf %454, %20 : vector<8x64xf32>
    %456 = vector.broadcast %426 : vector<1x64xf32> to vector<8x64xf32>
    %457 = arith.addf %456, %455 : vector<8x64xf32>
    %cst_156 = arith.constant dense<0.000000e+00> : vector<8x64xf32>
    %458 = tpu.matmul %412, %453, %cst_156 {dimension_numbers = #tpu.dot_dimension_numbers<[1], [0], [0], [1], [0, 0, 1, 1], [], []>} : vector<8x64xf32>, vector<64x64xf32>, vector<8x64xf32> -> vector<8x64xf32>
    %459 = arith.addf %458, %457 : vector<8x64xf32>
    %cst_157 = arith.constant 0.000000e+00 : f32
    %460 = vector.broadcast %cst_157 : f32 to vector<8x64xf32>
    %461 = arith.maximumf %459, %460 : vector<8x64xf32>
    %462 = vector.broadcast %428 : f32 to vector<64x64xf32>
    %463 = arith.mulf %462, %29 : vector<64x64xf32>
    %464 = arith.subf %425, %463 : vector<64x64xf32>
    %465 = vector.broadcast %427 : f32 to vector<8x64xf32>
    %466 = arith.mulf %465, %28 : vector<8x64xf32>
    %467 = vector.broadcast %426 : vector<1x64xf32> to vector<8x64xf32>
    %468 = arith.addf %467, %466 : vector<8x64xf32>
    %cst_158 = arith.constant dense<0.000000e+00> : vector<8x64xf32>
    %469 = tpu.matmul %423, %464, %cst_158 {dimension_numbers = #tpu.dot_dimension_numbers<[1], [0], [0], [1], [0, 0, 1, 1], [], []>} : vector<8x64xf32>, vector<64x64xf32>, vector<8x64xf32> -> vector<8x64xf32>
    %470 = arith.addf %469, %468 : vector<8x64xf32>
    %cst_159 = arith.constant 0.000000e+00 : f32
    %471 = vector.broadcast %cst_159 : f32 to vector<8x64xf32>
    %472 = arith.maximumf %470, %471 : vector<8x64xf32>
    %c9_160 = arith.constant 9 : index
    %c0_161 = arith.constant 0 : index
    %c0_162 = arith.constant 0 : index
    %473 = vector.load %arg5[%c9_160, %c0_161, %c0_162] : memref<15x64x64xf32, #tpu.memory_space<vmem>>, vector<1x64x64xf32>
    %474 = vector.shape_cast %473 : vector<1x64x64xf32> to vector<64x64xf32>
    %c9_163 = arith.constant 9 : index
    %c0_164 = arith.constant 0 : index
    %475 = vector.load %arg6[%c9_163, %c0_164] : memref<15x64xf32, #tpu.memory_space<vmem>>, vector<1x64xf32>
    %c18 = arith.constant 18 : index
    %476 = memref.load %arg1[%c18] : memref<30xf32, #tpu.memory_space<smem>>
    %c19 = arith.constant 19 : index
    %477 = memref.load %arg1[%c19] : memref<30xf32, #tpu.memory_space<smem>>
    %478 = vector.broadcast %477 : f32 to vector<64x64xf32>
    %479 = arith.mulf %478, %5 : vector<64x64xf32>
    %480 = arith.subf %474, %479 : vector<64x64xf32>
    %481 = vector.broadcast %476 : f32 to vector<8x64xf32>
    %482 = arith.mulf %481, %4 : vector<8x64xf32>
    %483 = vector.broadcast %475 : vector<1x64xf32> to vector<8x64xf32>
    %484 = arith.addf %483, %482 : vector<8x64xf32>
    %cst_165 = arith.constant dense<0.000000e+00> : vector<8x64xf32>
    %485 = tpu.matmul %439, %480, %cst_165 {dimension_numbers = #tpu.dot_dimension_numbers<[1], [0], [0], [1], [0, 0, 1, 1], [], []>} : vector<8x64xf32>, vector<64x64xf32>, vector<8x64xf32> -> vector<8x64xf32>
    %486 = arith.addf %485, %484 : vector<8x64xf32>
    %cst_166 = arith.constant 0.000000e+00 : f32
    %487 = vector.broadcast %cst_166 : f32 to vector<8x64xf32>
    %488 = arith.maximumf %486, %487 : vector<8x64xf32>
    %489 = vector.broadcast %477 : f32 to vector<64x64xf32>
    %490 = arith.mulf %489, %13 : vector<64x64xf32>
    %491 = arith.subf %474, %490 : vector<64x64xf32>
    %492 = vector.broadcast %476 : f32 to vector<8x64xf32>
    %493 = arith.mulf %492, %12 : vector<8x64xf32>
    %494 = vector.broadcast %475 : vector<1x64xf32> to vector<8x64xf32>
    %495 = arith.addf %494, %493 : vector<8x64xf32>
    %cst_167 = arith.constant dense<0.000000e+00> : vector<8x64xf32>
    %496 = tpu.matmul %450, %491, %cst_167 {dimension_numbers = #tpu.dot_dimension_numbers<[1], [0], [0], [1], [0, 0, 1, 1], [], []>} : vector<8x64xf32>, vector<64x64xf32>, vector<8x64xf32> -> vector<8x64xf32>
    %497 = arith.addf %496, %495 : vector<8x64xf32>
    %cst_168 = arith.constant 0.000000e+00 : f32
    %498 = vector.broadcast %cst_168 : f32 to vector<8x64xf32>
    %499 = arith.maximumf %497, %498 : vector<8x64xf32>
    %500 = vector.broadcast %477 : f32 to vector<64x64xf32>
    %501 = arith.mulf %500, %21 : vector<64x64xf32>
    %502 = arith.subf %474, %501 : vector<64x64xf32>
    %503 = vector.broadcast %476 : f32 to vector<8x64xf32>
    %504 = arith.mulf %503, %20 : vector<8x64xf32>
    %505 = vector.broadcast %475 : vector<1x64xf32> to vector<8x64xf32>
    %506 = arith.addf %505, %504 : vector<8x64xf32>
    %cst_169 = arith.constant dense<0.000000e+00> : vector<8x64xf32>
    %507 = tpu.matmul %461, %502, %cst_169 {dimension_numbers = #tpu.dot_dimension_numbers<[1], [0], [0], [1], [0, 0, 1, 1], [], []>} : vector<8x64xf32>, vector<64x64xf32>, vector<8x64xf32> -> vector<8x64xf32>
    %508 = arith.addf %507, %506 : vector<8x64xf32>
    %cst_170 = arith.constant 0.000000e+00 : f32
    %509 = vector.broadcast %cst_170 : f32 to vector<8x64xf32>
    %510 = arith.maximumf %508, %509 : vector<8x64xf32>
    %511 = vector.broadcast %477 : f32 to vector<64x64xf32>
    %512 = arith.mulf %511, %29 : vector<64x64xf32>
    %513 = arith.subf %474, %512 : vector<64x64xf32>
    %514 = vector.broadcast %476 : f32 to vector<8x64xf32>
    %515 = arith.mulf %514, %28 : vector<8x64xf32>
    %516 = vector.broadcast %475 : vector<1x64xf32> to vector<8x64xf32>
    %517 = arith.addf %516, %515 : vector<8x64xf32>
    %cst_171 = arith.constant dense<0.000000e+00> : vector<8x64xf32>
    %518 = tpu.matmul %472, %513, %cst_171 {dimension_numbers = #tpu.dot_dimension_numbers<[1], [0], [0], [1], [0, 0, 1, 1], [], []>} : vector<8x64xf32>, vector<64x64xf32>, vector<8x64xf32> -> vector<8x64xf32>
    %519 = arith.addf %518, %517 : vector<8x64xf32>
    %cst_172 = arith.constant 0.000000e+00 : f32
    %520 = vector.broadcast %cst_172 : f32 to vector<8x64xf32>
    %521 = arith.maximumf %519, %520 : vector<8x64xf32>
    %c10_173 = arith.constant 10 : index
    %c0_174 = arith.constant 0 : index
    %c0_175 = arith.constant 0 : index
    %522 = vector.load %arg5[%c10_173, %c0_174, %c0_175] : memref<15x64x64xf32, #tpu.memory_space<vmem>>, vector<1x64x64xf32>
    %523 = vector.shape_cast %522 : vector<1x64x64xf32> to vector<64x64xf32>
    %c10_176 = arith.constant 10 : index
    %c0_177 = arith.constant 0 : index
    %524 = vector.load %arg6[%c10_176, %c0_177] : memref<15x64xf32, #tpu.memory_space<vmem>>, vector<1x64xf32>
    %c20 = arith.constant 20 : index
    %525 = memref.load %arg1[%c20] : memref<30xf32, #tpu.memory_space<smem>>
    %c21 = arith.constant 21 : index
    %526 = memref.load %arg1[%c21] : memref<30xf32, #tpu.memory_space<smem>>
    %527 = vector.broadcast %526 : f32 to vector<64x64xf32>
    %528 = arith.mulf %527, %5 : vector<64x64xf32>
    %529 = arith.subf %523, %528 : vector<64x64xf32>
    %530 = vector.broadcast %525 : f32 to vector<8x64xf32>
    %531 = arith.mulf %530, %4 : vector<8x64xf32>
    %532 = vector.broadcast %524 : vector<1x64xf32> to vector<8x64xf32>
    %533 = arith.addf %532, %531 : vector<8x64xf32>
    %cst_178 = arith.constant dense<0.000000e+00> : vector<8x64xf32>
    %534 = tpu.matmul %488, %529, %cst_178 {dimension_numbers = #tpu.dot_dimension_numbers<[1], [0], [0], [1], [0, 0, 1, 1], [], []>} : vector<8x64xf32>, vector<64x64xf32>, vector<8x64xf32> -> vector<8x64xf32>
    %535 = arith.addf %534, %533 : vector<8x64xf32>
    %cst_179 = arith.constant 0.000000e+00 : f32
    %536 = vector.broadcast %cst_179 : f32 to vector<8x64xf32>
    %537 = arith.maximumf %535, %536 : vector<8x64xf32>
    %538 = vector.broadcast %526 : f32 to vector<64x64xf32>
    %539 = arith.mulf %538, %13 : vector<64x64xf32>
    %540 = arith.subf %523, %539 : vector<64x64xf32>
    %541 = vector.broadcast %525 : f32 to vector<8x64xf32>
    %542 = arith.mulf %541, %12 : vector<8x64xf32>
    %543 = vector.broadcast %524 : vector<1x64xf32> to vector<8x64xf32>
    %544 = arith.addf %543, %542 : vector<8x64xf32>
    %cst_180 = arith.constant dense<0.000000e+00> : vector<8x64xf32>
    %545 = tpu.matmul %499, %540, %cst_180 {dimension_numbers = #tpu.dot_dimension_numbers<[1], [0], [0], [1], [0, 0, 1, 1], [], []>} : vector<8x64xf32>, vector<64x64xf32>, vector<8x64xf32> -> vector<8x64xf32>
    %546 = arith.addf %545, %544 : vector<8x64xf32>
    %cst_181 = arith.constant 0.000000e+00 : f32
    %547 = vector.broadcast %cst_181 : f32 to vector<8x64xf32>
    %548 = arith.maximumf %546, %547 : vector<8x64xf32>
    %549 = vector.broadcast %526 : f32 to vector<64x64xf32>
    %550 = arith.mulf %549, %21 : vector<64x64xf32>
    %551 = arith.subf %523, %550 : vector<64x64xf32>
    %552 = vector.broadcast %525 : f32 to vector<8x64xf32>
    %553 = arith.mulf %552, %20 : vector<8x64xf32>
    %554 = vector.broadcast %524 : vector<1x64xf32> to vector<8x64xf32>
    %555 = arith.addf %554, %553 : vector<8x64xf32>
    %cst_182 = arith.constant dense<0.000000e+00> : vector<8x64xf32>
    %556 = tpu.matmul %510, %551, %cst_182 {dimension_numbers = #tpu.dot_dimension_numbers<[1], [0], [0], [1], [0, 0, 1, 1], [], []>} : vector<8x64xf32>, vector<64x64xf32>, vector<8x64xf32> -> vector<8x64xf32>
    %557 = arith.addf %556, %555 : vector<8x64xf32>
    %cst_183 = arith.constant 0.000000e+00 : f32
    %558 = vector.broadcast %cst_183 : f32 to vector<8x64xf32>
    %559 = arith.maximumf %557, %558 : vector<8x64xf32>
    %560 = vector.broadcast %526 : f32 to vector<64x64xf32>
    %561 = arith.mulf %560, %29 : vector<64x64xf32>
    %562 = arith.subf %523, %561 : vector<64x64xf32>
    %563 = vector.broadcast %525 : f32 to vector<8x64xf32>
    %564 = arith.mulf %563, %28 : vector<8x64xf32>
    %565 = vector.broadcast %524 : vector<1x64xf32> to vector<8x64xf32>
    %566 = arith.addf %565, %564 : vector<8x64xf32>
    %cst_184 = arith.constant dense<0.000000e+00> : vector<8x64xf32>
    %567 = tpu.matmul %521, %562, %cst_184 {dimension_numbers = #tpu.dot_dimension_numbers<[1], [0], [0], [1], [0, 0, 1, 1], [], []>} : vector<8x64xf32>, vector<64x64xf32>, vector<8x64xf32> -> vector<8x64xf32>
    %568 = arith.addf %567, %566 : vector<8x64xf32>
    %cst_185 = arith.constant 0.000000e+00 : f32
    %569 = vector.broadcast %cst_185 : f32 to vector<8x64xf32>
    %570 = arith.maximumf %568, %569 : vector<8x64xf32>
    %c11_186 = arith.constant 11 : index
    %c0_187 = arith.constant 0 : index
    %c0_188 = arith.constant 0 : index
    %571 = vector.load %arg5[%c11_186, %c0_187, %c0_188] : memref<15x64x64xf32, #tpu.memory_space<vmem>>, vector<1x64x64xf32>
    %572 = vector.shape_cast %571 : vector<1x64x64xf32> to vector<64x64xf32>
    %c11_189 = arith.constant 11 : index
    %c0_190 = arith.constant 0 : index
    %573 = vector.load %arg6[%c11_189, %c0_190] : memref<15x64xf32, #tpu.memory_space<vmem>>, vector<1x64xf32>
    %c22 = arith.constant 22 : index
    %574 = memref.load %arg1[%c22] : memref<30xf32, #tpu.memory_space<smem>>
    %c23 = arith.constant 23 : index
    %575 = memref.load %arg1[%c23] : memref<30xf32, #tpu.memory_space<smem>>
    %576 = vector.broadcast %575 : f32 to vector<64x64xf32>
    %577 = arith.mulf %576, %5 : vector<64x64xf32>
    %578 = arith.subf %572, %577 : vector<64x64xf32>
    %579 = vector.broadcast %574 : f32 to vector<8x64xf32>
    %580 = arith.mulf %579, %4 : vector<8x64xf32>
    %581 = vector.broadcast %573 : vector<1x64xf32> to vector<8x64xf32>
    %582 = arith.addf %581, %580 : vector<8x64xf32>
    %cst_191 = arith.constant dense<0.000000e+00> : vector<8x64xf32>
    %583 = tpu.matmul %537, %578, %cst_191 {dimension_numbers = #tpu.dot_dimension_numbers<[1], [0], [0], [1], [0, 0, 1, 1], [], []>} : vector<8x64xf32>, vector<64x64xf32>, vector<8x64xf32> -> vector<8x64xf32>
    %584 = arith.addf %583, %582 : vector<8x64xf32>
    %cst_192 = arith.constant 0.000000e+00 : f32
    %585 = vector.broadcast %cst_192 : f32 to vector<8x64xf32>
    %586 = arith.maximumf %584, %585 : vector<8x64xf32>
    %587 = vector.broadcast %575 : f32 to vector<64x64xf32>
    %588 = arith.mulf %587, %13 : vector<64x64xf32>
    %589 = arith.subf %572, %588 : vector<64x64xf32>
    %590 = vector.broadcast %574 : f32 to vector<8x64xf32>
    %591 = arith.mulf %590, %12 : vector<8x64xf32>
    %592 = vector.broadcast %573 : vector<1x64xf32> to vector<8x64xf32>
    %593 = arith.addf %592, %591 : vector<8x64xf32>
    %cst_193 = arith.constant dense<0.000000e+00> : vector<8x64xf32>
    %594 = tpu.matmul %548, %589, %cst_193 {dimension_numbers = #tpu.dot_dimension_numbers<[1], [0], [0], [1], [0, 0, 1, 1], [], []>} : vector<8x64xf32>, vector<64x64xf32>, vector<8x64xf32> -> vector<8x64xf32>
    %595 = arith.addf %594, %593 : vector<8x64xf32>
    %cst_194 = arith.constant 0.000000e+00 : f32
    %596 = vector.broadcast %cst_194 : f32 to vector<8x64xf32>
    %597 = arith.maximumf %595, %596 : vector<8x64xf32>
    %598 = vector.broadcast %575 : f32 to vector<64x64xf32>
    %599 = arith.mulf %598, %21 : vector<64x64xf32>
    %600 = arith.subf %572, %599 : vector<64x64xf32>
    %601 = vector.broadcast %574 : f32 to vector<8x64xf32>
    %602 = arith.mulf %601, %20 : vector<8x64xf32>
    %603 = vector.broadcast %573 : vector<1x64xf32> to vector<8x64xf32>
    %604 = arith.addf %603, %602 : vector<8x64xf32>
    %cst_195 = arith.constant dense<0.000000e+00> : vector<8x64xf32>
    %605 = tpu.matmul %559, %600, %cst_195 {dimension_numbers = #tpu.dot_dimension_numbers<[1], [0], [0], [1], [0, 0, 1, 1], [], []>} : vector<8x64xf32>, vector<64x64xf32>, vector<8x64xf32> -> vector<8x64xf32>
    %606 = arith.addf %605, %604 : vector<8x64xf32>
    %cst_196 = arith.constant 0.000000e+00 : f32
    %607 = vector.broadcast %cst_196 : f32 to vector<8x64xf32>
    %608 = arith.maximumf %606, %607 : vector<8x64xf32>
    %609 = vector.broadcast %575 : f32 to vector<64x64xf32>
    %610 = arith.mulf %609, %29 : vector<64x64xf32>
    %611 = arith.subf %572, %610 : vector<64x64xf32>
    %612 = vector.broadcast %574 : f32 to vector<8x64xf32>
    %613 = arith.mulf %612, %28 : vector<8x64xf32>
    %614 = vector.broadcast %573 : vector<1x64xf32> to vector<8x64xf32>
    %615 = arith.addf %614, %613 : vector<8x64xf32>
    %cst_197 = arith.constant dense<0.000000e+00> : vector<8x64xf32>
    %616 = tpu.matmul %570, %611, %cst_197 {dimension_numbers = #tpu.dot_dimension_numbers<[1], [0], [0], [1], [0, 0, 1, 1], [], []>} : vector<8x64xf32>, vector<64x64xf32>, vector<8x64xf32> -> vector<8x64xf32>
    %617 = arith.addf %616, %615 : vector<8x64xf32>
    %cst_198 = arith.constant 0.000000e+00 : f32
    %618 = vector.broadcast %cst_198 : f32 to vector<8x64xf32>
    %619 = arith.maximumf %617, %618 : vector<8x64xf32>
    %c12_199 = arith.constant 12 : index
    %c0_200 = arith.constant 0 : index
    %c0_201 = arith.constant 0 : index
    %620 = vector.load %arg5[%c12_199, %c0_200, %c0_201] : memref<15x64x64xf32, #tpu.memory_space<vmem>>, vector<1x64x64xf32>
    %621 = vector.shape_cast %620 : vector<1x64x64xf32> to vector<64x64xf32>
    %c12_202 = arith.constant 12 : index
    %c0_203 = arith.constant 0 : index
    %622 = vector.load %arg6[%c12_202, %c0_203] : memref<15x64xf32, #tpu.memory_space<vmem>>, vector<1x64xf32>
    %c24 = arith.constant 24 : index
    %623 = memref.load %arg1[%c24] : memref<30xf32, #tpu.memory_space<smem>>
    %c25 = arith.constant 25 : index
    %624 = memref.load %arg1[%c25] : memref<30xf32, #tpu.memory_space<smem>>
    %625 = vector.broadcast %624 : f32 to vector<64x64xf32>
    %626 = arith.mulf %625, %5 : vector<64x64xf32>
    %627 = arith.subf %621, %626 : vector<64x64xf32>
    %628 = vector.broadcast %623 : f32 to vector<8x64xf32>
    %629 = arith.mulf %628, %4 : vector<8x64xf32>
    %630 = vector.broadcast %622 : vector<1x64xf32> to vector<8x64xf32>
    %631 = arith.addf %630, %629 : vector<8x64xf32>
    %cst_204 = arith.constant dense<0.000000e+00> : vector<8x64xf32>
    %632 = tpu.matmul %586, %627, %cst_204 {dimension_numbers = #tpu.dot_dimension_numbers<[1], [0], [0], [1], [0, 0, 1, 1], [], []>} : vector<8x64xf32>, vector<64x64xf32>, vector<8x64xf32> -> vector<8x64xf32>
    %633 = arith.addf %632, %631 : vector<8x64xf32>
    %cst_205 = arith.constant 0.000000e+00 : f32
    %634 = vector.broadcast %cst_205 : f32 to vector<8x64xf32>
    %635 = arith.maximumf %633, %634 : vector<8x64xf32>
    %636 = vector.broadcast %624 : f32 to vector<64x64xf32>
    %637 = arith.mulf %636, %13 : vector<64x64xf32>
    %638 = arith.subf %621, %637 : vector<64x64xf32>
    %639 = vector.broadcast %623 : f32 to vector<8x64xf32>
    %640 = arith.mulf %639, %12 : vector<8x64xf32>
    %641 = vector.broadcast %622 : vector<1x64xf32> to vector<8x64xf32>
    %642 = arith.addf %641, %640 : vector<8x64xf32>
    %cst_206 = arith.constant dense<0.000000e+00> : vector<8x64xf32>
    %643 = tpu.matmul %597, %638, %cst_206 {dimension_numbers = #tpu.dot_dimension_numbers<[1], [0], [0], [1], [0, 0, 1, 1], [], []>} : vector<8x64xf32>, vector<64x64xf32>, vector<8x64xf32> -> vector<8x64xf32>
    %644 = arith.addf %643, %642 : vector<8x64xf32>
    %cst_207 = arith.constant 0.000000e+00 : f32
    %645 = vector.broadcast %cst_207 : f32 to vector<8x64xf32>
    %646 = arith.maximumf %644, %645 : vector<8x64xf32>
    %647 = vector.broadcast %624 : f32 to vector<64x64xf32>
    %648 = arith.mulf %647, %21 : vector<64x64xf32>
    %649 = arith.subf %621, %648 : vector<64x64xf32>
    %650 = vector.broadcast %623 : f32 to vector<8x64xf32>
    %651 = arith.mulf %650, %20 : vector<8x64xf32>
    %652 = vector.broadcast %622 : vector<1x64xf32> to vector<8x64xf32>
    %653 = arith.addf %652, %651 : vector<8x64xf32>
    %cst_208 = arith.constant dense<0.000000e+00> : vector<8x64xf32>
    %654 = tpu.matmul %608, %649, %cst_208 {dimension_numbers = #tpu.dot_dimension_numbers<[1], [0], [0], [1], [0, 0, 1, 1], [], []>} : vector<8x64xf32>, vector<64x64xf32>, vector<8x64xf32> -> vector<8x64xf32>
    %655 = arith.addf %654, %653 : vector<8x64xf32>
    %cst_209 = arith.constant 0.000000e+00 : f32
    %656 = vector.broadcast %cst_209 : f32 to vector<8x64xf32>
    %657 = arith.maximumf %655, %656 : vector<8x64xf32>
    %658 = vector.broadcast %624 : f32 to vector<64x64xf32>
    %659 = arith.mulf %658, %29 : vector<64x64xf32>
    %660 = arith.subf %621, %659 : vector<64x64xf32>
    %661 = vector.broadcast %623 : f32 to vector<8x64xf32>
    %662 = arith.mulf %661, %28 : vector<8x64xf32>
    %663 = vector.broadcast %622 : vector<1x64xf32> to vector<8x64xf32>
    %664 = arith.addf %663, %662 : vector<8x64xf32>
    %cst_210 = arith.constant dense<0.000000e+00> : vector<8x64xf32>
    %665 = tpu.matmul %619, %660, %cst_210 {dimension_numbers = #tpu.dot_dimension_numbers<[1], [0], [0], [1], [0, 0, 1, 1], [], []>} : vector<8x64xf32>, vector<64x64xf32>, vector<8x64xf32> -> vector<8x64xf32>
    %666 = arith.addf %665, %664 : vector<8x64xf32>
    %cst_211 = arith.constant 0.000000e+00 : f32
    %667 = vector.broadcast %cst_211 : f32 to vector<8x64xf32>
    %668 = arith.maximumf %666, %667 : vector<8x64xf32>
    %c13_212 = arith.constant 13 : index
    %c0_213 = arith.constant 0 : index
    %c0_214 = arith.constant 0 : index
    %669 = vector.load %arg5[%c13_212, %c0_213, %c0_214] : memref<15x64x64xf32, #tpu.memory_space<vmem>>, vector<1x64x64xf32>
    %670 = vector.shape_cast %669 : vector<1x64x64xf32> to vector<64x64xf32>
    %c13_215 = arith.constant 13 : index
    %c0_216 = arith.constant 0 : index
    %671 = vector.load %arg6[%c13_215, %c0_216] : memref<15x64xf32, #tpu.memory_space<vmem>>, vector<1x64xf32>
    %c26 = arith.constant 26 : index
    %672 = memref.load %arg1[%c26] : memref<30xf32, #tpu.memory_space<smem>>
    %c27 = arith.constant 27 : index
    %673 = memref.load %arg1[%c27] : memref<30xf32, #tpu.memory_space<smem>>
    %674 = vector.broadcast %673 : f32 to vector<64x64xf32>
    %675 = arith.mulf %674, %5 : vector<64x64xf32>
    %676 = arith.subf %670, %675 : vector<64x64xf32>
    %677 = vector.broadcast %672 : f32 to vector<8x64xf32>
    %678 = arith.mulf %677, %4 : vector<8x64xf32>
    %679 = vector.broadcast %671 : vector<1x64xf32> to vector<8x64xf32>
    %680 = arith.addf %679, %678 : vector<8x64xf32>
    %cst_217 = arith.constant dense<0.000000e+00> : vector<8x64xf32>
    %681 = tpu.matmul %635, %676, %cst_217 {dimension_numbers = #tpu.dot_dimension_numbers<[1], [0], [0], [1], [0, 0, 1, 1], [], []>} : vector<8x64xf32>, vector<64x64xf32>, vector<8x64xf32> -> vector<8x64xf32>
    %682 = arith.addf %681, %680 : vector<8x64xf32>
    %cst_218 = arith.constant 0.000000e+00 : f32
    %683 = vector.broadcast %cst_218 : f32 to vector<8x64xf32>
    %684 = arith.maximumf %682, %683 : vector<8x64xf32>
    %685 = vector.broadcast %673 : f32 to vector<64x64xf32>
    %686 = arith.mulf %685, %13 : vector<64x64xf32>
    %687 = arith.subf %670, %686 : vector<64x64xf32>
    %688 = vector.broadcast %672 : f32 to vector<8x64xf32>
    %689 = arith.mulf %688, %12 : vector<8x64xf32>
    %690 = vector.broadcast %671 : vector<1x64xf32> to vector<8x64xf32>
    %691 = arith.addf %690, %689 : vector<8x64xf32>
    %cst_219 = arith.constant dense<0.000000e+00> : vector<8x64xf32>
    %692 = tpu.matmul %646, %687, %cst_219 {dimension_numbers = #tpu.dot_dimension_numbers<[1], [0], [0], [1], [0, 0, 1, 1], [], []>} : vector<8x64xf32>, vector<64x64xf32>, vector<8x64xf32> -> vector<8x64xf32>
    %693 = arith.addf %692, %691 : vector<8x64xf32>
    %cst_220 = arith.constant 0.000000e+00 : f32
    %694 = vector.broadcast %cst_220 : f32 to vector<8x64xf32>
    %695 = arith.maximumf %693, %694 : vector<8x64xf32>
    %696 = vector.broadcast %673 : f32 to vector<64x64xf32>
    %697 = arith.mulf %696, %21 : vector<64x64xf32>
    %698 = arith.subf %670, %697 : vector<64x64xf32>
    %699 = vector.broadcast %672 : f32 to vector<8x64xf32>
    %700 = arith.mulf %699, %20 : vector<8x64xf32>
    %701 = vector.broadcast %671 : vector<1x64xf32> to vector<8x64xf32>
    %702 = arith.addf %701, %700 : vector<8x64xf32>
    %cst_221 = arith.constant dense<0.000000e+00> : vector<8x64xf32>
    %703 = tpu.matmul %657, %698, %cst_221 {dimension_numbers = #tpu.dot_dimension_numbers<[1], [0], [0], [1], [0, 0, 1, 1], [], []>} : vector<8x64xf32>, vector<64x64xf32>, vector<8x64xf32> -> vector<8x64xf32>
    %704 = arith.addf %703, %702 : vector<8x64xf32>
    %cst_222 = arith.constant 0.000000e+00 : f32
    %705 = vector.broadcast %cst_222 : f32 to vector<8x64xf32>
    %706 = arith.maximumf %704, %705 : vector<8x64xf32>
    %707 = vector.broadcast %673 : f32 to vector<64x64xf32>
    %708 = arith.mulf %707, %29 : vector<64x64xf32>
    %709 = arith.subf %670, %708 : vector<64x64xf32>
    %710 = vector.broadcast %672 : f32 to vector<8x64xf32>
    %711 = arith.mulf %710, %28 : vector<8x64xf32>
    %712 = vector.broadcast %671 : vector<1x64xf32> to vector<8x64xf32>
    %713 = arith.addf %712, %711 : vector<8x64xf32>
    %cst_223 = arith.constant dense<0.000000e+00> : vector<8x64xf32>
    %714 = tpu.matmul %668, %709, %cst_223 {dimension_numbers = #tpu.dot_dimension_numbers<[1], [0], [0], [1], [0, 0, 1, 1], [], []>} : vector<8x64xf32>, vector<64x64xf32>, vector<8x64xf32> -> vector<8x64xf32>
    %715 = arith.addf %714, %713 : vector<8x64xf32>
    %cst_224 = arith.constant 0.000000e+00 : f32
    %716 = vector.broadcast %cst_224 : f32 to vector<8x64xf32>
    %717 = arith.maximumf %715, %716 : vector<8x64xf32>
    %c14_225 = arith.constant 14 : index
    %c0_226 = arith.constant 0 : index
    %c0_227 = arith.constant 0 : index
    %718 = vector.load %arg5[%c14_225, %c0_226, %c0_227] : memref<15x64x64xf32, #tpu.memory_space<vmem>>, vector<1x64x64xf32>
    %719 = vector.shape_cast %718 : vector<1x64x64xf32> to vector<64x64xf32>
    %c14_228 = arith.constant 14 : index
    %c0_229 = arith.constant 0 : index
    %720 = vector.load %arg6[%c14_228, %c0_229] : memref<15x64xf32, #tpu.memory_space<vmem>>, vector<1x64xf32>
    %c28 = arith.constant 28 : index
    %721 = memref.load %arg1[%c28] : memref<30xf32, #tpu.memory_space<smem>>
    %c29 = arith.constant 29 : index
    %722 = memref.load %arg1[%c29] : memref<30xf32, #tpu.memory_space<smem>>
    %723 = vector.broadcast %722 : f32 to vector<64x64xf32>
    %724 = arith.mulf %723, %5 : vector<64x64xf32>
    %725 = arith.subf %719, %724 : vector<64x64xf32>
    %726 = vector.broadcast %721 : f32 to vector<8x64xf32>
    %727 = arith.mulf %726, %4 : vector<8x64xf32>
    %728 = vector.broadcast %720 : vector<1x64xf32> to vector<8x64xf32>
    %729 = arith.addf %728, %727 : vector<8x64xf32>
    %cst_230 = arith.constant dense<0.000000e+00> : vector<8x64xf32>
    %730 = tpu.matmul %684, %725, %cst_230 {dimension_numbers = #tpu.dot_dimension_numbers<[1], [0], [0], [1], [0, 0, 1, 1], [], []>} : vector<8x64xf32>, vector<64x64xf32>, vector<8x64xf32> -> vector<8x64xf32>
    %731 = arith.addf %730, %729 : vector<8x64xf32>
    %cst_231 = arith.constant 0.000000e+00 : f32
    %732 = vector.broadcast %cst_231 : f32 to vector<8x64xf32>
    %733 = arith.maximumf %731, %732 : vector<8x64xf32>
    %734 = vector.broadcast %722 : f32 to vector<64x64xf32>
    %735 = arith.mulf %734, %13 : vector<64x64xf32>
    %736 = arith.subf %719, %735 : vector<64x64xf32>
    %737 = vector.broadcast %721 : f32 to vector<8x64xf32>
    %738 = arith.mulf %737, %12 : vector<8x64xf32>
    %739 = vector.broadcast %720 : vector<1x64xf32> to vector<8x64xf32>
    %740 = arith.addf %739, %738 : vector<8x64xf32>
    %cst_232 = arith.constant dense<0.000000e+00> : vector<8x64xf32>
    %741 = tpu.matmul %695, %736, %cst_232 {dimension_numbers = #tpu.dot_dimension_numbers<[1], [0], [0], [1], [0, 0, 1, 1], [], []>} : vector<8x64xf32>, vector<64x64xf32>, vector<8x64xf32> -> vector<8x64xf32>
    %742 = arith.addf %741, %740 : vector<8x64xf32>
    %cst_233 = arith.constant 0.000000e+00 : f32
    %743 = vector.broadcast %cst_233 : f32 to vector<8x64xf32>
    %744 = arith.maximumf %742, %743 : vector<8x64xf32>
    %745 = vector.broadcast %722 : f32 to vector<64x64xf32>
    %746 = arith.mulf %745, %21 : vector<64x64xf32>
    %747 = arith.subf %719, %746 : vector<64x64xf32>
    %748 = vector.broadcast %721 : f32 to vector<8x64xf32>
    %749 = arith.mulf %748, %20 : vector<8x64xf32>
    %750 = vector.broadcast %720 : vector<1x64xf32> to vector<8x64xf32>
    %751 = arith.addf %750, %749 : vector<8x64xf32>
    %cst_234 = arith.constant dense<0.000000e+00> : vector<8x64xf32>
    %752 = tpu.matmul %706, %747, %cst_234 {dimension_numbers = #tpu.dot_dimension_numbers<[1], [0], [0], [1], [0, 0, 1, 1], [], []>} : vector<8x64xf32>, vector<64x64xf32>, vector<8x64xf32> -> vector<8x64xf32>
    %753 = arith.addf %752, %751 : vector<8x64xf32>
    %cst_235 = arith.constant 0.000000e+00 : f32
    %754 = vector.broadcast %cst_235 : f32 to vector<8x64xf32>
    %755 = arith.maximumf %753, %754 : vector<8x64xf32>
    %756 = vector.broadcast %722 : f32 to vector<64x64xf32>
    %757 = arith.mulf %756, %29 : vector<64x64xf32>
    %758 = arith.subf %719, %757 : vector<64x64xf32>
    %759 = vector.broadcast %721 : f32 to vector<8x64xf32>
    %760 = arith.mulf %759, %28 : vector<8x64xf32>
    %761 = vector.broadcast %720 : vector<1x64xf32> to vector<8x64xf32>
    %762 = arith.addf %761, %760 : vector<8x64xf32>
    %cst_236 = arith.constant dense<0.000000e+00> : vector<8x64xf32>
    %763 = tpu.matmul %717, %758, %cst_236 {dimension_numbers = #tpu.dot_dimension_numbers<[1], [0], [0], [1], [0, 0, 1, 1], [], []>} : vector<8x64xf32>, vector<64x64xf32>, vector<8x64xf32> -> vector<8x64xf32>
    %764 = arith.addf %763, %762 : vector<8x64xf32>
    %cst_237 = arith.constant 0.000000e+00 : f32
    %765 = vector.broadcast %cst_237 : f32 to vector<8x64xf32>
    %766 = arith.maximumf %764, %765 : vector<8x64xf32>
    %c0_238 = arith.constant 0 : index
    %c0_239 = arith.constant 0 : index
    %767 = vector.load %arg7[%c0_238, %c0_239] : memref<64x64xf32, #tpu.memory_space<vmem>>, vector<64x64xf32>
    %c0_240 = arith.constant 0 : index
    %c0_241 = arith.constant 0 : index
    %768 = vector.load %arg8[%c0_240, %c0_241] : memref<1x64xf32, #tpu.memory_space<vmem>>, vector<1x64xf32>
    %769 = tpu.concatenate %733, %744, %755, %766 in 0 : vector<8x64xf32>, vector<8x64xf32>, vector<8x64xf32>, vector<8x64xf32> -> vector<32x64xf32>
    %cst_242 = arith.constant dense<0.000000e+00> : vector<32x64xf32>
    %770 = tpu.matmul %769, %767, %cst_242 {dimension_numbers = #tpu.dot_dimension_numbers<[1], [0], [0], [1], [0, 0, 1, 1], [], []>} : vector<32x64xf32>, vector<64x64xf32>, vector<32x64xf32> -> vector<32x64xf32>
    %771 = vector.broadcast %768 : vector<1x64xf32> to vector<32x64xf32>
    %772 = arith.addf %770, %771 : vector<32x64xf32>
    %773 = vector.shape_cast %772 : vector<32x64xf32> to vector<4x8x64xf32>
    %c0_243 = arith.constant 0 : index
    %c0_244 = arith.constant 0 : index
    %c0_245 = arith.constant 0 : index
    %774 = vector.load %arg9[%c0_243, %c0_244, %c0_245] : memref<4x8x64xf32, #tpu.memory_space<vmem>>, vector<4x8x64xf32>
    tpu.vector_store %arg9[%c0_243, %c0_244, %c0_245], %773 {strides = array<i32>} : memref<4x8x64xf32, #tpu.memory_space<vmem>>, vector<4x8x64xf32>,
    return
  }
  func.func @transform_0(%arg0: i32) -> i32 {
    %c0_i32 = arith.constant 0 : i32
    %c0_i32_0 = arith.constant 0 : i32
    return %c0_i32 : i32
  }
  func.func @transform_1(%arg0: i32) -> (i32, i32, i32) {
    %c0_i32 = arith.constant 0 : i32
    %c0_i32_0 = arith.constant 0 : i32
    %c0_i32_1 = arith.constant 0 : i32
    return %arg0, %c0_i32, %c0_i32_0 : i32, i32, i32
  }
  func.func @transform_2(%arg0: i32) -> (i32, i32, i32) {
    %c0_i32 = arith.constant 0 : i32
    %c0_i32_0 = arith.constant 0 : i32
    %c0_i32_1 = arith.constant 0 : i32
    return %arg0, %c0_i32, %c0_i32_0 : i32, i32, i32
  }
  func.func @transform_3(%arg0: i32) -> (i32, i32, i32) {
    %c0_i32 = arith.constant 0 : i32
    %c0_i32_0 = arith.constant 0 : i32
    %c0_i32_1 = arith.constant 0 : i32
    return %arg0, %c0_i32, %c0_i32_0 : i32, i32, i32
  }
  func.func @transform_4(%arg0: i32) -> (i32, i32, i32) {
    %c0_i32 = arith.constant 0 : i32
    %c0_i32_0 = arith.constant 0 : i32
    %c0_i32_1 = arith.constant 0 : i32
    %c0_i32_2 = arith.constant 0 : i32
    return %c0_i32, %c0_i32_0, %c0_i32_1 : i32, i32, i32
  }
  func.func @transform_5(%arg0: i32) -> (i32, i32) {
    %c0_i32 = arith.constant 0 : i32
    %c0_i32_0 = arith.constant 0 : i32
    %c0_i32_1 = arith.constant 0 : i32
    return %c0_i32, %c0_i32_0 : i32, i32
  }
  func.func @transform_6(%arg0: i32) -> (i32, i32) {
    %c0_i32 = arith.constant 0 : i32
    %c0_i32_0 = arith.constant 0 : i32
    %c0_i32_1 = arith.constant 0 : i32
    return %c0_i32, %c0_i32_0 : i32, i32
  }
  func.func @transform_7(%arg0: i32) -> (i32, i32) {
    %c0_i32 = arith.constant 0 : i32
    %c0_i32_0 = arith.constant 0 : i32
    %c0_i32_1 = arith.constant 0 : i32
    return %c0_i32, %c0_i32_0 : i32, i32
  }
  func.func @transform_8(%arg0: i32) -> (i32, i32, i32) {
    %c0_i32 = arith.constant 0 : i32
    %c0_i32_0 = arith.constant 0 : i32
    %c0_i32_1 = arith.constant 0 : i32
    return %arg0, %c0_i32, %c0_i32_0 : i32, i32, i32
  }
}

</mosaic_0001>

<bundles_post_ra>
// kernel: tpu_custom_call.1
= control target key start
LH: loop header
LB: loop body
LE: loop exit
PB: predicated region body
PF: predicated region fallthrough
CT: control target
= control target key end

     0   :  { %13 = vsyncpa [#allocation5], 0  ;;  %s13162_s0 = inlined_call_operand.hbm [shape: f32[30], index: 0, kind: input, shape index: {}]   ;;  %s13163_s1 = inlined_call_operand.hbm [shape: f32[4,8,64], index: 1, kind: input, shape index: {}]   ;;  %s13164_s2 = inlined_call_operand.hbm [shape: f32[4,16,64], index: 2, kind: input, shape index: {}]   ;;  %s13165_s3 = inlined_call_operand.hbm [shape: f32[4,8,16], index: 3, kind: input, shape index: {}]   ;;  %s13166_s4 = inlined_call_operand.hbm [shape: f32[15,64,64], index: 4, kind: input, shape index: {}]   ;;  %s13167_s5 = inlined_call_operand.vmem [shape: f32[15,64], index: 5, kind: input, shape index: {}]   ;;  %s13168_s6 = inlined_call_operand.hbm [shape: f32[64,64], index: 6, kind: input, shape index: {}]   ;;  %s13169_s7 = inlined_call_operand.vmem [shape: f32[1,64], index: 7, kind: input, shape index: {}]   ;;  %s13170_s8 = inlined_call_operand.hbm [shape: f32[4,8,64], index: 8, kind: output, shape index: {}]  }
   0x1   :  { %14 = vsyncpa [#allocation3], 0 }
   0x2   :  { %15 = vsyncpa [#allocation8], 0 }
   0x3   :  { %16 = vsyncpa [#allocation11], 0 }
   0x4   :  { %17 = vsyncpa [#allocation4], 0  ;;  %s9930_s27 = smov [#allocation7]   ;;  %s9931_s29 = smov [#allocation10]  }
   0x5   :  { %s43_s28 = sshll.u32 %s9930_s27, 4  ;;  %s67_s30 = sshll.u32 %s9931_s29, 4  ;;  %s44_s28 = int_to_ptr.vmem [resolvable:$true] %s43_s28  ;;  %s9987_s30 = int_to_ptr.vmem [resolvable:$true] %s67_s30 }
   0x6   :  { %s9778_s11 = scalar_lea.hbm %s13164_s2, 1024 }
   0x7   :  { %p9779_p0 = scmp.ne.s32.totalorder %s13164_s2, %s9778_s11  ;;  %p9782_p1 = scmp.lt.u32.totalorder %s9778_s11, %s13164_s2 }
   0x9   :  { %p9784_p2 = pnand %p9782_p1, %p9779_p0 }
   0xb   :  { %9787 = shalt.err (!%p9784_p2)
}
   0xc   :  { %s9788_s16 = scalar_lea.vmem %s44_s28, 1024  ;;  %p9793_p4 = scmp.lt.s32.totalorder %s44_s28, %s44_s28 }
   0xd   :  { %p9789_p3 = scmp.ne.s32.totalorder %s44_s28, %s9788_s16  ;;  %p9794_p5 = scmp.lt.s32.totalorder %s9788_s16, %s9788_s16 }
   0xf   :  { %p9795_p6 = por %p9794_p5, %p9793_p4 }
  0x11   :  { %p9796_p7 = pnand %p9795_p6, %p9789_p3 }
  0x13   :  { %9799 = shalt.err (!%p9796_p7)
}
  0x14   :  { %s9932_s17 = smov 128   ;;  %s9933_s18 = smov 8  }
  0x15   :  { %49 = dma.hbm_to_vmem [thread:$0]  %s13164_s2, 1024, %s44_s28, [#allocation8], %s9932_s17, %s9932_s17, %s9933_s18  }
  0x16   :  { %s9800_s23 = scalar_lea.hbm %s13166_s4, 15360 }
  0x17   :  { %p9801_p8 = scmp.ne.s32.totalorder %s13166_s4, %s9800_s23  ;;  %p9804_p9 = scmp.lt.u32.totalorder %s9800_s23, %s13166_s4 }
  0x19   :  { %p9806_p10 = pnand %p9804_p9, %p9801_p8 }
  0x1b   :  { %9809 = shalt.err (!%p9806_p10)
}
  0x1c   :  { %s9810_s29 = scalar_lea.vmem %s9987_s30, 15360  ;;  %p9815_p12 = scmp.lt.s32.totalorder %s9987_s30, %s9987_s30 }
  0x1d   :  { %p9811_p11 = scmp.ne.s32.totalorder %s9987_s30, %s9810_s29  ;;  %p9816_p13 = scmp.lt.s32.totalorder %s9810_s29, %s9810_s29 }
  0x1f   :  { %p9817_p0 = por %p9816_p13, %p9815_p12 }
  0x21   :  { %p9818_p1 = pnand %p9817_p0, %p9811_p11 }
  0x23   :  { %9821 = shalt.err (!%p9818_p1)
}
  0x24   :  { %73 = dma.hbm_to_vmem [thread:$0]  %s13166_s4, 15360, %s9987_s30, [#allocation11], %s9932_s17, %s9932_s17, %s9933_s18  }
  0x25   :  { %s9822_s11 = scalar_lea.hbm %s13162_s0, 16 }
  0x26   :  { %p9823_p2 = scmp.ne.s32.totalorder %s13162_s0, %s9822_s11  ;;  %p9826_p3 = scmp.lt.u32.totalorder %s9822_s11, %s13162_s0 }
  0x28   :  { %p9828_p4 = pnand %p9826_p3, %p9823_p2 }
  0x2a   :  { %9831 = shalt.err (!%p9828_p4)
}
  0x2b   :  { %s9934_s16 = smov [#allocation2]   ;;  %s9935_s4 = smov [#allocation6]  }
  0x2c   :  { %25 = dma.hbm_to_smem %s13162_s0, 16, %s9934_s16, [#allocation5]  }
  0x2d   :  { %s31_s30 = sshll.u32 %s9935_s4, 4  ;;  %s9936_s21 = smov [#allocation9]   ;;  %s32_s30 = int_to_ptr.vmem [resolvable:$true] %s31_s30 }
  0x2e   :  { %s55_s22 = sshll.u32 %s9936_s21, 4  ;;  %s9832_s25 = scalar_lea.hbm %s13163_s1, 512  ;;  %s56_s22 = int_to_ptr.vmem [resolvable:$true] %s55_s22 }
  0x2f   :  { %p9833_p5 = scmp.ne.s32.totalorder %s13163_s1, %s9832_s25  ;;  %p9836_p6 = scmp.lt.u32.totalorder %s9832_s25, %s13163_s1 }
  0x31   :  { %p9838_p7 = pnand %p9836_p6, %p9833_p5 }
  0x33   :  { %9841 = shalt.err (!%p9838_p7)
}
  0x34   :  { %s9842_s0 = scalar_lea.vmem %s32_s30, 512  ;;  %p9847_p9 = scmp.lt.s32.totalorder %s32_s30, %s32_s30 }
  0x35   :  { %p9843_p8 = scmp.ne.s32.totalorder %s32_s30, %s9842_s0  ;;  %p9848_p10 = scmp.lt.s32.totalorder %s9842_s0, %s9842_s0 }
  0x37   :  { %p9849_p11 = por %p9848_p10, %p9847_p9 }
  0x39   :  { %p9850_p12 = pnand %p9849_p11, %p9843_p8 }
  0x3b   :  { %9853 = shalt.err (!%p9850_p12)
}
  0x3c   :  { %37 = dma.hbm_to_vmem [thread:$0]  %s13163_s1, 512, %s32_s30, [#allocation3], %s9932_s17, %s9932_s17, %s9933_s18  }
  0x3d   :  { %s9854_s12 = scalar_lea.hbm %s13165_s3, 512 }
  0x3e   :  { %p9855_p13 = scmp.ne.s32.totalorder %s13165_s3, %s9854_s12  ;;  %p9858_p0 = scmp.lt.u32.totalorder %s9854_s12, %s13165_s3 }
  0x40   :  { %p9860_p1 = pnand %p9858_p0, %p9855_p13 }
  0x42   :  { %9863 = shalt.err (!%p9860_p1)
}
  0x43   :  { %s9864_s19 = scalar_lea.vmem %s56_s22, 512  ;;  %p9869_p3 = scmp.lt.s32.totalorder %s56_s22, %s56_s22 }
  0x44   :  { %p9865_p2 = scmp.ne.s32.totalorder %s56_s22, %s9864_s19  ;;  %p9870_p4 = scmp.lt.s32.totalorder %s9864_s19, %s9864_s19 }
  0x46   :  { %p9871_p5 = por %p9870_p4, %p9869_p3 }
  0x48   :  { %p9872_p6 = pnand %p9871_p5, %p9865_p2 }
  0x4a   :  { %9875 = shalt.err (!%p9872_p6)
}
  0x4b   :  { %61 = dma.hbm_to_vmem [thread:$0]  %s13165_s3, 512, %s56_s22, [#allocation8], %s9932_s17, %s9932_s17, %s9933_s18  }
  0x4c   :  { %s9937_s4 = smov [#allocation12]   ;;  %s9876_s24 = scalar_lea.hbm %s13168_s6, 1024 }
  0x4d   :  { %s81_s30 = sshll.u32 %s9937_s4, 4  ;;  %p9877_p7 = scmp.ne.s32.totalorder %s13168_s6, %s9876_s24  ;;  %s82_s30 = int_to_ptr.vmem [resolvable:$true] %s81_s30 }
  0x4e   :  { %p9880_p8 = scmp.lt.u32.totalorder %s9876_s24, %s13168_s6 }
  0x50   :  { %p9882_p9 = pnand %p9880_p8, %p9877_p7 }
  0x52   :  { %9885 = shalt.err (!%p9882_p9)
}
  0x53   :  { %s9886_s2 = scalar_lea.vmem %s82_s30, 1024  ;;  %p9891_p11 = scmp.lt.s32.totalorder %s82_s30, %s82_s30 }
  0x54   :  { %p9887_p10 = scmp.ne.s32.totalorder %s82_s30, %s9886_s2  ;;  %p9892_p12 = scmp.lt.s32.totalorder %s9886_s2, %s9886_s2 }
  0x56   :  { %p9893_p13 = por %p9892_p12, %p9891_p11 }
  0x58   :  { %p9894_p0 = pnand %p9893_p13, %p9887_p10 }
  0x5a   :  { %9897 = shalt.err (!%p9894_p0)
}
  0x5b   :  { %87 = dma.hbm_to_vmem [thread:$0]  %s13168_s6, 1024, %s82_s30, [#allocation11], %s9932_s17, %s9932_s17, %s9933_s18  }
  0x5c   :  { %9920 = dma.done.wait [#allocation5], 16  }
  0x5d   :  { %9921 = vsyncadd [#allocation5], 4294967280 }
  0x5e   :  { %9922 = dma.done.wait [#allocation3], 512  }
  0x5f   :  { %9923 = vsyncadd [#allocation3], 4294966784 }
  0x60   :  { %9924 = dma.done.wait [#allocation8], 1536  }
  0x61   :  { %9925 = vsyncadd [#allocation8], 4294965760 }
  0x62   :  { %9926 = dma.done.wait [#allocation11], 16384  }
  0x63   :  { %9927 = vsyncadd [#allocation11], 4294950912 }
  0x64   :  { %108 = sfence }
  0x65   :  { %v349_v0 = vld [vmem:[#allocation7 + $0x10] sm:$0xff]  ;;  %v109_v1 = vld [vmem:[#allocation7] sm:$0xff]  ;;  %v350_v2 = vld [vmem:[#allocation7 + $0x18] sm:$0xff]  ;;  %v13173_v11 = vmov 0.0|0.0   ;;  %vm9939_vm0 = vmmov 0   ;;  %v13171_v12 = vmov 0.0  }
  0x66   :  { %426 = vxpose.xlu1.b32.start [1/2] (short) (narrow) %v349_v0, 64  ;;  %186 = vxpose.xlu0.b32.start [1/2] (short) (narrow) %v109_v1, 64  ;;  %v9008_v3 = vpack.c.bf16 %v350_v2, %v349_v0  ;;  %v110_v4 = vld [vmem:[#allocation7 + $0x8] sm:$0xff]  ;;  %v831_v5 = vld [vmem:[#allocation7 + $0x30] sm:$0xff]  ;;  %v832_v6 = vld [vmem:[#allocation7 + $0x38] sm:$0xff]  ;;  %vm112_vm1 = vcmask 130048  }
  0x67   :  { %v9001_v7 = vpack.c.bf16 %v110_v4, %v109_v1  ;;  %v10081_v8 = vpack.c.bf16 %v832_v6, %v831_v5  ;;  %v590_v9 = vld [vmem:[#allocation7 + $0x20] sm:$0xff]  ;;  %v591_v10 = vld [vmem:[#allocation7 + $0x28] sm:$0xff]  ;;  %9000 = vmatprep.subr.bf16.mxu0 %v13173_v11  ;;  %7750 = vmatprep.mubr.msk.f32.mxu0 %vm9939_vm0, %v13171_v12  ;;  %v593_v32 = vld [vmem:[#allocation9 + $0x10] sm:$0xff]  ;;  %s7033_s6 = sld [smem:[#allocation2 + $0x1]]  ;;  %s7040_s0 = sld [smem:[#allocation2 + $0x3]]  ;;  %vm1106_vm2 = vcmask 523264  }
  0x68   :  { %v10086_v13 = vpack.c.bf16 %v591_v10, %v590_v9  ;;  %v111_v14 = vld [vmem:[#allocation9] sm:$0xff]  ;;  %v352_v19 = vld [vmem:[#allocation9 + $0x8] sm:$0xff]  ;;  %v834_v33 = vld [vmem:[#allocation9 + $0x18] sm:$0xff]  ;;  %s7047_s28 = sld [smem:[#allocation2 + $0x5]]  ;;  %s7054_s9 = sld [smem:[#allocation2 + $0x7]] }
  0x69   :  { %9002 = vmatpush3.bf16.msra.mxu0 %v9001_v7  ;;  %9764 = vmatprep.subr.bf16.mxu1 %v9001_v7  ;;  %v10155_v56 = vld [vmem:[#allocation10 + $0x8] sm:$0xff]  ;;  %v10161_v59 = vld [vmem:[#allocation10] sm:$0xff]  ;;  %s10623_s10 = sld [smem:[#allocation2 + $0x9]]  ;;  %s10712_s11 = sld [smem:[#allocation2 + $0xb]] }
  0x6a   :  { %427 = vxpose.xlu1.b32.end [2/2] (short) (narrow) %v350_v2, 64  ;;  %187 = vxpose.xlu0.b32.end [2/2] (short) (narrow) %v110_v4, 64  ;;  %v10157_v57 = vld [vmem:[#allocation10 + $0x48] sm:$0xff]  ;;  %v10171_v0 = vld [vmem:[#allocation10 + $0x40] sm:$0xff]  ;;  %s11006_s12 = sld [smem:[#allocation2 + $0xd]]  ;;  %s11158_s13 = sld [smem:[#allocation2 + $0xf]] }
  0x6b   :  { %9004 = vmatprep.subr.bf16.mxu0 %v9001_v7  ;;  %9765 = vmatpush3.bf16.msra.mxu1 %v9001_v7  ;;  %v10163_v60 = vld [vmem:[#allocation10 + $0x88] sm:$0xff]  ;;  %v10175_v2 = vld [vmem:[#allocation10 + $0x80] sm:$0xff]  ;;  %s11308_s14 = sld [smem:[#allocation2 + $0x11]]  ;;  %s11451_s15 = sld [smem:[#allocation2 + $0x13]] }
  0x6c   :  { %7751 = vmatmul.mubr.msk.f32.vlgmr.msra.gmra.mrb[0].mxu0 %vm112_vm1, %v111_v14  ;;  %9014 = vmatprep.subr.bf16.mxu1 %v13173_v11  ;;  %v10165_v61 = vld [vmem:[#allocation10 + $0xc8] sm:$0xff]  ;;  %v10179_v4 = vld [vmem:[#allocation10 + $0xc0] sm:$0xff]  ;;  %s7103_s16 = sld [smem:[#allocation2 + $0x15]]  ;;  %s11706_s19 = sld [smem:[#allocation2]] }
  0x6d   :  { %9006 = vmatpush3.bf16.msra.mxu0 %v9001_v7  ;;  %v10147_v52 = vstv %s7033_s6  ;;  %v10149_v53 = vstv %s7040_s0  ;;  %13212 = vst [vmem:[#allocation21_spill] sm:$0xff] %v10165_v61  ;;  %13214 = vst [vmem:[#allocation23_spill] sm:$0xff] %v10179_v4  ;;  %s11807_s1 = sld [smem:[#allocation2 + $0x17]]  ;;  %s11955_s30 = sld [smem:[#allocation2 + $0x19]] }
  0x6e   :  { %9007 = vmatprep.subr.bf16.mxu0 %v13173_v11  ;;  %v10151_v54 = vstv %s7047_s28  ;;  %v10153_v55 = vstv %s7054_s9  ;;  %s12134_s21 = sld [smem:[#allocation2 + $0x1b]]  ;;  %s12248_s23 = sld [smem:[#allocation2 + $0x1d]] }
  0x6f   :  { %s7039_s24 = sld [smem:[#allocation2 + $0x2]]  ;;  %s7046_s27 = sld [smem:[#allocation2 + $0x4]] }
  0x70   :  { %s7053_s3 = sld [smem:[#allocation2 + $0x6]]  ;;  %s7060_s0 = sld [smem:[#allocation2 + $0x8]] }
  0x71   :  { %s7088_s20 = sld [smem:[#allocation2 + $0x10]]  ;;  %s7102_s25 = sld [smem:[#allocation2 + $0x14]] }
  0x72   :  { %s7109_s29 = sld [smem:[#allocation2 + $0x16]]  ;;  %s7116_s22 = sld [smem:[#allocation2 + $0x18]] }
  0x73   :  { %s7123_s28 = sld [smem:[#allocation2 + $0x1a]] }
  0x83   :  { %908 = vxpose.xlu1.b32.start [1/2] (short) (narrow) %v831_v5, 64  ;;  %667 = vxpose.xlu0.b32.start [1/2] (short) (narrow) %v590_v9, 64 }
  0x87   :  { %909 = vxpose.xlu1.b32.end [2/2] (short) (narrow) %v832_v6, 64  ;;  %668 = vxpose.xlu0.b32.end [2/2] (short) (narrow) %v591_v10, 64 }
  0xe6   :  { %v442_v15 = vpop.trf.xlu1  ;;  %v202_v16 = vpop.trf.xlu0 }
  0xe7   :  { %7757 = vmatprep.mubr.msk.f32.mxu0 %vm112_vm1, %v202_v16 }
  0xea   :  { %v443_v17 = vpop.trf.xlu1  ;;  %v203_v18 = vpop.trf.xlu0 }
  0xeb   :  { %7758 = vmatmul.mubr.msk.f32.vlgmr.msra.gmra.mrb[2].mxu0 %vm112_vm1, %v203_v18 }
  0xec   :  { %9009 = vmatpush3.bf16.msra.mxu0 %v9008_v3  ;;  %7773 = vmatprep.mubr.msk.f32.mxu0 %vm9939_vm0, %v13171_v12 }
  0xed   :  { %9011 = vmatprep.subr.bf16.mxu0 %v9008_v3 }
  0xee   :  { %v444_v20 = vpop.trf.xlu1  ;;  %v204_v21 = vpop.trf.xlu0 }
  0xef   :  { %7760 = vmatprep.mubr.msk.f32.mxu1 %vm112_vm1, %v204_v21  ;;  %7774 = vmatmul.mubr.msk.f32.vlgmr.msra.gmra.mrb[4].mxu0 %vm112_vm1, %v352_v19 }
  0xf0   :  { %9013 = vmatpush3.bf16.msra.mxu0 %v9008_v3  ;;  %7780 = vmatprep.mubr.msk.f32.mxu0 %vm112_vm1, %v442_v15 }
  0xf1   :  { %9021 = vmatprep.subr.bf16.mxu0 %v13173_v11 }
  0xf2   :  { %v445_v22 = vpop.trf.xlu1  ;;  %v205_v23 = vpop.trf.xlu0 }
  0xf3   :  { %7761 = vmatmul.mubr.msk.f32.vlgmr.msra.gmra.mrb[0].mxu1 %vm112_vm1, %v205_v23  ;;  %7781 = vmatmul.mubr.msk.f32.vlgmr.msra.gmra.mrb[6].mxu0 %vm112_vm1, %v443_v17 }
  0xf4   :  { %7783 = vmatprep.mubr.msk.f32.mxu0 %vm112_vm1, %v444_v20  ;;  %9016 = vmatpush3.bf16.msra.mxu1 %v10086_v13 }
  0xf5   :  { %9023 = vmatpush3.bf16.msra.mxu0 %v10081_v8  ;;  %9018 = vmatprep.subr.bf16.mxu1 %v10086_v13 }
  0xf6   :  { %v446_v24 = vpop.trf.xlu1  ;;  %v206_v25 = vpop.trf.xlu0  ;;  %9025 = vmatprep.subr.bf16.mxu0 %v10081_v8 }
  0xf7   :  { %7763 = vmatprep.mubr.msk.f32.mxu1 %vm112_vm1, %v206_v25  ;;  %7784 = vmatmul.mubr.msk.f32.gmra.mrb[8].mxu0 %vm112_vm1, %v445_v22 }
  0xf8   :  { %7786 = vmatprep.mubr.msk.f32.mxu0 %vm112_vm1, %v446_v24 }
  0xfa   :  { %v447_v26 = vpop.trf.xlu1  ;;  %v207_v27 = vpop.trf.xlu0 }
  0xfb   :  { %7764 = vmatmul.mubr.msk.f32.gmra.mrb[2].mxu1 %vm112_vm1, %v207_v27  ;;  %7787 = vmatmul.mubr.msk.f32.gmra.mrb[10].mxu0 %vm112_vm1, %v447_v26 }
  0xfe   :  { %v448_v28 = vpop.trf.xlu1  ;;  %v208_v29 = vpop.trf.xlu0 }
  0xff   :  { %7766 = vmatprep.mubr.msk.f32.mxu1 %vm112_vm1, %v208_v29  ;;  %7789 = vmatprep.mubr.msk.f32.mxu0 %vm112_vm1, %v448_v28  ;;  %v10211_v28 = vld [vmem:[#allocation10 + $0x18] sm:$0xff] }
 0x100   :  { %v10213_v29 = vld [vmem:[#allocation10 + $0x58] sm:$0xff] }
 0x102   :  { %v449_v30 = vpop.trf.xlu1  ;;  %v209_v31 = vpop.trf.xlu0 }
 0x103   :  { %7767 = vmatmul.mubr.msk.f32.gmra.mrb[4].mxu1 %vm112_vm1, %v209_v31  ;;  %7790 = vmatmul.mubr.msk.f32.gmra.mrb[12].mxu0 %vm112_vm1, %v449_v30 }
 0x104   :  { %7796 = vmatprep.mubr.msk.f32.mxu1 %vm9939_vm0, %v13171_v12  ;;  %7819 = vmatprep.mubr.msk.f32.mxu0 %vm9939_vm0, %v13171_v12 }
 0x106   :  { %v924_v34 = vpop.trf.xlu1  ;;  %v683_v35 = vpop.trf.xlu0 }
 0x107   :  { %7797 = vmatmul.mubr.msk.f32.vlgmr.msra.gmra.mrb[6].mxu1 %vm112_vm1, %v593_v32  ;;  %7820 = vmatmul.mubr.msk.f32.vlgmr.msra.gmra.mrb[14].mxu0 %vm112_vm1, %v834_v33  ;;  %v10220_v32 = vld [vmem:[#allocation10 + $0x10] sm:$0xff] }
 0x108   :  { %9020 = vmatpush3.bf16.msra.mxu1 %v10086_v13  ;;  %7803 = vmatprep.mubr.msk.f32.mxu1 %vm112_vm1, %v683_v35 }
 0x109   :  { %9027 = vmatpush3.bf16.msra.mxu0 %v10081_v8  ;;  %7826 = vmatprep.mubr.msk.f32.mxu0 %vm112_vm1, %v924_v34 }
 0x10a   :  { %v925_v36 = vpop.trf.xlu1  ;;  %v684_v37 = vpop.trf.xlu0  ;;  %9028 = vmatprep.subr.bf16.mxu1 %v13173_v11  ;;  %9040 = vmatprep.subr.bf16.mxu0 %v13173_v11 }
 0x10b   :  { %7804 = vmatmul.mubr.msk.f32.vlgmr.msra.gmra.mrb[8].mxu1 %vm112_vm1, %v684_v37 }
 0x10c   :  { %7827 = vmatmul.mubr.msk.f32.vlgmr.msra.gmra.mrb[16].mxu0 %vm112_vm1, %v925_v36  ;;  %v10228_v36 = vld [vmem:[#allocation10 + $0x50] sm:$0xff] }
 0x10e   :  { %v926_v38 = vpop.trf.xlu1  ;;  %v685_v39 = vpop.trf.xlu0 }
 0x10f   :  { %7806 = vmatprep.mubr.msk.f32.mxu1 %vm112_vm1, %v685_v39  ;;  %7829 = vmatprep.mubr.msk.f32.mxu0 %vm112_vm1, %v926_v38 }
 0x112   :  { %v927_v40 = vpop.trf.xlu1  ;;  %v686_v41 = vpop.trf.xlu0 }
 0x113   :  { %7807 = vmatmul.mubr.msk.f32.gmra.mrb[10].mxu1 %vm112_vm1, %v686_v41  ;;  %7830 = vmatmul.mubr.msk.f32.gmra.mrb[18].mxu0 %vm112_vm1, %v927_v40 }
 0x116   :  { %v928_v42 = vpop.trf.xlu1  ;;  %v687_v43 = vpop.trf.xlu0 }
 0x117   :  { %7809 = vmatprep.mubr.msk.f32.mxu1 %vm112_vm1, %v687_v43  ;;  %7832 = vmatprep.mubr.msk.f32.mxu0 %vm112_vm1, %v928_v42 }
 0x11a   :  { %v929_v44 = vpop.trf.xlu1  ;;  %v688_v45 = vpop.trf.xlu0 }
 0x11b   :  { %7810 = vmatmul.mubr.msk.f32.gmra.mrb[12].mxu1 %vm112_vm1, %v688_v45  ;;  %7833 = vmatmul.mubr.msk.f32.gmra.mrb[20].mxu0 %vm112_vm1, %v929_v44 }
 0x11e   :  { %v930_v46 = vpop.trf.xlu1  ;;  %v689_v47 = vpop.trf.xlu0 }
 0x11f   :  { %7812 = vmatprep.mubr.msk.f32.mxu1 %vm112_vm1, %v689_v47  ;;  %7835 = vmatprep.mubr.msk.f32.mxu0 %vm112_vm1, %v930_v46 }
 0x122   :  { %v931_v48 = vpop.trf.xlu1  ;;  %v690_v49 = vpop.trf.xlu0 }
 0x123   :  { %7813 = vmatmul.mubr.msk.f32.gmra.mrb[14].mxu1 %vm112_vm1, %v690_v49  ;;  %7836 = vmatmul.mubr.msk.f32.gmra.mrb[22].mxu0 %vm112_vm1, %v931_v48 }
 0x124   :  { %7854 = vmatprep.mubr.msk.f32.mxu1 %vm9939_vm0, %v13171_v12  ;;  %7873 = vmatprep.mubr.msk.f32.mxu0 %vm9939_vm0, %v13171_v12 }
 0x13f   :  { %v10145_v50 = vpop.f32.mrb[0].mxu0 }
 0x140   :  { %13210 = vst [vmem:[#allocation19_spill] sm:$0xff] %v10145_v50  ;;  %v7752_v51 = vpop.f32.mrb[1].mxu0 }
 0x1be   :  { %v10159_v58 = vpop.f32.mrb[2].mxu0 }
 0x1bf   :  { %13211 = vst [vmem:[#allocation20_spill] sm:$0xff] %v10159_v58  ;;  %v10167_v62 = vpop.f32.mrb[3].mxu0  ;;  %v1084_v63 = vmul.f32 %v10159_v58, %v10147_v52  ;;  %v1471_v1 = vmul.f32 %v10159_v58, %v10149_v53  ;;  %v1857_v3 = vmul.f32 %v10159_v58, %v10151_v54  ;;  %v2243_v5 = vmul.f32 %v10159_v58, %v10153_v55  ;;  %v10393_v58 = vld [vmem:[#allocation10 + $0xa0] sm:$0xff] }
 0x1c0   :  { %13213 = vst [vmem:[#allocation22_spill] sm:$0xff] %v10167_v62  ;;  %v1083_v6 = vmul.f32 %v10147_v52, %v10167_v62  ;;  %v1470_v7 = vmul.f32 %v10149_v53, %v10167_v62  ;;  %v1856_v8 = vmul.f32 %v10151_v54, %v10167_v62  ;;  %v2242_v9 = vmul.f32 %v10153_v55, %v10167_v62 }
 0x1c1   :  { %v1092_v10 = vsub.f32 %v10155_v56, %v1084_v63  ;;  %v1479_v13 = vsub.f32 %v10157_v57, %v1471_v1  ;;  %v1865_v14 = vsub.f32 %v10163_v60, %v1857_v3  ;;  %v2251_v15 = vsub.f32 %v10165_v61, %v2243_v5 }
 0x1c2   :  { %v10195_v16 = vpop.f32.mrb[4].mxu0  ;;  %v1091_v17 = vsub.f32 %v10161_v59, %v1083_v6  ;;  %v1478_v18 = vsub.f32 %v10171_v0, %v1470_v7  ;;  %v1864_v19 = vsub.f32 %v10175_v2, %v1856_v8  ;;  %v2250_v20 = vsub.f32 %v10179_v4, %v2242_v9 }
 0x1c3   :  { %13215 = vst [vmem:[#allocation24_spill] sm:$0xff] %v10195_v16  ;;  %v7775_v21 = vpop.f32.mrb[5].mxu0 }
 0x1c4   :  { %v9029_v22 = vpack.c.bf16 %v1092_v10, %v1091_v17  ;;  %v10201_v23 = vpack.c.bf16 %v1479_v13, %v1478_v18  ;;  %v10203_v24 = vpack.c.bf16 %v1865_v14, %v1864_v19  ;;  %v10205_v25 = vpack.c.bf16 %v2251_v15, %v2250_v20  ;;  %v10275_v21 = vld [vmem:[#allocation10 + $0x28] sm:$0xff] }
 0x1c6   :  { %13216 = vst [vmem:[#allocation25_spill] sm:$0xff] %v10203_v24  ;;  %13217 = vst [vmem:[#allocation26_spill] sm:$0xff] %v10205_v25  ;;  %v10207_v26 = vpop.f32.mrb[0].mxu1  ;;  %v10209_v27 = vpop.f32.mrb[6].mxu0  ;;  %9030 = vmatpush3.bf16.msra.mxu1 %v9029_v22 }
 0x1c7   :  { %13218 = vst [vmem:[#allocation27_spill] sm:$0xff] %v10207_v26  ;;  %v10215_v30 = vpop.f32.mrb[1].mxu1  ;;  %v10217_v31 = vpop.f32.mrb[7].mxu0  ;;  %9031 = vmatprep.subr.bf16.mxu1 %v13173_v11  ;;  %v1086_v33 = vmul.f32 %v10207_v26, %v10147_v52  ;;  %v1182_v34 = vmul.f32 %v10209_v27, %v10147_v52  ;;  %v1568_v35 = vmul.f32 %v10209_v27, %v10149_v53 }
 0x1c8   :  { %v1473_v37 = vmul.f32 %v10207_v26, %v10149_v53  ;;  %v1085_v38 = vmul.f32 %v10147_v52, %v10215_v30  ;;  %v1181_v39 = vmul.f32 %v10147_v52, %v10217_v31  ;;  %v1567_v40 = vmul.f32 %v10149_v53, %v10217_v31 }
 0x1c9   :  { %v1472_v41 = vmul.f32 %v10149_v53, %v10215_v30  ;;  %v1094_v42 = vsub.f32 %v10211_v28, %v1086_v33  ;;  %v1190_v43 = vsub.f32 %v10155_v56, %v1182_v34  ;;  %v1576_v44 = vsub.f32 %v10157_v57, %v1568_v35 }
 0x1ca   :  { %v1481_v45 = vsub.f32 %v10213_v29, %v1473_v37  ;;  %v10244_v46 = vpop.f32.mrb[8].mxu0  ;;  %v1093_v47 = vsub.f32 %v10220_v32, %v1085_v38  ;;  %v1189_v48 = vsub.f32 %v10161_v59, %v1181_v39  ;;  %v1575_v49 = vsub.f32 %v10171_v0, %v1567_v40  ;;  %v10285_v37 = vld [vmem:[#allocation10 + $0x20] sm:$0xff] }
 0x1cb   :  { %13219 = vst [vmem:[#allocation28_spill] sm:$0xff] %v10244_v46  ;;  %v1480_v51 = vsub.f32 %v10228_v36, %v1472_v41  ;;  %v10250_v63 = vpop.f32.mrb[9].mxu0  ;;  %v1184_v1 = vmul.f32 %v10244_v46, %v10147_v52  ;;  %v1570_v3 = vmul.f32 %v10244_v46, %v10149_v53  ;;  %v1953_v5 = vmul.f32 %v10151_v54, %v10217_v31  ;;  %v10292_v41 = vld [vmem:[#allocation10 + $0x60] sm:$0xff] }
 0x1cc   :  { %13220 = vst [vmem:[#allocation29_spill] sm:$0xff] %v10250_v63  ;;  %v1954_v6 = vmul.f32 %v10209_v27, %v10151_v54  ;;  %v9032_v7 = vpack.c.bf16 %v1094_v42, %v1093_v47  ;;  %v9041_v8 = vpack.c.bf16 %v1190_v43, %v1189_v48  ;;  %v1183_v9 = vmul.f32 %v10147_v52, %v10250_v63 }
 0x1cd   :  { %v10262_v10 = vpack.c.bf16 %v1576_v44, %v1575_v49  ;;  %v1192_v13 = vsub.f32 %v10211_v28, %v1184_v1  ;;  %v10265_v14 = vpack.c.bf16 %v1481_v45, %v1480_v51  ;;  %v1569_v15 = vmul.f32 %v10149_v53, %v10250_v63  ;;  %v10298_v45 = vld [vmem:[#allocation10 + $0x68] sm:$0xff] }
 0x1ce   :  { %v1578_v17 = vsub.f32 %v10213_v29, %v1570_v3  ;;  %v10270_v18 = vpop.f32.mrb[2].mxu1  ;;  %v10272_v19 = vpop.f32.mrb[10].mxu0  ;;  %9033 = vmatpush3.bf16.msra.mxu1 %v9032_v7  ;;  %9042 = vmatpush3.bf16.msra.mxu0 %v9041_v8  ;;  %v1191_v20 = vsub.f32 %v10220_v32, %v1183_v9  ;;  %v1961_v22 = vsub.f32 %v10175_v2, %v1953_v5  ;;  %v10313_v8 = vld [vmem:[#allocation10 + $0x90] sm:$0xff] }
 0x1cf   :  { %13221 = vst [vmem:[#allocation30_spill] sm:$0xff] %v10265_v14  ;;  %13222 = vst [vmem:[#allocation31_spill] sm:$0xff] %v10270_v18  ;;  %v1962_v33 = vsub.f32 %v10163_v60, %v1954_v6  ;;  %v10279_v34 = vpop.f32.mrb[3].mxu1  ;;  %v10281_v35 = vpop.f32.mrb[11].mxu0  ;;  %9043 = vmatprep.subr.bf16.mxu0 %v13173_v11  ;;  %9034 = vmatprep.subr.bf16.mxu1 %v13173_v11  ;;  %v1088_v38 = vmul.f32 %v10270_v18, %v10147_v52 }
 0x1d0   :  { %13223 = vst [vmem:[#allocation32_spill] sm:$0xff] %v10272_v19  ;;  %13224 = vst [vmem:[#allocation33_spill] sm:$0xff] %v10279_v34  ;;  %v1186_v39 = vmul.f32 %v10272_v19, %v10147_v52  ;;  %v1577_v40 = vsub.f32 %v10228_v36, %v1569_v15  ;;  %v9044_v42 = vpack.c.bf16 %v1192_v13, %v1191_v20 }
 0x1d1   :  { %13225 = vst [vmem:[#allocation34_spill] sm:$0xff] %v10281_v35  ;;  %v1087_v43 = vmul.f32 %v10147_v52, %v10279_v34  ;;  %v1185_v44 = vmul.f32 %v10147_v52, %v10281_v35  ;;  %v1474_v47 = vmul.f32 %v10149_v53, %v10279_v34  ;;  %v1096_v48 = vsub.f32 %v10275_v21, %v1088_v38 }
 0x1d2   :  { %v1194_v49 = vsub.f32 %v10275_v21, %v1186_v39  ;;  %v10304_v51 = vpack.c.bf16 %v1578_v17, %v1577_v40  ;;  %v1475_v1 = vmul.f32 %v10270_v18, %v10149_v53  ;;  %9045 = vmatpush3.bf16.msra.mxu0 %v9044_v42  ;;  %v1571_v7 = vmul.f32 %v10149_v53, %v10281_v35  ;;  %v10321_v17 = vld [vmem:[#allocation10 + $0x98] sm:$0xff] }
 0x1d3   :  { %v1095_v3 = vsub.f32 %v10285_v37, %v1087_v43  ;;  %v1193_v5 = vsub.f32 %v10285_v37, %v1185_v44  ;;  %v1482_v6 = vsub.f32 %v10292_v41, %v1474_v47  ;;  %9046 = vmatprep.subr.bf16.mxu0 %v13173_v11  ;;  %v1572_v13 = vmul.f32 %v10272_v19, %v10149_v53 }
 0x1d4   :  { %13226 = vst [vmem:[#allocation35_spill] sm:$0xff] %v10304_v51  ;;  %v1483_v9 = vsub.f32 %v10298_v45, %v1475_v1  ;;  %v10319_v15 = vpack.c.bf16 %v1962_v33, %v1961_v22  ;;  %v1858_v20 = vmul.f32 %v10151_v54, %v10215_v30  ;;  %v1579_v40 = vsub.f32 %v10292_v41, %v1571_v7 }
 0x1d5   :  { %v9035_v38 = vpack.c.bf16 %v1096_v48, %v1095_v3  ;;  %v9047_v39 = vpack.c.bf16 %v1194_v49, %v1193_v5  ;;  %v1859_v42 = vmul.f32 %v10207_v26, %v10151_v54  ;;  %v1580_v44 = vsub.f32 %v10298_v45, %v1572_v13  ;;  %v10340_v48 = vld [vmem:[#allocation10 + $0x38] sm:$0xff] }
 0x1d6   :  { %13227 = vst [vmem:[#allocation36_spill] sm:$0xff] %v10319_v15  ;;  %v10328_v43 = vpack.c.bf16 %v1483_v9, %v1482_v6  ;;  %v1866_v47 = vsub.f32 %v10313_v8, %v1858_v20  ;;  %v10334_v22 = vmul.f32 %v10151_v54, %v10250_v63  ;;  %v10336_v33 = vpop.f32.mrb[4].mxu1  ;;  %v10338_v1 = vpop.f32.mrb[12].mxu0  ;;  %v10345_v3 = vmul.f32 %v10244_v46, %v10151_v54  ;;  %v10357_v9 = vld [vmem:[#allocation10 + $0x30] sm:$0xff] }
 0x1d7   :  { %13229 = vst [vmem:[#allocation38_spill] sm:$0xff] %v10336_v33  ;;  %9036 = vmatpush3.bf16.msra.mxu1 %v9035_v38  ;;  %9048 = vmatpush3.bf16.msra.mxu0 %v9047_v39  ;;  %v1867_v49 = vsub.f32 %v10321_v17, %v1859_v42  ;;  %v10349_v5 = vmul.f32 %v10151_v54, %v10279_v34  ;;  %v10351_v6 = vpop.f32.mrb[5].mxu1  ;;  %v10353_v7 = vpop.f32.mrb[13].mxu0  ;;  %v10365_v39 = vld [vmem:[#allocation10 + $0x70] sm:$0xff]  ;;  %v10367_v42 = vld [vmem:[#allocation10 + $0x78] sm:$0xff] }
 0x1d8   :  { %13228 = vst [vmem:[#allocation37_spill] sm:$0xff] %v10328_v43  ;;  %13230 = vst [vmem:[#allocation39_spill] sm:$0xff] %v10351_v6  ;;  %9037 = vmatprep.subr.bf16.mxu1 %v13173_v11  ;;  %9049 = vmatprep.subr.bf16.mxu0 %v13173_v11  ;;  %v1090_v13 = vmul.f32 %v10336_v33, %v10147_v52  ;;  %v1188_v20 = vmul.f32 %v10338_v1, %v10147_v52 }
 0x1d9   :  { %13231 = vst [vmem:[#allocation40_spill] sm:$0xff] %v10353_v7  ;;  %v10363_v38 = vpack.c.bf16 %v1580_v44, %v1579_v40  ;;  %v1089_v12 = vmul.f32 %v10147_v52, %v10351_v6  ;;  %v1187_v11 = vmul.f32 %v10147_v52, %v10353_v7  ;;  %v1476_v25 = vmul.f32 %v10149_v53, %v10351_v6 }
 0x1da   :  { %v1477_v15 = vmul.f32 %v10336_v33, %v10149_v53  ;;  %v1098_v24 = vsub.f32 %v10340_v48, %v1090_v13  ;;  %v1196_v40 = vsub.f32 %v10340_v48, %v1188_v20  ;;  %v1573_v44 = vmul.f32 %v10149_v53, %v10353_v7  ;;  %v10383_v50 = vpop.f32.mrb[6].mxu1 }
 0x1db   :  { %13232 = vst [vmem:[#allocation41_spill] sm:$0xff] %v10363_v38  ;;  %v1574_v16 = vmul.f32 %v10338_v1, %v10149_v53  ;;  %13233 = vst [vmem:[#allocation42_spill] sm:$0xff] %v10383_v50  ;;  %v10385_v38 = vpop.f32.mrb[14].mxu0  ;;  %v1097_v43 = vsub.f32 %v10357_v9, %v1089_v12  ;;  %v1195_v34 = vsub.f32 %v10357_v9, %v1187_v11  ;;  %v7798_v63 = vpop.f32.mrb[7].mxu1 }
 0x1dc   :  { %13234 = vst [vmem:[#allocation43_spill] sm:$0xff] %v10385_v38  ;;  %v1484_v46 = vsub.f32 %v10365_v39, %v1476_v25  ;;  %v1485_v13 = vsub.f32 %v10367_v42, %v1477_v15  ;;  %v7821_v20 = vpop.f32.mrb[15].mxu0  ;;  %v1581_v61 = vsub.f32 %v10365_v39, %v1573_v44  ;;  %v10397_v38 = vpack.c.bf16 %v1867_v49, %v1866_v47  ;;  %v347_v63 = vld [vmem:[#allocation6] sm:$0xff] }
 0x1dd   :  { %v1582_v4 = vsub.f32 %v10367_v42, %v1574_v16  ;;  %v9038_v62 = vpack.c.bf16 %v1098_v24, %v1097_v43  ;;  %v9050_v50 = vpack.c.bf16 %v1196_v40, %v1195_v34  ;;  %v1963_v11 = vsub.f32 %v10313_v8, %v10334_v22  ;;  %v588_v16 = vld [vmem:[#allocation6 + $0x8] sm:$0xff] }
 0x1de   :  { %v10395_v26 = vpack.c.bf16 %v1485_v13, %v1484_v46  ;;  %13236 = vst [vmem:[#allocation45_spill] sm:$0xff] %v10397_v38  ;;  %v10403_v25 = vpop.f32.mrb[8].mxu1  ;;  %v1964_v24 = vsub.f32 %v10321_v17, %v10345_v3  ;;  %v1861_v46 = vmul.f32 %v10270_v18, %v10151_v54  ;;  %v13238_v15 = vmov 0.0|0.0   ;;  %v10439_v20 = vld [vmem:[#allocation10 + $0xa8] sm:$0xff] }
 0x1df   :  { %v10399_v12 = vpack.c.bf16 %v1582_v4, %v1581_v61  ;;  %9039 = vmatpush3.bf16.msra.mxu1 %v9038_v62  ;;  %9051 = vmatpush3.bf16.msra.mxu0 %v9050_v50  ;;  %v1868_v61 = vsub.f32 %v10393_v58, %v10349_v5  ;;  %v10411_v4 = vpop.f32.mrb[16].mxu0  ;;  %v10413_v34 = vpop.f32.mrb[9].mxu1  ;;  %v1274_v50 = vmul.f32 %v10403_v25, %v10147_v52 }
 0x1e0   :  { %13235 = vst [vmem:[#allocation44_spill] sm:$0xff] %v10395_v26  ;;  %9052 = vmatprep.subr.bf16.mxu1 %v13238_v15  ;;  %9064 = vmatprep.subr.bf16.mxu0 %v13238_v15  ;;  %v1660_v62 = vmul.f32 %v10403_v25, %v10149_v53  ;;  %v1957_v43 = vmul.f32 %v10151_v54, %v10281_v35  ;;  %v10423_v47 = vpop.f32.mrb[17].mxu0  ;;  %v13239_v26 = vmov 0.0  }
 0x1e1   :  { %13237 = vst [vmem:[#allocation46_spill] sm:$0xff] %v10399_v12  ;;  %v1273_v22 = vmul.f32 %v10147_v52, %v10413_v34  ;;  %v1366_v49 = vmul.f32 %v10411_v4, %v10147_v52  ;;  %v1659_v3 = vmul.f32 %v10149_v53, %v10413_v34  ;;  %v1752_v5 = vmul.f32 %v10411_v4, %v10149_v53 }
 0x1e2   :  { %7855 = vmatmul.mubr.msk.f32.vlgmr.msra.gmra.mrb[16].mxu1 %vm1106_vm2, %v347_v63  ;;  %7874 = vmatmul.mubr.msk.f32.vlgmr.msra.gmra.mrb[24].mxu0 %vm1106_vm2, %v588_v16  ;;  %v1282_v40 = vsub.f32 %v10155_v56, %v1274_v50  ;;  %v1365_v44 = vmul.f32 %v10147_v52, %v10423_v47  ;;  %v1668_v13 = vsub.f32 %v10157_v57, %v1660_v62 }
 0x1e3   :  { %v1281_v38 = vsub.f32 %v10161_v59, %v1273_v22  ;;  %v1374_v12 = vsub.f32 %v10155_v56, %v1366_v49  ;;  %7892 = vmatprep.mubr.msk.f32.mxu1 %vm9939_vm0, %v13239_v26  ;;  %7911 = vmatprep.mubr.msk.f32.mxu0 %vm9939_vm0, %v13239_v26  ;;  %v1667_v63 = vsub.f32 %v10171_v0, %v1659_v3 }
 0x1e4   :  { %v1373_v16 = vsub.f32 %v10161_v59, %v1365_v44  ;;  %v1751_v50 = vmul.f32 %v10149_v53, %v10423_v47  ;;  %v1760_v62 = vsub.f32 %v10157_v57, %v1752_v5  ;;  %v10452_v35 = vpack.c.bf16 %v1964_v24, %v1963_v11 }
 0x1e5   :  { %v9053_v22 = vpack.c.bf16 %v1282_v40, %v1281_v38  ;;  %v10454_v18 = vpack.c.bf16 %v1668_v13, %v1667_v63  ;;  %v1869_v56 = vsub.f32 %v10439_v20, %v1861_v46  ;;  %v1958_v49 = vmul.f32 %v10272_v19, %v10151_v54 }
 0x1e6   :  { %13240 = vst [vmem:[#allocation47_spill] sm:$0xff] %v10452_v35  ;;  %v9065_v51 = vpack.c.bf16 %v1374_v12, %v1373_v16  ;;  %v1759_v3 = vsub.f32 %v10171_v0, %v1751_v50  ;;  %v1965_v59 = vsub.f32 %v10393_v58, %v1957_v43  ;;  %v1862_v44 = vmul.f32 %v10151_v54, %v10351_v6  ;;  %v10463_v14 = vpop.f32.mrb[10].mxu1  ;;  %v10465_v57 = vpop.f32.mrb[18].mxu0  ;;  %v10496_v16 = vld [vmem:[#allocation10 + $0xb0] sm:$0xff] }
 0x1e7   :  { %13241 = vst [vmem:[#allocation48_spill] sm:$0xff] %v10454_v18  ;;  %9054 = vmatpush3.bf16.msra.mxu1 %v9053_v22  ;;  %v10467_v38 = vpack.c.bf16 %v1869_v56, %v1868_v61  ;;  %v1966_v11 = vsub.f32 %v10439_v20, %v1958_v49  ;;  %v1863_v24 = vmul.f32 %v10336_v33, %v10151_v54  ;;  %v10476_v12 = vpop.f32.mrb[11].mxu1  ;;  %v10478_v46 = vpop.f32.mrb[19].mxu0  ;;  %v10504_v49 = vld [vmem:[#allocation10 + $0xb8] sm:$0xff] }
 0x1e8   :  { %v10474_v0 = vmul.f32 %v10151_v54, %v10353_v7  ;;  %9066 = vmatpush3.bf16.msra.mxu0 %v9065_v51  ;;  %9055 = vmatprep.subr.bf16.mxu1 %v13238_v15  ;;  %v1276_v61 = vmul.f32 %v10463_v14, %v10147_v52  ;;  %v1368_v43 = vmul.f32 %v10465_v57, %v10147_v52 }
 0x1e9   :  { %13242 = vst [vmem:[#allocation49_spill] sm:$0xff] %v10467_v38  ;;  %v10485_v5 = vpack.c.bf16 %v1760_v62, %v1759_v3  ;;  %9067 = vmatprep.subr.bf16.mxu0 %v13238_v15  ;;  %v1275_v40 = vmul.f32 %v10147_v52, %v10476_v12  ;;  %v1367_v51 = vmul.f32 %v10147_v52, %v10478_v46 }
 0x1ea   :  { %v1661_v13 = vmul.f32 %v10149_v53, %v10476_v12  ;;  %v1662_v63 = vmul.f32 %v10463_v14, %v10149_v53  ;;  %v1284_v50 = vsub.f32 %v10211_v28, %v1276_v61  ;;  %v1376_v62 = vsub.f32 %v10211_v28, %v1368_v43 }
 0x1eb   :  { %13243 = vst [vmem:[#allocation50_spill] sm:$0xff] %v10485_v5  ;;  %v1753_v22 = vmul.f32 %v10149_v53, %v10478_v46  ;;  %v1754_v56 = vmul.f32 %v10465_v57, %v10149_v53  ;;  %v1283_v3 = vsub.f32 %v10220_v32, %v1275_v40  ;;  %v1375_v38 = vsub.f32 %v10220_v32, %v1367_v51 }
 0x1ec   :  { %v1669_v35 = vsub.f32 %v10228_v36, %v1661_v13  ;;  %v1670_v5 = vsub.f32 %v10213_v29, %v1662_v63  ;;  %v10512_v43 = vpack.c.bf16 %v1966_v11, %v1965_v59  ;;  %v1870_v18 = vsub.f32 %v10496_v16, %v1862_v44 }
 0x1ed   :  { %v1761_v61 = vsub.f32 %v10228_v36, %v1753_v22  ;;  %v1762_v28 = vsub.f32 %v10213_v29, %v1754_v56  ;;  %v9056_v7 = vpack.c.bf16 %v1284_v50, %v1283_v3  ;;  %v9068_v33 = vpack.c.bf16 %v1376_v62, %v1375_v38 }
 0x1ee   :  { %13244 = vst [vmem:[#allocation51_spill] sm:$0xff] %v10512_v43  ;;  %v10515_v6 = vpack.c.bf16 %v1670_v5, %v1669_v35  ;;  %v1871_v40 = vsub.f32 %v10504_v49, %v1863_v24  ;;  %v1960_v32 = vmul.f32 %v10338_v1, %v10151_v54  ;;  %v1967_v36 = vsub.f32 %v10496_v16, %v10474_v0  ;;  %v10526_v59 = vpop.f32.mrb[12].mxu1  ;;  %v10528_v44 = vpop.f32.mrb[20].mxu0 }
 0x1ef   :  { %v10518_v19 = vpack.c.bf16 %v1762_v28, %v1761_v61  ;;  %v2045_v29 = vmul.f32 %v10151_v54, %v10413_v34  ;;  %9057 = vmatpush3.bf16.msra.mxu1 %v9056_v7  ;;  %9069 = vmatpush3.bf16.msra.mxu0 %v9068_v33  ;;  %v2046_v38 = vmul.f32 %v10403_v25, %v10151_v54  ;;  %v10536_v24 = vpop.f32.mrb[13].mxu1  ;;  %v10538_v0 = vpop.f32.mrb[21].mxu0 }
 0x1f0   :  { %13245 = vst [vmem:[#allocation52_spill] sm:$0xff] %v10515_v6  ;;  %v10530_v35 = vpack.c.bf16 %v1871_v40, %v1870_v18  ;;  %v2137_v11 = vmul.f32 %v10151_v54, %v10423_v47  ;;  %9058 = vmatprep.subr.bf16.mxu1 %v13238_v15  ;;  %9070 = vmatprep.subr.bf16.mxu0 %v13238_v15 }
 0x1f1   :  { %13246 = vst [vmem:[#allocation53_spill] sm:$0xff] %v10518_v19  ;;  %v1278_v7 = vmul.f32 %v10526_v59, %v10147_v52  ;;  %v1370_v18 = vmul.f32 %v10528_v44, %v10147_v52  ;;  %v1664_v33 = vmul.f32 %v10526_v59, %v10149_v53  ;;  %v1277_v5 = vmul.f32 %v10147_v52, %v10536_v24 }
 0x1f2   :  { %13247 = vst [vmem:[#allocation54_spill] sm:$0xff] %v10530_v35  ;;  %v1369_v51 = vmul.f32 %v10147_v52, %v10538_v0  ;;  %v1663_v13 = vmul.f32 %v10149_v53, %v10536_v24  ;;  %v1755_v63 = vmul.f32 %v10149_v53, %v10538_v0  ;;  %v1756_v56 = vmul.f32 %v10528_v44, %v10149_v53 }
 0x1f3   :  { %v1286_v50 = vsub.f32 %v10275_v21, %v1278_v7  ;;  %v1378_v62 = vsub.f32 %v10275_v21, %v1370_v18  ;;  %v1672_v22 = vsub.f32 %v10298_v45, %v1664_v33  ;;  %v1285_v3 = vsub.f32 %v10285_v37, %v1277_v5 }
 0x1f4   :  { %v1377_v61 = vsub.f32 %v10285_v37, %v1369_v51  ;;  %v1671_v28 = vsub.f32 %v10292_v41, %v1663_v13  ;;  %v1763_v40 = vsub.f32 %v10292_v41, %v1755_v63  ;;  %v1764_v35 = vsub.f32 %v10298_v45, %v1756_v56 }
 0x1f5   :  { %v1968_v43 = vsub.f32 %v10504_v49, %v1960_v32  ;;  %v2053_v7 = vsub.f32 %v10175_v2, %v2045_v29  ;;  %v2054_v21 = vsub.f32 %v10163_v60, %v2046_v38  ;;  %v9059_v18 = vpack.c.bf16 %v1286_v50, %v1285_v3 }
 0x1f6   :  { %v9071_v33 = vpack.c.bf16 %v1378_v62, %v1377_v61  ;;  %v10569_v19 = vpack.c.bf16 %v1672_v22, %v1671_v28  ;;  %v2138_v5 = vmul.f32 %v10411_v4, %v10151_v54  ;;  %v10573_v37 = vpack.c.bf16 %v1764_v35, %v1763_v40  ;;  %v10580_v32 = vpop.f32.mrb[14].mxu1  ;;  %v10582_v29 = vpop.f32.mrb[22].mxu0 }
 0x1f7   :  { %v10575_v51 = vpack.c.bf16 %v1968_v43, %v1967_v36  ;;  %v10577_v41 = vpack.c.bf16 %v2054_v21, %v2053_v7  ;;  %v2145_v45 = vsub.f32 %v10175_v2, %v2137_v11  ;;  %9060 = vmatpush3.bf16.msra.mxu1 %v9059_v18  ;;  %v2047_v13 = vmul.f32 %v10151_v54, %v10476_v12  ;;  %v10589_v43 = vpop.f32.mrb[15].mxu1  ;;  %v10591_v36 = vpop.f32.mrb[23].mxu0 }
 0x1f8   :  { %13248 = vst [vmem:[#allocation55_spill] sm:$0xff] %v10569_v19  ;;  %13249 = vst [vmem:[#allocation56_spill] sm:$0xff] %v10573_v37  ;;  %9072 = vmatpush3.bf16.msra.mxu0 %v9071_v33  ;;  %v2146_v38 = vsub.f32 %v10163_v60, %v2138_v5  ;;  %v2048_v35 = vmul.f32 %v10463_v14, %v10151_v54  ;;  %9061 = vmatprep.subr.bf16.mxu1 %v13238_v15 }
 0x1f9   :  { %13250 = vst [vmem:[#allocation57_spill] sm:$0xff] %v10575_v51  ;;  %13251 = vst [vmem:[#allocation58_spill] sm:$0xff] %v10577_v41  ;;  %9073 = vmatprep.subr.bf16.mxu0 %v13238_v15  ;;  %v1280_v2 = vmul.f32 %v10580_v32, %v10147_v52  ;;  %v1372_v60 = vmul.f32 %v10582_v29, %v10147_v52  ;;  %v1666_v11 = vmul.f32 %v10580_v32, %v10149_v53  ;;  %v13282_v41 = vld [vmem:[#allocation40_spill] sm:$0xff] }
 0x1fa   :  { %v1279_v63 = vmul.f32 %v10147_v52, %v10589_v43  ;;  %v1371_v50 = vmul.f32 %v10147_v52, %v10591_v36  ;;  %v1665_v62 = vmul.f32 %v10149_v53, %v10589_v43  ;;  %v1757_v22 = vmul.f32 %v10149_v53, %v10591_v36 }
 0x1fb   :  { %v1288_v56 = vsub.f32 %v10340_v48, %v1280_v2  ;;  %v1380_v3 = vsub.f32 %v10340_v48, %v1372_v60  ;;  %v1674_v61 = vsub.f32 %v10367_v42, %v1666_v11  ;;  %v1758_v28 = vmul.f32 %v10582_v29, %v10149_v53 }
 0x1fc   :  { %v1287_v40 = vsub.f32 %v10357_v9, %v1279_v63  ;;  %v1379_v7 = vsub.f32 %v10357_v9, %v1371_v50  ;;  %v1673_v52 = vsub.f32 %v10365_v39, %v1665_v62  ;;  %v1765_v21 = vsub.f32 %v10365_v39, %v1757_v22 }
 0x1fd   :  { %v1766_v18 = vsub.f32 %v10367_v42, %v1758_v28  ;;  %v10619_v33 = vpack.c.bf16 %v2146_v38, %v2145_v45  ;;  %v2055_v5 = vsub.f32 %v10313_v8, %v2047_v13  ;;  %v2056_v48 = vsub.f32 %v10321_v17, %v2048_v35  ;;  %v829_v38 = vld [vmem:[#allocation6 + $0x10] sm:$0xff]  ;;  %v1070_v13 = vld [vmem:[#allocation6 + $0x18] sm:$0xff] }
 0x1fe   :  { %v9062_v2 = vpack.c.bf16 %v1288_v56, %v1287_v40  ;;  %v9074_v53 = vpack.c.bf16 %v1380_v3, %v1379_v7  ;;  %v10625_v60 = vpack.c.bf16 %v1674_v61, %v1673_v52  ;;  %v2139_v9 = vmul.f32 %v10151_v54, %v10478_v46 }
 0x1ff   :  { %13252 = vst [vmem:[#allocation59_spill] sm:$0xff] %v10619_v33  ;;  %v10629_v11 = vpack.c.bf16 %v1766_v18, %v1765_v21  ;;  %v10631_v39 = vpack.c.bf16 %v2056_v48, %v2055_v5  ;;  %v2140_v42 = vmul.f32 %v10465_v57, %v10151_v54  ;;  %v2049_v45 = vmul.f32 %v10151_v54, %v10536_v24 }
 0x200   :  { %13253 = vst [vmem:[#allocation60_spill] sm:$0xff] %v10625_v60  ;;  %9063 = vmatpush3.bf16.msra.mxu1 %v9062_v2  ;;  %9075 = vmatpush3.bf16.msra.mxu0 %v9074_v53  ;;  %v2147_v35 = vsub.f32 %v10313_v8, %v2139_v9  ;;  %v2050_v63 = vmul.f32 %v10526_v59, %v10151_v54  ;;  %v10688_v53 = vld [vmem:[#allocation10 + $0xd0] sm:$0xff] }
 0x201   :  { %13254 = vst [vmem:[#allocation61_spill] sm:$0xff] %v10629_v11  ;;  %13255 = vst [vmem:[#allocation62_spill] sm:$0xff] %v10631_v39  ;;  %v2141_v50 = vmul.f32 %v10151_v54, %v10538_v0  ;;  %9076 = vmatprep.subr.bf16.mxu1 %v13238_v15  ;;  %9088 = vmatprep.subr.bf16.mxu0 %v13238_v15  ;;  %v2148_v62 = vsub.f32 %v10321_v17, %v2140_v42  ;;  %v13260_v42 = vld [vmem:[#allocation30_spill] sm:$0xff] }
 0x202   :  { %v2057_v22 = vsub.f32 %v10393_v58, %v2049_v45  ;;  %v2142_v56 = vmul.f32 %v10528_v44, %v10151_v54  ;;  %v2058_v3 = vsub.f32 %v10439_v20, %v2050_v63  ;;  %v2051_v61 = vmul.f32 %v10151_v54, %v10589_v43  ;;  %v13261_v45 = vld [vmem:[#allocation35_spill] sm:$0xff]  ;;  %v13264_v63 = vld [vmem:[#allocation20_spill] sm:$0xff] }
 0x203   :  { %v2149_v8 = vsub.f32 %v10393_v58, %v2141_v50  ;;  %v2052_v28 = vmul.f32 %v10580_v32, %v10151_v54  ;;  %7893 = vmatmul.mubr.msk.f32.vlgmr.msra.gmra.mrb[18].mxu1 %vm1106_vm2, %v829_v38  ;;  %7912 = vmatmul.mubr.msk.f32.vlgmr.msra.gmra.mrb[26].mxu0 %vm1106_vm2, %v1070_v13  ;;  %v10656_v17 = vpack.c.bf16 %v2148_v62, %v2147_v35  ;;  %v13262_v38 = vld [vmem:[#allocation27_spill] sm:$0xff]  ;;  %v13263_v13 = vld [vmem:[#allocation22_spill] sm:$0xff] }
 0x204   :  { %v2150_v40 = vsub.f32 %v10439_v20, %v2142_v56  ;;  %v2143_v7 = vmul.f32 %v10151_v54, %v10591_v36  ;;  %9078 = vmatpush3.bf16.msra.mxu1 %v10201_v23  ;;  %9090 = vmatpush3.bf16.msra.mxu0 %v10262_v10  ;;  %v10663_v58 = vpack.c.bf16 %v2058_v3, %v2057_v22  ;;  %v10675_v23 = vstv %s10623_s10  ;;  %v13266_v22 = vld [vmem:[#allocation23_spill] sm:$0xff]  ;;  %v13267_v3 = vld [vmem:[#allocation21_spill] sm:$0xff]  ;;  %s7067_s10 = sld [smem:[#allocation2 + $0xa]] }
 0x205   :  { %13256 = vst [vmem:[#allocation63_spill] sm:$0xff] %v10656_v17  ;;  %v2059_v52 = vsub.f32 %v10496_v16, %v2051_v61  ;;  %v2060_v21 = vsub.f32 %v10504_v49, %v2052_v28  ;;  %9079 = vmatprep.subr.bf16.mxu1 %v13238_v15  ;;  %9091 = vmatprep.subr.bf16.mxu0 %v13238_v15  ;;  %v13277_v17 = vld [vmem:[#allocation32_spill] sm:$0xff] }
 0x206   :  { %13257 = vst [vmem:[#allocation64_spill] sm:$0xff] %v10663_v58  ;;  %v10669_v18 = vpack.c.bf16 %v2150_v40, %v2149_v8  ;;  %v2144_v20 = vmul.f32 %v10582_v29, %v10151_v54  ;;  %v2151_v5 = vsub.f32 %v10496_v16, %v2143_v7  ;;  %7930 = vmatprep.mubr.msk.f32.mxu1 %vm9939_vm0, %v13239_v26  ;;  %v10690_v16 = vld [vmem:[#allocation10 + $0xd8] sm:$0xff]  ;;  %v13268_v40 = vld [vmem:[#allocation29_spill] sm:$0xff] }
 0x207   :  { %7949 = vmatprep.mubr.msk.f32.mxu0 %vm9939_vm0, %v13239_v26  ;;  %v10681_v10 = vpack.c.bf16 %v2060_v21, %v2059_v52  ;;  %v2339_v2 = vmul.f32 %v10153_v55, %v10217_v31  ;;  %v2340_v54 = vmul.f32 %v10209_v27, %v10153_v55  ;;  %v2244_v9 = vmul.f32 %v10153_v55, %v10215_v30  ;;  %v13269_v52 = vld [vmem:[#allocation28_spill] sm:$0xff] }
 0x208   :  { %13258 = vst [vmem:[#allocation65_spill] sm:$0xff] %v10669_v18  ;;  %v2152_v48 = vsub.f32 %v10504_v49, %v2144_v20  ;;  %9081 = vmatpush3.bf16.msra.mxu1 %v13260_v42  ;;  %9093 = vmatpush3.bf16.msra.mxu0 %v13261_v45  ;;  %v2245_v49 = vmul.f32 %v13262_v38, %v10153_v55  ;;  %v10720_v20 = vld [vmem:[#allocation10 + $0xe0] sm:$0xff]  ;;  %v13273_v45 = vld [vmem:[#allocation34_spill] sm:$0xff] }
 0x209   :  { %13259 = vst [vmem:[#allocation66_spill] sm:$0xff] %v10681_v10  ;;  %v10700_v35 = vmul.f32 %v10675_v23, %v13263_v13  ;;  %v10704_v50 = vmul.f32 %v13264_v63, %v10675_v23  ;;  %9082 = vmatprep.subr.bf16.mxu1 %v13238_v15  ;;  %9094 = vmatprep.subr.bf16.mxu0 %v13238_v15  ;;  %v13272_v42 = vld [vmem:[#allocation31_spill] sm:$0xff]  ;;  %v13275_v10 = vld [vmem:[#allocation41_spill] sm:$0xff] }
 0x20a   :  { %v10708_v62 = vpack.c.bf16 %v2152_v48, %v2151_v5  ;;  %v2347_v56 = vsub.f32 %v13266_v22, %v2339_v2  ;;  %v2348_v8 = vsub.f32 %v13267_v3, %v2340_v54  ;;  %v2252_v61 = vsub.f32 %v10688_v53, %v2244_v9  ;;  %v10722_v5 = vld [vmem:[#allocation10 + $0xe8] sm:$0xff]  ;;  %v13271_v2 = vld [vmem:[#allocation33_spill] sm:$0xff] }
 0x20b   :  { %v2253_v28 = vsub.f32 %v10690_v16, %v2245_v49  ;;  %v2341_v7 = vmul.f32 %v10153_v55, %v13268_v40  ;;  %v2342_v21 = vmul.f32 %v13269_v52, %v10153_v55  ;;  %v2246_v54 = vmul.f32 %v10153_v55, %v13271_v2 }
 0x20c   :  { %13265 = vst [vmem:[#allocation30_spill] sm:$0xff] %v10708_v62  ;;  %v10724_v48 = vpack.c.bf16 %v2348_v8, %v2347_v56  ;;  %v2247_v9 = vmul.f32 %v13272_v42, %v10153_v55  ;;  %v2343_v49 = vmul.f32 %v10153_v55, %v13273_v45  ;;  %v13274_v62 = vld [vmem:[#allocation37_spill] sm:$0xff]  ;;  %9096 = vmatpush3.bf16.msra.mxu0 %v13275_v10  ;;  %v10746_v10 = vld [vmem:[#allocation10 + $0xf8] sm:$0xff] }
 0x20d   :  { %9084 = vmatpush3.bf16.msra.mxu1 %v13274_v62  ;;  %v10734_v18 = vpack.c.bf16 %v2253_v28, %v2252_v61  ;;  %v2349_v58 = vsub.f32 %v10688_v53, %v2341_v7  ;;  %v2350_v56 = vsub.f32 %v10690_v16, %v2342_v21  ;;  %9097 = vmatprep.subr.bf16.mxu0 %v13238_v15  ;;  %v10744_v62 = vld [vmem:[#allocation10 + $0xf0] sm:$0xff]  ;;  %v13279_v7 = vld [vmem:[#allocation39_spill] sm:$0xff] }
 0x20e   :  { %13270 = vst [vmem:[#allocation35_spill] sm:$0xff] %v10724_v48  ;;  %9085 = vmatprep.subr.bf16.mxu1 %v13238_v15  ;;  %v2254_v8 = vsub.f32 %v10720_v20, %v2246_v54  ;;  %v2255_v48 = vsub.f32 %v10722_v5, %v2247_v9  ;;  %v2344_v39 = vmul.f32 %v13277_v17, %v10153_v55 }
 0x20f   :  { %13276 = vst [vmem:[#allocation27_spill] sm:$0xff] %v10734_v18  ;;  %v10748_v61 = vpack.c.bf16 %v2350_v56, %v2349_v58  ;;  %v2351_v28 = vsub.f32 %v10720_v20, %v2343_v49  ;;  %v2248_v21 = vmul.f32 %v10153_v55, %v13279_v7  ;;  %v13280_v18 = vld [vmem:[#allocation38_spill] sm:$0xff]  ;;  %v2345_v51 = vmul.f32 %v10153_v55, %v13282_v41  ;;  %v13283_v56 = vld [vmem:[#allocation44_spill] sm:$0xff] }
 0x210   :  { %v2249_v54 = vmul.f32 %v13280_v18, %v10153_v55  ;;  %v10755_v33 = vpack.c.bf16 %v2255_v48, %v2254_v8  ;;  %v2352_v9 = vsub.f32 %v10722_v5, %v2344_v39  ;;  %v2346_v58 = vmul.f32 %v10338_v1, %v10153_v55  ;;  %v13284_v49 = vld [vmem:[#allocation46_spill] sm:$0xff] }
 0x211   :  { %13278 = vst [vmem:[#allocation22_spill] sm:$0xff] %v10748_v61  ;;  %9087 = vmatpush3.bf16.msra.mxu1 %v13283_v56  ;;  %9099 = vmatpush3.bf16.msra.mxu0 %v13284_v49  ;;  %v2256_v61 = vsub.f32 %v10744_v62, %v2248_v21  ;;  %v2431_v48 = vmul.f32 %v10153_v55, %v10413_v34  ;;  %v10775_v56 = vstv %s10712_s11  ;;  %s7130_s11 = sld [smem:[#allocation2 + $0x1c]] }
 0x212   :  { %13281 = vst [vmem:[#allocation20_spill] sm:$0xff] %v10755_v33  ;;  %v2257_v11 = vsub.f32 %v10746_v10, %v2249_v54  ;;  %9100 = vmatprep.subr.bf16.mxu1 %v13238_v15  ;;  %9112 = vmatprep.subr.bf16.mxu0 %v13238_v15  ;;  %v10770_v39 = vpack.c.bf16 %v2352_v9, %v2351_v28 }
 0x213   :  { %v2353_v8 = vsub.f32 %v10744_v62, %v2345_v51  ;;  %v2354_v33 = vsub.f32 %v10746_v10, %v2346_v58  ;;  %v2432_v21 = vmul.f32 %v10403_v25, %v10153_v55  ;;  %v2439_v54 = vsub.f32 %v13266_v22, %v2431_v48 }
 0x214   :  { %13285 = vst [vmem:[#allocation23_spill] sm:$0xff] %v10770_v39  ;;  %v10777_v49 = vpack.c.bf16 %v2257_v11, %v2256_v61  ;;  %v2523_v60 = vmul.f32 %v10153_v55, %v10423_v47  ;;  %v2524_v28 = vmul.f32 %v10411_v4, %v10153_v55  ;;  %v2433_v51 = vmul.f32 %v10153_v55, %v10476_v12 }
 0x215   :  { %v10784_v37 = vpack.c.bf16 %v2354_v33, %v2353_v8  ;;  %v2434_v11 = vmul.f32 %v10463_v14, %v10153_v55  ;;  %v2440_v61 = vsub.f32 %v13267_v3, %v2432_v21  ;;  %v2525_v58 = vmul.f32 %v10153_v55, %v10478_v46 }
 0x216   :  { %13286 = vst [vmem:[#allocation21_spill] sm:$0xff] %v10777_v49  ;;  %v2531_v9 = vsub.f32 %v13266_v22, %v2523_v60  ;;  %v2526_v33 = vmul.f32 %v10465_v57, %v10153_v55  ;;  %v2532_v48 = vsub.f32 %v13267_v3, %v2524_v28  ;;  %v2441_v8 = vsub.f32 %v10688_v53, %v2433_v51  ;;  %v10816_v51 = vld [vmem:[#allocation10 + $0x100] sm:$0xff] }
 0x217   :  { %13287 = vst [vmem:[#allocation29_spill] sm:$0xff] %v10784_v37  ;;  %v2442_v37 = vsub.f32 %v10690_v16, %v2434_v11  ;;  %v2435_v49 = vmul.f32 %v10153_v55, %v10536_v24  ;;  %v10803_v39 = vpack.c.bf16 %v2440_v61, %v2439_v54  ;;  %v2533_v21 = vsub.f32 %v10688_v53, %v2525_v58  ;;  %v10832_v58 = vld [vmem:[#allocation10 + $0x108] sm:$0xff] }
 0x218   :  { %v2534_v60 = vsub.f32 %v10690_v16, %v2526_v33  ;;  %v2436_v22 = vmul.f32 %v10526_v59, %v10153_v55  ;;  %v10809_v19 = vpack.c.bf16 %v2532_v48, %v2531_v9  ;;  %v2527_v28 = vmul.f32 %v10153_v55, %v10538_v0 }
 0x219   :  { %13288 = vst [vmem:[#allocation28_spill] sm:$0xff] %v10803_v39  ;;  %v10811_v6 = vpack.c.bf16 %v2442_v37, %v2441_v8  ;;  %v2443_v3 = vsub.f32 %v10720_v20, %v2435_v49  ;;  %v2528_v16 = vmul.f32 %v10528_v44, %v10153_v55  ;;  %v2437_v11 = vmul.f32 %v10153_v55, %v10589_v43 }
 0x21a   :  { %13289 = vst [vmem:[#allocation33_spill] sm:$0xff] %v10809_v19  ;;  %v10818_v54 = vpack.c.bf16 %v2534_v60, %v2533_v21  ;;  %v2444_v53 = vsub.f32 %v10722_v5, %v2436_v22  ;;  %v2535_v37 = vsub.f32 %v10720_v20, %v2527_v28  ;;  %v2438_v49 = vmul.f32 %v10580_v32, %v10153_v55 }
 0x21b   :  { %13290 = vst [vmem:[#allocation31_spill] sm:$0xff] %v10811_v6  ;;  %v2529_v61 = vmul.f32 %v10153_v55, %v10591_v36  ;;  %v2530_v9 = vmul.f32 %v10582_v29, %v10153_v55  ;;  %v2536_v48 = vsub.f32 %v10722_v5, %v2528_v16  ;;  %v2445_v8 = vsub.f32 %v10744_v62, %v2437_v11  ;;  %v10855_v16 = vld [vmem:[#allocation10 + $0x110] sm:$0xff]  ;;  %v2623_v6 = vld [vmem:[#allocation10 + $0x138] sm:$0xff] }
 0x21c   :  { %13291 = vst [vmem:[#allocation34_spill] sm:$0xff] %v10818_v54  ;;  %v10834_v33 = vpack.c.bf16 %v2444_v53, %v2443_v3  ;;  %v2636_v20 = vsub.f32 %v10816_v51, %v10700_v35  ;;  %v2446_v21 = vsub.f32 %v10746_v10, %v2438_v49  ;;  %v2637_v55 = vsub.f32 %v10832_v58, %v10704_v50  ;;  %v2622_v54 = vld [vmem:[#allocation10 + $0x130] sm:$0xff] }
 0x21d   :  { %v2537_v60 = vsub.f32 %v10744_v62, %v2529_v61  ;;  %v2538_v22 = vsub.f32 %v10746_v10, %v2530_v9  ;;  %v10843_v28 = vpack.c.bf16 %v2536_v48, %v2535_v37  ;;  %v2725_v3 = vmul.f32 %v10675_v23, %v10217_v31  ;;  %v10857_v62 = vld [vmem:[#allocation10 + $0x118] sm:$0xff]  ;;  %v10870_v61 = vld [vmem:[#allocation10 + $0x120] sm:$0xff] }
 0x21e   :  { %13292 = vst [vmem:[#allocation37_spill] sm:$0xff] %v10834_v33  ;;  %v10849_v5 = vpack.c.bf16 %v2446_v21, %v2445_v8  ;;  %v2726_v35 = vmul.f32 %v10209_v27, %v10675_v23  ;;  %v10861_v10 = vmul.f32 %v10775_v56, %v13263_v13  ;;  %v10863_v11 = vpack.c.bf16 %v2637_v55, %v2636_v20  ;;  %v10877_v20 = vld [vmem:[#allocation10 + $0x128] sm:$0xff] }
 0x21f   :  { %13293 = vst [vmem:[#allocation41_spill] sm:$0xff] %v10843_v28  ;;  %v10851_v53 = vpack.c.bf16 %v2538_v22, %v2537_v60  ;;  %v2733_v50 = vsub.f32 %v10816_v51, %v2725_v3  ;;  %v2630_v37 = vmul.f32 %v10675_v23, %v10215_v30  ;;  %v2631_v49 = vmul.f32 %v13262_v38, %v10675_v23 }
 0x220   :  { %13294 = vst [vmem:[#allocation32_spill] sm:$0xff] %v10849_v5  ;;  %13296 = vst [vmem:[#allocation46_spill] sm:$0xff] %v10863_v11  ;;  %v2734_v9 = vsub.f32 %v10832_v58, %v2726_v35  ;;  %v2727_v48 = vmul.f32 %v10675_v23, %v13268_v40  ;;  %v2728_v8 = vmul.f32 %v13269_v52, %v10675_v23 }
 0x221   :  { %13295 = vst [vmem:[#allocation44_spill] sm:$0xff] %v10851_v53  ;;  %v2632_v21 = vmul.f32 %v10675_v23, %v13271_v2  ;;  %v2638_v60 = vsub.f32 %v10855_v16, %v2630_v37  ;;  %v2639_v22 = vsub.f32 %v10857_v62, %v2631_v49  ;;  %v2633_v55 = vmul.f32 %v13272_v42, %v10675_v23 }
 0x222   :  { %v2729_v3 = vmul.f32 %v10675_v23, %v13273_v45  ;;  %v10887_v35 = vpack.c.bf16 %v2734_v9, %v2733_v50  ;;  %v2735_v11 = vsub.f32 %v10855_v16, %v2727_v48  ;;  %v2736_v53 = vsub.f32 %v10857_v62, %v2728_v8 }
 0x223   :  { %v2640_v5 = vsub.f32 %v10870_v61, %v2632_v21  ;;  %v10892_v28 = vpack.c.bf16 %v2639_v22, %v2638_v60  ;;  %v2641_v37 = vsub.f32 %v10877_v20, %v2633_v55  ;;  %v2730_v49 = vmul.f32 %v13277_v17, %v10675_v23 }
 0x224   :  { %13297 = vst [vmem:[#allocation67_spill] sm:$0xff] %v10887_v35  ;;  %v2737_v33 = vsub.f32 %v10870_v61, %v2729_v3  ;;  %v10898_v19 = vpack.c.bf16 %v2736_v53, %v2735_v11  ;;  %v2634_v50 = vmul.f32 %v10675_v23, %v13279_v7  ;;  %v2635_v9 = vmul.f32 %v13280_v18, %v10675_v23 }
 0x225   :  { %13298 = vst [vmem:[#allocation68_spill] sm:$0xff] %v10892_v28  ;;  %v2731_v48 = vmul.f32 %v10675_v23, %v13282_v41  ;;  %v10906_v8 = vpack.c.bf16 %v2641_v37, %v2640_v5  ;;  %v2738_v21 = vsub.f32 %v10877_v20, %v2730_v49  ;;  %v2732_v60 = vmul.f32 %v10338_v1, %v10675_v23 }
 0x226   :  { %13299 = vst [vmem:[#allocation69_spill] sm:$0xff] %v10898_v19  ;;  %v3015_v53 = vmul.f32 %v13264_v63, %v10775_v56  ;;  %v2642_v11 = vsub.f32 %v2622_v54, %v2634_v50  ;;  %v2643_v22 = vsub.f32 %v2623_v6, %v2635_v9  ;;  %v2817_v3 = vmul.f32 %v10675_v23, %v10413_v34 }
 0x227   :  { %13300 = vst [vmem:[#allocation70_spill] sm:$0xff] %v10906_v8  ;;  %v2739_v55 = vsub.f32 %v2622_v54, %v2731_v48  ;;  %v10915_v19 = vpack.c.bf16 %v2738_v21, %v2737_v33  ;;  %v2740_v28 = vsub.f32 %v2623_v6, %v2732_v60  ;;  %v2818_v5 = vmul.f32 %v10403_v25, %v10675_v23 }
 0x228   :  { %v2909_v37 = vmul.f32 %v10675_v23, %v10423_v47  ;;  %v10921_v49 = vpack.c.bf16 %v2643_v22, %v2642_v11  ;;  %v2825_v8 = vsub.f32 %v10816_v51, %v2817_v3  ;;  %v2910_v50 = vmul.f32 %v10411_v4, %v10675_v23 }
 0x229   :  { %13301 = vst [vmem:[#allocation71_spill] sm:$0xff] %v10915_v19  ;;  %v2819_v9 = vmul.f32 %v10675_v23, %v10476_v12  ;;  %v10928_v48 = vpack.c.bf16 %v2740_v28, %v2739_v55  ;;  %v2826_v33 = vsub.f32 %v10832_v58, %v2818_v5  ;;  %v2820_v60 = vmul.f32 %v10463_v14, %v10675_v23 }
 0x22a   :  { %13302 = vst [vmem:[#allocation72_spill] sm:$0xff] %v10921_v49  ;;  %v2917_v21 = vsub.f32 %v10816_v51, %v2909_v37  ;;  %v2918_v11 = vsub.f32 %v10832_v58, %v2910_v50  ;;  %v2911_v3 = vmul.f32 %v10675_v23, %v10478_v46  ;;  %v2912_v49 = vmul.f32 %v10465_v57, %v10675_v23 }
 0x22b   :  { %13303 = vst [vmem:[#allocation73_spill] sm:$0xff] %v10928_v48  ;;  %v2827_v22 = vsub.f32 %v10855_v16, %v2819_v9  ;;  %v10940_v19 = vpack.c.bf16 %v2826_v33, %v2825_v8  ;;  %v2828_v28 = vsub.f32 %v10857_v62, %v2820_v60  ;;  %v2821_v51 = vmul.f32 %v10675_v23, %v10536_v24 }
 0x22c   :  { %v2822_v55 = vmul.f32 %v10526_v59, %v10675_v23  ;;  %v10947_v5 = vpack.c.bf16 %v2918_v11, %v2917_v21  ;;  %v2919_v58 = vsub.f32 %v10855_v16, %v2911_v3  ;;  %v2920_v37 = vsub.f32 %v10857_v62, %v2912_v49  ;;  %v10966_v49 = vld [vmem:[#allocation10 + $0x140] sm:$0xff] }
 0x22d   :  { %13304 = vst [vmem:[#allocation74_spill] sm:$0xff] %v10940_v19  ;;  %v2913_v50 = vmul.f32 %v10675_v23, %v10538_v0  ;;  %v10953_v9 = vpack.c.bf16 %v2828_v28, %v2827_v22  ;;  %v2829_v8 = vsub.f32 %v10870_v61, %v2821_v51  ;;  %v2914_v60 = vmul.f32 %v10528_v44, %v10675_v23  ;;  %v10975_v51 = vld [vmem:[#allocation10 + $0x148] sm:$0xff] }
 0x22e   :  { %13305 = vst [vmem:[#allocation75_spill] sm:$0xff] %v10947_v5  ;;  %v2830_v33 = vsub.f32 %v10877_v20, %v2822_v55  ;;  %v10959_v19 = vpack.c.bf16 %v2920_v37, %v2919_v58  ;;  %v2823_v16 = vmul.f32 %v10675_v23, %v10589_v43  ;;  %v2824_v62 = vmul.f32 %v10580_v32, %v10675_v23 }
 0x22f   :  { %13306 = vst [vmem:[#allocation76_spill] sm:$0xff] %v10953_v9  ;;  %v2921_v21 = vsub.f32 %v10870_v61, %v2913_v50  ;;  %v2922_v22 = vsub.f32 %v10877_v20, %v2914_v60  ;;  %v2915_v3 = vmul.f32 %v10675_v23, %v10591_v36  ;;  %v2916_v28 = vmul.f32 %v10582_v29, %v10675_v23  ;;  %v10984_v60 = vld [vmem:[#allocation10 + $0x150] sm:$0xff] }
 0x230   :  { %13307 = vst [vmem:[#allocation77_spill] sm:$0xff] %v10959_v19  ;;  %v10968_v11 = vpack.c.bf16 %v2830_v33, %v2829_v8  ;;  %v2831_v61 = vsub.f32 %v2622_v54, %v2823_v16  ;;  %v2832_v55 = vsub.f32 %v2623_v6, %v2824_v62  ;;  %v3022_v8 = vsub.f32 %v10966_v49, %v10861_v10  ;;  %v10992_v16 = vld [vmem:[#allocation10 + $0x158] sm:$0xff] }
 0x231   :  { %v10977_v58 = vpack.c.bf16 %v2922_v22, %v2921_v21  ;;  %v2923_v37 = vsub.f32 %v2622_v54, %v2915_v3  ;;  %v2924_v50 = vsub.f32 %v2623_v6, %v2916_v28  ;;  %v3023_v20 = vsub.f32 %v10975_v51, %v3015_v53  ;;  %v11004_v22 = vld [vmem:[#allocation10 + $0x160] sm:$0xff] }
 0x232   :  { %13308 = vst [vmem:[#allocation78_spill] sm:$0xff] %v10968_v11  ;;  %v10981_v33 = vpack.c.bf16 %v2832_v55, %v2831_v61  ;;  %v3111_v23 = vmul.f32 %v10775_v56, %v10217_v31  ;;  %v3112_v21 = vmul.f32 %v10209_v27, %v10775_v56  ;;  %v3016_v6 = vmul.f32 %v10775_v56, %v10215_v30  ;;  %v11011_v55 = vld [vmem:[#allocation10 + $0x168] sm:$0xff] }
 0x233   :  { %13309 = vst [vmem:[#allocation79_spill] sm:$0xff] %v10977_v58  ;;  %v10986_v11 = vpack.c.bf16 %v2924_v50, %v2923_v37  ;;  %v10996_v54 = vpack.c.bf16 %v3023_v20, %v3022_v8  ;;  %v3017_v10 = vmul.f32 %v13262_v38, %v10775_v56  ;;  %v3113_v53 = vmul.f32 %v10775_v56, %v13268_v40  ;;  %v3009_v58 = vld [vmem:[#allocation10 + $0x178] sm:$0xff] }
 0x234   :  { %13310 = vst [vmem:[#allocation80_spill] sm:$0xff] %v10981_v33  ;;  %v3114_v62 = vmul.f32 %v13269_v52, %v10775_v56  ;;  %v3119_v3 = vsub.f32 %v10966_v49, %v3111_v23  ;;  %v3120_v28 = vsub.f32 %v10975_v51, %v3112_v21  ;;  %v3024_v61 = vsub.f32 %v10984_v60, %v3016_v6  ;;  %v11027_v33 = vld [vmem:[#allocation10 + $0x170] sm:$0xff] }
 0x235   :  { %13311 = vst [vmem:[#allocation81_spill] sm:$0xff] %v10986_v11  ;;  %13312 = vst [vmem:[#allocation82_spill] sm:$0xff] %v10996_v54  ;;  %v3018_v37 = vmul.f32 %v10775_v56, %v13271_v2  ;;  %v3025_v50 = vsub.f32 %v10992_v16, %v3017_v10  ;;  %v3121_v8 = vsub.f32 %v10984_v60, %v3113_v53 }
 0x236   :  { %v3122_v20 = vsub.f32 %v10992_v16, %v3114_v62  ;;  %v3019_v54 = vmul.f32 %v13272_v42, %v10775_v56  ;;  %v11020_v11 = vpack.c.bf16 %v3120_v28, %v3119_v3  ;;  %v3115_v21 = vmul.f32 %v10775_v56, %v13273_v45 }
 0x237   :  { %v3026_v23 = vsub.f32 %v11004_v22, %v3018_v37  ;;  %v3116_v6 = vmul.f32 %v13277_v17, %v10775_v56  ;;  %v11029_v10 = vpack.c.bf16 %v3025_v50, %v3024_v61  ;;  %v3020_v3 = vmul.f32 %v10775_v56, %v13279_v7 }
 0x238   :  { %13313 = vst [vmem:[#allocation83_spill] sm:$0xff] %v11020_v11  ;;  %v11031_v53 = vpack.c.bf16 %v3122_v20, %v3121_v8  ;;  %v3027_v62 = vsub.f32 %v11011_v55, %v3019_v54  ;;  %v3123_v28 = vsub.f32 %v11004_v22, %v3115_v21  ;;  %v3021_v11 = vmul.f32 %v13280_v18, %v10775_v56 }
 0x239   :  { %13314 = vst [vmem:[#allocation84_spill] sm:$0xff] %v11029_v10  ;;  %v3124_v37 = vsub.f32 %v11011_v55, %v3116_v6  ;;  %v3117_v61 = vmul.f32 %v10775_v56, %v13282_v41  ;;  %v3028_v8 = vsub.f32 %v11027_v33, %v3020_v3  ;;  %v3118_v54 = vmul.f32 %v10338_v1, %v10775_v56 }
 0x23a   :  { %13315 = vst [vmem:[#allocation85_spill] sm:$0xff] %v11031_v53  ;;  %v11042_v50 = vpack.c.bf16 %v3027_v62, %v3026_v23  ;;  %v3029_v53 = vsub.f32 %v3009_v58, %v3021_v11  ;;  %v3203_v6 = vmul.f32 %v10775_v56, %v10413_v34  ;;  %v3204_v19 = vmul.f32 %v10403_v25, %v10775_v56 }
 0x23b   :  { %v11047_v20 = vpack.c.bf16 %v3124_v37, %v3123_v28  ;;  %v3125_v21 = vsub.f32 %v11027_v33, %v3117_v61  ;;  %v3126_v10 = vsub.f32 %v3009_v58, %v3118_v54  ;;  %v3295_v23 = vmul.f32 %v10775_v56, %v10423_v47 }
 0x23c   :  { %13316 = vst [vmem:[#allocation86_spill] sm:$0xff] %v11042_v50  ;;  %v11057_v62 = vstv %s11006_s12  ;;  %v11059_v3 = vpack.c.bf16 %v3029_v53, %v3028_v8  ;;  %v3211_v28 = vsub.f32 %v10966_v49, %v3203_v6  ;;  %v3296_v11 = vmul.f32 %v10411_v4, %v10775_v56 }
 0x23d   :  { %13317 = vst [vmem:[#allocation87_spill] sm:$0xff] %v11047_v20  ;;  %v3205_v37 = vmul.f32 %v10775_v56, %v10476_v12  ;;  %v11066_v61 = vpack.c.bf16 %v3126_v10, %v3125_v21  ;;  %v3212_v54 = vsub.f32 %v10975_v51, %v3204_v19  ;;  %v3303_v20 = vsub.f32 %v10966_v49, %v3295_v23 }
 0x23e   :  { %13318 = vst [vmem:[#allocation88_spill] sm:$0xff] %v11059_v3  ;;  %v3206_v50 = vmul.f32 %v10463_v14, %v10775_v56  ;;  %v3304_v53 = vsub.f32 %v10975_v51, %v3296_v11  ;;  %v3297_v6 = vmul.f32 %v10775_v56, %v10478_v46  ;;  %v3298_v3 = vmul.f32 %v10465_v57, %v10775_v56 }
 0x23f   :  { %13319 = vst [vmem:[#allocation89_spill] sm:$0xff] %v11066_v61  ;;  %v3213_v8 = vsub.f32 %v10984_v60, %v3205_v37  ;;  %v11078_v9 = vpack.c.bf16 %v3212_v54, %v3211_v28  ;;  %v3207_v19 = vmul.f32 %v10775_v56, %v10536_v24  ;;  %v3208_v49 = vmul.f32 %v10526_v59, %v10775_v56 }
 0x240   :  { %v3214_v10 = vsub.f32 %v10992_v16, %v3206_v50  ;;  %v11085_v21 = vpack.c.bf16 %v3304_v53, %v3303_v20  ;;  %v3305_v51 = vsub.f32 %v10984_v60, %v3297_v6  ;;  %v3306_v23 = vsub.f32 %v10992_v16, %v3298_v3 }
 0x241   :  { %13320 = vst [vmem:[#allocation90_spill] sm:$0xff] %v11078_v9  ;;  %v3299_v11 = vmul.f32 %v10775_v56, %v10538_v0  ;;  %v3215_v28 = vsub.f32 %v11004_v22, %v3207_v19  ;;  %v3216_v50 = vsub.f32 %v11011_v55, %v3208_v49  ;;  %v3300_v54 = vmul.f32 %v10528_v44, %v10775_v56 }
 0x242   :  { %13321 = vst [vmem:[#allocation91_spill] sm:$0xff] %v11085_v21  ;;  %v11091_v37 = vpack.c.bf16 %v3214_v10, %v3213_v8  ;;  %v11097_v9 = vpack.c.bf16 %v3306_v23, %v3305_v51  ;;  %v3209_v60 = vmul.f32 %v10775_v56, %v10589_v43  ;;  %v3210_v16 = vmul.f32 %v10580_v32, %v10775_v56 }
 0x243   :  { %v3307_v20 = vsub.f32 %v11004_v22, %v3299_v11  ;;  %v11104_v3 = vpack.c.bf16 %v3216_v50, %v3215_v28  ;;  %v3308_v53 = vsub.f32 %v11011_v55, %v3300_v54  ;;  %v3301_v8 = vmul.f32 %v10775_v56, %v10591_v36  ;;  %v11112_v22 = vld [vmem:[#allocation10 + $0x180] sm:$0xff]  ;;  %v11117_v11 = vld [vmem:[#allocation10 + $0x188] sm:$0xff] }
 0x244   :  { %13322 = vst [vmem:[#allocation92_spill] sm:$0xff] %v11091_v37  ;;  %13323 = vst [vmem:[#allocation93_spill] sm:$0xff] %v11097_v9  ;;  %v3302_v6 = vmul.f32 %v10582_v29, %v10775_v56  ;;  %v3217_v10 = vsub.f32 %v11027_v33, %v3209_v60  ;;  %v3218_v19 = vsub.f32 %v3009_v58, %v3210_v16  ;;  %v11134_v60 = vld [vmem:[#allocation10 + $0x198] sm:$0xff] }
 0x245   :  { %13324 = vst [vmem:[#allocation94_spill] sm:$0xff] %v11104_v3  ;;  %v11114_v49 = vpack.c.bf16 %v3308_v53, %v3307_v20  ;;  %v3309_v51 = vsub.f32 %v11027_v33, %v3301_v8  ;;  %v3400_v55 = vmul.f32 %v11057_v62, %v13263_v13  ;;  %v3401_v56 = vmul.f32 %v13264_v63, %v11057_v62  ;;  %v11132_v33 = vld [vmem:[#allocation10 + $0x190] sm:$0xff]  ;;  %v11156_v3 = vld [vmem:[#allocation10 + $0x1a8] sm:$0xff] }
 0x246   :  { %v3310_v23 = vsub.f32 %v3009_v58, %v3302_v6  ;;  %v11121_v28 = vpack.c.bf16 %v3218_v19, %v3217_v10  ;;  %v3497_v20 = vmul.f32 %v11057_v62, %v10217_v31  ;;  %v3498_v58 = vmul.f32 %v10209_v27, %v11057_v62  ;;  %v11143_v10 = vld [vmem:[#allocation10 + $0x1a0] sm:$0xff] }
 0x247   :  { %13325 = vst [vmem:[#allocation95_spill] sm:$0xff] %v11114_v49  ;;  %v3408_v54 = vsub.f32 %v11112_v22, %v3400_v55  ;;  %v3409_v16 = vsub.f32 %v11117_v11, %v3401_v56  ;;  %v3402_v53 = vmul.f32 %v11057_v62, %v10215_v30  ;;  %v3403_v8 = vmul.f32 %v13262_v38, %v11057_v62 }
 0x248   :  { %13326 = vst [vmem:[#allocation96_spill] sm:$0xff] %v11121_v28  ;;  %v11125_v50 = vpack.c.bf16 %v3310_v23, %v3309_v51  ;;  %v3499_v6 = vmul.f32 %v11057_v62, %v13268_v40  ;;  %v3505_v19 = vsub.f32 %v11112_v22, %v3497_v20  ;;  %v3506_v51 = vsub.f32 %v11117_v11, %v3498_v58 }
 0x249   :  { %v3500_v23 = vmul.f32 %v13269_v52, %v11057_v62  ;;  %v3404_v55 = vmul.f32 %v11057_v62, %v13271_v2  ;;  %v11151_v56 = vpack.c.bf16 %v3409_v16, %v3408_v54  ;;  %v3411_v28 = vsub.f32 %v11134_v60, %v3403_v8  ;;  %v11166_v16 = vld [vmem:[#allocation10 + $0x1b0] sm:$0xff] }
 0x24a   :  { %13327 = vst [vmem:[#allocation97_spill] sm:$0xff] %v11125_v50  ;;  %v3410_v50 = vsub.f32 %v11132_v33, %v3402_v53  ;;  %v3507_v49 = vsub.f32 %v11132_v33, %v3499_v6  ;;  %v11160_v20 = vpack.c.bf16 %v3506_v51, %v3505_v19  ;;  %v3405_v9 = vmul.f32 %v13272_v42, %v11057_v62 }
 0x24b   :  { %13328 = vst [vmem:[#allocation98_spill] sm:$0xff] %v11151_v56  ;;  %v3508_v58 = vsub.f32 %v11134_v60, %v3500_v23  ;;  %v3412_v54 = vsub.f32 %v11143_v10, %v3404_v55  ;;  %v3501_v8 = vmul.f32 %v11057_v62, %v13273_v45  ;;  %v3502_v6 = vmul.f32 %v13277_v17, %v11057_v62  ;;  %v11174_v56 = vld [vmem:[#allocation10 + $0x1b8] sm:$0xff] }
 0x24c   :  { %13329 = vst [vmem:[#allocation99_spill] sm:$0xff] %v11160_v20  ;;  %v11168_v53 = vpack.c.bf16 %v3411_v28, %v3410_v50  ;;  %v3406_v19 = vmul.f32 %v11057_v62, %v13279_v7  ;;  %v3413_v23 = vsub.f32 %v11156_v3, %v3405_v9  ;;  %v3407_v55 = vmul.f32 %v13280_v18, %v11057_v62 }
 0x24d   :  { %v11178_v51 = vpack.c.bf16 %v3508_v58, %v3507_v49  ;;  %v3503_v28 = vmul.f32 %v11057_v62, %v13282_v41  ;;  %v3509_v50 = vsub.f32 %v11143_v10, %v3501_v8  ;;  %v3504_v37 = vmul.f32 %v10338_v1, %v11057_v62 }
 0x24e   :  { %13330 = vst [vmem:[#allocation100_spill] sm:$0xff] %v11168_v53  ;;  %v3510_v53 = vsub.f32 %v11156_v3, %v3502_v6  ;;  %v3414_v20 = vsub.f32 %v11166_v16, %v3406_v19  ;;  %v11190_v49 = vpack.c.bf16 %v3413_v23, %v3412_v54  ;;  %v3415_v9 = vsub.f32 %v11174_v56, %v3407_v55 }
 0x24f   :  { %13331 = vst [vmem:[#allocation101_spill] sm:$0xff] %v11178_v51  ;;  %v3511_v58 = vsub.f32 %v11166_v16, %v3503_v28  ;;  %v3512_v21 = vsub.f32 %v11174_v56, %v3504_v37  ;;  %v3589_v8 = vmul.f32 %v11057_v62, %v10413_v34  ;;  %v3590_v6 = vmul.f32 %v10403_v25, %v11057_v62 }
 0x250   :  { %13332 = vst [vmem:[#allocation102_spill] sm:$0xff] %v11190_v49  ;;  %v11194_v51 = vpack.c.bf16 %v3510_v53, %v3509_v50  ;;  %v11199_v61 = vpack.c.bf16 %v3415_v9, %v3414_v20  ;;  %v3681_v54 = vmul.f32 %v11057_v62, %v10423_v47  ;;  %v3682_v53 = vmul.f32 %v10411_v4, %v11057_v62 }
 0x251   :  { %v11205_v19 = vpack.c.bf16 %v3512_v21, %v3511_v58  ;;  %v3597_v23 = vsub.f32 %v11112_v22, %v3589_v8  ;;  %v11211_v55 = vstv %s11158_s13  ;;  %v3598_v37 = vsub.f32 %v11117_v11, %v3590_v6  ;;  %s7074_s13 = sld [smem:[#allocation2 + $0xc]] }
 0x252   :  { %13333 = vst [vmem:[#allocation103_spill] sm:$0xff] %v11194_v51  ;;  %13334 = vst [vmem:[#allocation104_spill] sm:$0xff] %v11199_v61  ;;  %v3689_v20 = vsub.f32 %v11112_v22, %v3681_v54  ;;  %v3591_v28 = vmul.f32 %v11057_v62, %v10476_v12  ;;  %v3592_v50 = vmul.f32 %v10463_v14, %v11057_v62 }
 0x253   :  { %13335 = vst [vmem:[#allocation105_spill] sm:$0xff] %v11205_v19  ;;  %v3690_v21 = vsub.f32 %v11117_v11, %v3682_v53  ;;  %v3683_v9 = vmul.f32 %v11057_v62, %v10478_v46  ;;  %v3684_v58 = vmul.f32 %v10465_v57, %v11057_v62  ;;  %v3593_v8 = vmul.f32 %v11057_v62, %v10536_v24 }
 0x254   :  { %v11226_v6 = vpack.c.bf16 %v3598_v37, %v3597_v23  ;;  %v3599_v22 = vsub.f32 %v11132_v33, %v3591_v28  ;;  %v3600_v54 = vsub.f32 %v11134_v60, %v3592_v50  ;;  %v3594_v19 = vmul.f32 %v10526_v59, %v11057_v62 }
 0x255   :  { %v11232_v61 = vpack.c.bf16 %v3690_v21, %v3689_v20  ;;  %v3691_v11 = vsub.f32 %v11132_v33, %v3683_v9  ;;  %v3692_v53 = vsub.f32 %v11134_v60, %v3684_v58  ;;  %v3601_v51 = vsub.f32 %v11143_v10, %v3593_v8 }
 0x256   :  { %13336 = vst [vmem:[#allocation106_spill] sm:$0xff] %v11226_v6  ;;  %v11237_v49 = vpack.c.bf16 %v3600_v54, %v3599_v22  ;;  %v3602_v23 = vsub.f32 %v11156_v3, %v3594_v19  ;;  %v3685_v37 = vmul.f32 %v11057_v62, %v10538_v0  ;;  %v3686_v28 = vmul.f32 %v10528_v44, %v11057_v62 }
 0x257   :  { %13337 = vst [vmem:[#allocation107_spill] sm:$0xff] %v11232_v61  ;;  %v11244_v50 = vpack.c.bf16 %v3692_v53, %v3691_v11  ;;  %v3595_v20 = vmul.f32 %v11057_v62, %v10589_v43  ;;  %v3596_v33 = vmul.f32 %v10580_v32, %v11057_v62  ;;  %v3687_v60 = vmul.f32 %v11057_v62, %v10591_v36  ;;  %v11261_v11 = vld [vmem:[#allocation10 + $0x1c0] sm:$0xff] }
 0x258   :  { %13338 = vst [vmem:[#allocation108_spill] sm:$0xff] %v11237_v49  ;;  %v11252_v21 = vpack.c.bf16 %v3602_v23, %v3601_v51  ;;  %v3693_v19 = vsub.f32 %v11143_v10, %v3685_v37  ;;  %v3694_v9 = vsub.f32 %v11156_v3, %v3686_v28  ;;  %v3688_v58 = vmul.f32 %v10582_v29, %v11057_v62  ;;  %v11266_v23 = vld [vmem:[#allocation10 + $0x1c8] sm:$0xff] }
 0x259   :  { %13339 = vst [vmem:[#allocation109_spill] sm:$0xff] %v11244_v50  ;;  %v3603_v8 = vsub.f32 %v11166_v16, %v3595_v20  ;;  %v3604_v22 = vsub.f32 %v11174_v56, %v3596_v33  ;;  %v3695_v54 = vsub.f32 %v11166_v16, %v3687_v60  ;;  %v3786_v3 = vmul.f32 %v11211_v55, %v13263_v13  ;;  %v11281_v20 = vld [vmem:[#allocation10 + $0x1d0] sm:$0xff]  ;;  %v11283_v33 = vld [vmem:[#allocation10 + $0x1d8] sm:$0xff] }
 0x25a   :  { %13340 = vst [vmem:[#allocation110_spill] sm:$0xff] %v11252_v21  ;;  %v11263_v53 = vpack.c.bf16 %v3694_v9, %v3693_v19  ;;  %v3696_v51 = vsub.f32 %v11174_v56, %v3688_v58  ;;  %v3787_v62 = vmul.f32 %v13264_v63, %v11211_v55  ;;  %v3883_v37 = vmul.f32 %v11211_v55, %v10217_v31 }
 0x25b   :  { %v11270_v10 = vpack.c.bf16 %v3604_v22, %v3603_v8  ;;  %v3794_v28 = vsub.f32 %v11261_v11, %v3786_v3  ;;  %v3884_v56 = vmul.f32 %v10209_v27, %v11211_v55  ;;  %v3788_v9 = vmul.f32 %v11211_v55, %v10215_v30  ;;  %v11291_v8 = vld [vmem:[#allocation10 + $0x1e0] sm:$0xff]  ;;  %v11298_v3 = vld [vmem:[#allocation10 + $0x1e8] sm:$0xff] }
 0x25c   :  { %13341 = vst [vmem:[#allocation111_spill] sm:$0xff] %v11263_v53  ;;  %v11276_v16 = vpack.c.bf16 %v3696_v51, %v3695_v54  ;;  %v3795_v60 = vsub.f32 %v11266_v23, %v3787_v62  ;;  %v3891_v19 = vsub.f32 %v11261_v11, %v3883_v37  ;;  %v3789_v58 = vmul.f32 %v13262_v38, %v11211_v55 }
 0x25d   :  { %13342 = vst [vmem:[#allocation112_spill] sm:$0xff] %v11270_v10  ;;  %v3892_v22 = vsub.f32 %v11266_v23, %v3884_v56  ;;  %v3885_v54 = vmul.f32 %v11211_v55, %v13268_v40  ;;  %v3886_v51 = vmul.f32 %v13269_v52, %v11211_v55  ;;  %v3790_v62 = vmul.f32 %v11211_v55, %v13271_v2 }
 0x25e   :  { %13343 = vst [vmem:[#allocation113_spill] sm:$0xff] %v11276_v16  ;;  %v11302_v37 = vpack.c.bf16 %v3795_v60, %v3794_v28  ;;  %v3796_v16 = vsub.f32 %v11281_v20, %v3788_v9  ;;  %v3797_v10 = vsub.f32 %v11283_v33, %v3789_v58  ;;  %v3791_v56 = vmul.f32 %v13272_v42, %v11211_v55  ;;  %v11322_v58 = vld [vmem:[#allocation10 + $0x1f0] sm:$0xff] }
 0x25f   :  { %v11310_v53 = vpack.c.bf16 %v3892_v22, %v3891_v19  ;;  %v3893_v21 = vsub.f32 %v11281_v20, %v3885_v54  ;;  %v3894_v50 = vsub.f32 %v11283_v33, %v3886_v51  ;;  %v3798_v49 = vsub.f32 %v11291_v8, %v3790_v62  ;;  %v3781_v19 = vld [vmem:[#allocation10 + $0x1f8] sm:$0xff] }
 0x260   :  { %13344 = vst [vmem:[#allocation114_spill] sm:$0xff] %v11302_v37  ;;  %v11315_v61 = vpack.c.bf16 %v3797_v10, %v3796_v16  ;;  %v3799_v28 = vsub.f32 %v11298_v3, %v3791_v56  ;;  %v3887_v60 = vmul.f32 %v11211_v55, %v13273_v45  ;;  %v3888_v9 = vmul.f32 %v13277_v17, %v11211_v55 }
 0x261   :  { %13345 = vst [vmem:[#allocation115_spill] sm:$0xff] %v11310_v53  ;;  %v11324_v22 = vpack.c.bf16 %v3894_v50, %v3893_v21  ;;  %v3792_v54 = vmul.f32 %v11211_v55, %v13279_v7  ;;  %v3793_v10 = vmul.f32 %v13280_v18, %v11211_v55  ;;  %v3889_v16 = vmul.f32 %v11211_v55, %v13282_v41 }
 0x262   :  { %13346 = vst [vmem:[#allocation116_spill] sm:$0xff] %v11315_v61  ;;  %v11332_v51 = vpack.c.bf16 %v3799_v28, %v3798_v49  ;;  %v3895_v62 = vsub.f32 %v11291_v8, %v3887_v60  ;;  %v3896_v56 = vsub.f32 %v11298_v3, %v3888_v9  ;;  %v3890_v50 = vmul.f32 %v10338_v1, %v11211_v55 }
 0x263   :  { %13347 = vst [vmem:[#allocation117_spill] sm:$0xff] %v11324_v22  ;;  %v3800_v21 = vsub.f32 %v11322_v58, %v3792_v54  ;;  %v3801_v22 = vsub.f32 %v3781_v19, %v3793_v10  ;;  %v3897_v61 = vsub.f32 %v11322_v58, %v3889_v16  ;;  %v3975_v49 = vmul.f32 %v11211_v55, %v10413_v34 }
 0x264   :  { %13348 = vst [vmem:[#allocation118_spill] sm:$0xff] %v11332_v51  ;;  %v11340_v53 = vpack.c.bf16 %v3896_v56, %v3895_v62  ;;  %v3898_v37 = vsub.f32 %v3781_v19, %v3890_v50  ;;  %v3976_v60 = vmul.f32 %v10403_v25, %v11211_v55  ;;  %v4067_v9 = vmul.f32 %v11211_v55, %v10423_v47 }
 0x265   :  { %v11344_v28 = vpack.c.bf16 %v3801_v22, %v3800_v21  ;;  %v3983_v54 = vsub.f32 %v11261_v11, %v3975_v49  ;;  %v4068_v10 = vmul.f32 %v10411_v4, %v11211_v55  ;;  %v11356_v16 = vstv %s11308_s14 }
 0x266   :  { %13349 = vst [vmem:[#allocation119_spill] sm:$0xff] %v11340_v53  ;;  %v11350_v51 = vpack.c.bf16 %v3898_v37, %v3897_v61  ;;  %v3984_v62 = vsub.f32 %v11266_v23, %v3976_v60  ;;  %v4075_v22 = vsub.f32 %v11261_v11, %v4067_v9  ;;  %v3977_v56 = vmul.f32 %v11211_v55, %v10476_v12 }
 0x267   :  { %13350 = vst [vmem:[#allocation120_spill] sm:$0xff] %v11344_v28  ;;  %v3978_v50 = vmul.f32 %v10463_v14, %v11211_v55  ;;  %v4076_v61 = vsub.f32 %v11266_v23, %v4068_v10  ;;  %v4069_v37 = vmul.f32 %v11211_v55, %v10478_v46  ;;  %v4070_v21 = vmul.f32 %v10465_v57, %v11211_v55 }
 0x268   :  { %13351 = vst [vmem:[#allocation121_spill] sm:$0xff] %v11350_v51  ;;  %v3979_v49 = vmul.f32 %v11211_v55, %v10536_v24  ;;  %v11371_v60 = vpack.c.bf16 %v3984_v62, %v3983_v54  ;;  %v3985_v11 = vsub.f32 %v11281_v20, %v3977_v56  ;;  %v3980_v51 = vmul.f32 %v10526_v59, %v11211_v55 }
 0x269   :  { %v3986_v9 = vsub.f32 %v11283_v33, %v3978_v50  ;;  %v11377_v28 = vpack.c.bf16 %v4076_v61, %v4075_v22  ;;  %v4077_v23 = vsub.f32 %v11281_v20, %v4069_v37  ;;  %v4078_v10 = vsub.f32 %v11283_v33, %v4070_v21 }
 0x26a   :  { %13352 = vst [vmem:[#allocation122_spill] sm:$0xff] %v11371_v60  ;;  %v3987_v53 = vsub.f32 %v11291_v8, %v3979_v49  ;;  %v3988_v54 = vsub.f32 %v11298_v3, %v3980_v51  ;;  %v4071_v62 = vmul.f32 %v11211_v55, %v10538_v0  ;;  %v4072_v56 = vmul.f32 %v10528_v44, %v11211_v55 }
 0x26b   :  { %13353 = vst [vmem:[#allocation123_spill] sm:$0xff] %v11377_v28  ;;  %v11382_v6 = vpack.c.bf16 %v3986_v9, %v3985_v11  ;;  %v11389_v50 = vpack.c.bf16 %v4078_v10, %v4077_v23  ;;  %v3981_v22 = vmul.f32 %v11211_v55, %v10589_v43  ;;  %v3982_v20 = vmul.f32 %v10580_v32, %v11211_v55  ;;  %v11405_v23 = vld [vmem:[#allocation10 + $0x200] sm:$0xff] }
 0x26c   :  { %v4073_v33 = vmul.f32 %v11211_v55, %v10591_v36  ;;  %v11397_v61 = vpack.c.bf16 %v3988_v54, %v3987_v53  ;;  %v4079_v51 = vsub.f32 %v11291_v8, %v4071_v62  ;;  %v4080_v37 = vsub.f32 %v11298_v3, %v4072_v56  ;;  %v11424_v62 = vld [vmem:[#allocation10 + $0x210] sm:$0xff]  ;;  %v11426_v56 = vld [vmem:[#allocation10 + $0x218] sm:$0xff] }
 0x26d   :  { %13354 = vst [vmem:[#allocation124_spill] sm:$0xff] %v11382_v6  ;;  %13355 = vst [vmem:[#allocation125_spill] sm:$0xff] %v11389_v50  ;;  %v4074_v21 = vmul.f32 %v10582_v29, %v11211_v55  ;;  %v3989_v49 = vsub.f32 %v11322_v58, %v3981_v22  ;;  %v3990_v11 = vsub.f32 %v3781_v19, %v3982_v20  ;;  %v11409_v6 = vld [vmem:[#allocation10 + $0x208] sm:$0xff] }
 0x26e   :  { %13356 = vst [vmem:[#allocation126_spill] sm:$0xff] %v11397_v61  ;;  %v4081_v9 = vsub.f32 %v11322_v58, %v4073_v33  ;;  %v11407_v10 = vpack.c.bf16 %v4080_v37, %v4079_v51  ;;  %v4172_v53 = vmul.f32 %v11356_v16, %v13263_v13  ;;  %v4173_v55 = vmul.f32 %v13264_v63, %v11356_v16  ;;  %v11434_v51 = vld [vmem:[#allocation10 + $0x220] sm:$0xff] }
 0x26f   :  { %v4082_v50 = vsub.f32 %v3781_v19, %v4074_v21  ;;  %v11413_v8 = vpack.c.bf16 %v3990_v11, %v3989_v49  ;;  %v4269_v3 = vmul.f32 %v11356_v16, %v10217_v31  ;;  %v4270_v19 = vmul.f32 %v10209_v27, %v11356_v16  ;;  %v11441_v11 = vld [vmem:[#allocation10 + $0x228] sm:$0xff] }
 0x270   :  { %13357 = vst [vmem:[#allocation127_spill] sm:$0xff] %v11407_v10  ;;  %v4180_v58 = vsub.f32 %v11405_v23, %v4172_v53  ;;  %v4181_v22 = vsub.f32 %v11409_v6, %v4173_v55  ;;  %v4174_v33 = vmul.f32 %v11356_v16, %v10215_v30  ;;  %v4271_v21 = vmul.f32 %v11356_v16, %v13268_v40 }
 0x271   :  { %13358 = vst [vmem:[#allocation128_spill] sm:$0xff] %v11413_v8  ;;  %v11419_v54 = vpack.c.bf16 %v4082_v50, %v4081_v9  ;;  %v4277_v20 = vsub.f32 %v11405_v23, %v4269_v3  ;;  %v4175_v50 = vmul.f32 %v13262_v38, %v11356_v16  ;;  %v4278_v37 = vsub.f32 %v11409_v6, %v4270_v19 }
 0x272   :  { %v4272_v49 = vmul.f32 %v13269_v52, %v11356_v16  ;;  %v4176_v9 = vmul.f32 %v11356_v16, %v13271_v2  ;;  %v11445_v53 = vpack.c.bf16 %v4181_v22, %v4180_v58  ;;  %v4182_v55 = vsub.f32 %v11424_v62, %v4174_v33 }
 0x273   :  { %13359 = vst [vmem:[#allocation129_spill] sm:$0xff] %v11419_v54  ;;  %v4183_v3 = vsub.f32 %v11426_v56, %v4175_v50  ;;  %v4177_v19 = vmul.f32 %v13272_v42, %v11356_v16  ;;  %v11453_v54 = vpack.c.bf16 %v4278_v37, %v4277_v20  ;;  %v4279_v8 = vsub.f32 %v11424_v62, %v4271_v21  ;;  %v11465_v50 = vld [vmem:[#allocation10 + $0x230] sm:$0xff]  ;;  %v4167_v20 = vld [vmem:[#allocation10 + $0x238] sm:$0xff] }
 0x274   :  { %13360 = vst [vmem:[#allocation130_spill] sm:$0xff] %v11445_v53  ;;  %v4280_v10 = vsub.f32 %v11426_v56, %v4272_v49  ;;  %v4184_v61 = vsub.f32 %v11434_v51, %v4176_v9  ;;  %v4273_v22 = vmul.f32 %v11356_v16, %v13273_v45  ;;  %v4274_v33 = vmul.f32 %v13277_v17, %v11356_v16 }
 0x275   :  { %13361 = vst [vmem:[#allocation131_spill] sm:$0xff] %v11453_v54  ;;  %v11458_v28 = vpack.c.bf16 %v4183_v3, %v4182_v55  ;;  %v4185_v58 = vsub.f32 %v11441_v11, %v4177_v19  ;;  %v4178_v21 = vmul.f32 %v11356_v16, %v13279_v7  ;;  %v4179_v49 = vmul.f32 %v13280_v18, %v11356_v16 }
 0x276   :  { %v11467_v37 = vpack.c.bf16 %v4280_v10, %v4279_v8  ;;  %v4275_v9 = vmul.f32 %v11356_v16, %v13282_v41  ;;  %v4281_v3 = vsub.f32 %v11434_v51, %v4273_v22  ;;  %v4282_v19 = vsub.f32 %v11441_v11, %v4274_v33 }
 0x277   :  { %13362 = vst [vmem:[#allocation132_spill] sm:$0xff] %v11458_v28  ;;  %v11475_v55 = vpack.c.bf16 %v4185_v58, %v4184_v61  ;;  %v4276_v10 = vmul.f32 %v10338_v1, %v11356_v16  ;;  %v4186_v8 = vsub.f32 %v11465_v50, %v4178_v21  ;;  %v4361_v61 = vmul.f32 %v11356_v16, %v10413_v34 }
 0x278   :  { %13363 = vst [vmem:[#allocation133_spill] sm:$0xff] %v11467_v37  ;;  %v4187_v37 = vsub.f32 %v4167_v20, %v4179_v49  ;;  %v4283_v28 = vsub.f32 %v11465_v50, %v4275_v9  ;;  %v11483_v54 = vpack.c.bf16 %v4282_v19, %v4281_v3  ;;  %v4362_v22 = vmul.f32 %v10403_v25, %v11356_v16 }
 0x279   :  { %13364 = vst [vmem:[#allocation134_spill] sm:$0xff] %v11475_v55  ;;  %v4284_v53 = vsub.f32 %v4167_v20, %v4276_v10  ;;  %v4453_v33 = vmul.f32 %v11356_v16, %v10423_v47  ;;  %v4369_v21 = vsub.f32 %v11405_v23, %v4361_v61  ;;  %v4454_v49 = vmul.f32 %v10411_v4, %v11356_v16 }
 0x27a   :  { %13365 = vst [vmem:[#allocation135_spill] sm:$0xff] %v11483_v54  ;;  %v11487_v58 = vpack.c.bf16 %v4187_v37, %v4186_v8  ;;  %v11499_v9 = vstv %s11451_s15  ;;  %v4370_v3 = vsub.f32 %v11409_v6, %v4362_v22  ;;  %v4363_v19 = vmul.f32 %v11356_v16, %v10476_v12  ;;  %s9941_s15 = smov [#allocation13]  }
 0x27b   :  { %v11493_v55 = vpack.c.bf16 %v4284_v53, %v4283_v28  ;;  %v4461_v37 = vsub.f32 %v11405_v23, %v4453_v33  ;;  %v4364_v10 = vmul.f32 %v10463_v14, %v11356_v16  ;;  %v4462_v28 = vsub.f32 %v11409_v6, %v4454_v49 }
 0x27c   :  { %13366 = vst [vmem:[#allocation136_spill] sm:$0xff] %v11487_v58  ;;  %v4455_v53 = vmul.f32 %v11356_v16, %v10478_v46  ;;  %v4456_v8 = vmul.f32 %v10465_v57, %v11356_v16  ;;  %v4365_v61 = vmul.f32 %v11356_v16, %v10536_v24  ;;  %v11514_v22 = vpack.c.bf16 %v4370_v3, %v4369_v21 }
 0x27d   :  { %13367 = vst [vmem:[#allocation137_spill] sm:$0xff] %v11493_v55  ;;  %v4371_v23 = vsub.f32 %v11424_v62, %v4363_v19  ;;  %v4372_v33 = vsub.f32 %v11426_v56, %v4364_v10  ;;  %v4366_v55 = vmul.f32 %v10526_v59, %v11356_v16  ;;  %v11520_v58 = vpack.c.bf16 %v4462_v28, %v4461_v37 }
 0x27e   :  { %13368 = vst [vmem:[#allocation138_spill] sm:$0xff] %v11514_v22  ;;  %v4463_v6 = vsub.f32 %v11424_v62, %v4455_v53  ;;  %v4464_v49 = vsub.f32 %v11426_v56, %v4456_v8  ;;  %v4373_v54 = vsub.f32 %v11434_v51, %v4365_v61  ;;  %v4457_v3 = vmul.f32 %v11356_v16, %v10538_v0 }
 0x27f   :  { %13369 = vst [vmem:[#allocation139_spill] sm:$0xff] %v11520_v58  ;;  %v11525_v60 = vpack.c.bf16 %v4372_v33, %v4371_v23  ;;  %v4374_v21 = vsub.f32 %v11441_v11, %v4366_v55  ;;  %v4458_v19 = vmul.f32 %v10528_v44, %v11356_v16  ;;  %v4367_v37 = vmul.f32 %v11356_v16, %v10589_v43 }
 0x280   :  { %v11532_v10 = vpack.c.bf16 %v4464_v49, %v4463_v6  ;;  %v4368_v62 = vmul.f32 %v10580_v32, %v11356_v16  ;;  %v4459_v56 = vmul.f32 %v11356_v16, %v10591_v36  ;;  %v4465_v55 = vsub.f32 %v11434_v51, %v4457_v3  ;;  %v11548_v6 = vld [vmem:[#allocation10 + $0x240] sm:$0xff]  ;;  %v11567_v3 = vld [vmem:[#allocation10 + $0x250] sm:$0xff] }
 0x281   :  { %13370 = vst [vmem:[#allocation140_spill] sm:$0xff] %v11525_v60  ;;  %v11540_v28 = vpack.c.bf16 %v4374_v21, %v4373_v54  ;;  %v4466_v53 = vsub.f32 %v11441_v11, %v4458_v19  ;;  %v4460_v8 = vmul.f32 %v10582_v29, %v11356_v16  ;;  %v4375_v61 = vsub.f32 %v11465_v50, %v4367_v37  ;;  %v11552_v60 = vld [vmem:[#allocation10 + $0x248] sm:$0xff]  ;;  %v11569_v19 = vld [vmem:[#allocation10 + $0x258] sm:$0xff] }
 0x282   :  { %13371 = vst [vmem:[#allocation141_spill] sm:$0xff] %v11532_v10  ;;  %v4376_v23 = vsub.f32 %v4167_v20, %v4368_v62  ;;  %v4467_v33 = vsub.f32 %v11465_v50, %v4459_v56  ;;  %v4558_v54 = vmul.f32 %v11499_v9, %v13263_v13  ;;  %v4559_v16 = vmul.f32 %v13264_v63, %v11499_v9 }
 0x283   :  { %13372 = vst [vmem:[#allocation142_spill] sm:$0xff] %v11540_v28  ;;  %v11550_v49 = vpack.c.bf16 %v4466_v53, %v4465_v55  ;;  %v4468_v10 = vsub.f32 %v4167_v20, %v4460_v8  ;;  %v4655_v11 = vmul.f32 %v11499_v9, %v10217_v31  ;;  %v4656_v20 = vmul.f32 %v10209_v27, %v11499_v9  ;;  %v11577_v55 = vld [vmem:[#allocation10 + $0x260] sm:$0xff] }
 0x284   :  { %v11556_v51 = vpack.c.bf16 %v4376_v23, %v4375_v61  ;;  %v4566_v50 = vsub.f32 %v11548_v6, %v4558_v54  ;;  %v4567_v37 = vsub.f32 %v11552_v60, %v4559_v16  ;;  %v4560_v56 = vmul.f32 %v11499_v9, %v10215_v30  ;;  %v11584_v23 = vld [vmem:[#allocation10 + $0x268] sm:$0xff] }
 0x285   :  { %13373 = vst [vmem:[#allocation143_spill] sm:$0xff] %v11550_v49  ;;  %v11562_v21 = vpack.c.bf16 %v4468_v10, %v4467_v33  ;;  %v4663_v62 = vsub.f32 %v11548_v6, %v4655_v11  ;;  %v4561_v10 = vmul.f32 %v13262_v38, %v11499_v9  ;;  %v4664_v53 = vsub.f32 %v11552_v60, %v4656_v20 }
 0x286   :  { %13374 = vst [vmem:[#allocation144_spill] sm:$0xff] %v11556_v51  ;;  %v4657_v8 = vmul.f32 %v11499_v9, %v13268_v40  ;;  %v4658_v61 = vmul.f32 %v13269_v52, %v11499_v9  ;;  %v4562_v33 = vmul.f32 %v11499_v9, %v13271_v2  ;;  %v11588_v54 = vpack.c.bf16 %v4567_v37, %v4566_v50 }
 0x287   :  { %13375 = vst [vmem:[#allocation145_spill] sm:$0xff] %v11562_v21  ;;  %v4568_v16 = vsub.f32 %v11567_v3, %v4560_v56  ;;  %v4569_v11 = vsub.f32 %v11569_v19, %v4561_v10  ;;  %v4563_v20 = vmul.f32 %v13272_v42, %v11499_v9  ;;  %v11594_v21 = vpack.c.bf16 %v4664_v53, %v4663_v62  ;;  %v11606_v10 = vld [vmem:[#allocation10 + $0x270] sm:$0xff]  ;;  %v11608_v62 = vld [vmem:[#allocation10 + $0x278] sm:$0xff] }
 0x288   :  { %13376 = vst [vmem:[#allocation146_spill] sm:$0xff] %v11588_v54  ;;  %v4665_v51 = vsub.f32 %v11567_v3, %v4657_v8  ;;  %v4666_v49 = vsub.f32 %v11569_v19, %v4658_v61  ;;  %v4570_v28 = vsub.f32 %v11577_v55, %v4562_v33  ;;  %v4659_v37 = vmul.f32 %v11499_v9, %v13273_v45 }
 0x289   :  { %13377 = vst [vmem:[#allocation147_spill] sm:$0xff] %v11594_v21  ;;  %v11599_v58 = vpack.c.bf16 %v4569_v11, %v4568_v16  ;;  %v4571_v50 = vsub.f32 %v11584_v23, %v4563_v20  ;;  %v4660_v56 = vmul.f32 %v13277_v17, %v11499_v9  ;;  %v4564_v8 = vmul.f32 %v11499_v9, %v13279_v7 }
 0x28a   :  { %v11610_v53 = vpack.c.bf16 %v4666_v49, %v4665_v51  ;;  %v4565_v61 = vmul.f32 %v13280_v18, %v11499_v9  ;;  %v4661_v33 = vmul.f32 %v11499_v9, %v13282_v41  ;;  %v4667_v11 = vsub.f32 %v11577_v55, %v4659_v37 }
 0x28b   :  { %13378 = vst [vmem:[#allocation148_spill] sm:$0xff] %v11599_v58  ;;  %v11618_v16 = vpack.c.bf16 %v4571_v50, %v4570_v28  ;;  %v4668_v20 = vsub.f32 %v11584_v23, %v4660_v56  ;;  %v4662_v58 = vmul.f32 %v10338_v1, %v11499_v9  ;;  %v4572_v49 = vsub.f32 %v11606_v10, %v4564_v8 }
 0x28c   :  { %13379 = vst [vmem:[#allocation149_spill] sm:$0xff] %v11610_v53  ;;  %v4573_v51 = vsub.f32 %v11608_v62, %v4565_v61  ;;  %v4669_v53 = vsub.f32 %v11606_v10, %v4661_v33  ;;  %v4747_v28 = vmul.f32 %v11499_v9, %v10413_v34  ;;  %v4748_v50 = vmul.f32 %v10403_v25, %v11499_v9 }
 0x28d   :  { %13380 = vst [vmem:[#allocation150_spill] sm:$0xff] %v11618_v16  ;;  %v11627_v21 = vpack.c.bf16 %v4668_v20, %v4667_v11  ;;  %v4670_v54 = vsub.f32 %v11608_v62, %v4662_v58  ;;  %v4839_v37 = vmul.f32 %v11499_v9, %v10423_v47  ;;  %v4840_v8 = vmul.f32 %v10411_v4, %v11499_v9 }
 0x28e   :  { %v11630_v22 = vpack.c.bf16 %v4573_v51, %v4572_v49  ;;  %v11642_v61 = vstv %s7103_s16  ;;  %v4755_v58 = vsub.f32 %v11548_v6, %v4747_v28  ;;  %v4756_v33 = vsub.f32 %v11552_v60, %v4748_v50  ;;  %s7081_s16 = sld [smem:[#allocation2 + $0xe]] }
 0x28f   :  { %13381 = vst [vmem:[#allocation151_spill] sm:$0xff] %v11627_v21  ;;  %v11638_v56 = vpack.c.bf16 %v4670_v54, %v4669_v53  ;;  %v4847_v11 = vsub.f32 %v11548_v6, %v4839_v37  ;;  %v4749_v20 = vmul.f32 %v11499_v9, %v10476_v12  ;;  %v4848_v49 = vsub.f32 %v11552_v60, %v4840_v8 }
 0x290   :  { %13382 = vst [vmem:[#allocation152_spill] sm:$0xff] %v11630_v22  ;;  %v4750_v54 = vmul.f32 %v10463_v14, %v11499_v9  ;;  %v4841_v53 = vmul.f32 %v11499_v9, %v10478_v46  ;;  %v4842_v51 = vmul.f32 %v10465_v57, %v11499_v9  ;;  %v4751_v6 = vmul.f32 %v11499_v9, %v10536_v24 }
 0x291   :  { %13383 = vst [vmem:[#allocation153_spill] sm:$0xff] %v11638_v56  ;;  %v11656_v56 = vpack.c.bf16 %v4756_v33, %v4755_v58  ;;  %v4757_v28 = vsub.f32 %v11567_v3, %v4749_v20  ;;  %v4752_v50 = vmul.f32 %v10526_v59, %v11499_v9  ;;  %v11663_v60 = vpack.c.bf16 %v4848_v49, %v4847_v11 }
 0x292   :  { %v4758_v37 = vsub.f32 %v11569_v19, %v4750_v54  ;;  %v4849_v8 = vsub.f32 %v11567_v3, %v4841_v53  ;;  %v4850_v22 = vsub.f32 %v11569_v19, %v4842_v51  ;;  %v4759_v21 = vsub.f32 %v11577_v55, %v4751_v6 }
 0x293   :  { %13384 = vst [vmem:[#allocation154_spill] sm:$0xff] %v11656_v56  ;;  %13385 = vst [vmem:[#allocation155_spill] sm:$0xff] %v11663_v60  ;;  %v4760_v58 = vsub.f32 %v11584_v23, %v4752_v50  ;;  %v4843_v33 = vmul.f32 %v11499_v9, %v10538_v0  ;;  %v4844_v20 = vmul.f32 %v10528_v44, %v11499_v9  ;;  %v11692_v50 = vld [vmem:[#allocation10 + $0x280] sm:$0xff] }
 0x294   :  { %v11674_v56 = vpack.c.bf16 %v4758_v37, %v4757_v28  ;;  %v11676_v11 = vpack.c.bf16 %v4850_v22, %v4849_v8  ;;  %v4753_v49 = vmul.f32 %v11499_v9, %v10589_v43  ;;  %v4754_v3 = vmul.f32 %v10580_v32, %v11499_v9  ;;  %v11697_v8 = vld [vmem:[#allocation10 + $0x288] sm:$0xff] }
 0x295   :  { %v11682_v19 = vpack.c.bf16 %v4760_v58, %v4759_v21  ;;  %v4851_v54 = vsub.f32 %v11577_v55, %v4843_v33  ;;  %v4852_v53 = vsub.f32 %v11584_v23, %v4844_v20  ;;  %v4845_v51 = vmul.f32 %v11499_v9, %v10591_v36 }
 0x296   :  { %13386 = vst [vmem:[#allocation156_spill] sm:$0xff] %v11674_v56  ;;  %13387 = vst [vmem:[#allocation157_spill] sm:$0xff] %v11676_v11  ;;  %v4761_v28 = vsub.f32 %v11606_v10, %v4753_v49  ;;  %v4762_v22 = vsub.f32 %v11608_v62, %v4754_v3  ;;  %v4846_v6 = vmul.f32 %v10582_v29, %v11499_v9  ;;  %v11713_v49 = vld [vmem:[#allocation10 + $0x290] sm:$0xff]  ;;  %v11715_v3 = vld [vmem:[#allocation10 + $0x298] sm:$0xff] }
 0x297   :  { %13388 = vst [vmem:[#allocation158_spill] sm:$0xff] %v11682_v19  ;;  %v11694_v37 = vpack.c.bf16 %v4852_v53, %v4851_v54  ;;  %v4853_v21 = vsub.f32 %v11606_v10, %v4845_v51  ;;  %v4944_v55 = vmul.f32 %v11642_v61, %v13263_v13  ;;  %v4945_v33 = vmul.f32 %v13264_v63, %v11642_v61 }
 0x298   :  { %v11701_v23 = vpack.c.bf16 %v4762_v22, %v4761_v28  ;;  %v4854_v58 = vsub.f32 %v11608_v62, %v4846_v6  ;;  %v5041_v20 = vmul.f32 %v11642_v61, %v10217_v31  ;;  %v5042_v10 = vmul.f32 %v10209_v27, %v11642_v61 }
 0x299   :  { %13389 = vst [vmem:[#allocation159_spill] sm:$0xff] %v11694_v37  ;;  %v4952_v9 = vsub.f32 %v11692_v50, %v4944_v55  ;;  %v4953_v62 = vsub.f32 %v11697_v8, %v4945_v33  ;;  %v4946_v53 = vmul.f32 %v11642_v61, %v10215_v30  ;;  %v4947_v51 = vmul.f32 %v13262_v38, %v11642_v61 }
 0x29a   :  { %13390 = vst [vmem:[#allocation160_spill] sm:$0xff] %v11701_v23  ;;  %v11717_v54 = vpack.c.bf16 %v4854_v58, %v4853_v21  ;;  %v5049_v28 = vsub.f32 %v11692_v50, %v5041_v20  ;;  %v5050_v22 = vsub.f32 %v11697_v8, %v5042_v10  ;;  %v5043_v6 = vmul.f32 %v11642_v61, %v13268_v40  ;;  %v11730_v21 = vld [vmem:[#allocation10 + $0x2a0] sm:$0xff]  ;;  %v11736_v23 = vld [vmem:[#allocation10 + $0x2a8] sm:$0xff] }
 0x29b   :  { %v5044_v55 = vmul.f32 %v13269_v52, %v11642_v61  ;;  %v11732_v58 = vpack.c.bf16 %v4953_v62, %v4952_v9  ;;  %v4954_v33 = vsub.f32 %v11713_v49, %v4946_v53  ;;  %v4948_v20 = vmul.f32 %v11642_v61, %v13271_v2 }
 0x29c   :  { %13391 = vst [vmem:[#allocation161_spill] sm:$0xff] %v11717_v54  ;;  %v4955_v54 = vsub.f32 %v11715_v3, %v4947_v51  ;;  %v11740_v10 = vpack.c.bf16 %v5050_v22, %v5049_v28  ;;  %v5051_v37 = vsub.f32 %v11713_v49, %v5043_v6  ;;  %v4949_v9 = vmul.f32 %v13272_v42, %v11642_v61  ;;  %v11753_v28 = vld [vmem:[#allocation10 + $0x2b0] sm:$0xff]  ;;  %v11755_v22 = vld [vmem:[#allocation10 + $0x2b8] sm:$0xff] }
 0x29d   :  { %13392 = vst [vmem:[#allocation162_spill] sm:$0xff] %v11732_v58  ;;  %v5052_v19 = vsub.f32 %v11715_v3, %v5044_v55  ;;  %v4956_v53 = vsub.f32 %v11730_v21, %v4948_v20  ;;  %v5045_v51 = vmul.f32 %v11642_v61, %v13273_v45  ;;  %v5046_v58 = vmul.f32 %v13277_v17, %v11642_v61 }
 0x29e   :  { %13393 = vst [vmem:[#allocation163_spill] sm:$0xff] %v11740_v10  ;;  %v11746_v62 = vpack.c.bf16 %v4955_v54, %v4954_v33  ;;  %v4957_v55 = vsub.f32 %v11736_v23, %v4949_v9  ;;  %v4950_v54 = vmul.f32 %v11642_v61, %v13279_v7  ;;  %v4951_v33 = vmul.f32 %v13280_v18, %v11642_v61 }
 0x29f   :  { %v11757_v6 = vpack.c.bf16 %v5052_v19, %v5051_v37  ;;  %v5053_v20 = vsub.f32 %v11730_v21, %v5045_v51  ;;  %v5047_v10 = vmul.f32 %v11642_v61, %v13282_v41  ;;  %v5048_v11 = vmul.f32 %v10338_v1, %v11642_v61 }
 0x2a0   :  { %13394 = vst [vmem:[#allocation164_spill] sm:$0xff] %v11746_v62  ;;  %v5054_v62 = vsub.f32 %v11736_v23, %v5046_v58  ;;  %v11771_v19 = vstv %s11706_s19  ;;  %v11773_v37 = vpack.c.bf16 %v4957_v55, %v4956_v53  ;;  %v4958_v9 = vsub.f32 %v11753_v28, %v4950_v54  ;;  %v13399_v53 = vld [vmem:[#allocation19_spill] sm:$0xff] }
 0x2a1   :  { %13395 = vst [vmem:[#allocation165_spill] sm:$0xff] %v11757_v6  ;;  %v4959_v6 = vsub.f32 %v11755_v22, %v4951_v33  ;;  %v5055_v51 = vsub.f32 %v11753_v28, %v5047_v10  ;;  %v5056_v58 = vsub.f32 %v11755_v22, %v5048_v11  ;;  %v5133_v16 = vmul.f32 %v11642_v61, %v10413_v34  ;;  %v13401_v11 = vld [vmem:[#allocation24_spill] sm:$0xff] }
 0x2a2   :  { %13396 = vst [vmem:[#allocation166_spill] sm:$0xff] %v11773_v37  ;;  %v11777_v56 = vpack.c.bf16 %v5054_v62, %v5053_v20  ;;  %v5134_v5 = vmul.f32 %v10403_v25, %v11642_v61  ;;  %v1100_v55 = vmul.f32 %v11771_v19, %v13399_v53  ;;  %v5225_v62 = vmul.f32 %v11642_v61, %v10423_v47 }
 0x2a3   :  { %v11781_v60 = vpack.c.bf16 %v4959_v6, %v4958_v9  ;;  %v11789_v54 = vpack.c.bf16 %v5056_v58, %v5055_v51  ;;  %v5226_v10 = vmul.f32 %v10411_v4, %v11642_v61  ;;  %v1197_v6 = vmul.f32 %v11771_v19, %v13401_v11 }
 0x2a4   :  { %13397 = vst [vmem:[#allocation167_spill] sm:$0xff] %v11777_v56  ;;  %v5141_v33 = vsub.f32 %v11692_v50, %v5133_v16  ;;  %v5142_v20 = vsub.f32 %v11697_v8, %v5134_v5  ;;  %v5135_v9 = vmul.f32 %v11642_v61, %v10476_v12  ;;  %v5136_v58 = vmul.f32 %v10463_v14, %v11642_v61 }
 0x2a5   :  { %13398 = vst [vmem:[#allocation168_spill] sm:$0xff] %v11781_v60  ;;  %13400 = vst [vmem:[#allocation169_spill] sm:$0xff] %v11789_v54  ;;  %v5233_v60 = vsub.f32 %v11692_v50, %v5225_v62  ;;  %v5234_v51 = vsub.f32 %v11697_v8, %v5226_v10  ;;  %v5227_v54 = vmul.f32 %v11642_v61, %v10478_v46 }
 0x2a6   :  { %v11809_v56 = vpack.c.bf16 %v5142_v20, %v5141_v33  ;;  %v5143_v16 = vsub.f32 %v11713_v49, %v5135_v9  ;;  %v5228_v5 = vmul.f32 %v10465_v57, %v11642_v61  ;;  %v5137_v50 = vmul.f32 %v11642_v61, %v10536_v24 }
 0x2a7   :  { %v11816_v62 = vpack.c.bf16 %v5234_v51, %v5233_v60  ;;  %v5144_v8 = vsub.f32 %v11715_v3, %v5136_v58  ;;  %v5235_v10 = vsub.f32 %v11713_v49, %v5227_v54  ;;  %v5138_v37 = vmul.f32 %v10526_v59, %v11642_v61 }
 0x2a8   :  { %13402 = vst [vmem:[#allocation170_spill] sm:$0xff] %v11809_v56  ;;  %v5236_v33 = vsub.f32 %v11715_v3, %v5228_v5  ;;  %v5145_v20 = vsub.f32 %v11730_v21, %v5137_v50  ;;  %v5229_v9 = vmul.f32 %v11642_v61, %v10538_v0  ;;  %v5230_v56 = vmul.f32 %v10528_v44, %v11642_v61 }
 0x2a9   :  { %13403 = vst [vmem:[#allocation171_spill] sm:$0xff] %v11816_v62  ;;  %v11828_v48 = vpack.c.bf16 %v5144_v8, %v5143_v16  ;;  %v5146_v60 = vsub.f32 %v11736_v23, %v5138_v37  ;;  %v5139_v49 = vmul.f32 %v11642_v61, %v10589_v43  ;;  %v5140_v54 = vmul.f32 %v10580_v32, %v11642_v61  ;;  %v11844_v37 = vld [vmem:[%s13167_s5] ss:$0 sm:$0xff] }
 0x2aa   :  { %v11835_v3 = vpack.c.bf16 %v5236_v33, %v5235_v10  ;;  %v5237_v51 = vsub.f32 %v11730_v21, %v5229_v9  ;;  %v5238_v58 = vsub.f32 %v11736_v23, %v5230_v56  ;;  %v5231_v5 = vmul.f32 %v11642_v61, %v10591_v36  ;;  %v11858_v9 = vld [vmem:[#allocation10 + $0x2c0] sm:$0xff] }
 0x2ab   :  { %13404 = vst [vmem:[#allocation172_spill] sm:$0xff] %v11828_v48  ;;  %v11846_v16 = vpack.c.bf16 %v5146_v60, %v5145_v20  ;;  %v5147_v50 = vsub.f32 %v11753_v28, %v5139_v49  ;;  %v5148_v8 = vsub.f32 %v11755_v22, %v5140_v54  ;;  %v5232_v10 = vmul.f32 %v10582_v29, %v11642_v61  ;;  %v11871_v54 = vld [vmem:[#allocation10 + $0x2d0] sm:$0xff]  ;;  %v11883_v48 = vld [vmem:[#allocation10 + $0x2d8] sm:$0xff] }
 0x2ac   :  { %13405 = vst [vmem:[#allocation173_spill] sm:$0xff] %v11835_v3  ;;  %v11852_v21 = vpack.c.bf16 %v5238_v58, %v5237_v51  ;;  %v5239_v56 = vsub.f32 %v11753_v28, %v5231_v5  ;;  %v11860_v3 = vld [vmem:[#allocation10 + $0x2c8] sm:$0xff]  ;;  %v11863_v20 = vstv %s11807_s1  ;;  %v1105_v60 = vadd.f32 %v11844_v37, %v1100_v55 }
 0x2ad   :  { %13406 = vst [vmem:[#allocation174_spill] sm:$0xff] %v11846_v16  ;;  %v11855_v23 = vpack.c.bf16 %v5148_v8, %v5147_v50  ;;  %v5240_v33 = vsub.f32 %v11755_v22, %v5232_v10  ;;  %v1198_v49 = vadd.f32 %v11844_v37, %v1197_v6  ;;  %v5330_v61 = vmul.f32 %v11863_v20, %v13263_v13 }
 0x2ae   :  { %13407 = vst [vmem:[#allocation175_spill] sm:$0xff] %v11852_v21  ;;  %v5331_v28 = vmul.f32 %v13264_v63, %v11863_v20  ;;  %v5427_v5 = vmul.f32 %v11863_v20, %v10217_v31  ;;  %v5428_v55 = vmul.f32 %v10209_v27, %v11863_v20  ;;  %v5332_v6 = vmul.f32 %v11863_v20, %v10215_v30 }
 0x2af   :  { %13408 = vst [vmem:[#allocation176_spill] sm:$0xff] %v11855_v23  ;;  %v11873_v58 = vpack.c.bf16 %v5240_v33, %v5239_v56  ;;  %v5338_v21 = vsub.f32 %v11858_v9, %v5330_v61  ;;  %v11894_v61 = vld [vmem:[#allocation10 + $0x2e0] sm:$0xff] }
 0x2b0   :  { %v5339_v16 = vsub.f32 %v11860_v3, %v5331_v28  ;;  %v5435_v56 = vsub.f32 %v11858_v9, %v5427_v5  ;;  %v5436_v33 = vsub.f32 %v11860_v3, %v5428_v55  ;;  %v5340_v62 = vsub.f32 %v11871_v54, %v5332_v6  ;;  %v11901_v5 = vld [vmem:[#allocation10 + $0x2e8] sm:$0xff] }
 0x2b1   :  { %13409 = vst [vmem:[#allocation177_spill] sm:$0xff] %v11873_v58  ;;  %v5333_v58 = vmul.f32 %v13262_v38, %v11863_v20  ;;  %v5334_v55 = vmul.f32 %v11863_v20, %v13271_v2  ;;  %v13412_v6 = vld [vmem:[#allocation48_spill] sm:$0xff] }
 0x2b2   :  { %v11896_v28 = vpack.c.bf16 %v5436_v33, %v5435_v56  ;;  %v5432_v33 = vmul.f32 %v13277_v17, %v11863_v20 }
 0x2b4   :  { %13411 = vst [vmem:[#allocation179_spill] sm:$0xff] %v11896_v28  ;;  %v5614_v28 = vmul.f32 %v10465_v57, %v11863_v20 }
 0x2b5   :  { %v1176_v51 = vpop.f32.mrb[16].mxu1  ;;  %v1268_v22 = vpop.f32.mrb[24].mxu0 }
 0x2b6   :  { %v1177_v50 = vadd.f32 %v1176_v51, %v1105_v60  ;;  %v1269_v8 = vadd.f32 %v1268_v22, %v1198_v49  ;;  %v7856_v10 = vpop.f32.mrb[17].mxu1  ;;  %v7875_v23 = vpop.f32.mrb[25].mxu0  ;;  %v11890_v49 = vpack.c.bf16 %v5339_v16, %v5338_v21  ;;  %v5341_v51 = vsub.f32 %v11883_v48, %v5333_v58 }
 0x2b7   :  { %v5429_v23 = vmul.f32 %v11863_v20, %v13268_v40  ;;  %v5430_v22 = vmul.f32 %v13269_v52, %v11863_v20  ;;  %v5335_v21 = vmul.f32 %v13272_v42, %v11863_v20  ;;  %v5431_v58 = vmul.f32 %v11863_v20, %v13273_v45 }
 0x2b8   :  { %v1180_v35 = vmax.f32 %v1177_v50, 0.0  ;;  %v1272_v60 = vmax.f32 %v1269_v8, 0.0  ;;  %13410 = vst [vmem:[#allocation178_spill] sm:$0xff] %v11890_v49  ;;  %v13413_v50 = vld [vmem:[#allocation50_spill] sm:$0xff]  ;;  %v11914_v8 = vpack.c.bf16 %v5341_v51, %v5340_v62  ;;  %v5336_v51 = vmul.f32 %v11863_v20, %v13279_v7 }
 0x2b9   :  { %v5437_v16 = vsub.f32 %v11871_v54, %v5429_v23  ;;  %v5438_v10 = vsub.f32 %v11883_v48, %v5430_v22  ;;  %v5343_v56 = vsub.f32 %v11901_v5, %v5335_v21  ;;  %v11924_v23 = vld [vmem:[#allocation10 + $0x2f0] sm:$0xff]  ;;  %v5337_v22 = vmul.f32 %v13280_v18, %v11863_v20 }
 0x2ba   :  { %7931 = vmatmul.mubr.msk.f32.vlgmr.msra.gmra.mrb[20].mxu1 %vm1106_vm2, %v1180_v35  ;;  %7950 = vmatmul.mubr.msk.f32.vlgmr.msra.gmra.mrb[28].mxu0 %vm1106_vm2, %v1272_v60  ;;  %13414 = vst [vmem:[#allocation48_spill] sm:$0xff] %v11914_v8  ;;  %v5342_v35 = vsub.f32 %v11894_v61, %v5334_v55  ;;  %v5439_v60 = vsub.f32 %v11894_v61, %v5431_v58  ;;  %v13417_v8 = vld [vmem:[#allocation52_spill] sm:$0xff] }
 0x2bb   :  { %9102 = vmatpush3.bf16.msra.mxu1 %v13412_v6  ;;  %9114 = vmatpush3.bf16.msra.mxu0 %v13413_v50  ;;  %v11926_v6 = vld [vmem:[#allocation10 + $0x2f8] sm:$0xff]  ;;  %v11932_v62 = vpack.c.bf16 %v5438_v10, %v5437_v16  ;;  %v5440_v21 = vsub.f32 %v11901_v5, %v5432_v33  ;;  %v5433_v58 = vmul.f32 %v11863_v20, %v13282_v41  ;;  %v13418_v16 = vld [vmem:[#allocation53_spill] sm:$0xff] }
 0x2bc   :  { %9103 = vmatprep.subr.bf16.mxu1 %v13238_v15  ;;  %9115 = vmatprep.subr.bf16.mxu0 %v13238_v15  ;;  %v11938_v55 = vpack.c.bf16 %v5343_v56, %v5342_v35  ;;  %v5434_v50 = vmul.f32 %v10338_v1, %v11863_v20  ;;  %v5344_v10 = vsub.f32 %v11924_v23, %v5336_v51 }
 0x2bd   :  { %7968 = vmatprep.mubr.msk.f32.mxu1 %vm9939_vm0, %v13239_v26  ;;  %7987 = vmatprep.mubr.msk.f32.mxu0 %vm9939_vm0, %v13239_v26  ;;  %13415 = vst [vmem:[#allocation50_spill] sm:$0xff] %v11932_v62  ;;  %v5345_v62 = vsub.f32 %v11926_v6, %v5337_v22  ;;  %v11951_v35 = vpack.c.bf16 %v5440_v21, %v5439_v60 }
 0x2be   :  { %13416 = vst [vmem:[#allocation180_spill] sm:$0xff] %v11938_v55  ;;  %v5441_v56 = vsub.f32 %v11924_v23, %v5433_v58  ;;  %v5442_v33 = vsub.f32 %v11926_v6, %v5434_v50  ;;  %v13420_v55 = vld [vmem:[#allocation42_spill] sm:$0xff]  ;;  %v5519_v51 = vmul.f32 %v11863_v20, %v10413_v34  ;;  %v5520_v60 = vmul.f32 %v10403_v25, %v11863_v20  ;;  %v13423_v50 = vld [vmem:[#allocation55_spill] sm:$0xff] }
 0x2bf   :  { %9105 = vmatpush3.bf16.msra.mxu1 %v13417_v8  ;;  %9117 = vmatpush3.bf16.msra.mxu0 %v13418_v16  ;;  %13419 = vst [vmem:[#allocation52_spill] sm:$0xff] %v11951_v35  ;;  %v1289_v8 = vmul.f32 %v11771_v19, %v13420_v55  ;;  %v11959_v16 = vpack.c.bf16 %v5345_v62, %v5344_v10  ;;  %v13424_v35 = vld [vmem:[#allocation56_spill] sm:$0xff]  ;;  %v13425_v62 = vld [vmem:[#allocation43_spill] sm:$0xff] }
 0x2c0   :  { %9106 = vmatprep.subr.bf16.mxu1 %v13238_v15  ;;  %9118 = vmatprep.subr.bf16.mxu0 %v13238_v15  ;;  %v11963_v22 = vpack.c.bf16 %v5442_v33, %v5441_v56  ;;  %v5611_v21 = vmul.f32 %v11863_v20, %v10423_v47  ;;  %v5612_v58 = vmul.f32 %v10411_v4, %v11863_v20 }
 0x2c1   :  { %13421 = vst [vmem:[#allocation53_spill] sm:$0xff] %v11959_v16  ;;  %v1381_v10 = vmul.f32 %v11771_v19, %v13425_v62  ;;  %v5527_v16 = vsub.f32 %v11858_v9, %v5519_v51  ;;  %v5521_v56 = vmul.f32 %v11863_v20, %v10476_v12  ;;  %v5528_v33 = vsub.f32 %v11860_v3, %v5520_v60  ;;  %v13428_v60 = vld [vmem:[#allocation60_spill] sm:$0xff] }
 0x2c2   :  { %13422 = vst [vmem:[#allocation181_spill] sm:$0xff] %v11963_v22  ;;  %v5619_v22 = vsub.f32 %v11858_v9, %v5611_v21  ;;  %v5613_v51 = vmul.f32 %v11863_v20, %v10478_v46  ;;  %v5523_v9 = vmul.f32 %v11863_v20, %v10536_v24  ;;  %v13429_v21 = vld [vmem:[#allocation61_spill] sm:$0xff]  ;;  %v5622_v62 = vsub.f32 %v11883_v48, %v5614_v28 }
 0x2c3   :  { %9108 = vmatpush3.bf16.msra.mxu1 %v13423_v50  ;;  %9120 = vmatpush3.bf16.msra.mxu0 %v13424_v35  ;;  %v5620_v50 = vsub.f32 %v11860_v3, %v5612_v58  ;;  %v5522_v35 = vmul.f32 %v10463_v14, %v11863_v20  ;;  %v5529_v19 = vsub.f32 %v11871_v54, %v5521_v56 }
 0x2c4   :  { %9109 = vmatprep.subr.bf16.mxu1 %v13238_v15  ;;  %9121 = vmatprep.subr.bf16.mxu0 %v13238_v15  ;;  %v11990_v49 = vpack.c.bf16 %v5528_v33, %v5527_v16  ;;  %v5524_v3 = vmul.f32 %v10526_v59, %v11863_v20  ;;  %v5621_v56 = vsub.f32 %v11871_v54, %v5613_v51 }
 0x2c5   :  { %v11992_v39 = vpack.c.bf16 %v5620_v50, %v5619_v22  ;;  %v5530_v58 = vsub.f32 %v11883_v48, %v5522_v35  ;;  %v5531_v16 = vsub.f32 %v11894_v61, %v5523_v9  ;;  %v5615_v33 = vmul.f32 %v11863_v20, %v10538_v0 }
 0x2c6   :  { %13426 = vst [vmem:[#allocation55_spill] sm:$0xff] %v11990_v49  ;;  %v5532_v22 = vsub.f32 %v11901_v5, %v5524_v3  ;;  %v12010_v50 = vstv %s11955_s30  ;;  %v12014_v35 = vpack.c.bf16 %v5622_v62, %v5621_v56  ;;  %v5616_v48 = vmul.f32 %v10528_v44, %v11863_v20 }
 0x2c7   :  { %13427 = vst [vmem:[#allocation56_spill] sm:$0xff] %v11992_v39  ;;  %9111 = vmatpush3.bf16.msra.mxu1 %v13428_v60  ;;  %9123 = vmatpush3.bf16.msra.mxu0 %v13429_v21  ;;  %v12012_v60 = vpack.c.bf16 %v5530_v58, %v5529_v19  ;;  %v5525_v54 = vmul.f32 %v11863_v20, %v10589_v43  ;;  %v12031_v58 = vld [vmem:[#allocation10 + $0x300] sm:$0xff]  ;;  %v12098_v39 = vld [vmem:[#allocation10 + $0x338] sm:$0xff] }
 0x2c8   :  { %9124 = vmatprep.subr.bf16.mxu1 %v13238_v15  ;;  %9136 = vmatprep.subr.bf16.mxu0 %v13238_v15  ;;  %13431 = vst [vmem:[#allocation61_spill] sm:$0xff] %v12014_v35  ;;  %v12020_v28 = vpack.c.bf16 %v5532_v22, %v5531_v16  ;;  %v5623_v51 = vsub.f32 %v11894_v61, %v5615_v33  ;;  %v12035_v61 = vld [vmem:[#allocation10 + $0x308] sm:$0xff] }
 0x2c9   :  { %13430 = vst [vmem:[#allocation60_spill] sm:$0xff] %v12012_v60  ;;  %v5526_v9 = vmul.f32 %v10580_v32, %v11863_v20  ;;  %v5617_v3 = vmul.f32 %v11863_v20, %v10591_v36  ;;  %v5624_v19 = vsub.f32 %v11901_v5, %v5616_v48  ;;  %v5533_v62 = vsub.f32 %v11924_v23, %v5525_v54 }
 0x2ca   :  { %13432 = vst [vmem:[#allocation182_spill] sm:$0xff] %v12020_v28  ;;  %v5618_v21 = vmul.f32 %v10582_v29, %v11863_v20  ;;  %v5716_v22 = vmul.f32 %v12010_v50, %v13263_v13  ;;  %v1290_v33 = vadd.f32 %v11844_v37, %v1289_v8  ;;  %v5717_v20 = vmul.f32 %v13264_v63, %v12010_v50 }
 0x2cb   :  { %v5534_v56 = vsub.f32 %v11926_v6, %v5526_v9  ;;  %v5625_v16 = vsub.f32 %v11924_v23, %v5617_v3  ;;  %v12040_v28 = vpack.c.bf16 %v5624_v19, %v5623_v51  ;;  %v1382_v48 = vadd.f32 %v11844_v37, %v1381_v10  ;;  %v12051_v3 = vld [vmem:[#allocation10 + $0x310] sm:$0xff]  ;;  %v12058_v51 = vld [vmem:[#allocation10 + $0x318] sm:$0xff] }
 0x2cc   :  { %v5626_v5 = vsub.f32 %v11926_v6, %v5618_v21  ;;  %v5724_v23 = vsub.f32 %v12031_v58, %v5716_v22  ;;  %v5813_v9 = vmul.f32 %v12010_v50, %v10217_v31  ;;  %v5725_v8 = vsub.f32 %v12035_v61, %v5717_v20  ;;  %v12075_v20 = vld [vmem:[#allocation10 + $0x328] sm:$0xff] }
 0x2cd   :  { %13433 = vst [vmem:[#allocation183_spill] sm:$0xff] %v12040_v28  ;;  %v12046_v54 = vpack.c.bf16 %v5534_v56, %v5533_v62  ;;  %v5814_v6 = vmul.f32 %v10209_v27, %v12010_v50  ;;  %v5718_v37 = vmul.f32 %v12010_v50, %v10215_v30  ;;  %v5719_v19 = vmul.f32 %v13262_v38, %v12010_v50  ;;  %v12069_v56 = vld [vmem:[#allocation10 + $0x320] sm:$0xff] }
 0x2ce   :  { %v12053_v35 = vpack.c.bf16 %v5626_v5, %v5625_v16  ;;  %v5821_v10 = vsub.f32 %v12031_v58, %v5813_v9  ;;  %v5815_v62 = vmul.f32 %v12010_v50, %v13268_v40  ;;  %v5816_v21 = vmul.f32 %v13269_v52, %v12010_v50 }
 0x2cf   :  { %13434 = vst [vmem:[#allocation184_spill] sm:$0xff] %v12046_v54  ;;  %v12071_v16 = vpack.c.bf16 %v5725_v8, %v5724_v23  ;;  %v5822_v22 = vsub.f32 %v12035_v61, %v5814_v6  ;;  %v5726_v5 = vsub.f32 %v12051_v3, %v5718_v37  ;;  %v5720_v9 = vmul.f32 %v12010_v50, %v13271_v2 }
 0x2d0   :  { %13435 = vst [vmem:[#allocation185_spill] sm:$0xff] %v12053_v35  ;;  %v5727_v35 = vsub.f32 %v12058_v51, %v5719_v19  ;;  %v5823_v54 = vsub.f32 %v12051_v3, %v5815_v62  ;;  %v5824_v28 = vsub.f32 %v12058_v51, %v5816_v21  ;;  %v5721_v60 = vmul.f32 %v13272_v42, %v12010_v50 }
 0x2d1   :  { %13436 = vst [vmem:[#allocation186_spill] sm:$0xff] %v12071_v16  ;;  %v12084_v23 = vpack.c.bf16 %v5822_v22, %v5821_v10  ;;  %v5728_v8 = vsub.f32 %v12069_v56, %v5720_v9  ;;  %v5817_v6 = vmul.f32 %v12010_v50, %v13273_v45  ;;  %v5818_v37 = vmul.f32 %v13277_v17, %v12010_v50  ;;  %v12091_v16 = vld [vmem:[#allocation10 + $0x330] sm:$0xff] }
 0x2d2   :  { %v12093_v19 = vpack.c.bf16 %v5727_v35, %v5726_v5  ;;  %v12095_v62 = vpack.c.bf16 %v5824_v28, %v5823_v54  ;;  %v5729_v21 = vsub.f32 %v12075_v20, %v5721_v60  ;;  %v5722_v10 = vmul.f32 %v12010_v50, %v13279_v7 }
 0x2d3   :  { %13437 = vst [vmem:[#allocation187_spill] sm:$0xff] %v12084_v23  ;;  %v5825_v23 = vsub.f32 %v12069_v56, %v5817_v6  ;;  %v5826_v49 = vsub.f32 %v12075_v20, %v5818_v37  ;;  %v5723_v55 = vmul.f32 %v13280_v18, %v12010_v50  ;;  %v5819_v35 = vmul.f32 %v12010_v50, %v13282_v41 }
 0x2d4   :  { %13438 = vst [vmem:[#allocation188_spill] sm:$0xff] %v12093_v19  ;;  %13439 = vst [vmem:[#allocation189_spill] sm:$0xff] %v12095_v62  ;;  %v12108_v62 = vpack.c.bf16 %v5729_v21, %v5728_v8  ;;  %v5730_v19 = vsub.f32 %v12091_v16, %v5722_v10  ;;  %v5820_v37 = vmul.f32 %v10338_v1, %v12010_v50  ;;  %v13441_v8 = vld [vmem:[#allocation36_spill] sm:$0xff] }
 0x2d5   :  { %v12111_v11 = vpack.c.bf16 %v5826_v49, %v5825_v23  ;;  %v5731_v6 = vsub.f32 %v12098_v39, %v5723_v55  ;;  %v5827_v53 = vsub.f32 %v12091_v16, %v5819_v35  ;;  %v5906_v49 = vmul.f32 %v10403_v25, %v12010_v50  ;;  %v13440_v23 = vld [vmem:[#allocation25_spill] sm:$0xff] }
 0x2d6   :  { %v1360_v22 = vpop.f32.mrb[18].mxu1  ;;  %v1452_v9 = vpop.f32.mrb[26].mxu0  ;;  %v5997_v55 = vmul.f32 %v12010_v50, %v10423_v47  ;;  %v5999_v35 = vmul.f32 %v12010_v50, %v10478_v46 }
 0x2d7   :  { %v1361_v28 = vadd.f32 %v1360_v22, %v1290_v33  ;;  %v1453_v54 = vadd.f32 %v1452_v9, %v1382_v48  ;;  %v7894_v60 = vpop.f32.mrb[19].mxu1  ;;  %v7913_v5 = vpop.f32.mrb[27].mxu0  ;;  %v12117_v41 = vpack.c.bf16 %v5731_v6, %v5730_v19  ;;  %v5828_v33 = vsub.f32 %v12098_v39, %v5820_v37  ;;  %v13444_v6 = vld [vmem:[#allocation47_spill] sm:$0xff] }
 0x2d8   :  { %v5905_v48 = vmul.f32 %v12010_v50, %v10413_v34  ;;  %v5914_v10 = vsub.f32 %v12035_v61, %v5906_v49  ;;  %v5907_v22 = vmul.f32 %v12010_v50, %v10476_v12  ;;  %v5908_v9 = vmul.f32 %v10463_v14, %v12010_v50  ;;  %v13443_v5 = vld [vmem:[#allocation45_spill] sm:$0xff] }
 0x2d9   :  { %v1364_v18 = vmax.f32 %v1361_v28, 0.0  ;;  %v1456_v7 = vmax.f32 %v1453_v54, 0.0  ;;  %v12130_v19 = vpack.c.bf16 %v5828_v33, %v5827_v53  ;;  %v6000_v54 = vmul.f32 %v10465_v57, %v12010_v50 }
 0x2da   :  { %v5913_v21 = vsub.f32 %v12031_v58, %v5905_v48  ;;  %v5909_v60 = vmul.f32 %v12010_v50, %v10536_v24  ;;  %v5916_v37 = vsub.f32 %v12058_v51, %v5908_v9  ;;  %v6007_v33 = vsub.f32 %v12051_v3, %v5999_v35  ;;  %v13449_v9 = vld [vmem:[#allocation51_spill] sm:$0xff] }
 0x2db   :  { %7969 = vmatmul.mubr.msk.f32.vlgmr.msra.gmra.mrb[22].mxu1 %vm1106_vm2, %v1364_v18  ;;  %7988 = vmatmul.mubr.msk.f32.vlgmr.msra.gmra.mrb[30].mxu0 %vm1106_vm2, %v1456_v7  ;;  %v5998_v18 = vmul.f32 %v10411_v4, %v12010_v50  ;;  %v6005_v7 = vsub.f32 %v12031_v58, %v5997_v55  ;;  %v5915_v58 = vsub.f32 %v12051_v3, %v5907_v22  ;;  %v13448_v22 = vld [vmem:[#allocation49_spill] sm:$0xff] }
 0x2dc   :  { %9126 = vmatpush3.bf16.msra.mxu1 %v13440_v23  ;;  %9138 = vmatpush3.bf16.msra.mxu0 %v13441_v8  ;;  %v12147_v53 = vpack.c.bf16 %v5914_v10, %v5913_v21  ;;  %v5910_v48 = vmul.f32 %v10526_v59, %v12010_v50  ;;  %v6008_v49 = vsub.f32 %v12058_v51, %v6000_v54  ;;  %v12193_v54 = vstv %s12134_s21  ;;  %s7095_s21 = sld [smem:[#allocation2 + $0x12]] }
 0x2dd   :  { %9127 = vmatprep.subr.bf16.mxu1 %v13238_v15  ;;  %9139 = vmatprep.subr.bf16.mxu0 %v13238_v15  ;;  %v6006_v28 = vsub.f32 %v12035_v61, %v5998_v18  ;;  %v5917_v55 = vsub.f32 %v12069_v56, %v5909_v60  ;;  %v12171_v23 = vpack.c.bf16 %v5916_v37, %v5915_v58 }
 0x2de   :  { %8006 = vmatprep.mubr.msk.f32.mxu1 %vm9939_vm0, %v13239_v26  ;;  %8025 = vmatprep.mubr.msk.f32.mxu0 %vm9939_vm0, %v13239_v26  ;;  %13442 = vst [vmem:[#allocation25_spill] sm:$0xff] %v12147_v53  ;;  %v5918_v8 = vsub.f32 %v12075_v20, %v5910_v48  ;;  %v6001_v3 = vmul.f32 %v12010_v50, %v10538_v0 }
 0x2df   :  { %v12167_v61 = vpack.c.bf16 %v6006_v28, %v6005_v7  ;;  %13446 = vst [vmem:[#allocation45_spill] sm:$0xff] %v12171_v23  ;;  %v6002_v21 = vmul.f32 %v10528_v44, %v12010_v50  ;;  %v12178_v10 = vpack.c.bf16 %v6008_v49, %v6007_v33  ;;  %v5911_v18 = vmul.f32 %v12010_v50, %v10589_v43 }
 0x2e0   :  { %9129 = vmatpush3.bf16.msra.mxu1 %v13443_v5  ;;  %9141 = vmatpush3.bf16.msra.mxu0 %v13444_v6  ;;  %v5912_v51 = vmul.f32 %v10580_v32, %v12010_v50  ;;  %v6003_v7 = vmul.f32 %v12010_v50, %v10591_v36  ;;  %v12188_v35 = vpack.c.bf16 %v5918_v8, %v5917_v55 }
 0x2e1   :  { %9130 = vmatprep.subr.bf16.mxu1 %v13238_v15  ;;  %9142 = vmatprep.subr.bf16.mxu0 %v13238_v15  ;;  %13445 = vst [vmem:[#allocation36_spill] sm:$0xff] %v12167_v61  ;;  %13447 = vst [vmem:[#allocation47_spill] sm:$0xff] %v12178_v10  ;;  %v6009_v28 = vsub.f32 %v12069_v56, %v6001_v3  ;;  %v6010_v58 = vsub.f32 %v12075_v20, %v6002_v21  ;;  %v12204_v56 = vld [vmem:[#allocation10 + $0x340] sm:$0xff]  ;;  %v12206_v20 = vld [vmem:[#allocation10 + $0x348] sm:$0xff] }
 0x2e2   :  { %13450 = vst [vmem:[#allocation49_spill] sm:$0xff] %v12188_v35  ;;  %v5919_v60 = vsub.f32 %v12091_v16, %v5911_v18  ;;  %v5920_v5 = vsub.f32 %v12098_v39, %v5912_v51  ;;  %v6004_v6 = vmul.f32 %v10582_v29, %v12010_v50  ;;  %v6011_v33 = vsub.f32 %v12091_v16, %v6003_v7  ;;  %v13453_v3 = vld [vmem:[#allocation54_spill] sm:$0xff]  ;;  %v13454_v50 = vld [vmem:[#allocation57_spill] sm:$0xff] }
 0x2e3   :  { %v12201_v37 = vpack.c.bf16 %v6010_v58, %v6009_v28  ;;  %v6102_v55 = vmul.f32 %v12193_v54, %v13263_v13  ;;  %v6103_v8 = vmul.f32 %v13264_v63, %v12193_v54  ;;  %v6199_v16 = vmul.f32 %v12193_v54, %v10217_v31  ;;  %v12225_v51 = vld [vmem:[#allocation10 + $0x350] sm:$0xff]  ;;  %v12227_v7 = vld [vmem:[#allocation10 + $0x358] sm:$0xff] }
 0x2e4   :  { %9132 = vmatpush3.bf16.msra.mxu1 %v13448_v22  ;;  %9144 = vmatpush3.bf16.msra.mxu0 %v13449_v9  ;;  %v12208_v48 = vpack.c.bf16 %v5920_v5, %v5919_v60  ;;  %v6012_v49 = vsub.f32 %v12098_v39, %v6004_v6  ;;  %v6200_v22 = vmul.f32 %v10209_v27, %v12193_v54  ;;  %v12236_v60 = vld [vmem:[#allocation10 + $0x360] sm:$0xff]  ;;  %v6097_v35 = vld [vmem:[#allocation10 + $0x378] sm:$0xff] }
 0x2e5   :  { %9133 = vmatprep.subr.bf16.mxu1 %v13238_v15  ;;  %9145 = vmatprep.subr.bf16.mxu0 %v13238_v15  ;;  %13451 = vst [vmem:[#allocation51_spill] sm:$0xff] %v12201_v37  ;;  %v6110_v39 = vsub.f32 %v12204_v56, %v6102_v55  ;;  %v6111_v18 = vsub.f32 %v12206_v20, %v6103_v8 }
 0x2e6   :  { %13452 = vst [vmem:[#allocation190_spill] sm:$0xff] %v12208_v48  ;;  %v12221_v21 = vpack.c.bf16 %v6012_v49, %v6011_v33  ;;  %v6207_v9 = vsub.f32 %v12204_v56, %v6199_v16  ;;  %v6104_v28 = vmul.f32 %v12193_v54, %v10215_v30  ;;  %v6105_v58 = vmul.f32 %v13262_v38, %v12193_v54  ;;  %v12244_v49 = vld [vmem:[#allocation10 + $0x368] sm:$0xff] }
 0x2e7   :  { %v12238_v5 = vpack.c.bf16 %v6111_v18, %v6110_v39  ;;  %v6201_v6 = vmul.f32 %v12193_v54, %v13268_v40  ;;  %v6202_v33 = vmul.f32 %v13269_v52, %v12193_v54  ;;  %v6106_v55 = vmul.f32 %v12193_v54, %v13271_v2 }
 0x2e8   :  { %9135 = vmatpush3.bf16.msra.mxu1 %v13453_v3  ;;  %9147 = vmatpush3.bf16.msra.mxu0 %v13454_v50  ;;  %13455 = vst [vmem:[#allocation54_spill] sm:$0xff] %v12221_v21  ;;  %v6208_v8 = vsub.f32 %v12206_v20, %v6200_v22  ;;  %v6112_v3 = vsub.f32 %v12225_v51, %v6104_v28 }
 0x2e9   :  { %9148 = vmatprep.subr.bf16.mxu1 %v13238_v15  ;;  %9160 = vmatprep.subr.bf16.mxu0 %v13238_v15  ;;  %13456 = vst [vmem:[#allocation57_spill] sm:$0xff] %v12238_v5  ;;  %v6113_v50 = vsub.f32 %v12227_v7, %v6105_v58  ;;  %v6107_v16 = vmul.f32 %v13272_v42, %v12193_v54  ;;  %v12267_v58 = vld [vmem:[#allocation10 + $0x370] sm:$0xff] }
 0x2ea   :  { %v6209_v39 = vsub.f32 %v12225_v51, %v6201_v6  ;;  %v6210_v18 = vsub.f32 %v12227_v7, %v6202_v33  ;;  %v6114_v5 = vsub.f32 %v12236_v60, %v6106_v55  ;;  %v6203_v21 = vmul.f32 %v12193_v54, %v13273_v45  ;;  %v13460_v55 = vld [vmem:[#allocation39_spill] sm:$0xff] }
 0x2eb   :  { %v12260_v48 = vpack.c.bf16 %v6208_v8, %v6207_v9  ;;  %v12262_v37 = vpack.c.bf16 %v6113_v50, %v6112_v3  ;;  %v6115_v22 = vsub.f32 %v12244_v49, %v6107_v16  ;;  %v6204_v28 = vmul.f32 %v13277_v17, %v12193_v54  ;;  %v13461_v9 = vld [vmem:[#allocation38_spill] sm:$0xff]  ;;  %v13463_v16 = vld [vmem:[#allocation40_spill] sm:$0xff] }
 0x2ec   :  { %v12269_v6 = vpack.c.bf16 %v6210_v18, %v6209_v39  ;;  %v6211_v33 = vsub.f32 %v12236_v60, %v6203_v21  ;;  %v6108_v10 = vmul.f32 %v12193_v54, %v13460_v55  ;;  %v6109_v8 = vmul.f32 %v13461_v9, %v12193_v54 }
 0x2ed   :  { %13457 = vst [vmem:[#allocation191_spill] sm:$0xff] %v12260_v48  ;;  %13458 = vst [vmem:[#allocation192_spill] sm:$0xff] %v12262_v37  ;;  %v12276_v3 = vpack.c.bf16 %v6115_v22, %v6114_v5  ;;  %v6212_v50 = vsub.f32 %v12244_v49, %v6204_v28  ;;  %v6205_v37 = vmul.f32 %v12193_v54, %v13463_v16 }
 0x2ee   :  { %13459 = vst [vmem:[#allocation193_spill] sm:$0xff] %v12269_v6  ;;  %v6206_v39 = vmul.f32 %v10338_v1, %v12193_v54  ;;  %v6116_v18 = vsub.f32 %v12267_v58, %v6108_v10  ;;  %v6117_v6 = vsub.f32 %v6097_v35, %v6109_v8  ;;  %v6291_v5 = vmul.f32 %v12193_v54, %v10413_v34 }
 0x2ef   :  { %13462 = vst [vmem:[#allocation39_spill] sm:$0xff] %v12276_v3  ;;  %v12284_v21 = vpack.c.bf16 %v6212_v50, %v6211_v33  ;;  %v6213_v48 = vsub.f32 %v12267_v58, %v6205_v37  ;;  %v6292_v28 = vmul.f32 %v10403_v25, %v12193_v54  ;;  %v12294_v3 = vstv %s12248_s23 }
 0x2f0   :  { %v6214_v23 = vsub.f32 %v6097_v35, %v6206_v39  ;;  %v12289_v22 = vpack.c.bf16 %v6117_v6, %v6116_v18  ;;  %v6299_v10 = vsub.f32 %v12204_v56, %v6291_v5  ;;  %v6383_v33 = vmul.f32 %v12193_v54, %v10423_v47 }
 0x2f1   :  { %13464 = vst [vmem:[#allocation38_spill] sm:$0xff] %v12284_v21  ;;  %v6384_v37 = vmul.f32 %v10411_v4, %v12193_v54  ;;  %v6300_v8 = vsub.f32 %v12206_v20, %v6292_v28  ;;  %v6293_v6 = vmul.f32 %v12193_v54, %v10476_v12  ;;  %v6294_v50 = vmul.f32 %v10463_v14, %v12193_v54 }
 0x2f2   :  { %13465 = vst [vmem:[#allocation40_spill] sm:$0xff] %v12289_v22  ;;  %v12296_v61 = vpack.c.bf16 %v6214_v23, %v6213_v48  ;;  %v6385_v23 = vmul.f32 %v12193_v54, %v10478_v46  ;;  %v6391_v48 = vsub.f32 %v12204_v56, %v6383_v33  ;;  %v6386_v18 = vmul.f32 %v10465_v57, %v12193_v54 }
 0x2f3   :  { %v6392_v39 = vsub.f32 %v12206_v20, %v6384_v37  ;;  %v6295_v5 = vmul.f32 %v12193_v54, %v10536_v24  ;;  %v12316_v28 = vpack.c.bf16 %v6300_v8, %v6299_v10  ;;  %v6302_v22 = vsub.f32 %v12227_v7, %v6294_v50 }
 0x2f4   :  { %13466 = vst [vmem:[#allocation194_spill] sm:$0xff] %v12296_v61  ;;  %v6301_v61 = vsub.f32 %v12225_v51, %v6293_v6  ;;  %v6393_v21 = vsub.f32 %v12225_v51, %v6385_v23  ;;  %v6394_v56 = vsub.f32 %v12227_v7, %v6386_v18  ;;  %v6296_v20 = vmul.f32 %v10526_v59, %v12193_v54 }
 0x2f5   :  { %v12321_v53 = vpack.c.bf16 %v6392_v39, %v6391_v48  ;;  %v6303_v33 = vsub.f32 %v12236_v60, %v6295_v5  ;;  %v6387_v10 = vmul.f32 %v12193_v54, %v10538_v0  ;;  %v6388_v8 = vmul.f32 %v10528_v44, %v12193_v54 }
 0x2f6   :  { %v12327_v37 = vpack.c.bf16 %v6302_v22, %v6301_v61  ;;  %v6297_v51 = vmul.f32 %v12193_v54, %v10589_v43  ;;  %v12335_v6 = vpack.c.bf16 %v6394_v56, %v6393_v21  ;;  %v6304_v7 = vsub.f32 %v12244_v49, %v6296_v20  ;;  %v12350_v56 = vld [vmem:[#allocation10 + $0x380] sm:$0xff] }
 0x2f7   :  { %v6298_v50 = vmul.f32 %v10580_v32, %v12193_v54  ;;  %v6389_v61 = vmul.f32 %v12193_v54, %v10591_v36  ;;  %v6395_v22 = vsub.f32 %v12236_v60, %v6387_v10  ;;  %v6396_v23 = vsub.f32 %v12244_v49, %v6388_v8  ;;  %v12369_v8 = vld [vmem:[#allocation10 + $0x390] sm:$0xff] }
 0x2f8   :  { %13467 = vst [vmem:[#allocation195_spill] sm:$0xff] %v12327_v37  ;;  %13468 = vst [vmem:[#allocation196_spill] sm:$0xff] %v12335_v6  ;;  %v6305_v48 = vsub.f32 %v12267_v58, %v6297_v51  ;;  %v6390_v39 = vmul.f32 %v10582_v29, %v12193_v54  ;;  %v12347_v18 = vpack.c.bf16 %v6304_v7, %v6303_v33  ;;  %v12354_v37 = vld [vmem:[#allocation10 + $0x388] sm:$0xff]  ;;  %v12371_v51 = vld [vmem:[#allocation10 + $0x398] sm:$0xff] }
 0x2f9   :  { %v6306_v21 = vsub.f32 %v6097_v35, %v6298_v50  ;;  %v6397_v5 = vsub.f32 %v12267_v58, %v6389_v61  ;;  %v12352_v20 = vpack.c.bf16 %v6396_v23, %v6395_v22  ;;  %v6488_v60 = vmul.f32 %v12294_v3, %v13263_v13  ;;  %v12386_v22 = vld [vmem:[#allocation10 + $0x3a8] sm:$0xff] }
 0x2fa   :  { %v6398_v6 = vsub.f32 %v6097_v35, %v6390_v39  ;;  %v6489_v54 = vmul.f32 %v13264_v63, %v12294_v3  ;;  %v6585_v33 = vmul.f32 %v12294_v3, %v10217_v31  ;;  %v6586_v35 = vmul.f32 %v10209_v27, %v12294_v3 }
 0x2fb   :  { %v12358_v49 = vpack.c.bf16 %v6306_v21, %v6305_v48  ;;  %v6496_v58 = vsub.f32 %v12350_v56, %v6488_v60  ;;  %v6490_v63 = vmul.f32 %v12294_v3, %v10215_v30  ;;  %v6491_v31 = vmul.f32 %v13262_v38, %v12294_v3 }
 0x2fc   :  { %v12364_v10 = vpack.c.bf16 %v6398_v6, %v6397_v5  ;;  %v6497_v13 = vsub.f32 %v12354_v37, %v6489_v54  ;;  %v6593_v7 = vsub.f32 %v12350_v56, %v6585_v33  ;;  %v12379_v6 = vld [vmem:[#allocation10 + $0x3a0] sm:$0xff]  ;;  %v6594_v50 = vsub.f32 %v12354_v37, %v6586_v35 }
 0x2fd   :  { %v6587_v27 = vmul.f32 %v12294_v3, %v13268_v40  ;;  %v6588_v61 = vmul.f32 %v13269_v52, %v12294_v3  ;;  %v6492_v23 = vmul.f32 %v12294_v3, %v13271_v2  ;;  %v6498_v30 = vsub.f32 %v12369_v8, %v6490_v63 }
 0x2fe   :  { %v12390_v48 = vpack.c.bf16 %v6497_v13, %v6496_v58  ;;  %v6499_v38 = vsub.f32 %v12371_v51, %v6491_v31  ;;  %v6493_v39 = vmul.f32 %v13272_v42, %v12294_v3  ;;  %v12396_v21 = vpack.c.bf16 %v6594_v50, %v6593_v7  ;;  %v6482_v58 = vld [vmem:[#allocation10 + $0x3b0] sm:$0xff]  ;;  %v6483_v42 = vld [vmem:[#allocation10 + $0x3b8] sm:$0xff] }
 0x2ff   :  { %v6595_v40 = vsub.f32 %v12369_v8, %v6587_v27  ;;  %v6596_v52 = vsub.f32 %v12371_v51, %v6588_v61  ;;  %v6500_v5 = vsub.f32 %v12379_v6, %v6492_v23  ;;  %v6589_v54 = vmul.f32 %v12294_v3, %v13273_v45 }
 0x300   :  { %v12401_v60 = vpack.c.bf16 %v6499_v38, %v6498_v30  ;;  %v6501_v2 = vsub.f32 %v12386_v22, %v6493_v39  ;;  %v6590_v33 = vmul.f32 %v13277_v17, %v12294_v3  ;;  %v6494_v13 = vmul.f32 %v12294_v3, %v13460_v55 }
 0x301   :  { %v12408_v35 = vpack.c.bf16 %v6596_v52, %v6595_v40  ;;  %v6495_v7 = vmul.f32 %v13461_v9, %v12294_v3  ;;  %v6591_v63 = vmul.f32 %v12294_v3, %v13463_v16  ;;  %v6597_v45 = vsub.f32 %v12379_v6, %v6589_v54 }
 0x302   :  { %v12416_v31 = vpack.c.bf16 %v6501_v2, %v6500_v5  ;;  %v6598_v50 = vsub.f32 %v12386_v22, %v6590_v33  ;;  %v6592_v17 = vmul.f32 %v10338_v1, %v12294_v3  ;;  %v6502_v27 = vsub.f32 %v6482_v58, %v6494_v13 }
 0x303   :  { %v6503_v61 = vsub.f32 %v6483_v42, %v6495_v7  ;;  %v6599_v23 = vsub.f32 %v6482_v58, %v6591_v63  ;;  %v6677_v9 = vmul.f32 %v12294_v3, %v10413_v34  ;;  %v6678_v16 = vmul.f32 %v10403_v25, %v12294_v3 }
 0x304   :  { %v12422_v30 = vpack.c.bf16 %v6598_v50, %v6597_v45  ;;  %v6600_v55 = vsub.f32 %v6483_v42, %v6592_v17  ;;  %v6769_v39 = vmul.f32 %v12294_v3, %v10423_v47  ;;  %v6770_v52 = vmul.f32 %v10411_v4, %v12294_v3 }
 0x305   :  { %v12426_v38 = vpack.c.bf16 %v6503_v61, %v6502_v27  ;;  %v6685_v1 = vsub.f32 %v12350_v56, %v6677_v9  ;;  %v6686_v5 = vsub.f32 %v12354_v37, %v6678_v16  ;;  %v6679_v34 = vmul.f32 %v12294_v3, %v10476_v12 }
 0x306   :  { %v12432_v40 = vpack.c.bf16 %v6600_v55, %v6599_v23  ;;  %v6777_v2 = vsub.f32 %v12350_v56, %v6769_v39  ;;  %v6680_v25 = vmul.f32 %v10463_v14, %v12294_v3  ;;  %v6778_v54 = vsub.f32 %v12354_v37, %v6770_v52 }
 0x307   :  { %v6771_v47 = vmul.f32 %v12294_v3, %v10478_v46  ;;  %v6772_v33 = vmul.f32 %v10465_v57, %v12294_v3  ;;  %v6681_v4 = vmul.f32 %v12294_v3, %v10536_v24  ;;  %v12450_v13 = vpack.c.bf16 %v6686_v5, %v6685_v1  ;;  %v13469_v1 = vld [vmem:[#allocation19_spill] sm:$0xff] }
 0x308   :  { %v6687_v56 = vsub.f32 %v12369_v8, %v6679_v34  ;;  %v6688_v12 = vsub.f32 %v12371_v51, %v6680_v25  ;;  %v6682_v14 = vmul.f32 %v10526_v59, %v12294_v3  ;;  %v12456_v7 = vpack.c.bf16 %v6778_v54, %v6777_v2 }
 0x309   :  { %v6779_v37 = vsub.f32 %v12369_v8, %v6771_v47  ;;  %v6780_v46 = vsub.f32 %v12371_v51, %v6772_v33  ;;  %v6689_v57 = vsub.f32 %v12379_v6, %v6681_v4  ;;  %v6773_v45 = vmul.f32 %v12294_v3, %v10538_v0  ;;  %v13471_v4 = vld [vmem:[#allocation58_spill] sm:$0xff] }
 0x30a   :  { %v12461_v63 = vpack.c.bf16 %v6688_v12, %v6687_v56  ;;  %v6690_v24 = vsub.f32 %v12386_v22, %v6682_v14  ;;  %v6774_v50 = vmul.f32 %v10528_v44, %v12294_v3  ;;  %v6683_v59 = vmul.f32 %v12294_v3, %v10589_v43  ;;  %v13472_v56 = vld [vmem:[#allocation59_spill] sm:$0xff]  ;;  %v13473_v12 = vld [vmem:[#allocation62_spill] sm:$0xff] }
 0x30b   :  { %v12468_v17 = vpack.c.bf16 %v6780_v46, %v6779_v37  ;;  %v6684_v8 = vmul.f32 %v10580_v32, %v12294_v3  ;;  %v6775_v51 = vmul.f32 %v12294_v3, %v10591_v36  ;;  %v6781_v61 = vsub.f32 %v12379_v6, %v6773_v45  ;;  %v13470_v6 = vld [vmem:[#allocation24_spill] sm:$0xff]  ;;  %v13474_v14 = vld [vmem:[#allocation63_spill] sm:$0xff]  ;;  %v13476_v46 = vld [vmem:[#allocation65_spill] sm:$0xff] }
 0x30c   :  { %v12476_v27 = vpack.c.bf16 %v6690_v24, %v6689_v57  ;;  %v6782_v0 = vsub.f32 %v12386_v22, %v6774_v50  ;;  %v6776_v44 = vmul.f32 %v10582_v29, %v12294_v3  ;;  %v6691_v23 = vsub.f32 %v6482_v58, %v6683_v59  ;;  %v7041_v29 = vld [vmem:[%s13167_s5 + $0x1] ss:$0 sm:$0xff]  ;;  %v13475_v37 = vld [vmem:[#allocation64_spill] sm:$0xff]  ;;  %v13477_v57 = vld [vmem:[#allocation66_spill] sm:$0xff] }
 0x30d   :  { %v6692_v55 = vsub.f32 %v6483_v42, %v6684_v8  ;;  %v6783_v9 = vsub.f32 %v6482_v58, %v6775_v51  ;;  %v1486_v36 = vstv %s7039_s24  ;;  %v13478_v24 = vld [vmem:[#allocation30_spill] sm:$0xff]  ;;  %v13480_v59 = vld [vmem:[#allocation43_spill] sm:$0xff] }
 0x30e   :  { %v12482_v16 = vpack.c.bf16 %v6782_v0, %v6781_v61  ;;  %v6784_v43 = vsub.f32 %v6483_v42, %v6776_v44  ;;  %v1487_v52 = vmul.f32 %v1486_v36, %v13469_v1  ;;  %v1583_v5 = vmul.f32 %v1486_v36, %v13470_v6  ;;  %v13479_v45 = vld [vmem:[#allocation42_spill] sm:$0xff] }
 0x30f   :  { %v12484_v39 = vpack.c.bf16 %v6692_v55, %v6691_v23  ;;  %v1675_v50 = vmul.f32 %v1486_v36, %v13479_v45  ;;  %v1767_v8 = vmul.f32 %v1486_v36, %v13480_v59  ;;  %v13483_v36 = vld [vmem:[#allocation27_spill] sm:$0xff] }
 0x310   :  { %v12486_v32 = vpack.c.bf16 %v6784_v43, %v6783_v9  ;;  %v1492_v3 = vadd.f32 %v7041_v29, %v1487_v52  ;;  %v1584_v22 = vadd.f32 %v7041_v29, %v1583_v5 }
 0x311   :  { %v1676_v51 = vadd.f32 %v7041_v29, %v1675_v50  ;;  %v1768_v61 = vadd.f32 %v7041_v29, %v1767_v8  ;;  %v13484_v29 = vld [vmem:[#allocation22_spill] sm:$0xff] }
 0x38d   :  { %v1562_v58 = vpop.f32.mrb[20].mxu1  ;;  %v1654_v2 = vpop.f32.mrb[28].mxu0 }
 0x38e   :  { %v1563_v34 = vadd.f32 %v1562_v58, %v1492_v3  ;;  %v1655_v42 = vadd.f32 %v1654_v2, %v1584_v22  ;;  %v7932_v25 = vpop.f32.mrb[21].mxu1  ;;  %v7951_v54 = vpop.f32.mrb[29].mxu0  ;;  %v13481_v3 = vld [vmem:[#allocation26_spill] sm:$0xff]  ;;  %v13482_v22 = vld [vmem:[#allocation35_spill] sm:$0xff]  ;;  %v13485_v58 = vld [vmem:[#allocation20_spill] sm:$0xff] }
 0x38f   :  { %v13486_v2 = vld [vmem:[#allocation23_spill] sm:$0xff]  ;;  %v1872_v25 = vstv %s7046_s27 }
 0x390   :  { %v1566_v47 = vmax.f32 %v1563_v34, 0.0  ;;  %v1658_v33 = vmax.f32 %v1655_v42, 0.0  ;;  %v13487_v34 = vld [vmem:[#allocation21_spill] sm:$0xff]  ;;  %v1873_v54 = vmul.f32 %v1872_v25, %v13469_v1 }
 0x391   :  { %v13488_v42 = vld [vmem:[#allocation29_spill] sm:$0xff] }
 0x392   :  { %8007 = vmatmul.mubr.msk.f32.vlgmr.msra.gmra.mrb[24].mxu1 %vm1106_vm2, %v1566_v47  ;;  %8026 = vmatmul.mubr.msk.f32.vlgmr.msra.gmra.mrb[32].mxu0 %vm1106_vm2, %v1658_v33  ;;  %v1969_v47 = vmul.f32 %v1872_v25, %v13470_v6  ;;  %v7048_v33 = vld [vmem:[%s13167_s5 + $0x2] ss:$0 sm:$0xff] }
 0x393   :  { %9150 = vmatpush3.bf16.msra.mxu1 %v13471_v4  ;;  %9162 = vmatpush3.bf16.msra.mxu0 %v13472_v56  ;;  %v1878_v4 = vadd.f32 %v7048_v33, %v1873_v54 }
 0x394   :  { %9151 = vmatprep.subr.bf16.mxu1 %v13238_v15  ;;  %9163 = vmatprep.subr.bf16.mxu0 %v13238_v15  ;;  %v1970_v56 = vadd.f32 %v7048_v33, %v1969_v47 }
 0x395   :  { %8044 = vmatprep.mubr.msk.f32.mxu1 %vm9939_vm0, %v13239_v26  ;;  %8063 = vmatprep.mubr.msk.f32.mxu0 %vm9939_vm0, %v13239_v26 }
 0x397   :  { %9153 = vmatpush3.bf16.msra.mxu1 %v13473_v12  ;;  %9165 = vmatpush3.bf16.msra.mxu0 %v13474_v14 }
 0x398   :  { %9154 = vmatprep.subr.bf16.mxu1 %v13238_v15  ;;  %9166 = vmatprep.subr.bf16.mxu0 %v13238_v15 }
 0x39b   :  { %9156 = vmatpush3.bf16.msra.mxu1 %v13475_v37  ;;  %9168 = vmatpush3.bf16.msra.mxu0 %v13476_v46 }
 0x39c   :  { %9157 = vmatprep.subr.bf16.mxu1 %v13238_v15  ;;  %9169 = vmatprep.subr.bf16.mxu0 %v13238_v15 }
 0x39f   :  { %9159 = vmatpush3.bf16.msra.mxu1 %v13477_v57  ;;  %9171 = vmatpush3.bf16.msra.mxu0 %v13478_v24 }
 0x3a0   :  { %9172 = vmatprep.subr.bf16.mxu1 %v13238_v15  ;;  %9184 = vmatprep.subr.bf16.mxu0 %v13238_v15 }
 0x3ae   :  { %v1746_v0 = vpop.f32.mrb[22].mxu1  ;;  %v1838_v44 = vpop.f32.mrb[30].mxu0 }
 0x3af   :  { %v1747_v23 = vadd.f32 %v1746_v0, %v1676_v51  ;;  %v1839_v55 = vadd.f32 %v1838_v44, %v1768_v61  ;;  %v7970_v9 = vpop.f32.mrb[23].mxu1  ;;  %v7989_v43 = vpop.f32.mrb[31].mxu0  ;;  %v13489_v51 = vld [vmem:[#allocation28_spill] sm:$0xff]  ;;  %v13490_v61 = vld [vmem:[#allocation33_spill] sm:$0xff]  ;;  %v13491_v0 = vld [vmem:[#allocation31_spill] sm:$0xff] }
 0x3b0   :  { %v13492_v44 = vld [vmem:[#allocation34_spill] sm:$0xff]  ;;  %v13495_v9 = vld [vmem:[#allocation32_spill] sm:$0xff] }
 0x3b1   :  { %v1750_v52 = vmax.f32 %v1747_v23, 0.0  ;;  %v1842_v5 = vmax.f32 %v1839_v55, 0.0  ;;  %v13493_v23 = vld [vmem:[#allocation37_spill] sm:$0xff]  ;;  %v13496_v43 = vld [vmem:[#allocation44_spill] sm:$0xff] }
 0x3b2   :  { %v13494_v55 = vld [vmem:[#allocation41_spill] sm:$0xff] }
 0x3b3   :  { %8045 = vmatmul.mubr.msk.f32.vlgmr.msra.gmra.mrb[26].mxu1 %vm1106_vm2, %v1750_v52  ;;  %8064 = vmatmul.mubr.msk.f32.vlgmr.msra.gmra.mrb[34].mxu0 %vm1106_vm2, %v1842_v5  ;;  %v2061_v52 = vmul.f32 %v1872_v25, %v13479_v45  ;;  %v2153_v5 = vmul.f32 %v1872_v25, %v13480_v59  ;;  %v13499_v25 = vld [vmem:[#allocation68_spill] sm:$0xff] }
 0x3b4   :  { %9174 = vmatpush3.bf16.msra.mxu1 %v13481_v3  ;;  %9186 = vmatpush3.bf16.msra.mxu0 %v13482_v22 }
 0x3b5   :  { %9175 = vmatprep.subr.bf16.mxu1 %v13238_v15  ;;  %9187 = vmatprep.subr.bf16.mxu0 %v13238_v15  ;;  %v2062_v3 = vadd.f32 %v7048_v33, %v2061_v52  ;;  %v2154_v22 = vadd.f32 %v7048_v33, %v2153_v5  ;;  %v13500_v33 = vld [vmem:[#allocation69_spill] sm:$0xff] }
 0x3b6   :  { %8082 = vmatprep.mubr.msk.f32.mxu1 %vm9939_vm0, %v13239_v26  ;;  %8101 = vmatprep.mubr.msk.f32.mxu0 %vm9939_vm0, %v13239_v26 }
 0x3b8   :  { %9177 = vmatpush3.bf16.msra.mxu1 %v13483_v36  ;;  %9189 = vmatpush3.bf16.msra.mxu0 %v13484_v29 }
 0x3b9   :  { %9178 = vmatprep.subr.bf16.mxu1 %v13238_v15  ;;  %9190 = vmatprep.subr.bf16.mxu0 %v13238_v15 }
 0x3bc   :  { %9180 = vmatpush3.bf16.msra.mxu1 %v13485_v58  ;;  %9192 = vmatpush3.bf16.msra.mxu0 %v13486_v2 }
 0x3bd   :  { %9181 = vmatprep.subr.bf16.mxu1 %v13238_v15  ;;  %9193 = vmatprep.subr.bf16.mxu0 %v13238_v15 }
 0x3c0   :  { %9183 = vmatpush3.bf16.msra.mxu1 %v13487_v34  ;;  %9195 = vmatpush3.bf16.msra.mxu0 %v13488_v42 }
 0x3c1   :  { %9196 = vmatprep.subr.bf16.mxu1 %v13238_v15  ;;  %9208 = vmatprep.subr.bf16.mxu0 %v13238_v15 }
 0x465   :  { %v1948_v12 = vpop.f32.mrb[24].mxu1  ;;  %v2040_v14 = vpop.f32.mrb[32].mxu0 }
 0x466   :  { %v1949_v37 = vadd.f32 %v1948_v12, %v1878_v4  ;;  %v2041_v46 = vadd.f32 %v2040_v14, %v1970_v56  ;;  %v8008_v57 = vpop.f32.mrb[25].mxu1  ;;  %v8027_v24 = vpop.f32.mrb[33].mxu0  ;;  %v13497_v4 = vld [vmem:[#allocation46_spill] sm:$0xff]  ;;  %v13498_v56 = vld [vmem:[#allocation67_spill] sm:$0xff] }
 0x467   :  { %v13501_v12 = vld [vmem:[#allocation70_spill] sm:$0xff]  ;;  %v13502_v14 = vld [vmem:[#allocation71_spill] sm:$0xff]  ;;  %v2258_v57 = vstv %s7053_s3 }
 0x468   :  { %v1952_v50 = vmax.f32 %v1949_v37, 0.0  ;;  %v2044_v8 = vmax.f32 %v2041_v46, 0.0  ;;  %v13503_v37 = vld [vmem:[#allocation72_spill] sm:$0xff]  ;;  %v13504_v46 = vld [vmem:[#allocation73_spill] sm:$0xff]  ;;  %v2259_v24 = vmul.f32 %v2258_v57, %v13469_v1 }
 0x46a   :  { %8083 = vmatmul.mubr.msk.f32.vlgmr.msra.gmra.mrb[28].mxu1 %vm1106_vm2, %v1952_v50  ;;  %8102 = vmatmul.mubr.msk.f32.vlgmr.msra.gmra.mrb[36].mxu0 %vm1106_vm2, %v2044_v8  ;;  %v2355_v50 = vmul.f32 %v2258_v57, %v13470_v6  ;;  %v7055_v8 = vld [vmem:[%s13167_s5 + $0x3] ss:$0 sm:$0xff] }
 0x46b   :  { %9198 = vmatpush3.bf16.msra.mxu1 %v13489_v51  ;;  %9210 = vmatpush3.bf16.msra.mxu0 %v13490_v61  ;;  %v2264_v51 = vadd.f32 %v7055_v8, %v2259_v24 }
 0x46c   :  { %9199 = vmatprep.subr.bf16.mxu1 %v13238_v15  ;;  %9211 = vmatprep.subr.bf16.mxu0 %v13238_v15  ;;  %v2356_v61 = vadd.f32 %v7055_v8, %v2355_v50 }
 0x46d   :  { %8120 = vmatprep.mubr.msk.f32.mxu1 %vm9939_vm0, %v13239_v26  ;;  %8139 = vmatprep.mubr.msk.f32.mxu0 %vm9939_vm0, %v13239_v26 }
 0x46f   :  { %9201 = vmatpush3.bf16.msra.mxu1 %v13491_v0  ;;  %9213 = vmatpush3.bf16.msra.mxu0 %v13492_v44 }
 0x470   :  { %9202 = vmatprep.subr.bf16.mxu1 %v13238_v15  ;;  %9214 = vmatprep.subr.bf16.mxu0 %v13238_v15 }
 0x473   :  { %9204 = vmatpush3.bf16.msra.mxu1 %v13493_v23  ;;  %9216 = vmatpush3.bf16.msra.mxu0 %v13494_v55 }
 0x474   :  { %9205 = vmatprep.subr.bf16.mxu1 %v13238_v15  ;;  %9217 = vmatprep.subr.bf16.mxu0 %v13238_v15 }
 0x477   :  { %9207 = vmatpush3.bf16.msra.mxu1 %v13495_v9  ;;  %9219 = vmatpush3.bf16.msra.mxu0 %v13496_v43 }
 0x478   :  { %9220 = vmatprep.subr.bf16.mxu1 %v13238_v15  ;;  %9232 = vmatprep.subr.bf16.mxu0 %v13238_v15 }
 0x486   :  { %v2132_v36 = vpop.f32.mrb[26].mxu1  ;;  %v2224_v29 = vpop.f32.mrb[34].mxu0 }
 0x487   :  { %v2133_v58 = vadd.f32 %v2132_v36, %v2062_v3  ;;  %v2225_v2 = vadd.f32 %v2224_v29, %v2154_v22  ;;  %v8046_v34 = vpop.f32.mrb[27].mxu1  ;;  %v8065_v42 = vpop.f32.mrb[35].mxu0  ;;  %v13505_v3 = vld [vmem:[#allocation74_spill] sm:$0xff]  ;;  %v13506_v22 = vld [vmem:[#allocation75_spill] sm:$0xff]  ;;  %v13507_v36 = vld [vmem:[#allocation76_spill] sm:$0xff] }
 0x488   :  { %v13508_v29 = vld [vmem:[#allocation77_spill] sm:$0xff]  ;;  %v13511_v34 = vld [vmem:[#allocation80_spill] sm:$0xff] }
 0x489   :  { %v2136_v54 = vmax.f32 %v2133_v58, 0.0  ;;  %v2228_v47 = vmax.f32 %v2225_v2, 0.0  ;;  %v13509_v58 = vld [vmem:[#allocation78_spill] sm:$0xff]  ;;  %v13510_v2 = vld [vmem:[#allocation79_spill] sm:$0xff]  ;;  %v13512_v42 = vld [vmem:[#allocation81_spill] sm:$0xff] }
 0x48b   :  { %8121 = vmatmul.mubr.msk.f32.vlgmr.msra.gmra.mrb[30].mxu1 %vm1106_vm2, %v2136_v54  ;;  %8140 = vmatmul.mubr.msk.f32.vlgmr.msra.gmra.mrb[38].mxu0 %vm1106_vm2, %v2228_v47  ;;  %v2447_v54 = vmul.f32 %v2258_v57, %v13479_v45  ;;  %v2539_v47 = vmul.f32 %v2258_v57, %v13480_v59  ;;  %v13515_v57 = vld [vmem:[#allocation84_spill] sm:$0xff] }
 0x48c   :  { %9222 = vmatpush3.bf16.msra.mxu1 %v13497_v4  ;;  %9234 = vmatpush3.bf16.msra.mxu0 %v13498_v56 }
 0x48d   :  { %9223 = vmatprep.subr.bf16.mxu1 %v13238_v15  ;;  %9235 = vmatprep.subr.bf16.mxu0 %v13238_v15  ;;  %v2448_v4 = vadd.f32 %v7055_v8, %v2447_v54  ;;  %v2540_v56 = vadd.f32 %v7055_v8, %v2539_v47  ;;  %v13516_v8 = vld [vmem:[#allocation85_spill] sm:$0xff] }
 0x48e   :  { %8158 = vmatprep.mubr.msk.f32.mxu1 %vm9939_vm0, %v13239_v26  ;;  %8177 = vmatprep.mubr.msk.f32.mxu0 %vm9939_vm0, %v13239_v26 }
 0x490   :  { %9225 = vmatpush3.bf16.msra.mxu1 %v13499_v25  ;;  %9237 = vmatpush3.bf16.msra.mxu0 %v13500_v33 }
 0x491   :  { %9226 = vmatprep.subr.bf16.mxu1 %v13238_v15  ;;  %9238 = vmatprep.subr.bf16.mxu0 %v13238_v15 }
 0x494   :  { %9228 = vmatpush3.bf16.msra.mxu1 %v13501_v12  ;;  %9240 = vmatpush3.bf16.msra.mxu0 %v13502_v14 }
 0x495   :  { %9229 = vmatprep.subr.bf16.mxu1 %v13238_v15  ;;  %9241 = vmatprep.subr.bf16.mxu0 %v13238_v15 }
 0x498   :  { %9231 = vmatpush3.bf16.msra.mxu1 %v13503_v37  ;;  %9243 = vmatpush3.bf16.msra.mxu0 %v13504_v46 }
 0x499   :  { %9244 = vmatprep.subr.bf16.mxu1 %v13238_v15  ;;  %9256 = vmatprep.subr.bf16.mxu0 %v13238_v15 }
 0x53d   :  { %v2334_v0 = vpop.f32.mrb[28].mxu1  ;;  %v2426_v44 = vpop.f32.mrb[36].mxu0 }
 0x53e   :  { %v2335_v23 = vadd.f32 %v2334_v0, %v2264_v51  ;;  %v2427_v55 = vadd.f32 %v2426_v44, %v2356_v61  ;;  %v8084_v9 = vpop.f32.mrb[29].mxu1  ;;  %v8103_v43 = vpop.f32.mrb[37].mxu0  ;;  %v13513_v51 = vld [vmem:[#allocation82_spill] sm:$0xff]  ;;  %v13514_v61 = vld [vmem:[#allocation83_spill] sm:$0xff] }
 0x53f   :  { %v13517_v0 = vld [vmem:[#allocation86_spill] sm:$0xff]  ;;  %v13518_v44 = vld [vmem:[#allocation87_spill] sm:$0xff]  ;;  %v2644_v9 = vstv %s7060_s0 }
 0x540   :  { %v2338_v52 = vmax.f32 %v2335_v23, 0.0  ;;  %v2430_v5 = vmax.f32 %v2427_v55, 0.0  ;;  %v13519_v23 = vld [vmem:[#allocation88_spill] sm:$0xff]  ;;  %v13520_v55 = vld [vmem:[#allocation89_spill] sm:$0xff]  ;;  %v2645_v43 = vmul.f32 %v2644_v9, %v13469_v1 }
 0x542   :  { %8159 = vmatmul.mubr.msk.f32.vlgmr.msra.gmra.mrb[32].mxu1 %vm1106_vm2, %v2338_v52  ;;  %8178 = vmatmul.mubr.msk.f32.vlgmr.msra.gmra.mrb[40].mxu0 %vm1106_vm2, %v2430_v5  ;;  %v2741_v52 = vmul.f32 %v2644_v9, %v13470_v6  ;;  %v7062_v5 = vld [vmem:[%s13167_s5 + $0x4] ss:$0 sm:$0xff] }
 0x543   :  { %9246 = vmatpush3.bf16.msra.mxu1 %v13505_v3  ;;  %9258 = vmatpush3.bf16.msra.mxu0 %v13506_v22  ;;  %v2650_v3 = vadd.f32 %v7062_v5, %v2645_v43 }
 0x544   :  { %9247 = vmatprep.subr.bf16.mxu1 %v13238_v15  ;;  %9259 = vmatprep.subr.bf16.mxu0 %v13238_v15  ;;  %v2742_v22 = vadd.f32 %v7062_v5, %v2741_v52 }
 0x545   :  { %8196 = vmatprep.mubr.msk.f32.mxu1 %vm9939_vm0, %v13239_v26  ;;  %8215 = vmatprep.mubr.msk.f32.mxu0 %vm9939_vm0, %v13239_v26 }
 0x547   :  { %9249 = vmatpush3.bf16.msra.mxu1 %v13507_v36  ;;  %9261 = vmatpush3.bf16.msra.mxu0 %v13508_v29 }
 0x548   :  { %9250 = vmatprep.subr.bf16.mxu1 %v13238_v15  ;;  %9262 = vmatprep.subr.bf16.mxu0 %v13238_v15 }
 0x54b   :  { %9252 = vmatpush3.bf16.msra.mxu1 %v13509_v58  ;;  %9264 = vmatpush3.bf16.msra.mxu0 %v13510_v2 }
 0x54c   :  { %9253 = vmatprep.subr.bf16.mxu1 %v13238_v15  ;;  %9265 = vmatprep.subr.bf16.mxu0 %v13238_v15 }
 0x54f   :  { %9255 = vmatpush3.bf16.msra.mxu1 %v13511_v34  ;;  %9267 = vmatpush3.bf16.msra.mxu0 %v13512_v42 }
 0x550   :  { %9268 = vmatprep.subr.bf16.mxu1 %v13238_v15  ;;  %9280 = vmatprep.subr.bf16.mxu0 %v13238_v15 }
 0x55e   :  { %v2518_v25 = vpop.f32.mrb[30].mxu1  ;;  %v2610_v33 = vpop.f32.mrb[38].mxu0 }
 0x55f   :  { %v2519_v12 = vadd.f32 %v2518_v25, %v2448_v4  ;;  %v2611_v14 = vadd.f32 %v2610_v33, %v2540_v56  ;;  %v8122_v37 = vpop.f32.mrb[31].mxu1  ;;  %v8141_v46 = vpop.f32.mrb[39].mxu0  ;;  %v13521_v4 = vld [vmem:[#allocation90_spill] sm:$0xff]  ;;  %v13522_v56 = vld [vmem:[#allocation91_spill] sm:$0xff]  ;;  %v13523_v25 = vld [vmem:[#allocation92_spill] sm:$0xff] }
 0x560   :  { %v13524_v33 = vld [vmem:[#allocation93_spill] sm:$0xff]  ;;  %v13527_v37 = vld [vmem:[#allocation96_spill] sm:$0xff] }
 0x561   :  { %v2522_v24 = vmax.f32 %v2519_v12, 0.0  ;;  %v2614_v50 = vmax.f32 %v2611_v14, 0.0  ;;  %v13525_v12 = vld [vmem:[#allocation94_spill] sm:$0xff]  ;;  %v13526_v14 = vld [vmem:[#allocation95_spill] sm:$0xff]  ;;  %v13528_v46 = vld [vmem:[#allocation97_spill] sm:$0xff] }
 0x563   :  { %8197 = vmatmul.mubr.msk.f32.vlgmr.msra.gmra.mrb[34].mxu1 %vm1106_vm2, %v2522_v24  ;;  %8216 = vmatmul.mubr.msk.f32.vlgmr.msra.gmra.mrb[42].mxu0 %vm1106_vm2, %v2614_v50  ;;  %v2833_v24 = vmul.f32 %v2644_v9, %v13479_v45  ;;  %v2925_v50 = vmul.f32 %v2644_v9, %v13480_v59  ;;  %v13531_v9 = vld [vmem:[#allocation100_spill] sm:$0xff] }
 0x564   :  { %9270 = vmatpush3.bf16.msra.mxu1 %v13513_v51  ;;  %9282 = vmatpush3.bf16.msra.mxu0 %v13514_v61 }
 0x565   :  { %9271 = vmatprep.subr.bf16.mxu1 %v13238_v15  ;;  %9283 = vmatprep.subr.bf16.mxu0 %v13238_v15  ;;  %v2834_v51 = vadd.f32 %v7062_v5, %v2833_v24  ;;  %v2926_v61 = vadd.f32 %v7062_v5, %v2925_v50  ;;  %v13532_v5 = vld [vmem:[#allocation101_spill] sm:$0xff] }
 0x566   :  { %8234 = vmatprep.mubr.msk.f32.mxu1 %vm9939_vm0, %v13239_v26  ;;  %8253 = vmatprep.mubr.msk.f32.mxu0 %vm9939_vm0, %v13239_v26 }
 0x568   :  { %9273 = vmatpush3.bf16.msra.mxu1 %v13515_v57  ;;  %9285 = vmatpush3.bf16.msra.mxu0 %v13516_v8 }
 0x569   :  { %9274 = vmatprep.subr.bf16.mxu1 %v13238_v15  ;;  %9286 = vmatprep.subr.bf16.mxu0 %v13238_v15 }
 0x56c   :  { %9276 = vmatpush3.bf16.msra.mxu1 %v13517_v0  ;;  %9288 = vmatpush3.bf16.msra.mxu0 %v13518_v44 }
 0x56d   :  { %9277 = vmatprep.subr.bf16.mxu1 %v13238_v15  ;;  %9289 = vmatprep.subr.bf16.mxu0 %v13238_v15 }
 0x570   :  { %9279 = vmatpush3.bf16.msra.mxu1 %v13519_v23  ;;  %9291 = vmatpush3.bf16.msra.mxu0 %v13520_v55 }
 0x571   :  { %9292 = vmatprep.subr.bf16.mxu1 %v13238_v15  ;;  %9304 = vmatprep.subr.bf16.mxu0 %v13238_v15 }
 0x615   :  { %v2720_v36 = vpop.f32.mrb[32].mxu1  ;;  %v2812_v29 = vpop.f32.mrb[40].mxu0 }
 0x616   :  { %v2721_v58 = vadd.f32 %v2720_v36, %v2650_v3  ;;  %v2813_v2 = vadd.f32 %v2812_v29, %v2742_v22  ;;  %v8160_v34 = vpop.f32.mrb[33].mxu1  ;;  %v8179_v42 = vpop.f32.mrb[41].mxu0  ;;  %v13529_v3 = vld [vmem:[#allocation98_spill] sm:$0xff]  ;;  %v13530_v22 = vld [vmem:[#allocation99_spill] sm:$0xff] }
 0x617   :  { %v13533_v36 = vld [vmem:[#allocation102_spill] sm:$0xff]  ;;  %v13534_v29 = vld [vmem:[#allocation103_spill] sm:$0xff]  ;;  %v3030_v34 = vstv %s7067_s10 }
 0x618   :  { %v2724_v54 = vmax.f32 %v2721_v58, 0.0  ;;  %v2816_v47 = vmax.f32 %v2813_v2, 0.0  ;;  %v13535_v58 = vld [vmem:[#allocation104_spill] sm:$0xff]  ;;  %v13536_v2 = vld [vmem:[#allocation105_spill] sm:$0xff]  ;;  %v3031_v42 = vmul.f32 %v3030_v34, %v13469_v1 }
 0x61a   :  { %8235 = vmatmul.mubr.msk.f32.vlgmr.msra.gmra.mrb[36].mxu1 %vm1106_vm2, %v2724_v54  ;;  %8254 = vmatmul.mubr.msk.f32.vlgmr.msra.gmra.mrb[44].mxu0 %vm1106_vm2, %v2816_v47  ;;  %v3127_v54 = vmul.f32 %v3030_v34, %v13470_v6  ;;  %v7069_v47 = vld [vmem:[%s13167_s5 + $0x5] ss:$0 sm:$0xff] }
 0x61b   :  { %9294 = vmatpush3.bf16.msra.mxu1 %v13521_v4  ;;  %9306 = vmatpush3.bf16.msra.mxu0 %v13522_v56  ;;  %v3036_v4 = vadd.f32 %v7069_v47, %v3031_v42 }
 0x61c   :  { %9295 = vmatprep.subr.bf16.mxu1 %v13238_v15  ;;  %9307 = vmatprep.subr.bf16.mxu0 %v13238_v15  ;;  %v3128_v56 = vadd.f32 %v7069_v47, %v3127_v54 }
 0x61d   :  { %8272 = vmatprep.mubr.msk.f32.mxu1 %vm9939_vm0, %v13239_v26  ;;  %8291 = vmatprep.mubr.msk.f32.mxu0 %vm9939_vm0, %v13239_v26 }
 0x61f   :  { %9297 = vmatpush3.bf16.msra.mxu1 %v13523_v25  ;;  %9309 = vmatpush3.bf16.msra.mxu0 %v13524_v33 }
 0x620   :  { %9298 = vmatprep.subr.bf16.mxu1 %v13238_v15  ;;  %9310 = vmatprep.subr.bf16.mxu0 %v13238_v15 }
 0x623   :  { %9300 = vmatpush3.bf16.msra.mxu1 %v13525_v12  ;;  %9312 = vmatpush3.bf16.msra.mxu0 %v13526_v14 }
 0x624   :  { %9301 = vmatprep.subr.bf16.mxu1 %v13238_v15  ;;  %9313 = vmatprep.subr.bf16.mxu0 %v13238_v15 }
 0x627   :  { %9303 = vmatpush3.bf16.msra.mxu1 %v13527_v37  ;;  %9315 = vmatpush3.bf16.msra.mxu0 %v13528_v46 }
 0x628   :  { %9316 = vmatprep.subr.bf16.mxu1 %v13238_v15  ;;  %9328 = vmatprep.subr.bf16.mxu0 %v13238_v15 }
 0x636   :  { %v2904_v57 = vpop.f32.mrb[34].mxu1  ;;  %v2996_v8 = vpop.f32.mrb[42].mxu0 }
 0x637   :  { %v2905_v0 = vadd.f32 %v2904_v57, %v2834_v51  ;;  %v2997_v44 = vadd.f32 %v2996_v8, %v2926_v61  ;;  %v8198_v23 = vpop.f32.mrb[35].mxu1  ;;  %v8217_v55 = vpop.f32.mrb[43].mxu0  ;;  %v13537_v51 = vld [vmem:[#allocation106_spill] sm:$0xff]  ;;  %v13538_v61 = vld [vmem:[#allocation107_spill] sm:$0xff]  ;;  %v13539_v57 = vld [vmem:[#allocation108_spill] sm:$0xff] }
 0x638   :  { %v13540_v8 = vld [vmem:[#allocation109_spill] sm:$0xff]  ;;  %v13543_v23 = vld [vmem:[#allocation112_spill] sm:$0xff] }
 0x639   :  { %v2908_v43 = vmax.f32 %v2905_v0, 0.0  ;;  %v3000_v52 = vmax.f32 %v2997_v44, 0.0  ;;  %v13541_v0 = vld [vmem:[#allocation110_spill] sm:$0xff]  ;;  %v13542_v44 = vld [vmem:[#allocation111_spill] sm:$0xff]  ;;  %v13544_v55 = vld [vmem:[#allocation113_spill] sm:$0xff] }
 0x63b   :  { %8273 = vmatmul.mubr.msk.f32.vlgmr.msra.gmra.mrb[38].mxu1 %vm1106_vm2, %v2908_v43  ;;  %8292 = vmatmul.mubr.msk.f32.vlgmr.msra.gmra.mrb[46].mxu0 %vm1106_vm2, %v3000_v52  ;;  %v3219_v43 = vmul.f32 %v3030_v34, %v13479_v45  ;;  %v3311_v52 = vmul.f32 %v3030_v34, %v13480_v59  ;;  %v13547_v34 = vld [vmem:[#allocation116_spill] sm:$0xff] }
 0x63c   :  { %9318 = vmatpush3.bf16.msra.mxu1 %v13529_v3  ;;  %9330 = vmatpush3.bf16.msra.mxu0 %v13530_v22 }
 0x63d   :  { %9319 = vmatprep.subr.bf16.mxu1 %v13238_v15  ;;  %9331 = vmatprep.subr.bf16.mxu0 %v13238_v15  ;;  %v3220_v3 = vadd.f32 %v7069_v47, %v3219_v43  ;;  %v3312_v22 = vadd.f32 %v7069_v47, %v3311_v52  ;;  %v13548_v47 = vld [vmem:[#allocation117_spill] sm:$0xff] }
 0x63e   :  { %8310 = vmatprep.mubr.msk.f32.mxu1 %vm9939_vm0, %v13239_v26  ;;  %8329 = vmatprep.mubr.msk.f32.mxu0 %vm9939_vm0, %v13239_v26 }
 0x640   :  { %9321 = vmatpush3.bf16.msra.mxu1 %v13531_v9  ;;  %9333 = vmatpush3.bf16.msra.mxu0 %v13532_v5 }
 0x641   :  { %9322 = vmatprep.subr.bf16.mxu1 %v13238_v15  ;;  %9334 = vmatprep.subr.bf16.mxu0 %v13238_v15 }
 0x644   :  { %9324 = vmatpush3.bf16.msra.mxu1 %v13533_v36  ;;  %9336 = vmatpush3.bf16.msra.mxu0 %v13534_v29 }
 0x645   :  { %9325 = vmatprep.subr.bf16.mxu1 %v13238_v15  ;;  %9337 = vmatprep.subr.bf16.mxu0 %v13238_v15 }
 0x648   :  { %9327 = vmatpush3.bf16.msra.mxu1 %v13535_v58  ;;  %9339 = vmatpush3.bf16.msra.mxu0 %v13536_v2 }
 0x649   :  { %9340 = vmatprep.subr.bf16.mxu1 %v13238_v15  ;;  %9352 = vmatprep.subr.bf16.mxu0 %v13238_v15 }
 0x6ed   :  { %v3106_v25 = vpop.f32.mrb[36].mxu1  ;;  %v3198_v33 = vpop.f32.mrb[44].mxu0 }
 0x6ee   :  { %v3107_v12 = vadd.f32 %v3106_v25, %v3036_v4  ;;  %v3199_v14 = vadd.f32 %v3198_v33, %v3128_v56  ;;  %v8236_v37 = vpop.f32.mrb[37].mxu1  ;;  %v8255_v46 = vpop.f32.mrb[45].mxu0  ;;  %v13545_v4 = vld [vmem:[#allocation114_spill] sm:$0xff]  ;;  %v13546_v56 = vld [vmem:[#allocation115_spill] sm:$0xff] }
 0x6ef   :  { %v13549_v25 = vld [vmem:[#allocation118_spill] sm:$0xff]  ;;  %v13550_v33 = vld [vmem:[#allocation119_spill] sm:$0xff]  ;;  %v3416_v37 = vstv %s7074_s13 }
 0x6f0   :  { %v3110_v24 = vmax.f32 %v3107_v12, 0.0  ;;  %v3202_v50 = vmax.f32 %v3199_v14, 0.0  ;;  %v13551_v12 = vld [vmem:[#allocation120_spill] sm:$0xff]  ;;  %v13552_v14 = vld [vmem:[#allocation121_spill] sm:$0xff]  ;;  %v3417_v46 = vmul.f32 %v3416_v37, %v13469_v1 }
 0x6f2   :  { %8311 = vmatmul.mubr.msk.f32.vlgmr.msra.gmra.mrb[40].mxu1 %vm1106_vm2, %v3110_v24  ;;  %8330 = vmatmul.mubr.msk.f32.vlgmr.msra.gmra.mrb[48].mxu0 %vm1106_vm2, %v3202_v50  ;;  %v3513_v24 = vmul.f32 %v3416_v37, %v13470_v6  ;;  %v7076_v50 = vld [vmem:[%s13167_s5 + $0x6] ss:$0 sm:$0xff] }
 0x6f3   :  { %9342 = vmatpush3.bf16.msra.mxu1 %v13537_v51  ;;  %9354 = vmatpush3.bf16.msra.mxu0 %v13538_v61  ;;  %v3422_v51 = vadd.f32 %v7076_v50, %v3417_v46 }
 0x6f4   :  { %9343 = vmatprep.subr.bf16.mxu1 %v13238_v15  ;;  %9355 = vmatprep.subr.bf16.mxu0 %v13238_v15  ;;  %v3514_v61 = vadd.f32 %v7076_v50, %v3513_v24 }
 0x6f5   :  { %8348 = vmatprep.mubr.msk.f32.mxu1 %vm9939_vm0, %v13239_v26  ;;  %8367 = vmatprep.mubr.msk.f32.mxu0 %vm9939_vm0, %v13239_v26 }
 0x6f7   :  { %9345 = vmatpush3.bf16.msra.mxu1 %v13539_v57  ;;  %9357 = vmatpush3.bf16.msra.mxu0 %v13540_v8 }
 0x6f8   :  { %9346 = vmatprep.subr.bf16.mxu1 %v13238_v15  ;;  %9358 = vmatprep.subr.bf16.mxu0 %v13238_v15 }
 0x6fb   :  { %9348 = vmatpush3.bf16.msra.mxu1 %v13541_v0  ;;  %9360 = vmatpush3.bf16.msra.mxu0 %v13542_v44 }
 0x6fc   :  { %9349 = vmatprep.subr.bf16.mxu1 %v13238_v15  ;;  %9361 = vmatprep.subr.bf16.mxu0 %v13238_v15 }
 0x6ff   :  { %9351 = vmatpush3.bf16.msra.mxu1 %v13543_v23  ;;  %9363 = vmatpush3.bf16.msra.mxu0 %v13544_v55 }
 0x700   :  { %9364 = vmatprep.subr.bf16.mxu1 %v13238_v15  ;;  %9376 = vmatprep.subr.bf16.mxu0 %v13238_v15 }
 0x70e   :  { %v3290_v9 = vpop.f32.mrb[38].mxu1  ;;  %v3382_v5 = vpop.f32.mrb[46].mxu0 }
 0x70f   :  { %v3291_v36 = vadd.f32 %v3290_v9, %v3220_v3  ;;  %v3383_v29 = vadd.f32 %v3382_v5, %v3312_v22  ;;  %v8274_v58 = vpop.f32.mrb[39].mxu1  ;;  %v8293_v2 = vpop.f32.mrb[47].mxu0  ;;  %v13553_v3 = vld [vmem:[#allocation122_spill] sm:$0xff]  ;;  %v13554_v22 = vld [vmem:[#allocation123_spill] sm:$0xff]  ;;  %v13555_v9 = vld [vmem:[#allocation124_spill] sm:$0xff] }
 0x710   :  { %v13556_v5 = vld [vmem:[#allocation125_spill] sm:$0xff]  ;;  %v13559_v58 = vld [vmem:[#allocation128_spill] sm:$0xff] }
 0x711   :  { %v3294_v42 = vmax.f32 %v3291_v36, 0.0  ;;  %v3386_v54 = vmax.f32 %v3383_v29, 0.0  ;;  %v13557_v36 = vld [vmem:[#allocation126_spill] sm:$0xff]  ;;  %v13558_v29 = vld [vmem:[#allocation127_spill] sm:$0xff]  ;;  %v13560_v2 = vld [vmem:[#allocation129_spill] sm:$0xff] }
 0x713   :  { %8349 = vmatmul.mubr.msk.f32.vlgmr.msra.gmra.mrb[42].mxu1 %vm1106_vm2, %v3294_v42  ;;  %8368 = vmatmul.mubr.msk.f32.vlgmr.msra.gmra.mrb[50].mxu0 %vm1106_vm2, %v3386_v54  ;;  %v3605_v42 = vmul.f32 %v3416_v37, %v13479_v45  ;;  %v3697_v54 = vmul.f32 %v3416_v37, %v13480_v59  ;;  %v13563_v37 = vld [vmem:[#allocation132_spill] sm:$0xff] }
 0x714   :  { %9366 = vmatpush3.bf16.msra.mxu1 %v13545_v4  ;;  %9378 = vmatpush3.bf16.msra.mxu0 %v13546_v56 }
 0x715   :  { %9367 = vmatprep.subr.bf16.mxu1 %v13238_v15  ;;  %9379 = vmatprep.subr.bf16.mxu0 %v13238_v15  ;;  %v3606_v4 = vadd.f32 %v7076_v50, %v3605_v42  ;;  %v3698_v56 = vadd.f32 %v7076_v50, %v3697_v54  ;;  %v13564_v50 = vld [vmem:[#allocation133_spill] sm:$0xff] }
 0x716   :  { %8386 = vmatprep.mubr.msk.f32.mxu1 %vm9939_vm0, %v13239_v26  ;;  %8405 = vmatprep.mubr.msk.f32.mxu0 %vm9939_vm0, %v13239_v26 }
 0x718   :  { %9369 = vmatpush3.bf16.msra.mxu1 %v13547_v34  ;;  %9381 = vmatpush3.bf16.msra.mxu0 %v13548_v47 }
 0x719   :  { %9370 = vmatprep.subr.bf16.mxu1 %v13238_v15  ;;  %9382 = vmatprep.subr.bf16.mxu0 %v13238_v15 }
 0x71c   :  { %9372 = vmatpush3.bf16.msra.mxu1 %v13549_v25  ;;  %9384 = vmatpush3.bf16.msra.mxu0 %v13550_v33 }
 0x71d   :  { %9373 = vmatprep.subr.bf16.mxu1 %v13238_v15  ;;  %9385 = vmatprep.subr.bf16.mxu0 %v13238_v15 }
 0x720   :  { %9375 = vmatpush3.bf16.msra.mxu1 %v13551_v12  ;;  %9387 = vmatpush3.bf16.msra.mxu0 %v13552_v14 }
 0x721   :  { %9388 = vmatprep.subr.bf16.mxu1 %v13238_v15  ;;  %9400 = vmatprep.subr.bf16.mxu0 %v13238_v15 }
 0x7c5   :  { %v3492_v57 = vpop.f32.mrb[40].mxu1  ;;  %v3584_v8 = vpop.f32.mrb[48].mxu0 }
 0x7c6   :  { %v3493_v0 = vadd.f32 %v3492_v57, %v3422_v51  ;;  %v3585_v44 = vadd.f32 %v3584_v8, %v3514_v61  ;;  %v8312_v23 = vpop.f32.mrb[41].mxu1  ;;  %v8331_v55 = vpop.f32.mrb[49].mxu0  ;;  %v13561_v51 = vld [vmem:[#allocation130_spill] sm:$0xff]  ;;  %v13562_v61 = vld [vmem:[#allocation131_spill] sm:$0xff] }
 0x7c7   :  { %v13565_v57 = vld [vmem:[#allocation134_spill] sm:$0xff]  ;;  %v13566_v8 = vld [vmem:[#allocation135_spill] sm:$0xff]  ;;  %v3802_v23 = vstv %s7081_s16  ;;  %s6982_s16 = sshll.u32 %s9941_s15, 4  ;;  %s6983_s16 = int_to_ptr.vmem [resolvable:$true] %s6982_s16 }
 0x7c8   :  { %v3496_v43 = vmax.f32 %v3493_v0, 0.0  ;;  %v3588_v52 = vmax.f32 %v3585_v44, 0.0  ;;  %v13567_v0 = vld [vmem:[#allocation136_spill] sm:$0xff]  ;;  %v13568_v44 = vld [vmem:[#allocation137_spill] sm:$0xff]  ;;  %v3803_v55 = vmul.f32 %v3802_v23, %v13469_v1  ;;  %p9903_p2 = scmp.lt.s32.totalorder %s6983_s16, %s6983_s16 }
 0x7ca   :  { %8387 = vmatmul.mubr.msk.f32.vlgmr.msra.gmra.mrb[44].mxu1 %vm1106_vm2, %v3496_v43  ;;  %8406 = vmatmul.mubr.msk.f32.vlgmr.msra.gmra.mrb[52].mxu0 %vm1106_vm2, %v3588_v52  ;;  %v3899_v43 = vmul.f32 %v3802_v23, %v13470_v6  ;;  %v7083_v52 = vld [vmem:[%s13167_s5 + $0x7] ss:$0 sm:$0xff] }
 0x7cb   :  { %9390 = vmatpush3.bf16.msra.mxu1 %v13553_v3  ;;  %9402 = vmatpush3.bf16.msra.mxu0 %v13554_v22  ;;  %v3808_v3 = vadd.f32 %v7083_v52, %v3803_v55 }
 0x7cc   :  { %9391 = vmatprep.subr.bf16.mxu1 %v13238_v15  ;;  %9403 = vmatprep.subr.bf16.mxu0 %v13238_v15  ;;  %v3900_v22 = vadd.f32 %v7083_v52, %v3899_v43 }
 0x7cd   :  { %8424 = vmatprep.mubr.msk.f32.mxu1 %vm9939_vm0, %v13239_v26  ;;  %8443 = vmatprep.mubr.msk.f32.mxu0 %vm9939_vm0, %v13239_v26 }
 0x7cf   :  { %9393 = vmatpush3.bf16.msra.mxu1 %v13555_v9  ;;  %9405 = vmatpush3.bf16.msra.mxu0 %v13556_v5 }
 0x7d0   :  { %9394 = vmatprep.subr.bf16.mxu1 %v13238_v15  ;;  %9406 = vmatprep.subr.bf16.mxu0 %v13238_v15 }
 0x7d3   :  { %9396 = vmatpush3.bf16.msra.mxu1 %v13557_v36  ;;  %9408 = vmatpush3.bf16.msra.mxu0 %v13558_v29 }
 0x7d4   :  { %9397 = vmatprep.subr.bf16.mxu1 %v13238_v15  ;;  %9409 = vmatprep.subr.bf16.mxu0 %v13238_v15 }
 0x7d7   :  { %9399 = vmatpush3.bf16.msra.mxu1 %v13559_v58  ;;  %9411 = vmatpush3.bf16.msra.mxu0 %v13560_v2 }
 0x7d8   :  { %9412 = vmatprep.subr.bf16.mxu1 %v13238_v15  ;;  %9424 = vmatprep.subr.bf16.mxu0 %v13238_v15 }
 0x7e6   :  { %v3676_v34 = vpop.f32.mrb[42].mxu1  ;;  %v3768_v47 = vpop.f32.mrb[50].mxu0 }
 0x7e7   :  { %v3677_v25 = vadd.f32 %v3676_v34, %v3606_v4  ;;  %v3769_v33 = vadd.f32 %v3768_v47, %v3698_v56  ;;  %v8350_v12 = vpop.f32.mrb[43].mxu1  ;;  %v8369_v14 = vpop.f32.mrb[51].mxu0  ;;  %v13569_v4 = vld [vmem:[#allocation138_spill] sm:$0xff]  ;;  %v13570_v56 = vld [vmem:[#allocation139_spill] sm:$0xff]  ;;  %v13571_v34 = vld [vmem:[#allocation140_spill] sm:$0xff] }
 0x7e8   :  { %v13572_v47 = vld [vmem:[#allocation141_spill] sm:$0xff]  ;;  %v13575_v12 = vld [vmem:[#allocation144_spill] sm:$0xff] }
 0x7e9   :  { %v3680_v46 = vmax.f32 %v3677_v25, 0.0  ;;  %v3772_v24 = vmax.f32 %v3769_v33, 0.0  ;;  %v13573_v25 = vld [vmem:[#allocation142_spill] sm:$0xff]  ;;  %v13574_v33 = vld [vmem:[#allocation143_spill] sm:$0xff]  ;;  %v13576_v14 = vld [vmem:[#allocation145_spill] sm:$0xff] }
 0x7eb   :  { %8425 = vmatmul.mubr.msk.f32.vlgmr.msra.gmra.mrb[46].mxu1 %vm1106_vm2, %v3680_v46  ;;  %8444 = vmatmul.mubr.msk.f32.vlgmr.msra.gmra.mrb[54].mxu0 %vm1106_vm2, %v3772_v24  ;;  %v3991_v46 = vmul.f32 %v3802_v23, %v13479_v45  ;;  %v4083_v24 = vmul.f32 %v3802_v23, %v13480_v59  ;;  %v13579_v23 = vld [vmem:[#allocation148_spill] sm:$0xff] }
 0x7ec   :  { %9414 = vmatpush3.bf16.msra.mxu1 %v13561_v51  ;;  %9426 = vmatpush3.bf16.msra.mxu0 %v13562_v61 }
 0x7ed   :  { %9415 = vmatprep.subr.bf16.mxu1 %v13238_v15  ;;  %9427 = vmatprep.subr.bf16.mxu0 %v13238_v15  ;;  %v3992_v51 = vadd.f32 %v7083_v52, %v3991_v46  ;;  %v4084_v61 = vadd.f32 %v7083_v52, %v4083_v24  ;;  %v13580_v52 = vld [vmem:[#allocation149_spill] sm:$0xff] }
 0x7ee   :  { %8462 = vmatprep.mubr.msk.f32.mxu1 %vm9939_vm0, %v13239_v26  ;;  %8481 = vmatprep.mubr.msk.f32.mxu0 %vm9939_vm0, %v13239_v26 }
 0x7f0   :  { %9417 = vmatpush3.bf16.msra.mxu1 %v13563_v37  ;;  %9429 = vmatpush3.bf16.msra.mxu0 %v13564_v50 }
 0x7f1   :  { %9418 = vmatprep.subr.bf16.mxu1 %v13238_v15  ;;  %9430 = vmatprep.subr.bf16.mxu0 %v13238_v15 }
 0x7f4   :  { %9420 = vmatpush3.bf16.msra.mxu1 %v13565_v57  ;;  %9432 = vmatpush3.bf16.msra.mxu0 %v13566_v8 }
 0x7f5   :  { %9421 = vmatprep.subr.bf16.mxu1 %v13238_v15  ;;  %9433 = vmatprep.subr.bf16.mxu0 %v13238_v15 }
 0x7f8   :  { %9423 = vmatpush3.bf16.msra.mxu1 %v13567_v0  ;;  %9435 = vmatpush3.bf16.msra.mxu0 %v13568_v44 }
 0x7f9   :  { %9436 = vmatprep.subr.bf16.mxu1 %v13238_v15  ;;  %9448 = vmatprep.subr.bf16.mxu0 %v13238_v15 }
 0x89d   :  { %v3878_v9 = vpop.f32.mrb[44].mxu1  ;;  %v3970_v5 = vpop.f32.mrb[52].mxu0 }
 0x89e   :  { %v3879_v36 = vadd.f32 %v3878_v9, %v3808_v3  ;;  %v3971_v29 = vadd.f32 %v3970_v5, %v3900_v22  ;;  %v8388_v58 = vpop.f32.mrb[45].mxu1  ;;  %v8407_v2 = vpop.f32.mrb[53].mxu0  ;;  %v13577_v3 = vld [vmem:[#allocation146_spill] sm:$0xff]  ;;  %v13578_v22 = vld [vmem:[#allocation147_spill] sm:$0xff] }
 0x89f   :  { %v13581_v9 = vld [vmem:[#allocation150_spill] sm:$0xff]  ;;  %v13582_v5 = vld [vmem:[#allocation151_spill] sm:$0xff]  ;;  %v4188_v58 = vstv %s7088_s20 }
 0x8a0   :  { %v3882_v42 = vmax.f32 %v3879_v36, 0.0  ;;  %v3974_v54 = vmax.f32 %v3971_v29, 0.0  ;;  %v13583_v36 = vld [vmem:[#allocation152_spill] sm:$0xff]  ;;  %v13584_v29 = vld [vmem:[#allocation153_spill] sm:$0xff]  ;;  %v4189_v2 = vmul.f32 %v4188_v58, %v13469_v1 }
 0x8a2   :  { %8463 = vmatmul.mubr.msk.f32.vlgmr.msra.gmra.mrb[48].mxu1 %vm1106_vm2, %v3882_v42  ;;  %8482 = vmatmul.mubr.msk.f32.vlgmr.msra.gmra.mrb[56].mxu0 %vm1106_vm2, %v3974_v54  ;;  %v4285_v42 = vmul.f32 %v4188_v58, %v13470_v6  ;;  %v7090_v54 = vld [vmem:[%s13167_s5 + $0x8] ss:$0 sm:$0xff] }
 0x8a3   :  { %9438 = vmatpush3.bf16.msra.mxu1 %v13569_v4  ;;  %9450 = vmatpush3.bf16.msra.mxu0 %v13570_v56  ;;  %v4194_v4 = vadd.f32 %v7090_v54, %v4189_v2 }
 0x8a4   :  { %9439 = vmatprep.subr.bf16.mxu1 %v13238_v15  ;;  %9451 = vmatprep.subr.bf16.mxu0 %v13238_v15  ;;  %v4286_v56 = vadd.f32 %v7090_v54, %v4285_v42 }
 0x8a5   :  { %8500 = vmatprep.mubr.msk.f32.mxu1 %vm9939_vm0, %v13239_v26  ;;  %8519 = vmatprep.mubr.msk.f32.mxu0 %vm9939_vm0, %v13239_v26 }
 0x8a7   :  { %9441 = vmatpush3.bf16.msra.mxu1 %v13571_v34  ;;  %9453 = vmatpush3.bf16.msra.mxu0 %v13572_v47 }
 0x8a8   :  { %9442 = vmatprep.subr.bf16.mxu1 %v13238_v15  ;;  %9454 = vmatprep.subr.bf16.mxu0 %v13238_v15 }
 0x8ab   :  { %9444 = vmatpush3.bf16.msra.mxu1 %v13573_v25  ;;  %9456 = vmatpush3.bf16.msra.mxu0 %v13574_v33 }
 0x8ac   :  { %9445 = vmatprep.subr.bf16.mxu1 %v13238_v15  ;;  %9457 = vmatprep.subr.bf16.mxu0 %v13238_v15 }
 0x8af   :  { %9447 = vmatpush3.bf16.msra.mxu1 %v13575_v12  ;;  %9459 = vmatpush3.bf16.msra.mxu0 %v13576_v14 }
 0x8b0   :  { %9460 = vmatprep.subr.bf16.mxu1 %v13238_v15  ;;  %9472 = vmatprep.subr.bf16.mxu0 %v13238_v15 }
 0x8be   :  { %v4062_v37 = vpop.f32.mrb[46].mxu1  ;;  %v4154_v50 = vpop.f32.mrb[54].mxu0 }
 0x8bf   :  { %v4063_v57 = vadd.f32 %v4062_v37, %v3992_v51  ;;  %v4155_v8 = vadd.f32 %v4154_v50, %v4084_v61  ;;  %v8426_v0 = vpop.f32.mrb[47].mxu1  ;;  %v8445_v44 = vpop.f32.mrb[55].mxu0  ;;  %v13585_v51 = vld [vmem:[#allocation154_spill] sm:$0xff]  ;;  %v13586_v61 = vld [vmem:[#allocation155_spill] sm:$0xff]  ;;  %v13587_v37 = vld [vmem:[#allocation156_spill] sm:$0xff] }
 0x8c0   :  { %v13588_v50 = vld [vmem:[#allocation157_spill] sm:$0xff]  ;;  %v13591_v0 = vld [vmem:[#allocation160_spill] sm:$0xff] }
 0x8c1   :  { %v4066_v55 = vmax.f32 %v4063_v57, 0.0  ;;  %v4158_v43 = vmax.f32 %v4155_v8, 0.0  ;;  %v13589_v57 = vld [vmem:[#allocation158_spill] sm:$0xff]  ;;  %v13590_v8 = vld [vmem:[#allocation159_spill] sm:$0xff]  ;;  %v13592_v44 = vld [vmem:[#allocation161_spill] sm:$0xff] }
 0x8c3   :  { %8501 = vmatmul.mubr.msk.f32.vlgmr.msra.gmra.mrb[50].mxu1 %vm1106_vm2, %v4066_v55  ;;  %8520 = vmatmul.mubr.msk.f32.vlgmr.msra.gmra.mrb[58].mxu0 %vm1106_vm2, %v4158_v43  ;;  %v4377_v55 = vmul.f32 %v4188_v58, %v13479_v45  ;;  %v4469_v43 = vmul.f32 %v4188_v58, %v13480_v59  ;;  %v13595_v58 = vld [vmem:[#allocation164_spill] sm:$0xff] }
 0x8c4   :  { %9462 = vmatpush3.bf16.msra.mxu1 %v13577_v3  ;;  %9474 = vmatpush3.bf16.msra.mxu0 %v13578_v22 }
 0x8c5   :  { %9463 = vmatprep.subr.bf16.mxu1 %v13238_v15  ;;  %9475 = vmatprep.subr.bf16.mxu0 %v13238_v15  ;;  %v4378_v3 = vadd.f32 %v7090_v54, %v4377_v55  ;;  %v4470_v22 = vadd.f32 %v7090_v54, %v4469_v43  ;;  %v13596_v54 = vld [vmem:[#allocation165_spill] sm:$0xff] }
 0x8c6   :  { %8538 = vmatprep.mubr.msk.f32.mxu1 %vm9939_vm0, %v13239_v26  ;;  %8557 = vmatprep.mubr.msk.f32.mxu0 %vm9939_vm0, %v13239_v26 }
 0x8c8   :  { %9465 = vmatpush3.bf16.msra.mxu1 %v13579_v23  ;;  %9477 = vmatpush3.bf16.msra.mxu0 %v13580_v52 }
 0x8c9   :  { %9466 = vmatprep.subr.bf16.mxu1 %v13238_v15  ;;  %9478 = vmatprep.subr.bf16.mxu0 %v13238_v15 }
 0x8cc   :  { %9468 = vmatpush3.bf16.msra.mxu1 %v13581_v9  ;;  %9480 = vmatpush3.bf16.msra.mxu0 %v13582_v5 }
 0x8cd   :  { %9469 = vmatprep.subr.bf16.mxu1 %v13238_v15  ;;  %9481 = vmatprep.subr.bf16.mxu0 %v13238_v15 }
 0x8d0   :  { %9471 = vmatpush3.bf16.msra.mxu1 %v13583_v36  ;;  %9483 = vmatpush3.bf16.msra.mxu0 %v13584_v29 }
 0x8d1   :  { %9484 = vmatprep.subr.bf16.mxu1 %v13238_v15  ;;  %9496 = vmatprep.subr.bf16.mxu0 %v13238_v15 }
 0x975   :  { %v4264_v34 = vpop.f32.mrb[48].mxu1  ;;  %v4356_v47 = vpop.f32.mrb[56].mxu0 }
 0x976   :  { %v4265_v25 = vadd.f32 %v4264_v34, %v4194_v4  ;;  %v4357_v33 = vadd.f32 %v4356_v47, %v4286_v56  ;;  %v8464_v12 = vpop.f32.mrb[49].mxu1  ;;  %v8483_v14 = vpop.f32.mrb[57].mxu0  ;;  %v13593_v4 = vld [vmem:[#allocation162_spill] sm:$0xff]  ;;  %v13594_v56 = vld [vmem:[#allocation163_spill] sm:$0xff] }
 0x977   :  { %v13597_v34 = vld [vmem:[#allocation166_spill] sm:$0xff]  ;;  %v13598_v47 = vld [vmem:[#allocation167_spill] sm:$0xff]  ;;  %v4574_v12 = vstv %s7095_s21 }
 0x978   :  { %v4268_v46 = vmax.f32 %v4265_v25, 0.0  ;;  %v4360_v24 = vmax.f32 %v4357_v33, 0.0  ;;  %v13599_v25 = vld [vmem:[#allocation168_spill] sm:$0xff]  ;;  %v13600_v33 = vld [vmem:[#allocation169_spill] sm:$0xff]  ;;  %v4575_v14 = vmul.f32 %v4574_v12, %v13469_v1 }
 0x97a   :  { %8539 = vmatmul.mubr.msk.f32.vlgmr.msra.gmra.mrb[52].mxu1 %vm1106_vm2, %v4268_v46  ;;  %8558 = vmatmul.mubr.msk.f32.vlgmr.msra.gmra.mrb[60].mxu0 %vm1106_vm2, %v4360_v24  ;;  %v4671_v46 = vmul.f32 %v4574_v12, %v13470_v6  ;;  %v7097_v24 = vld [vmem:[%s13167_s5 + $0x9] ss:$0 sm:$0xff] }
 0x97b   :  { %9486 = vmatpush3.bf16.msra.mxu1 %v13585_v51  ;;  %9498 = vmatpush3.bf16.msra.mxu0 %v13586_v61  ;;  %v4580_v51 = vadd.f32 %v7097_v24, %v4575_v14 }
 0x97c   :  { %9487 = vmatprep.subr.bf16.mxu1 %v13238_v15  ;;  %9499 = vmatprep.subr.bf16.mxu0 %v13238_v15  ;;  %v4672_v61 = vadd.f32 %v7097_v24, %v4671_v46 }
 0x97d   :  { %8576 = vmatprep.mubr.msk.f32.mxu1 %vm9939_vm0, %v13239_v26  ;;  %8595 = vmatprep.mubr.msk.f32.mxu0 %vm9939_vm0, %v13239_v26 }
 0x97f   :  { %9489 = vmatpush3.bf16.msra.mxu1 %v13587_v37  ;;  %9501 = vmatpush3.bf16.msra.mxu0 %v13588_v50 }
 0x980   :  { %9490 = vmatprep.subr.bf16.mxu1 %v13238_v15  ;;  %9502 = vmatprep.subr.bf16.mxu0 %v13238_v15 }
 0x983   :  { %9492 = vmatpush3.bf16.msra.mxu1 %v13589_v57  ;;  %9504 = vmatpush3.bf16.msra.mxu0 %v13590_v8 }
 0x984   :  { %9493 = vmatprep.subr.bf16.mxu1 %v13238_v15  ;;  %9505 = vmatprep.subr.bf16.mxu0 %v13238_v15 }
 0x987   :  { %9495 = vmatpush3.bf16.msra.mxu1 %v13591_v0  ;;  %9507 = vmatpush3.bf16.msra.mxu0 %v13592_v44 }
 0x988   :  { %9508 = vmatprep.subr.bf16.mxu1 %v13238_v15  ;;  %9520 = vmatprep.subr.bf16.mxu0 %v13238_v15 }
 0x996   :  { %v4448_v23 = vpop.f32.mrb[50].mxu1  ;;  %v4540_v52 = vpop.f32.mrb[58].mxu0 }
 0x997   :  { %v4449_v9 = vadd.f32 %v4448_v23, %v4378_v3  ;;  %v4541_v5 = vadd.f32 %v4540_v52, %v4470_v22  ;;  %v8502_v36 = vpop.f32.mrb[51].mxu1  ;;  %v8521_v29 = vpop.f32.mrb[59].mxu0  ;;  %v13601_v3 = vld [vmem:[#allocation170_spill] sm:$0xff]  ;;  %v13602_v22 = vld [vmem:[#allocation171_spill] sm:$0xff]  ;;  %v13603_v23 = vld [vmem:[#allocation172_spill] sm:$0xff] }
 0x998   :  { %v13604_v52 = vld [vmem:[#allocation173_spill] sm:$0xff]  ;;  %v13607_v36 = vld [vmem:[#allocation176_spill] sm:$0xff] }
 0x999   :  { %v4452_v2 = vmax.f32 %v4449_v9, 0.0  ;;  %v4544_v42 = vmax.f32 %v4541_v5, 0.0  ;;  %v13605_v9 = vld [vmem:[#allocation174_spill] sm:$0xff]  ;;  %v13606_v5 = vld [vmem:[#allocation175_spill] sm:$0xff]  ;;  %v13608_v29 = vld [vmem:[#allocation177_spill] sm:$0xff] }
 0x99b   :  { %8577 = vmatmul.mubr.msk.f32.vlgmr.msra.gmra.mrb[54].mxu1 %vm1106_vm2, %v4452_v2  ;;  %8596 = vmatmul.mubr.msk.f32.vlgmr.msra.gmra.mrb[62].mxu0 %vm1106_vm2, %v4544_v42  ;;  %v4763_v2 = vmul.f32 %v4574_v12, %v13479_v45  ;;  %v4855_v42 = vmul.f32 %v4574_v12, %v13480_v59  ;;  %v13611_v12 = vld [vmem:[#allocation48_spill] sm:$0xff] }
 0x99c   :  { %9510 = vmatpush3.bf16.msra.mxu1 %v13593_v4  ;;  %9522 = vmatpush3.bf16.msra.mxu0 %v13594_v56 }
 0x99d   :  { %9511 = vmatprep.subr.bf16.mxu1 %v13238_v15  ;;  %9523 = vmatprep.subr.bf16.mxu0 %v13238_v15  ;;  %v4764_v4 = vadd.f32 %v7097_v24, %v4763_v2  ;;  %v4856_v56 = vadd.f32 %v7097_v24, %v4855_v42  ;;  %v13612_v24 = vld [vmem:[#allocation50_spill] sm:$0xff] }
 0x99e   :  { %8614 = vmatprep.mubr.msk.f32.mxu1 %vm9939_vm0, %v13239_v26  ;;  %8633 = vmatprep.mubr.msk.f32.mxu0 %vm9939_vm0, %v13239_v26 }
 0x9a0   :  { %9513 = vmatpush3.bf16.msra.mxu1 %v13595_v58  ;;  %9525 = vmatpush3.bf16.msra.mxu0 %v13596_v54 }
 0x9a1   :  { %9514 = vmatprep.subr.bf16.mxu1 %v13238_v15  ;;  %9526 = vmatprep.subr.bf16.mxu0 %v13238_v15 }
 0x9a4   :  { %9516 = vmatpush3.bf16.msra.mxu1 %v13597_v34  ;;  %9528 = vmatpush3.bf16.msra.mxu0 %v13598_v47 }
 0x9a5   :  { %9517 = vmatprep.subr.bf16.mxu1 %v13238_v15  ;;  %9529 = vmatprep.subr.bf16.mxu0 %v13238_v15 }
 0x9a8   :  { %9519 = vmatpush3.bf16.msra.mxu1 %v13599_v25  ;;  %9531 = vmatpush3.bf16.msra.mxu0 %v13600_v33 }
 0x9a9   :  { %9532 = vmatprep.subr.bf16.mxu1 %v13238_v15  ;;  %9544 = vmatprep.subr.bf16.mxu0 %v13238_v15 }
 0xa4d   :  { %v4650_v37 = vpop.f32.mrb[52].mxu1  ;;  %v4742_v50 = vpop.f32.mrb[60].mxu0 }
 0xa4e   :  { %v4651_v57 = vadd.f32 %v4650_v37, %v4580_v51  ;;  %v4743_v8 = vadd.f32 %v4742_v50, %v4672_v61  ;;  %v8540_v0 = vpop.f32.mrb[53].mxu1  ;;  %v8559_v44 = vpop.f32.mrb[61].mxu0  ;;  %v13609_v51 = vld [vmem:[#allocation178_spill] sm:$0xff]  ;;  %v13610_v61 = vld [vmem:[#allocation179_spill] sm:$0xff]  ;;  %v13613_v37 = vld [vmem:[#allocation180_spill] sm:$0xff] }
 0xa4f   :  { %v13614_v50 = vld [vmem:[#allocation52_spill] sm:$0xff]  ;;  %v4960_v0 = vstv %s7102_s25 }
 0xa50   :  { %v4654_v55 = vmax.f32 %v4651_v57, 0.0  ;;  %v4746_v43 = vmax.f32 %v4743_v8, 0.0  ;;  %v13615_v57 = vld [vmem:[#allocation53_spill] sm:$0xff]  ;;  %v4961_v44 = vmul.f32 %v4960_v0, %v13469_v1 }
 0xa51   :  { %v13616_v8 = vld [vmem:[#allocation181_spill] sm:$0xff] }
 0xa52   :  { %8615 = vmatmul.mubr.msk.f32.vlgmr.msra.gmra.mrb[56].mxu1 %vm1106_vm2, %v4654_v55  ;;  %8634 = vmatmul.mubr.msk.f32.vlgmr.msra.gmra.mrb[64].mxu0 %vm1106_vm2, %v4746_v43  ;;  %v5057_v55 = vmul.f32 %v4960_v0, %v13470_v6  ;;  %v7104_v43 = vld [vmem:[%s13167_s5 + $0xa] ss:$0 sm:$0xff] }
 0xa53   :  { %9534 = vmatpush3.bf16.msra.mxu1 %v13601_v3  ;;  %9546 = vmatpush3.bf16.msra.mxu0 %v13602_v22  ;;  %v4966_v3 = vadd.f32 %v7104_v43, %v4961_v44 }
 0xa54   :  { %9535 = vmatprep.subr.bf16.mxu1 %v13238_v15  ;;  %9547 = vmatprep.subr.bf16.mxu0 %v13238_v15  ;;  %v5058_v22 = vadd.f32 %v7104_v43, %v5057_v55 }
 0xa55   :  { %8652 = vmatprep.mubr.msk.f32.mxu1 %vm9939_vm0, %v13239_v26  ;;  %8671 = vmatprep.mubr.msk.f32.mxu0 %vm9939_vm0, %v13239_v26 }
 0xa57   :  { %9537 = vmatpush3.bf16.msra.mxu1 %v13603_v23  ;;  %9549 = vmatpush3.bf16.msra.mxu0 %v13604_v52 }
 0xa58   :  { %9538 = vmatprep.subr.bf16.mxu1 %v13238_v15  ;;  %9550 = vmatprep.subr.bf16.mxu0 %v13238_v15 }
 0xa5b   :  { %9540 = vmatpush3.bf16.msra.mxu1 %v13605_v9  ;;  %9552 = vmatpush3.bf16.msra.mxu0 %v13606_v5 }
 0xa5c   :  { %9541 = vmatprep.subr.bf16.mxu1 %v13238_v15  ;;  %9553 = vmatprep.subr.bf16.mxu0 %v13238_v15 }
 0xa5f   :  { %9543 = vmatpush3.bf16.msra.mxu1 %v13607_v36  ;;  %9555 = vmatpush3.bf16.msra.mxu0 %v13608_v29 }
 0xa60   :  { %9556 = vmatprep.subr.bf16.mxu1 %v13238_v15  ;;  %9568 = vmatprep.subr.bf16.mxu0 %v13238_v15 }
 0xa6e   :  { %v4834_v58 = vpop.f32.mrb[54].mxu1  ;;  %v4926_v54 = vpop.f32.mrb[62].mxu0 }
 0xa6f   :  { %v4835_v34 = vadd.f32 %v4834_v58, %v4764_v4  ;;  %v4927_v47 = vadd.f32 %v4926_v54, %v4856_v56  ;;  %v8578_v25 = vpop.f32.mrb[55].mxu1  ;;  %v8597_v33 = vpop.f32.mrb[63].mxu0  ;;  %v13617_v4 = vld [vmem:[#allocation55_spill] sm:$0xff]  ;;  %v13618_v56 = vld [vmem:[#allocation56_spill] sm:$0xff]  ;;  %v13620_v54 = vld [vmem:[#allocation61_spill] sm:$0xff] }
 0xa70   :  { %v13619_v58 = vld [vmem:[#allocation60_spill] sm:$0xff]  ;;  %v13624_v33 = vld [vmem:[#allocation185_spill] sm:$0xff] }
 0xa71   :  { %v4838_v14 = vmax.f32 %v4835_v34, 0.0  ;;  %v4930_v46 = vmax.f32 %v4927_v47, 0.0  ;;  %v13621_v34 = vld [vmem:[#allocation182_spill] sm:$0xff]  ;;  %v13622_v47 = vld [vmem:[#allocation183_spill] sm:$0xff]  ;;  %v13623_v25 = vld [vmem:[#allocation184_spill] sm:$0xff] }
 0xa73   :  { %8653 = vmatmul.mubr.msk.f32.vlgmr.msra.gmra.mrb[58].mxu1 %vm1106_vm2, %v4838_v14  ;;  %8672 = vmatmul.mubr.msk.f32.vlgmr.msra.gmra.mrb[66].mxu0 %vm1106_vm2, %v4930_v46  ;;  %v5149_v14 = vmul.f32 %v4960_v0, %v13479_v45  ;;  %v5241_v46 = vmul.f32 %v4960_v0, %v13480_v59  ;;  %v13627_v0 = vld [vmem:[#allocation188_spill] sm:$0xff] }
 0xa74   :  { %9558 = vmatpush3.bf16.msra.mxu1 %v13609_v51  ;;  %9570 = vmatpush3.bf16.msra.mxu0 %v13610_v61 }
 0xa75   :  { %9559 = vmatprep.subr.bf16.mxu1 %v13238_v15  ;;  %9571 = vmatprep.subr.bf16.mxu0 %v13238_v15  ;;  %v5150_v51 = vadd.f32 %v7104_v43, %v5149_v14  ;;  %v5242_v61 = vadd.f32 %v7104_v43, %v5241_v46  ;;  %v13628_v43 = vld [vmem:[#allocation189_spill] sm:$0xff]  ;;  %v13635_v14 = vld [vmem:[#allocation190_spill] sm:$0xff] }
 0xa76   :  { %8690 = vmatprep.mubr.msk.f32.mxu1 %vm9939_vm0, %v13239_v26  ;;  %8709 = vmatprep.mubr.msk.f32.mxu0 %vm9939_vm0, %v13239_v26  ;;  %v13636_v46 = vld [vmem:[#allocation54_spill] sm:$0xff] }
 0xa78   :  { %9561 = vmatpush3.bf16.msra.mxu1 %v13611_v12  ;;  %9573 = vmatpush3.bf16.msra.mxu0 %v13612_v24 }
 0xa79   :  { %9562 = vmatprep.subr.bf16.mxu1 %v13238_v15  ;;  %9574 = vmatprep.subr.bf16.mxu0 %v13238_v15 }
 0xa7c   :  { %9564 = vmatpush3.bf16.msra.mxu1 %v13613_v37  ;;  %9576 = vmatpush3.bf16.msra.mxu0 %v13614_v50 }
 0xa7d   :  { %9565 = vmatprep.subr.bf16.mxu1 %v13238_v15  ;;  %9577 = vmatprep.subr.bf16.mxu0 %v13238_v15 }
 0xa80   :  { %9567 = vmatpush3.bf16.msra.mxu1 %v13615_v57  ;;  %9579 = vmatpush3.bf16.msra.mxu0 %v13616_v8 }
 0xa81   :  { %9580 = vmatprep.subr.bf16.mxu1 %v13238_v15  ;;  %9592 = vmatprep.subr.bf16.mxu0 %v13238_v15 }
 0xb25   :  { %v5036_v23 = vpop.f32.mrb[56].mxu1  ;;  %v5128_v52 = vpop.f32.mrb[64].mxu0 }
 0xb26   :  { %v5037_v9 = vadd.f32 %v5036_v23, %v4966_v3  ;;  %v5129_v5 = vadd.f32 %v5128_v52, %v5058_v22  ;;  %v8616_v36 = vpop.f32.mrb[57].mxu1  ;;  %v8635_v29 = vpop.f32.mrb[65].mxu0  ;;  %v13625_v3 = vld [vmem:[#allocation186_spill] sm:$0xff]  ;;  %v13626_v22 = vld [vmem:[#allocation187_spill] sm:$0xff]  ;;  %v5346_v23 = vstv %s7109_s29 }
 0xb27   :  { %v5347_v52 = vmul.f32 %v5346_v23, %v13469_v1 }
 0xb28   :  { %v5040_v2 = vmax.f32 %v5037_v9, 0.0  ;;  %v5132_v42 = vmax.f32 %v5129_v5, 0.0 }
 0xb2a   :  { %8691 = vmatmul.mubr.msk.f32.vlgmr.msra.gmra.mrb[60].mxu1 %vm1106_vm2, %v5040_v2  ;;  %8710 = vmatmul.mubr.msk.f32.vlgmr.msra.gmra.mrb[68].mxu0 %vm1106_vm2, %v5132_v42 }
 0xb2b   :  { %9582 = vmatpush3.bf16.msra.mxu1 %v13617_v4  ;;  %9594 = vmatpush3.bf16.msra.mxu0 %v13618_v56 }
 0xb2c   :  { %9583 = vmatprep.subr.bf16.mxu1 %v13238_v15  ;;  %9595 = vmatprep.subr.bf16.mxu0 %v13238_v15 }
 0xb2d   :  { %8728 = vmatprep.mubr.msk.f32.mxu1 %vm9939_vm0, %v13239_v26  ;;  %8747 = vmatprep.mubr.msk.f32.mxu0 %vm9939_vm0, %v13239_v26 }
 0xb2f   :  { %9585 = vmatpush3.bf16.msra.mxu1 %v13619_v58  ;;  %9597 = vmatpush3.bf16.msra.mxu0 %v13620_v54  ;;  %v13629_v58 = vld [vmem:[#allocation25_spill] sm:$0xff]  ;;  %v13630_v54 = vld [vmem:[#allocation36_spill] sm:$0xff] }
 0xb30   :  { %9586 = vmatprep.subr.bf16.mxu1 %v13238_v15  ;;  %9598 = vmatprep.subr.bf16.mxu0 %v13238_v15 }
 0xb33   :  { %9588 = vmatpush3.bf16.msra.mxu1 %v13621_v34  ;;  %9600 = vmatpush3.bf16.msra.mxu0 %v13622_v47  ;;  %v13631_v34 = vld [vmem:[#allocation45_spill] sm:$0xff]  ;;  %v13632_v47 = vld [vmem:[#allocation47_spill] sm:$0xff] }
 0xb34   :  { %9589 = vmatprep.subr.bf16.mxu1 %v13238_v15  ;;  %9601 = vmatprep.subr.bf16.mxu0 %v13238_v15 }
 0xb37   :  { %9591 = vmatpush3.bf16.msra.mxu1 %v13623_v25  ;;  %9603 = vmatpush3.bf16.msra.mxu0 %v13624_v33  ;;  %v13633_v25 = vld [vmem:[#allocation49_spill] sm:$0xff]  ;;  %v13634_v33 = vld [vmem:[#allocation51_spill] sm:$0xff] }
 0xb38   :  { %9604 = vmatprep.subr.bf16.mxu1 %v13238_v15  ;;  %9616 = vmatprep.subr.bf16.mxu0 %v13238_v15 }
 0xb46   :  { %v5220_v12 = vpop.f32.mrb[58].mxu1  ;;  %v5312_v24 = vpop.f32.mrb[66].mxu0 }
 0xb47   :  { %v5221_v37 = vadd.f32 %v5220_v12, %v5150_v51  ;;  %v5313_v50 = vadd.f32 %v5312_v24, %v5242_v61  ;;  %v8654_v57 = vpop.f32.mrb[59].mxu1  ;;  %v8673_v8 = vpop.f32.mrb[67].mxu0  ;;  %v5535_v51 = vmul.f32 %v5346_v23, %v13479_v45  ;;  %v5627_v61 = vmul.f32 %v5346_v23, %v13480_v59 }
 0xb49   :  { %v5224_v44 = vmax.f32 %v5221_v37, 0.0  ;;  %v5316_v55 = vmax.f32 %v5313_v50, 0.0 }
 0xb4b   :  { %8729 = vmatmul.mubr.msk.f32.vlgmr.msra.gmra.mrb[62].mxu1 %vm1106_vm2, %v5224_v44  ;;  %8748 = vmatmul.mubr.msk.f32.vlgmr.msra.gmra.mrb[70].mxu0 %vm1106_vm2, %v5316_v55 }
 0xb4c   :  { %9606 = vmatpush3.bf16.msra.mxu1 %v13625_v3  ;;  %9618 = vmatpush3.bf16.msra.mxu0 %v13626_v22 }
 0xb4d   :  { %9607 = vmatprep.subr.bf16.mxu1 %v13238_v15  ;;  %9619 = vmatprep.subr.bf16.mxu0 %v13238_v15 }
 0xb4e   :  { %8766 = vmatprep.mubr.msk.f32.mxu1 %vm9939_vm0, %v13239_v26  ;;  %8785 = vmatprep.mubr.msk.f32.mxu0 %vm9939_vm0, %v13239_v26 }
 0xb50   :  { %9609 = vmatpush3.bf16.msra.mxu1 %v13627_v0  ;;  %9621 = vmatpush3.bf16.msra.mxu0 %v13628_v43  ;;  %v13637_v0 = vld [vmem:[#allocation57_spill] sm:$0xff]  ;;  %v13638_v43 = vld [vmem:[#allocation191_spill] sm:$0xff] }
 0xb51   :  { %9610 = vmatprep.subr.bf16.mxu1 %v13238_v15  ;;  %9622 = vmatprep.subr.bf16.mxu0 %v13238_v15 }
 0xb54   :  { %9612 = vmatpush3.bf16.msra.mxu1 %v12108_v62  ;;  %9624 = vmatpush3.bf16.msra.mxu0 %v12111_v11  ;;  %v5443_v62 = vmul.f32 %v5346_v23, %v13470_v6  ;;  %v7111_v11 = vld [vmem:[%s13167_s5 + $0xb] ss:$0 sm:$0xff]  ;;  %v13639_v23 = vld [vmem:[#allocation192_spill] sm:$0xff] }
 0xb55   :  { %9613 = vmatprep.subr.bf16.mxu1 %v13238_v15  ;;  %9625 = vmatprep.subr.bf16.mxu0 %v13238_v15  ;;  %v5352_v9 = vadd.f32 %v7111_v11, %v5347_v52  ;;  %v5536_v12 = vadd.f32 %v7111_v11, %v5535_v51  ;;  %v5628_v24 = vadd.f32 %v7111_v11, %v5627_v61  ;;  %v13640_v52 = vld [vmem:[#allocation193_spill] sm:$0xff] }
 0xb56   :  { %v5444_v5 = vadd.f32 %v7111_v11, %v5443_v62  ;;  %v13641_v62 = vld [vmem:[#allocation39_spill] sm:$0xff]  ;;  %v13642_v11 = vld [vmem:[#allocation38_spill] sm:$0xff] }
 0xb58   :  { %9615 = vmatpush3.bf16.msra.mxu1 %v12117_v41  ;;  %9627 = vmatpush3.bf16.msra.mxu0 %v12130_v19 }
 0xb59   :  { %9628 = vmatprep.subr.bf16.mxu1 %v13238_v15  ;;  %9640 = vmatprep.subr.bf16.mxu0 %v13238_v15 }
 0xbfd   :  { %v5422_v36 = vpop.f32.mrb[60].mxu1  ;;  %v5514_v41 = vpop.f32.mrb[68].mxu0 }
 0xbfe   :  { %v5423_v29 = vadd.f32 %v5422_v36, %v5352_v9  ;;  %v5515_v19 = vadd.f32 %v5514_v41, %v5444_v5  ;;  %v8692_v2 = vpop.f32.mrb[61].mxu1  ;;  %v8711_v42 = vpop.f32.mrb[69].mxu0  ;;  %v13643_v9 = vld [vmem:[#allocation40_spill] sm:$0xff]  ;;  %v13644_v5 = vld [vmem:[#allocation194_spill] sm:$0xff]  ;;  %v5732_v36 = vstv %s7116_s22 }
 0xbff   :  { %v5733_v41 = vmul.f32 %v5732_v36, %v13469_v1 }
 0xc00   :  { %v5426_v4 = vmax.f32 %v5423_v29, 0.0  ;;  %v5518_v56 = vmax.f32 %v5515_v19, 0.0  ;;  %v5829_v29 = vmul.f32 %v5732_v36, %v13470_v6  ;;  %v7118_v19 = vld [vmem:[%s13167_s5 + $0xc] ss:$0 sm:$0xff] }
 0xc01   :  { %v5738_v2 = vadd.f32 %v7118_v19, %v5733_v41  ;;  %v6865_v41 = vld [vmem:[#allocation12 + $0x20] sm:$0xff] }
 0xc02   :  { %8767 = vmatmul.mubr.msk.f32.vlgmr.msra.gmra.mrb[64].mxu1 %vm1106_vm2, %v5426_v4  ;;  %8786 = vmatmul.mubr.msk.f32.vlgmr.msra.gmra.mrb[72].mxu0 %vm1106_vm2, %v5518_v56  ;;  %v5830_v42 = vadd.f32 %v7118_v19, %v5829_v29 }
 0xc03   :  { %9630 = vmatpush3.bf16.msra.mxu1 %v13629_v58  ;;  %9642 = vmatpush3.bf16.msra.mxu0 %v13630_v54 }
 0xc04   :  { %9631 = vmatprep.subr.bf16.mxu1 %v13238_v15  ;;  %9643 = vmatprep.subr.bf16.mxu0 %v13238_v15 }
 0xc05   :  { %8804 = vmatprep.mubr.msk.f32.mxu1 %vm9939_vm0, %v13239_v26  ;;  %8823 = vmatprep.mubr.msk.f32.mxu0 %vm9939_vm0, %v13239_v26 }
 0xc07   :  { %9633 = vmatpush3.bf16.msra.mxu1 %v13631_v34  ;;  %9645 = vmatpush3.bf16.msra.mxu0 %v13632_v47 }
 0xc08   :  { %9634 = vmatprep.subr.bf16.mxu1 %v13238_v15  ;;  %9646 = vmatprep.subr.bf16.mxu0 %v13238_v15 }
 0xc0b   :  { %9636 = vmatpush3.bf16.msra.mxu1 %v13633_v25  ;;  %9648 = vmatpush3.bf16.msra.mxu0 %v13634_v33 }
 0xc0c   :  { %9637 = vmatprep.subr.bf16.mxu1 %v13238_v15  ;;  %9649 = vmatprep.subr.bf16.mxu0 %v13238_v15 }
 0xc0f   :  { %9639 = vmatpush3.bf16.msra.mxu1 %v13635_v14  ;;  %9651 = vmatpush3.bf16.msra.mxu0 %v13636_v46  ;;  %v13645_v14 = vld [vmem:[#allocation195_spill] sm:$0xff]  ;;  %v13646_v46 = vld [vmem:[#allocation196_spill] sm:$0xff] }
 0xc10   :  { %9652 = vmatprep.subr.bf16.mxu1 %v13238_v15  ;;  %9664 = vmatprep.subr.bf16.mxu0 %v13238_v15 }
 0xc1e   :  { %v5606_v37 = vpop.f32.mrb[62].mxu1  ;;  %v5698_v50 = vpop.f32.mrb[70].mxu0 }
 0xc1f   :  { %v5607_v57 = vadd.f32 %v5606_v37, %v5536_v12  ;;  %v5699_v8 = vadd.f32 %v5698_v50, %v5628_v24  ;;  %v8730_v44 = vpop.f32.mrb[63].mxu1  ;;  %v8749_v55 = vpop.f32.mrb[71].mxu0 }
 0xc21   :  { %v5610_v3 = vmax.f32 %v5607_v57, 0.0  ;;  %v5702_v22 = vmax.f32 %v5699_v8, 0.0 }
 0xc23   :  { %8805 = vmatmul.mubr.msk.f32.vlgmr.msra.gmra.mrb[66].mxu1 %vm1106_vm2, %v5610_v3  ;;  %8824 = vmatmul.mubr.msk.f32.vlgmr.msra.gmra.mrb[74].mxu0 %vm1106_vm2, %v5702_v22 }
 0xc24   :  { %9654 = vmatpush3.bf16.msra.mxu1 %v13637_v0  ;;  %9666 = vmatpush3.bf16.msra.mxu0 %v13638_v43 }
 0xc25   :  { %9655 = vmatprep.subr.bf16.mxu1 %v13238_v15  ;;  %9667 = vmatprep.subr.bf16.mxu0 %v13238_v15 }
 0xc26   :  { %8842 = vmatprep.mubr.msk.f32.mxu1 %vm9939_vm0, %v13239_v26  ;;  %8861 = vmatprep.mubr.msk.f32.mxu0 %vm9939_vm0, %v13239_v26 }
 0xc28   :  { %9657 = vmatpush3.bf16.msra.mxu1 %v13639_v23  ;;  %9669 = vmatpush3.bf16.msra.mxu0 %v13640_v52  ;;  %v6863_v52 = vld [vmem:[#allocation12 + $0x10] sm:$0xff] }
 0xc29   :  { %9658 = vmatprep.subr.bf16.mxu1 %v13238_v15  ;;  %9670 = vmatprep.subr.bf16.mxu0 %v13238_v15 }
 0xc2c   :  { %9660 = vmatpush3.bf16.msra.mxu1 %v13641_v62  ;;  %9672 = vmatpush3.bf16.msra.mxu0 %v13642_v11 }
 0xc2d   :  { %9661 = vmatprep.subr.bf16.mxu1 %v13238_v15  ;;  %9673 = vmatprep.subr.bf16.mxu0 %v13238_v15 }
 0xc30   :  { %9663 = vmatpush3.bf16.msra.mxu1 %v13643_v9  ;;  %9675 = vmatpush3.bf16.msra.mxu0 %v13644_v5 }
 0xc31   :  { %9676 = vmatprep.subr.bf16.mxu1 %v13238_v15  ;;  %9688 = vmatprep.subr.bf16.mxu0 %v13238_v15 }
 0xcd5   :  { %v5808_v4 = vpop.f32.mrb[64].mxu1  ;;  %v5900_v56 = vpop.f32.mrb[72].mxu0 }
 0xcd6   :  { %v5809_v58 = vadd.f32 %v5808_v4, %v5738_v2  ;;  %v5901_v54 = vadd.f32 %v5900_v56, %v5830_v42  ;;  %v8768_v34 = vpop.f32.mrb[65].mxu1  ;;  %v8787_v47 = vpop.f32.mrb[73].mxu0  ;;  %v6868_v2 = vld [vmem:[#allocation12 + $0x38] sm:$0xff]  ;;  %v6504_v4 = vstv %s7130_s11 }
 0xcd7   :  { %v6505_v56 = vmul.f32 %v6504_v4, %v13469_v1 }
 0xcd8   :  { %v5812_v25 = vmax.f32 %v5809_v58, 0.0  ;;  %v5904_v33 = vmax.f32 %v5901_v54, 0.0  ;;  %v6601_v58 = vmul.f32 %v6504_v4, %v13470_v6  ;;  %v7132_v54 = vld [vmem:[%s13167_s5 + $0xe] ss:$0 sm:$0xff] }
 0xcd9   :  { %v6510_v34 = vadd.f32 %v7132_v54, %v6505_v56 }
 0xcda   :  { %8843 = vmatmul.mubr.msk.f32.vlgmr.msra.gmra.mrb[68].mxu1 %vm1106_vm2, %v5812_v25  ;;  %8862 = vmatmul.mubr.msk.f32.vlgmr.msra.gmra.mrb[76].mxu0 %vm1106_vm2, %v5904_v33  ;;  %v6602_v47 = vadd.f32 %v7132_v54, %v6601_v58 }
 0xcdb   :  { %9678 = vmatpush3.bf16.msra.mxu1 %v12316_v28  ;;  %9690 = vmatpush3.bf16.msra.mxu0 %v12321_v53  ;;  %v5921_v53 = vmul.f32 %v5732_v36, %v13479_v45  ;;  %v6013_v28 = vmul.f32 %v5732_v36, %v13480_v59 }
 0xcdc   :  { %9679 = vmatprep.subr.bf16.mxu1 %v13238_v15  ;;  %9691 = vmatprep.subr.bf16.mxu0 %v13238_v15 }
 0xcdd   :  { %8880 = vmatprep.mubr.msk.f32.mxu1 %vm9939_vm0, %v13239_v26  ;;  %8899 = vmatprep.mubr.msk.f32.mxu0 %vm9939_vm0, %v13239_v26  ;;  %v5922_v51 = vadd.f32 %v7118_v19, %v5921_v53 }
 0xcdf   :  { %9681 = vmatpush3.bf16.msra.mxu1 %v13645_v14  ;;  %9693 = vmatpush3.bf16.msra.mxu0 %v13646_v46 }
 0xce0   :  { %9682 = vmatprep.subr.bf16.mxu1 %v13238_v15  ;;  %9694 = vmatprep.subr.bf16.mxu0 %v13238_v15 }
 0xce3   :  { %9684 = vmatpush3.bf16.msra.mxu1 %v12347_v18  ;;  %9696 = vmatpush3.bf16.msra.mxu0 %v12352_v20  ;;  %v6014_v18 = vadd.f32 %v7118_v19, %v6013_v28  ;;  %v6867_v19 = vld [vmem:[#allocation12 + $0x30] sm:$0xff] }
 0xce4   :  { %9685 = vmatprep.subr.bf16.mxu1 %v13238_v15  ;;  %9697 = vmatprep.subr.bf16.mxu0 %v13238_v15  ;;  %v9760_v42 = vpack.c.bf16 %v6868_v2, %v6867_v19 }
 0xce7   :  { %9687 = vmatpush3.bf16.msra.mxu1 %v12358_v49  ;;  %9699 = vmatpush3.bf16.msra.mxu0 %v12364_v10  ;;  %v6118_v10 = vstv %s7123_s28 }
 0xce8   :  { %9700 = vmatprep.subr.bf16.mxu1 %v13238_v15  ;;  %9712 = vmatprep.subr.bf16.mxu0 %v13238_v15 }
 0xcf6   :  { %v5992_v61 = vpop.f32.mrb[66].mxu1  ;;  %v6084_v20 = vpop.f32.mrb[74].mxu0 }
 0xcf7   :  { %v5993_v12 = vadd.f32 %v5992_v61, %v5922_v51  ;;  %v6085_v24 = vadd.f32 %v6084_v20, %v6014_v18  ;;  %v8806_v37 = vpop.f32.mrb[67].mxu1  ;;  %v8825_v50 = vpop.f32.mrb[75].mxu0 }
 0xcf9   :  { %v5996_v57 = vmax.f32 %v5993_v12, 0.0  ;;  %v6088_v49 = vmax.f32 %v6085_v24, 0.0 }
 0xcfb   :  { %8881 = vmatmul.mubr.msk.f32.vlgmr.msra.gmra.mrb[70].mxu1 %vm1106_vm2, %v5996_v57  ;;  %8900 = vmatmul.mubr.msk.f32.vlgmr.msra.gmra.mrb[78].mxu0 %vm1106_vm2, %v6088_v49 }
 0xcfc   :  { %9702 = vmatpush3.bf16.msra.mxu1 %v12390_v48  ;;  %9714 = vmatpush3.bf16.msra.mxu0 %v12396_v21  ;;  %v6119_v48 = vmul.f32 %v6118_v10, %v13469_v1  ;;  %v6215_v21 = vmul.f32 %v6118_v10, %v13470_v6  ;;  %v6693_v1 = vmul.f32 %v6504_v4, %v13479_v45 }
 0xcfd   :  { %9703 = vmatprep.subr.bf16.mxu1 %v13238_v15  ;;  %9715 = vmatprep.subr.bf16.mxu0 %v13238_v15  ;;  %v6785_v6 = vmul.f32 %v6504_v4, %v13480_v59 }
 0xcfe   :  { %8918 = vmatprep.mubr.msk.f32.mxu1 %vm9939_vm0, %v13239_v26  ;;  %8937 = vmatprep.mubr.msk.f32.mxu0 %vm9939_vm0, %v13239_v26  ;;  %v6694_v61 = vadd.f32 %v7132_v54, %v6693_v1 }
 0xcff   :  { %v6786_v20 = vadd.f32 %v7132_v54, %v6785_v6 }
 0xd00   :  { %9705 = vmatpush3.bf16.msra.mxu1 %v12401_v60  ;;  %9717 = vmatpush3.bf16.msra.mxu0 %v12408_v35  ;;  %v7125_v60 = vld [vmem:[%s13167_s5 + $0xd] ss:$0 sm:$0xff] }
 0xd01   :  { %9706 = vmatprep.subr.bf16.mxu1 %v13238_v15  ;;  %9718 = vmatprep.subr.bf16.mxu0 %v13238_v15  ;;  %v6124_v35 = vadd.f32 %v7125_v60, %v6119_v48 }
 0xd04   :  { %9708 = vmatpush3.bf16.msra.mxu1 %v12416_v31  ;;  %9720 = vmatpush3.bf16.msra.mxu0 %v12422_v30  ;;  %v6216_v31 = vadd.f32 %v7125_v60, %v6215_v21 }
 0xd05   :  { %9709 = vmatprep.subr.bf16.mxu1 %v13238_v15  ;;  %9721 = vmatprep.subr.bf16.mxu0 %v13238_v15 }
 0xd08   :  { %9711 = vmatpush3.bf16.msra.mxu1 %v12426_v38  ;;  %9723 = vmatpush3.bf16.msra.mxu0 %v12432_v40 }
 0xd09   :  { %9724 = vmatprep.subr.bf16.mxu1 %v13238_v15  ;;  %9736 = vmatprep.subr.bf16.mxu0 %v13238_v15 }
 0xdad   :  { %v6194_v30 = vpop.f32.mrb[68].mxu1  ;;  %v6286_v38 = vpop.f32.mrb[76].mxu0 }
 0xdae   :  { %v6195_v8 = vadd.f32 %v6194_v30, %v6124_v35  ;;  %v6287_v40 = vadd.f32 %v6286_v38, %v6216_v31  ;;  %v8844_v44 = vpop.f32.mrb[69].mxu1  ;;  %v8863_v55 = vpop.f32.mrb[77].mxu0 }
 0xdb0   :  { %v6198_v3 = vmax.f32 %v6195_v8, 0.0  ;;  %v6290_v22 = vmax.f32 %v6287_v40, 0.0 }
 0xdb2   :  { %8919 = vmatmul.mubr.msk.f32.vlgmr.msra.gmra.mrb[72].mxu1 %vm1106_vm2, %v6198_v3  ;;  %8938 = vmatmul.mubr.msk.f32.vlgmr.msra.gmra.mrb[80].mxu0 %vm1106_vm2, %v6290_v22 }
 0xdb3   :  { %9726 = vmatpush3.bf16.msra.mxu1 %v12450_v13  ;;  %9738 = vmatpush3.bf16.msra.mxu0 %v12456_v7  ;;  %v6861_v13 = vld [vmem:[#allocation12] sm:$0xff]  ;;  %v6862_v7 = vld [vmem:[#allocation12 + $0x8] sm:$0xff] }
 0xdb4   :  { %9727 = vmatprep.subr.bf16.mxu1 %v13238_v15  ;;  %9739 = vmatprep.subr.bf16.mxu0 %v13238_v15  ;;  %v9748_v0 = vpack.c.bf16 %v6862_v7, %v6861_v13 }
 0xdb5   :  { %8956 = vmatprep.mubr.msk.f32.mxu1 %vm9939_vm0, %v13239_v26  ;;  %8975 = vmatprep.mubr.msk.f32.mxu0 %vm9939_vm0, %v13239_v26  ;;  %v6307_v26 = vmul.f32 %v6118_v10, %v13479_v45  ;;  %v7137_v45 = vld [vmem:[%s13169_s7] ss:$0 sm:$0xff]  ;;  %s9898_s7 = scalar_lea.vmem %s6983_s16, 512 }
 0xdb6   :  { %p9899_p1 = scmp.ne.s32.totalorder %s6983_s16, %s9898_s7  ;;  %p9904_p3 = scmp.lt.s32.totalorder %s9898_s7, %s9898_s7 }
 0xdb7   :  { %9729 = vmatpush3.bf16.msra.mxu1 %v12461_v63  ;;  %9741 = vmatpush3.bf16.msra.mxu0 %v12468_v17  ;;  %v6399_v63 = vmul.f32 %v6118_v10, %v13480_v59  ;;  %v6308_v17 = vadd.f32 %v7125_v60, %v6307_v26 }
 0xdb8   :  { %9730 = vmatprep.subr.bf16.mxu1 %v13238_v15  ;;  %9742 = vmatprep.subr.bf16.mxu0 %v13238_v15  ;;  %p9905_p4 = por %p9904_p3, %p9903_p2 }
 0xdb9   :  { %v6400_v43 = vadd.f32 %v7125_v60, %v6399_v63 }
 0xdba   :  { %p9906_p5 = pnand %p9905_p4, %p9899_p1 }
 0xdbb   :  { %9732 = vmatpush3.bf16.msra.mxu1 %v12476_v27  ;;  %9744 = vmatpush3.bf16.msra.mxu0 %v12482_v16  ;;  %v6864_v16 = vld [vmem:[#allocation12 + $0x18] sm:$0xff] }
 0xdbc   :  { %9733 = vmatprep.subr.bf16.mxu1 %v13238_v15  ;;  %9745 = vmatprep.subr.bf16.mxu0 %v13238_v15 }
 0xdbf   :  { %9735 = vmatpush3.bf16.msra.mxu1 %v12484_v39  ;;  %9747 = vmatpush3.bf16.msra.mxu0 %v12486_v32  ;;  %v9752_v39 = vpack.c.bf16 %v6864_v16, %v6863_v52  ;;  %v6866_v32 = vld [vmem:[#allocation12 + $0x28] sm:$0xff] }
 0xdc0   :  { %9749 = vmatprep.subr.bf16.mxu1 %v9748_v0  ;;  %v9756_v29 = vpack.c.bf16 %v6866_v32, %v6865_v41 }
 0xdce   :  { %v6378_v23 = vpop.f32.mrb[70].mxu1  ;;  %v6470_v27 = vpop.f32.mrb[78].mxu0 }
 0xdcf   :  { %v6379_v62 = vadd.f32 %v6378_v23, %v6308_v17  ;;  %v6471_v11 = vadd.f32 %v6470_v27, %v6400_v43  ;;  %v8882_v9 = vpop.f32.mrb[71].mxu1  ;;  %v8901_v15 = vpop.f32.mrb[79].mxu0 }
 0xdd1   :  { %v6382_v5 = vmax.f32 %v6379_v62, 0.0  ;;  %v6474_v36 = vmax.f32 %v6471_v11, 0.0 }
 0xdd3   :  { %8957 = vmatmul.mubr.msk.f32.vlgmr.msra.gmra.mrb[74].mxu1 %vm1106_vm2, %v6382_v5  ;;  %8976 = vmatmul.mubr.msk.f32.vlgmr.msra.gmra.mrb[82].mxu0 %vm1106_vm2, %v6474_v36 }
 0xdd4   :  { %9751 = vmatpush3.bf16.msra.mxu1 %v9748_v0 }
 0xdd5   :  { %9753 = vmatprep.subr.bf16.mxu1 %v9752_v39 }
 0xdd8   :  { %9755 = vmatpush3.bf16.msra.mxu1 %v9752_v39 }
 0xdd9   :  { %9757 = vmatprep.subr.bf16.mxu1 %v9756_v29 }
 0xddc   :  { %9759 = vmatpush3.bf16.msra.mxu1 %v9756_v29 }
 0xddd   :  { %9761 = vmatprep.subr.bf16.mxu1 %v9760_v42 }
 0xde0   :  { %9763 = vmatpush3.bf16.msra.mxu1 %v9760_v42 }
 0xe85   :  { %v6580_v25 = vpop.f32.mrb[72].mxu1  ;;  %v6672_v33 = vpop.f32.mrb[80].mxu0 }
 0xe86   :  { %v6581_v14 = vadd.f32 %v6580_v25, %v6510_v34  ;;  %v6673_v46 = vadd.f32 %v6672_v33, %v6602_v47  ;;  %v8920_v53 = vpop.f32.mrb[73].mxu1  ;;  %v8939_v28 = vpop.f32.mrb[81].mxu0 }
 0xe88   :  { %v6584_v51 = vmax.f32 %v6581_v14, 0.0  ;;  %v6676_v18 = vmax.f32 %v6673_v46, 0.0 }
 0xe8a   :  { %8994 = vmatprep.mubr.msk.f32.mxu1 %vm1106_vm2, %v6584_v51 }
 0xe8b   :  { %8995 = vmatmul.mubr.msk.f32.vlgmr.msra.gmra.mrb[76].mxu1 %vm1106_vm2, %v6676_v18 }
 0xea6   :  { %v6764_v12 = vpop.f32.mrb[74].mxu1  ;;  %v6856_v24 = vpop.f32.mrb[82].mxu0 }
 0xea7   :  { %v6765_v37 = vadd.f32 %v6764_v12, %v6694_v61  ;;  %v6857_v50 = vadd.f32 %v6856_v24, %v6786_v20  ;;  %v8958_v57 = vpop.f32.mrb[75].mxu1  ;;  %v8977_v49 = vpop.f32.mrb[83].mxu0 }
 0xea9   :  { %v6768_v10 = vmax.f32 %v6765_v37, 0.0  ;;  %v6860_v48 = vmax.f32 %v6857_v50, 0.0 }
 0xeab   :  { %8997 = vmatprep.mubr.msk.f32.mxu1 %vm1106_vm2, %v6768_v10 }
 0xeac   :  { %8998 = vmatmul.mubr.msk.f32.gmra.mrb[78].mxu1 %vm1106_vm2, %v6860_v48 }
 0xf5e   :  { %v8996_v21 = vpop.f32.mrb[76].mxu1 }
 0xf5f   :  { %v6960_v59 = vadd.f32 %v8996_v21, %v7137_v45  ;;  %v6954_v60 = vpop.f32.mrb[77].mxu1 }
 0xf60   :  { %v6955_v35 = vadd.f32 %v7137_v45, %v6954_v60 }
 0xf61   :  { %6974 = vst.msk [vmem:[#allocation13 + $0x8] sm:$0xff] %vm1106_vm2, %v6960_v59 }
 0xf62   :  { %6973 = vst.msk [vmem:[#allocation13] sm:$0xff] %vm1106_vm2, %v6955_v35 }
 0xf7f   :  { %v8999_v31 = vpop.f32.mrb[78].mxu1 }
 0xf80   :  { %v6970_v30 = vadd.f32 %v8999_v31, %v7137_v45  ;;  %v6964_v38 = vpop.f32.mrb[79].mxu1 }
 0xf81   :  { %v6965_v8 = vadd.f32 %v7137_v45, %v6964_v38 }
 0xf82   :  { %6976 = vst.msk [vmem:[#allocation13 + $0x18] sm:$0xff] %vm1106_vm2, %v6970_v30 }
 0xf83   :  { %6975 = vst.msk [vmem:[#allocation13 + $0x10] sm:$0xff] %vm1106_vm2, %v6965_v8 }
 0xf84   :  { %9909 = shalt.err (!%p9906_p5)
}
 0xf85   :  { %s9910_s20 = scalar_lea.hbm %s13170_s8, 512 }
 0xf86   :  { %p9911_p6 = scmp.ne.s32.totalorder %s13170_s8, %s9910_s20  ;;  %p9914_p7 = scmp.lt.u32.totalorder %s9910_s20, %s13170_s8 }
 0xf88   :  { %p9916_p8 = pnand %p9914_p7, %p9911_p6 }
 0xf8a   :  { %9919 = shalt.err (!%p9916_p8)
}
 0xf8b   :  { %6988 = dma.vmem_to_hbm [thread:$0]  %s6983_s16, 512, %s13170_s8, [#allocation4], %s9932_s17, %s9932_s17, %s9933_s18  }
 0xf8c   :  { %9928 = dma.done.wait [#allocation4], 512  }
 0xf8d   :  { %9929 = vsyncadd [#allocation4], 4294966784 }
 0xf8e   :  { %6992 = vsyncpa [#allocation3], 1 }
 0xf8f   :  { %6993 = vsyncpa [#allocation8], 1 }
 0xf90   :  { %6994 = vsyncpa [#allocation11], 1 }
 0xf91   :  { %6995 = vsyncpa [#allocation4], 1 }
 0xf92   :  { %6996 = vsyncpa [#allocation5], 1 }

</bundles_post_ra>
